<compile_context>
chip_gen: v7x
topology: tpu7x:2x2x1
jax: 0.10.0
libtpu: 0.0.40
codegen_flags: <defaults>
</compile_context>

<pallas_src>
import functools

import jax
import jax.numpy as jnp
from jax.experimental import pallas as pl
from jax.experimental.pallas import tpu as pltpu


def _small_mask_net_kernel(x_ref, w1_ref, b1_ref, a1_ref,
                           w2_ref, b2_ref, a2_ref,
                           w3t_ref, b3_ref,
                           o_ref,
                           xp1_ref, pt1_ref, xp2_ref, pt2_ref, xp3_ref, pt3_ref,
                           *, H, W, k1, k2, k3):
    """One batch element: three same-padded convs fused, intermediates in VMEM."""
    HW = H * W

    def build_patches(x_hwc, pad_ref, patch_ref, k):
        """Zero-pad (H,W,C) f32 into VMEM and build the (H*W, k*k*C) bf16
        im2col patch matrix from static tap slices."""
        C = x_hwc.shape[-1]
        p = (k - 1) // 2
        pad_ref[...] = jnp.zeros_like(pad_ref)            # zero border
        pad_ref[p:p + H, p:p + W, :] = x_hwc              # interior
        for t in range(k * k):
            dy, dx = t // k, t % k
            tap = pad_ref[dy:dy + H, dx:dx + W, :]        # (H, W, C) f32
            patch_ref[:, t * C:(t + 1) * C] = (
                tap.reshape(HW, C).astype(jnp.bfloat16))

    # ---- layer 1: 5x5 conv, pad 2, PReLU ---------------------------------
    x0 = x_ref[0].astype(jnp.float32)                     # (H, W, Cin)
    build_patches(x0, xp1_ref, pt1_ref, k1)
    h = jnp.dot(pt1_ref[...], w1_ref[...],                # (HW, 32) f32 acc
                preferred_element_type=jnp.float32)
    h = h + b1_ref[...]                                   # (1, 32) broadcast
    h = jnp.where(h >= 0.0, h, a1_ref[...] * h)           # per-channel PReLU

    # ---- layer 2: 3x3 conv, pad 1, PReLU ---------------------------------
    build_patches(h.reshape(H, W, -1), xp2_ref, pt2_ref, k2)
    h = jnp.dot(pt2_ref[...], w2_ref[...],                # (HW, 16) f32 acc
                preferred_element_type=jnp.float32)
    h = h + b2_ref[...]
    h = jnp.where(h >= 0.0, h, a2_ref[...] * h)

    # ---- layer 3: 3x3 conv, pad 1, no activation -------------------------
    # Contract against the transposed patch matrix so the result is
    # (Cout, H*W): lane-dense store instead of masked (..., Cout=1) stores.
    build_patches(h.reshape(H, W, -1), xp3_ref, pt3_ref, k3)
    out = jnp.dot(w3t_ref[...], pt3_ref[...].T,           # (Cout, HW) f32
                  preferred_element_type=jnp.float32)
    out = out + b3_ref[...]                               # (Cout, 1) broadcast
    o_ref[...] = out[None]                                # (1, Cout, HW)


@jax.jit
def small_mask_net_forward(params, x):
    """x: (N, Cin, H, W) f32 -> (N, Cout, H, W) f32, same semantics as the module."""
    N, Cin, H, W = x.shape
    w1, w2, w3 = params["w1"], params["w2"], params["w3"]
    C1, _, k1, _ = w1.shape          # 32, 5x5
    C2, _, k2, _ = w2.shape          # 16, 3x3
    Cout, _, k3, _ = w3.shape        # output, 3x3
    HW = H * W

    # NCHW -> NHWC (channels minor) once, bf16 for DMA + MXU; padding in-kernel.
    x_nhwc = jnp.transpose(x, (0, 2, 3, 1)).astype(jnp.bfloat16)

    def w_rhs(w):    # (O,I,kh,kw) -> (kh*kw*I, O), matches patch column order
        O, I, kh, kw = w.shape
        return jnp.transpose(w, (2, 3, 1, 0)).reshape(kh * kw * I, O).astype(jnp.bfloat16)

    def w_lhs(w):    # (O,I,kh,kw) -> (O, kh*kw*I), for the transposed last matmul
        O, I, kh, kw = w.shape
        return jnp.transpose(w, (0, 2, 3, 1)).reshape(O, kh * kw * I).astype(jnp.bfloat16)

    row = lambda v: v.reshape(1, -1).astype(jnp.float32)
    col = lambda v: v.reshape(-1, 1).astype(jnp.float32)

    w1m, w2m, w3m = w_rhs(w1), w_rhs(w2), w_lhs(w3)
    b1, a1 = row(params["b1"]), row(params["a1"])
    b2, a2 = row(params["b2"]), row(params["a2"])
    b3 = col(params["b3"])

    kernel = functools.partial(_small_mask_net_kernel, H=H, W=W,
                               k1=k1, k2=k2, k3=k3)

    out = pl.pallas_call(
        kernel,
        out_shape=jax.ShapeDtypeStruct((N, Cout, HW), jnp.float32),
        grid=(N,),
        in_specs=[
            pl.BlockSpec((1, H, W, Cin), lambda n: (n, 0, 0, 0)),       # x
            pl.BlockSpec((k1 * k1 * Cin, C1), lambda n: (0, 0)),        # w1
            pl.BlockSpec((1, C1), lambda n: (0, 0)),                    # b1
            pl.BlockSpec((1, C1), lambda n: (0, 0)),                    # a1
            pl.BlockSpec((k2 * k2 * C1, C2), lambda n: (0, 0)),         # w2
            pl.BlockSpec((1, C2), lambda n: (0, 0)),                    # b2
            pl.BlockSpec((1, C2), lambda n: (0, 0)),                    # a2
            pl.BlockSpec((Cout, k3 * k3 * C2), lambda n: (0, 0)),       # w3 (lhs)
            pl.BlockSpec((Cout, 1), lambda n: (0, 0)),                  # b3
        ],
        out_specs=pl.BlockSpec((1, Cout, HW), lambda n: (n, 0, 0)),
        scratch_shapes=[
            pltpu.VMEM((H + k1 - 1, W + k1 - 1, Cin), jnp.float32),     # padded L1 in
            pltpu.VMEM((HW, k1 * k1 * Cin), jnp.bfloat16),              # patches L1
            pltpu.VMEM((H + k2 - 1, W + k2 - 1, C1), jnp.float32),      # padded L2 in
            pltpu.VMEM((HW, k2 * k2 * C1), jnp.bfloat16),               # patches L2
            pltpu.VMEM((H + k3 - 1, W + k3 - 1, C2), jnp.float32),      # padded L3 in
            pltpu.VMEM((HW, k3 * k3 * C2), jnp.bfloat16),               # patches L3
        ],
        compiler_params=pltpu.CompilerParams(
            dimension_semantics=("parallel",)),
    )(x_nhwc, w1m, b1, a1, w2m, b2, a2, w3m, b3)

    return out.reshape(N, Cout, H, W)


def init_small_mask_net_params(key, in_ch, out_ch):
    """Deterministic params matching SmallMaskNet(__init__) shapes."""
    ks = jax.random.split(key, 6)

    def conv_init(kw, kb, cout, cin, kh, kwid):
        fan_in = cin * kh * kwid
        scale = 1.0 / jnp.sqrt(fan_in)
        w = jax.random.uniform(kw, (cout, cin, kh, kwid), jnp.float32, -scale, scale)
        b = jax.random.uniform(kb, (cout,), jnp.float32, -scale, scale)
        return w, b

    w1, b1 = conv_init(ks[0], ks[1], 32, in_ch, 5, 5)
    a1 = jnp.full((32,), 0.25, jnp.float32)          # PReLU default init
    w2, b2 = conv_init(ks[2], ks[3], 16, 32, 3, 3)
    a2 = jnp.full((16,), 0.25, jnp.float32)
    w3, b3 = conv_init(ks[4], ks[5], out_ch, 16, 3, 3)
    return dict(w1=w1, b1=b1, a1=a1, w2=w2, b2=b2, a2=a2, w3=w3, b3=b3)


def _reference_forward(params, x):
    """Pure-JAX f32 reference (lax.conv) for validation."""
    def conv(x, w, b, pad):
        y = jax.lax.conv_general_dilated(
            x, w, window_strides=(1, 1), padding=[(pad, pad), (pad, pad)],
            dimension_numbers=("NCHW", "OIHW", "NCHW"))
        return y + b[None, :, None, None]

    def prelu(x, a):
        return jnp.where(x >= 0, x, a[None, :, None, None] * x)

    x = prelu(conv(x, params["w1"], params["b1"], 2), params["a1"])
    x = prelu(conv(x, params["w2"], params["b2"], 1), params["a2"])
    x = conv(x, params["w3"], params["b3"], 1)
    return x


if __name__ == "__main__":
    key = jax.random.PRNGKey(0)
    k_param, k_x = jax.random.split(key)

    N, Cin, H, W = 2, 4, 16, 16
    Cout = 1
    x = jax.random.normal(k_x, (N, Cin, H, W), jnp.float32)
    params = init_small_mask_net_params(k_param, Cin, Cout)

    out = jax.block_until_ready(small_mask_net_forward(params, x))
    assert out.shape == (N, Cout, H, W), out.shape

    ref = jax.block_until_ready(_reference_forward(params, x))
    # bf16 MXU operands (f32 accumulation) -> compare with a bf16-level tolerance.
    max_err = float(jnp.max(jnp.abs(out - ref)))
    assert jnp.allclose(out, ref, atol=2e-2, rtol=2e-2), max_err

    print("KERNEL_OK")
</pallas_src>

<mosaic_0001>
module attributes {stable_mosaic.version = 11 : i64} {
  func.func @_small_mask_net_kernel(%arg0: i32, %arg1: memref<1x16x16x4xbf16, #tpu.memory_space<vmem>>, %arg2: memref<100x32xbf16, #tpu.memory_space<vmem>>, %arg3: memref<1x32xf32, #tpu.memory_space<vmem>>, %arg4: memref<1x32xf32, #tpu.memory_space<vmem>>, %arg5: memref<288x16xbf16, #tpu.memory_space<vmem>>, %arg6: memref<1x16xf32, #tpu.memory_space<vmem>>, %arg7: memref<1x16xf32, #tpu.memory_space<vmem>>, %arg8: memref<1x144xbf16, #tpu.memory_space<vmem>>, %arg9: memref<1x1xf32, #tpu.memory_space<vmem>>, %arg10: memref<1x1x256xf32, #tpu.memory_space<vmem>>, %arg11: memref<20x20x4xf32, #tpu.memory_space<vmem>>, %arg12: memref<256x100xbf16, #tpu.memory_space<vmem>>, %arg13: memref<18x18x32xf32, #tpu.memory_space<vmem>>, %arg14: memref<256x288xbf16, #tpu.memory_space<vmem>>, %arg15: memref<18x18x16xf32, #tpu.memory_space<vmem>>, %arg16: memref<256x144xbf16, #tpu.memory_space<vmem>>) attributes {dimension_semantics = [#tpu.dimension_semantics<parallel>], iteration_bounds = array<i64: 2>, scalar_prefetch = 0 : i64, scratch_operands = 6 : i64, tpu.core_type = #tpu.core_type<tc>, window_params = [{transform_indices = @transform_0, window_bounds = array<i64: 1, 16, 16, 4>}, {pipeline_mode = #tpu.pipeline_mode<synchronous>, transform_indices = @transform_1, window_bounds = array<i64: 100, 32>}, {pipeline_mode = #tpu.pipeline_mode<synchronous>, transform_indices = @transform_2, window_bounds = array<i64: 1, 32>}, {pipeline_mode = #tpu.pipeline_mode<synchronous>, transform_indices = @transform_3, window_bounds = array<i64: 1, 32>}, {pipeline_mode = #tpu.pipeline_mode<synchronous>, transform_indices = @transform_4, window_bounds = array<i64: 288, 16>}, {pipeline_mode = #tpu.pipeline_mode<synchronous>, transform_indices = @transform_5, window_bounds = array<i64: 1, 16>}, {pipeline_mode = #tpu.pipeline_mode<synchronous>, transform_indices = @transform_6, window_bounds = array<i64: 1, 16>}, {pipeline_mode = #tpu.pipeline_mode<synchronous>, transform_indices = @transform_7, window_bounds = array<i64: 1, 144>}, {pipeline_mode = #tpu.pipeline_mode<synchronous>, transform_indices = @transform_8, window_bounds = array<i64: 1, 1>}, {transform_indices = @transform_9, window_bounds = array<i64: 1, 1, 256>}]} {
    %c0 = arith.constant 0 : index
    %c0_0 = arith.constant 0 : index
    %c0_1 = arith.constant 0 : index
    %c0_2 = arith.constant 0 : index
    %0 = vector.load %arg1[%c0, %c0_0, %c0_1, %c0_2] : memref<1x16x16x4xbf16, #tpu.memory_space<vmem>>, vector<1x16x16x4xbf16>
    %1 = vector.shape_cast %0 : vector<1x16x16x4xbf16> to vector<16x16x4xbf16>
    %2 = arith.extf %1 : vector<16x16x4xbf16> to vector<16x16x4xf32>
    %cst = arith.constant 0.000000e+00 : f32
    %3 = vector.broadcast %cst : f32 to vector<20x20x4xf32>
    %c0_3 = arith.constant 0 : index
    %c0_4 = arith.constant 0 : index
    %c0_5 = arith.constant 0 : index
    %4 = vector.load %arg11[%c0_3, %c0_4, %c0_5] : memref<20x20x4xf32, #tpu.memory_space<vmem>>, vector<20x20x4xf32>
    tpu.vector_store %arg11[%c0_3, %c0_4, %c0_5], %3 {strides = array<i32>} : memref<20x20x4xf32, #tpu.memory_space<vmem>>, vector<20x20x4xf32>,
    %c2 = arith.constant 2 : index
    %c2_6 = arith.constant 2 : index
    %c0_7 = arith.constant 0 : index
    %5 = vector.load %arg11[%c2, %c2_6, %c0_7] : memref<20x20x4xf32, #tpu.memory_space<vmem>>, vector<16x16x4xf32>
    tpu.vector_store %arg11[%c2, %c2_6, %c0_7], %2 {strides = array<i32>} : memref<20x20x4xf32, #tpu.memory_space<vmem>>, vector<16x16x4xf32>,
    %c0_8 = arith.constant 0 : index
    %c0_9 = arith.constant 0 : index
    %c0_10 = arith.constant 0 : index
    %6 = vector.load %arg11[%c0_8, %c0_9, %c0_10] : memref<20x20x4xf32, #tpu.memory_space<vmem>>, vector<16x16x4xf32>
    %7 = vector.shape_cast %6 : vector<16x16x4xf32> to vector<256x4xf32>
    %8 = arith.truncf %7 : vector<256x4xf32> to vector<256x4xbf16>
    %c0_11 = arith.constant 0 : index
    %c0_12 = arith.constant 0 : index
    %9 = vector.load %arg12[%c0_11, %c0_12] : memref<256x100xbf16, #tpu.memory_space<vmem>>, vector<256x4xbf16>
    tpu.vector_store %arg12[%c0_11, %c0_12], %8 {strides = array<i32>} : memref<256x100xbf16, #tpu.memory_space<vmem>>, vector<256x4xbf16>,
    %c0_13 = arith.constant 0 : index
    %c1 = arith.constant 1 : index
    %c0_14 = arith.constant 0 : index
    %10 = vector.load %arg11[%c0_13, %c1, %c0_14] : memref<20x20x4xf32, #tpu.memory_space<vmem>>, vector<16x16x4xf32>
    %11 = vector.shape_cast %10 : vector<16x16x4xf32> to vector<256x4xf32>
    %12 = arith.truncf %11 : vector<256x4xf32> to vector<256x4xbf16>
    %c0_15 = arith.constant 0 : index
    %c4 = arith.constant 4 : index
    %13 = vector.load %arg12[%c0_15, %c4] : memref<256x100xbf16, #tpu.memory_space<vmem>>, vector<256x4xbf16>
    tpu.vector_store %arg12[%c0_15, %c4], %12 {strides = array<i32>} : memref<256x100xbf16, #tpu.memory_space<vmem>>, vector<256x4xbf16>,
    %c0_16 = arith.constant 0 : index
    %c2_17 = arith.constant 2 : index
    %c0_18 = arith.constant 0 : index
    %14 = vector.load %arg11[%c0_16, %c2_17, %c0_18] : memref<20x20x4xf32, #tpu.memory_space<vmem>>, vector<16x16x4xf32>
    %15 = vector.shape_cast %14 : vector<16x16x4xf32> to vector<256x4xf32>
    %16 = arith.truncf %15 : vector<256x4xf32> to vector<256x4xbf16>
    %c0_19 = arith.constant 0 : index
    %c8 = arith.constant 8 : index
    %17 = vector.load %arg12[%c0_19, %c8] : memref<256x100xbf16, #tpu.memory_space<vmem>>, vector<256x4xbf16>
    tpu.vector_store %arg12[%c0_19, %c8], %16 {strides = array<i32>} : memref<256x100xbf16, #tpu.memory_space<vmem>>, vector<256x4xbf16>,
    %c0_20 = arith.constant 0 : index
    %c3 = arith.constant 3 : index
    %c0_21 = arith.constant 0 : index
    %18 = vector.load %arg11[%c0_20, %c3, %c0_21] : memref<20x20x4xf32, #tpu.memory_space<vmem>>, vector<16x16x4xf32>
    %19 = vector.shape_cast %18 : vector<16x16x4xf32> to vector<256x4xf32>
    %20 = arith.truncf %19 : vector<256x4xf32> to vector<256x4xbf16>
    %c0_22 = arith.constant 0 : index
    %c12 = arith.constant 12 : index
    %21 = vector.load %arg12[%c0_22, %c12] : memref<256x100xbf16, #tpu.memory_space<vmem>>, vector<256x4xbf16>
    tpu.vector_store %arg12[%c0_22, %c12], %20 {strides = array<i32>} : memref<256x100xbf16, #tpu.memory_space<vmem>>, vector<256x4xbf16>,
    %c0_23 = arith.constant 0 : index
    %c4_24 = arith.constant 4 : index
    %c0_25 = arith.constant 0 : index
    %22 = vector.load %arg11[%c0_23, %c4_24, %c0_25] : memref<20x20x4xf32, #tpu.memory_space<vmem>>, vector<16x16x4xf32>
    %23 = vector.shape_cast %22 : vector<16x16x4xf32> to vector<256x4xf32>
    %24 = arith.truncf %23 : vector<256x4xf32> to vector<256x4xbf16>
    %c0_26 = arith.constant 0 : index
    %c16 = arith.constant 16 : index
    %25 = vector.load %arg12[%c0_26, %c16] : memref<256x100xbf16, #tpu.memory_space<vmem>>, vector<256x4xbf16>
    tpu.vector_store %arg12[%c0_26, %c16], %24 {strides = array<i32>} : memref<256x100xbf16, #tpu.memory_space<vmem>>, vector<256x4xbf16>,
    %c1_27 = arith.constant 1 : index
    %c0_28 = arith.constant 0 : index
    %c0_29 = arith.constant 0 : index
    %26 = vector.load %arg11[%c1_27, %c0_28, %c0_29] : memref<20x20x4xf32, #tpu.memory_space<vmem>>, vector<16x16x4xf32>
    %27 = vector.shape_cast %26 : vector<16x16x4xf32> to vector<256x4xf32>
    %28 = arith.truncf %27 : vector<256x4xf32> to vector<256x4xbf16>
    %c0_30 = arith.constant 0 : index
    %c20 = arith.constant 20 : index
    %29 = vector.load %arg12[%c0_30, %c20] : memref<256x100xbf16, #tpu.memory_space<vmem>>, vector<256x4xbf16>
    tpu.vector_store %arg12[%c0_30, %c20], %28 {strides = array<i32>} : memref<256x100xbf16, #tpu.memory_space<vmem>>, vector<256x4xbf16>,
    %c1_31 = arith.constant 1 : index
    %c1_32 = arith.constant 1 : index
    %c0_33 = arith.constant 0 : index
    %30 = vector.load %arg11[%c1_31, %c1_32, %c0_33] : memref<20x20x4xf32, #tpu.memory_space<vmem>>, vector<16x16x4xf32>
    %31 = vector.shape_cast %30 : vector<16x16x4xf32> to vector<256x4xf32>
    %32 = arith.truncf %31 : vector<256x4xf32> to vector<256x4xbf16>
    %c0_34 = arith.constant 0 : index
    %c24 = arith.constant 24 : index
    %33 = vector.load %arg12[%c0_34, %c24] : memref<256x100xbf16, #tpu.memory_space<vmem>>, vector<256x4xbf16>
    tpu.vector_store %arg12[%c0_34, %c24], %32 {strides = array<i32>} : memref<256x100xbf16, #tpu.memory_space<vmem>>, vector<256x4xbf16>,
    %c1_35 = arith.constant 1 : index
    %c2_36 = arith.constant 2 : index
    %c0_37 = arith.constant 0 : index
    %34 = vector.load %arg11[%c1_35, %c2_36, %c0_37] : memref<20x20x4xf32, #tpu.memory_space<vmem>>, vector<16x16x4xf32>
    %35 = vector.shape_cast %34 : vector<16x16x4xf32> to vector<256x4xf32>
    %36 = arith.truncf %35 : vector<256x4xf32> to vector<256x4xbf16>
    %c0_38 = arith.constant 0 : index
    %c28 = arith.constant 28 : index
    %37 = vector.load %arg12[%c0_38, %c28] : memref<256x100xbf16, #tpu.memory_space<vmem>>, vector<256x4xbf16>
    tpu.vector_store %arg12[%c0_38, %c28], %36 {strides = array<i32>} : memref<256x100xbf16, #tpu.memory_space<vmem>>, vector<256x4xbf16>,
    %c1_39 = arith.constant 1 : index
    %c3_40 = arith.constant 3 : index
    %c0_41 = arith.constant 0 : index
    %38 = vector.load %arg11[%c1_39, %c3_40, %c0_41] : memref<20x20x4xf32, #tpu.memory_space<vmem>>, vector<16x16x4xf32>
    %39 = vector.shape_cast %38 : vector<16x16x4xf32> to vector<256x4xf32>
    %40 = arith.truncf %39 : vector<256x4xf32> to vector<256x4xbf16>
    %c0_42 = arith.constant 0 : index
    %c32 = arith.constant 32 : index
    %41 = vector.load %arg12[%c0_42, %c32] : memref<256x100xbf16, #tpu.memory_space<vmem>>, vector<256x4xbf16>
    tpu.vector_store %arg12[%c0_42, %c32], %40 {strides = array<i32>} : memref<256x100xbf16, #tpu.memory_space<vmem>>, vector<256x4xbf16>,
    %c1_43 = arith.constant 1 : index
    %c4_44 = arith.constant 4 : index
    %c0_45 = arith.constant 0 : index
    %42 = vector.load %arg11[%c1_43, %c4_44, %c0_45] : memref<20x20x4xf32, #tpu.memory_space<vmem>>, vector<16x16x4xf32>
    %43 = vector.shape_cast %42 : vector<16x16x4xf32> to vector<256x4xf32>
    %44 = arith.truncf %43 : vector<256x4xf32> to vector<256x4xbf16>
    %c0_46 = arith.constant 0 : index
    %c36 = arith.constant 36 : index
    %45 = vector.load %arg12[%c0_46, %c36] : memref<256x100xbf16, #tpu.memory_space<vmem>>, vector<256x4xbf16>
    tpu.vector_store %arg12[%c0_46, %c36], %44 {strides = array<i32>} : memref<256x100xbf16, #tpu.memory_space<vmem>>, vector<256x4xbf16>,
    %c2_47 = arith.constant 2 : index
    %c0_48 = arith.constant 0 : index
    %c0_49 = arith.constant 0 : index
    %46 = vector.load %arg11[%c2_47, %c0_48, %c0_49] : memref<20x20x4xf32, #tpu.memory_space<vmem>>, vector<16x16x4xf32>
    %47 = vector.shape_cast %46 : vector<16x16x4xf32> to vector<256x4xf32>
    %48 = arith.truncf %47 : vector<256x4xf32> to vector<256x4xbf16>
    %c0_50 = arith.constant 0 : index
    %c40 = arith.constant 40 : index
    %49 = vector.load %arg12[%c0_50, %c40] : memref<256x100xbf16, #tpu.memory_space<vmem>>, vector<256x4xbf16>
    tpu.vector_store %arg12[%c0_50, %c40], %48 {strides = array<i32>} : memref<256x100xbf16, #tpu.memory_space<vmem>>, vector<256x4xbf16>,
    %c2_51 = arith.constant 2 : index
    %c1_52 = arith.constant 1 : index
    %c0_53 = arith.constant 0 : index
    %50 = vector.load %arg11[%c2_51, %c1_52, %c0_53] : memref<20x20x4xf32, #tpu.memory_space<vmem>>, vector<16x16x4xf32>
    %51 = vector.shape_cast %50 : vector<16x16x4xf32> to vector<256x4xf32>
    %52 = arith.truncf %51 : vector<256x4xf32> to vector<256x4xbf16>
    %c0_54 = arith.constant 0 : index
    %c44 = arith.constant 44 : index
    %53 = vector.load %arg12[%c0_54, %c44] : memref<256x100xbf16, #tpu.memory_space<vmem>>, vector<256x4xbf16>
    tpu.vector_store %arg12[%c0_54, %c44], %52 {strides = array<i32>} : memref<256x100xbf16, #tpu.memory_space<vmem>>, vector<256x4xbf16>,
    %c2_55 = arith.constant 2 : index
    %c2_56 = arith.constant 2 : index
    %c0_57 = arith.constant 0 : index
    %54 = vector.load %arg11[%c2_55, %c2_56, %c0_57] : memref<20x20x4xf32, #tpu.memory_space<vmem>>, vector<16x16x4xf32>
    %55 = vector.shape_cast %54 : vector<16x16x4xf32> to vector<256x4xf32>
    %56 = arith.truncf %55 : vector<256x4xf32> to vector<256x4xbf16>
    %c0_58 = arith.constant 0 : index
    %c48 = arith.constant 48 : index
    %57 = vector.load %arg12[%c0_58, %c48] : memref<256x100xbf16, #tpu.memory_space<vmem>>, vector<256x4xbf16>
    tpu.vector_store %arg12[%c0_58, %c48], %56 {strides = array<i32>} : memref<256x100xbf16, #tpu.memory_space<vmem>>, vector<256x4xbf16>,
    %c2_59 = arith.constant 2 : index
    %c3_60 = arith.constant 3 : index
    %c0_61 = arith.constant 0 : index
    %58 = vector.load %arg11[%c2_59, %c3_60, %c0_61] : memref<20x20x4xf32, #tpu.memory_space<vmem>>, vector<16x16x4xf32>
    %59 = vector.shape_cast %58 : vector<16x16x4xf32> to vector<256x4xf32>
    %60 = arith.truncf %59 : vector<256x4xf32> to vector<256x4xbf16>
    %c0_62 = arith.constant 0 : index
    %c52 = arith.constant 52 : index
    %61 = vector.load %arg12[%c0_62, %c52] : memref<256x100xbf16, #tpu.memory_space<vmem>>, vector<256x4xbf16>
    tpu.vector_store %arg12[%c0_62, %c52], %60 {strides = array<i32>} : memref<256x100xbf16, #tpu.memory_space<vmem>>, vector<256x4xbf16>,
    %c2_63 = arith.constant 2 : index
    %c4_64 = arith.constant 4 : index
    %c0_65 = arith.constant 0 : index
    %62 = vector.load %arg11[%c2_63, %c4_64, %c0_65] : memref<20x20x4xf32, #tpu.memory_space<vmem>>, vector<16x16x4xf32>
    %63 = vector.shape_cast %62 : vector<16x16x4xf32> to vector<256x4xf32>
    %64 = arith.truncf %63 : vector<256x4xf32> to vector<256x4xbf16>
    %c0_66 = arith.constant 0 : index
    %c56 = arith.constant 56 : index
    %65 = vector.load %arg12[%c0_66, %c56] : memref<256x100xbf16, #tpu.memory_space<vmem>>, vector<256x4xbf16>
    tpu.vector_store %arg12[%c0_66, %c56], %64 {strides = array<i32>} : memref<256x100xbf16, #tpu.memory_space<vmem>>, vector<256x4xbf16>,
    %c3_67 = arith.constant 3 : index
    %c0_68 = arith.constant 0 : index
    %c0_69 = arith.constant 0 : index
    %66 = vector.load %arg11[%c3_67, %c0_68, %c0_69] : memref<20x20x4xf32, #tpu.memory_space<vmem>>, vector<16x16x4xf32>
    %67 = vector.shape_cast %66 : vector<16x16x4xf32> to vector<256x4xf32>
    %68 = arith.truncf %67 : vector<256x4xf32> to vector<256x4xbf16>
    %c0_70 = arith.constant 0 : index
    %c60 = arith.constant 60 : index
    %69 = vector.load %arg12[%c0_70, %c60] : memref<256x100xbf16, #tpu.memory_space<vmem>>, vector<256x4xbf16>
    tpu.vector_store %arg12[%c0_70, %c60], %68 {strides = array<i32>} : memref<256x100xbf16, #tpu.memory_space<vmem>>, vector<256x4xbf16>,
    %c3_71 = arith.constant 3 : index
    %c1_72 = arith.constant 1 : index
    %c0_73 = arith.constant 0 : index
    %70 = vector.load %arg11[%c3_71, %c1_72, %c0_73] : memref<20x20x4xf32, #tpu.memory_space<vmem>>, vector<16x16x4xf32>
    %71 = vector.shape_cast %70 : vector<16x16x4xf32> to vector<256x4xf32>
    %72 = arith.truncf %71 : vector<256x4xf32> to vector<256x4xbf16>
    %c0_74 = arith.constant 0 : index
    %c64 = arith.constant 64 : index
    %73 = vector.load %arg12[%c0_74, %c64] : memref<256x100xbf16, #tpu.memory_space<vmem>>, vector<256x4xbf16>
    tpu.vector_store %arg12[%c0_74, %c64], %72 {strides = array<i32>} : memref<256x100xbf16, #tpu.memory_space<vmem>>, vector<256x4xbf16>,
    %c3_75 = arith.constant 3 : index
    %c2_76 = arith.constant 2 : index
    %c0_77 = arith.constant 0 : index
    %74 = vector.load %arg11[%c3_75, %c2_76, %c0_77] : memref<20x20x4xf32, #tpu.memory_space<vmem>>, vector<16x16x4xf32>
    %75 = vector.shape_cast %74 : vector<16x16x4xf32> to vector<256x4xf32>
    %76 = arith.truncf %75 : vector<256x4xf32> to vector<256x4xbf16>
    %c0_78 = arith.constant 0 : index
    %c68 = arith.constant 68 : index
    %77 = vector.load %arg12[%c0_78, %c68] : memref<256x100xbf16, #tpu.memory_space<vmem>>, vector<256x4xbf16>
    tpu.vector_store %arg12[%c0_78, %c68], %76 {strides = array<i32>} : memref<256x100xbf16, #tpu.memory_space<vmem>>, vector<256x4xbf16>,
    %c3_79 = arith.constant 3 : index
    %c3_80 = arith.constant 3 : index
    %c0_81 = arith.constant 0 : index
    %78 = vector.load %arg11[%c3_79, %c3_80, %c0_81] : memref<20x20x4xf32, #tpu.memory_space<vmem>>, vector<16x16x4xf32>
    %79 = vector.shape_cast %78 : vector<16x16x4xf32> to vector<256x4xf32>
    %80 = arith.truncf %79 : vector<256x4xf32> to vector<256x4xbf16>
    %c0_82 = arith.constant 0 : index
    %c72 = arith.constant 72 : index
    %81 = vector.load %arg12[%c0_82, %c72] : memref<256x100xbf16, #tpu.memory_space<vmem>>, vector<256x4xbf16>
    tpu.vector_store %arg12[%c0_82, %c72], %80 {strides = array<i32>} : memref<256x100xbf16, #tpu.memory_space<vmem>>, vector<256x4xbf16>,
    %c3_83 = arith.constant 3 : index
    %c4_84 = arith.constant 4 : index
    %c0_85 = arith.constant 0 : index
    %82 = vector.load %arg11[%c3_83, %c4_84, %c0_85] : memref<20x20x4xf32, #tpu.memory_space<vmem>>, vector<16x16x4xf32>
    %83 = vector.shape_cast %82 : vector<16x16x4xf32> to vector<256x4xf32>
    %84 = arith.truncf %83 : vector<256x4xf32> to vector<256x4xbf16>
    %c0_86 = arith.constant 0 : index
    %c76 = arith.constant 76 : index
    %85 = vector.load %arg12[%c0_86, %c76] : memref<256x100xbf16, #tpu.memory_space<vmem>>, vector<256x4xbf16>
    tpu.vector_store %arg12[%c0_86, %c76], %84 {strides = array<i32>} : memref<256x100xbf16, #tpu.memory_space<vmem>>, vector<256x4xbf16>,
    %c4_87 = arith.constant 4 : index
    %c0_88 = arith.constant 0 : index
    %c0_89 = arith.constant 0 : index
    %86 = vector.load %arg11[%c4_87, %c0_88, %c0_89] : memref<20x20x4xf32, #tpu.memory_space<vmem>>, vector<16x16x4xf32>
    %87 = vector.shape_cast %86 : vector<16x16x4xf32> to vector<256x4xf32>
    %88 = arith.truncf %87 : vector<256x4xf32> to vector<256x4xbf16>
    %c0_90 = arith.constant 0 : index
    %c80 = arith.constant 80 : index
    %89 = vector.load %arg12[%c0_90, %c80] : memref<256x100xbf16, #tpu.memory_space<vmem>>, vector<256x4xbf16>
    tpu.vector_store %arg12[%c0_90, %c80], %88 {strides = array<i32>} : memref<256x100xbf16, #tpu.memory_space<vmem>>, vector<256x4xbf16>,
    %c4_91 = arith.constant 4 : index
    %c1_92 = arith.constant 1 : index
    %c0_93 = arith.constant 0 : index
    %90 = vector.load %arg11[%c4_91, %c1_92, %c0_93] : memref<20x20x4xf32, #tpu.memory_space<vmem>>, vector<16x16x4xf32>
    %91 = vector.shape_cast %90 : vector<16x16x4xf32> to vector<256x4xf32>
    %92 = arith.truncf %91 : vector<256x4xf32> to vector<256x4xbf16>
    %c0_94 = arith.constant 0 : index
    %c84 = arith.constant 84 : index
    %93 = vector.load %arg12[%c0_94, %c84] : memref<256x100xbf16, #tpu.memory_space<vmem>>, vector<256x4xbf16>
    tpu.vector_store %arg12[%c0_94, %c84], %92 {strides = array<i32>} : memref<256x100xbf16, #tpu.memory_space<vmem>>, vector<256x4xbf16>,
    %c4_95 = arith.constant 4 : index
    %c2_96 = arith.constant 2 : index
    %c0_97 = arith.constant 0 : index
    %94 = vector.load %arg11[%c4_95, %c2_96, %c0_97] : memref<20x20x4xf32, #tpu.memory_space<vmem>>, vector<16x16x4xf32>
    %95 = vector.shape_cast %94 : vector<16x16x4xf32> to vector<256x4xf32>
    %96 = arith.truncf %95 : vector<256x4xf32> to vector<256x4xbf16>
    %c0_98 = arith.constant 0 : index
    %c88 = arith.constant 88 : index
    %97 = vector.load %arg12[%c0_98, %c88] : memref<256x100xbf16, #tpu.memory_space<vmem>>, vector<256x4xbf16>
    tpu.vector_store %arg12[%c0_98, %c88], %96 {strides = array<i32>} : memref<256x100xbf16, #tpu.memory_space<vmem>>, vector<256x4xbf16>,
    %c4_99 = arith.constant 4 : index
    %c3_100 = arith.constant 3 : index
    %c0_101 = arith.constant 0 : index
    %98 = vector.load %arg11[%c4_99, %c3_100, %c0_101] : memref<20x20x4xf32, #tpu.memory_space<vmem>>, vector<16x16x4xf32>
    %99 = vector.shape_cast %98 : vector<16x16x4xf32> to vector<256x4xf32>
    %100 = arith.truncf %99 : vector<256x4xf32> to vector<256x4xbf16>
    %c0_102 = arith.constant 0 : index
    %c92 = arith.constant 92 : index
    %101 = vector.load %arg12[%c0_102, %c92] : memref<256x100xbf16, #tpu.memory_space<vmem>>, vector<256x4xbf16>
    tpu.vector_store %arg12[%c0_102, %c92], %100 {strides = array<i32>} : memref<256x100xbf16, #tpu.memory_space<vmem>>, vector<256x4xbf16>,
    %c4_103 = arith.constant 4 : index
    %c4_104 = arith.constant 4 : index
    %c0_105 = arith.constant 0 : index
    %102 = vector.load %arg11[%c4_103, %c4_104, %c0_105] : memref<20x20x4xf32, #tpu.memory_space<vmem>>, vector<16x16x4xf32>
    %103 = vector.shape_cast %102 : vector<16x16x4xf32> to vector<256x4xf32>
    %104 = arith.truncf %103 : vector<256x4xf32> to vector<256x4xbf16>
    %c0_106 = arith.constant 0 : index
    %c96 = arith.constant 96 : index
    %105 = vector.load %arg12[%c0_106, %c96] : memref<256x100xbf16, #tpu.memory_space<vmem>>, vector<256x4xbf16>
    tpu.vector_store %arg12[%c0_106, %c96], %104 {strides = array<i32>} : memref<256x100xbf16, #tpu.memory_space<vmem>>, vector<256x4xbf16>,
    %c0_107 = arith.constant 0 : index
    %c0_108 = arith.constant 0 : index
    %106 = vector.load %arg12[%c0_107, %c0_108] : memref<256x100xbf16, #tpu.memory_space<vmem>>, vector<256x100xbf16>
    %c0_109 = arith.constant 0 : index
    %c0_110 = arith.constant 0 : index
    %107 = vector.load %arg2[%c0_109, %c0_110] : memref<100x32xbf16, #tpu.memory_space<vmem>>, vector<100x32xbf16>
    %cst_111 = arith.constant dense<0.000000e+00> : vector<256x32xf32>
    %108 = tpu.matmul %106, %107, %cst_111 {dimension_numbers = #tpu.dot_dimension_numbers<[1], [0], [0], [1], [0, 0, 1, 1], [], []>} : vector<256x100xbf16>, vector<100x32xbf16>, vector<256x32xf32> -> vector<256x32xf32>
    %c0_112 = arith.constant 0 : index
    %c0_113 = arith.constant 0 : index
    %109 = vector.load %arg3[%c0_112, %c0_113] : memref<1x32xf32, #tpu.memory_space<vmem>>, vector<1x32xf32>
    %110 = vector.broadcast %109 : vector<1x32xf32> to vector<256x32xf32>
    %111 = arith.addf %108, %110 : vector<256x32xf32>
    %cst_114 = arith.constant 0.000000e+00 : f32
    %112 = vector.broadcast %cst_114 : f32 to vector<256x32xf32>
    %113 = arith.cmpf oge, %111, %112 : vector<256x32xf32>
    %c0_115 = arith.constant 0 : index
    %c0_116 = arith.constant 0 : index
    %114 = vector.load %arg4[%c0_115, %c0_116] : memref<1x32xf32, #tpu.memory_space<vmem>>, vector<1x32xf32>
    %115 = vector.broadcast %114 : vector<1x32xf32> to vector<256x32xf32>
    %116 = arith.mulf %115, %111 : vector<256x32xf32>
    %117 = arith.select %113, %111, %116 : vector<256x32xi1>, vector<256x32xf32>
    %118 = vector.shape_cast %117 : vector<256x32xf32> to vector<16x16x32xf32>
    %cst_117 = arith.constant 0.000000e+00 : f32
    %119 = vector.broadcast %cst_117 : f32 to vector<18x18x32xf32>
    %c0_118 = arith.constant 0 : index
    %c0_119 = arith.constant 0 : index
    %c0_120 = arith.constant 0 : index
    %120 = vector.load %arg13[%c0_118, %c0_119, %c0_120] : memref<18x18x32xf32, #tpu.memory_space<vmem>>, vector<18x18x32xf32>
    tpu.vector_store %arg13[%c0_118, %c0_119, %c0_120], %119 {strides = array<i32>} : memref<18x18x32xf32, #tpu.memory_space<vmem>>, vector<18x18x32xf32>,
    %c1_121 = arith.constant 1 : index
    %c1_122 = arith.constant 1 : index
    %c0_123 = arith.constant 0 : index
    %121 = vector.load %arg13[%c1_121, %c1_122, %c0_123] : memref<18x18x32xf32, #tpu.memory_space<vmem>>, vector<16x16x32xf32>
    tpu.vector_store %arg13[%c1_121, %c1_122, %c0_123], %118 {strides = array<i32>} : memref<18x18x32xf32, #tpu.memory_space<vmem>>, vector<16x16x32xf32>,
    %c0_124 = arith.constant 0 : index
    %c0_125 = arith.constant 0 : index
    %c0_126 = arith.constant 0 : index
    %122 = vector.load %arg13[%c0_124, %c0_125, %c0_126] : memref<18x18x32xf32, #tpu.memory_space<vmem>>, vector<16x16x32xf32>
    %123 = vector.shape_cast %122 : vector<16x16x32xf32> to vector<256x32xf32>
    %124 = arith.truncf %123 : vector<256x32xf32> to vector<256x32xbf16>
    %c0_127 = arith.constant 0 : index
    %c0_128 = arith.constant 0 : index
    %125 = vector.load %arg14[%c0_127, %c0_128] : memref<256x288xbf16, #tpu.memory_space<vmem>>, vector<256x32xbf16>
    tpu.vector_store %arg14[%c0_127, %c0_128], %124 {strides = array<i32>} : memref<256x288xbf16, #tpu.memory_space<vmem>>, vector<256x32xbf16>,
    %c0_129 = arith.constant 0 : index
    %c1_130 = arith.constant 1 : index
    %c0_131 = arith.constant 0 : index
    %126 = vector.load %arg13[%c0_129, %c1_130, %c0_131] : memref<18x18x32xf32, #tpu.memory_space<vmem>>, vector<16x16x32xf32>
    %127 = vector.shape_cast %126 : vector<16x16x32xf32> to vector<256x32xf32>
    %128 = arith.truncf %127 : vector<256x32xf32> to vector<256x32xbf16>
    %c0_132 = arith.constant 0 : index
    %c32_133 = arith.constant 32 : index
    %129 = vector.load %arg14[%c0_132, %c32_133] : memref<256x288xbf16, #tpu.memory_space<vmem>>, vector<256x32xbf16>
    tpu.vector_store %arg14[%c0_132, %c32_133], %128 {strides = array<i32>} : memref<256x288xbf16, #tpu.memory_space<vmem>>, vector<256x32xbf16>,
    %c0_134 = arith.constant 0 : index
    %c2_135 = arith.constant 2 : index
    %c0_136 = arith.constant 0 : index
    %130 = vector.load %arg13[%c0_134, %c2_135, %c0_136] : memref<18x18x32xf32, #tpu.memory_space<vmem>>, vector<16x16x32xf32>
    %131 = vector.shape_cast %130 : vector<16x16x32xf32> to vector<256x32xf32>
    %132 = arith.truncf %131 : vector<256x32xf32> to vector<256x32xbf16>
    %c0_137 = arith.constant 0 : index
    %c64_138 = arith.constant 64 : index
    %133 = vector.load %arg14[%c0_137, %c64_138] : memref<256x288xbf16, #tpu.memory_space<vmem>>, vector<256x32xbf16>
    tpu.vector_store %arg14[%c0_137, %c64_138], %132 {strides = array<i32>} : memref<256x288xbf16, #tpu.memory_space<vmem>>, vector<256x32xbf16>,
    %c1_139 = arith.constant 1 : index
    %c0_140 = arith.constant 0 : index
    %c0_141 = arith.constant 0 : index
    %134 = vector.load %arg13[%c1_139, %c0_140, %c0_141] : memref<18x18x32xf32, #tpu.memory_space<vmem>>, vector<16x16x32xf32>
    %135 = vector.shape_cast %134 : vector<16x16x32xf32> to vector<256x32xf32>
    %136 = arith.truncf %135 : vector<256x32xf32> to vector<256x32xbf16>
    %c0_142 = arith.constant 0 : index
    %c96_143 = arith.constant 96 : index
    %137 = vector.load %arg14[%c0_142, %c96_143] : memref<256x288xbf16, #tpu.memory_space<vmem>>, vector<256x32xbf16>
    tpu.vector_store %arg14[%c0_142, %c96_143], %136 {strides = array<i32>} : memref<256x288xbf16, #tpu.memory_space<vmem>>, vector<256x32xbf16>,
    %c1_144 = arith.constant 1 : index
    %c1_145 = arith.constant 1 : index
    %c0_146 = arith.constant 0 : index
    %138 = vector.load %arg13[%c1_144, %c1_145, %c0_146] : memref<18x18x32xf32, #tpu.memory_space<vmem>>, vector<16x16x32xf32>
    %139 = vector.shape_cast %138 : vector<16x16x32xf32> to vector<256x32xf32>
    %140 = arith.truncf %139 : vector<256x32xf32> to vector<256x32xbf16>
    %c0_147 = arith.constant 0 : index
    %c128 = arith.constant 128 : index
    %141 = vector.load %arg14[%c0_147, %c128] : memref<256x288xbf16, #tpu.memory_space<vmem>>, vector<256x32xbf16>
    tpu.vector_store %arg14[%c0_147, %c128], %140 {strides = array<i32>} : memref<256x288xbf16, #tpu.memory_space<vmem>>, vector<256x32xbf16>,
    %c1_148 = arith.constant 1 : index
    %c2_149 = arith.constant 2 : index
    %c0_150 = arith.constant 0 : index
    %142 = vector.load %arg13[%c1_148, %c2_149, %c0_150] : memref<18x18x32xf32, #tpu.memory_space<vmem>>, vector<16x16x32xf32>
    %143 = vector.shape_cast %142 : vector<16x16x32xf32> to vector<256x32xf32>
    %144 = arith.truncf %143 : vector<256x32xf32> to vector<256x32xbf16>
    %c0_151 = arith.constant 0 : index
    %c160 = arith.constant 160 : index
    %145 = vector.load %arg14[%c0_151, %c160] : memref<256x288xbf16, #tpu.memory_space<vmem>>, vector<256x32xbf16>
    tpu.vector_store %arg14[%c0_151, %c160], %144 {strides = array<i32>} : memref<256x288xbf16, #tpu.memory_space<vmem>>, vector<256x32xbf16>,
    %c2_152 = arith.constant 2 : index
    %c0_153 = arith.constant 0 : index
    %c0_154 = arith.constant 0 : index
    %146 = vector.load %arg13[%c2_152, %c0_153, %c0_154] : memref<18x18x32xf32, #tpu.memory_space<vmem>>, vector<16x16x32xf32>
    %147 = vector.shape_cast %146 : vector<16x16x32xf32> to vector<256x32xf32>
    %148 = arith.truncf %147 : vector<256x32xf32> to vector<256x32xbf16>
    %c0_155 = arith.constant 0 : index
    %c192 = arith.constant 192 : index
    %149 = vector.load %arg14[%c0_155, %c192] : memref<256x288xbf16, #tpu.memory_space<vmem>>, vector<256x32xbf16>
    tpu.vector_store %arg14[%c0_155, %c192], %148 {strides = array<i32>} : memref<256x288xbf16, #tpu.memory_space<vmem>>, vector<256x32xbf16>,
    %c2_156 = arith.constant 2 : index
    %c1_157 = arith.constant 1 : index
    %c0_158 = arith.constant 0 : index
    %150 = vector.load %arg13[%c2_156, %c1_157, %c0_158] : memref<18x18x32xf32, #tpu.memory_space<vmem>>, vector<16x16x32xf32>
    %151 = vector.shape_cast %150 : vector<16x16x32xf32> to vector<256x32xf32>
    %152 = arith.truncf %151 : vector<256x32xf32> to vector<256x32xbf16>
    %c0_159 = arith.constant 0 : index
    %c224 = arith.constant 224 : index
    %153 = vector.load %arg14[%c0_159, %c224] : memref<256x288xbf16, #tpu.memory_space<vmem>>, vector<256x32xbf16>
    tpu.vector_store %arg14[%c0_159, %c224], %152 {strides = array<i32>} : memref<256x288xbf16, #tpu.memory_space<vmem>>, vector<256x32xbf16>,
    %c2_160 = arith.constant 2 : index
    %c2_161 = arith.constant 2 : index
    %c0_162 = arith.constant 0 : index
    %154 = vector.load %arg13[%c2_160, %c2_161, %c0_162] : memref<18x18x32xf32, #tpu.memory_space<vmem>>, vector<16x16x32xf32>
    %155 = vector.shape_cast %154 : vector<16x16x32xf32> to vector<256x32xf32>
    %156 = arith.truncf %155 : vector<256x32xf32> to vector<256x32xbf16>
    %c0_163 = arith.constant 0 : index
    %c256 = arith.constant 256 : index
    %157 = vector.load %arg14[%c0_163, %c256] : memref<256x288xbf16, #tpu.memory_space<vmem>>, vector<256x32xbf16>
    tpu.vector_store %arg14[%c0_163, %c256], %156 {strides = array<i32>} : memref<256x288xbf16, #tpu.memory_space<vmem>>, vector<256x32xbf16>,
    %c0_164 = arith.constant 0 : index
    %c0_165 = arith.constant 0 : index
    %158 = vector.load %arg14[%c0_164, %c0_165] : memref<256x288xbf16, #tpu.memory_space<vmem>>, vector<256x288xbf16>
    %c0_166 = arith.constant 0 : index
    %c0_167 = arith.constant 0 : index
    %159 = vector.load %arg5[%c0_166, %c0_167] : memref<288x16xbf16, #tpu.memory_space<vmem>>, vector<288x16xbf16>
    %cst_168 = arith.constant dense<0.000000e+00> : vector<256x16xf32>
    %160 = tpu.matmul %158, %159, %cst_168 {dimension_numbers = #tpu.dot_dimension_numbers<[1], [0], [0], [1], [0, 0, 1, 1], [], []>} : vector<256x288xbf16>, vector<288x16xbf16>, vector<256x16xf32> -> vector<256x16xf32>
    %c0_169 = arith.constant 0 : index
    %c0_170 = arith.constant 0 : index
    %161 = vector.load %arg6[%c0_169, %c0_170] : memref<1x16xf32, #tpu.memory_space<vmem>>, vector<1x16xf32>
    %162 = vector.broadcast %161 : vector<1x16xf32> to vector<256x16xf32>
    %163 = arith.addf %160, %162 : vector<256x16xf32>
    %cst_171 = arith.constant 0.000000e+00 : f32
    %164 = vector.broadcast %cst_171 : f32 to vector<256x16xf32>
    %165 = arith.cmpf oge, %163, %164 : vector<256x16xf32>
    %c0_172 = arith.constant 0 : index
    %c0_173 = arith.constant 0 : index
    %166 = vector.load %arg7[%c0_172, %c0_173] : memref<1x16xf32, #tpu.memory_space<vmem>>, vector<1x16xf32>
    %167 = vector.broadcast %166 : vector<1x16xf32> to vector<256x16xf32>
    %168 = arith.mulf %167, %163 : vector<256x16xf32>
    %169 = arith.select %165, %163, %168 : vector<256x16xi1>, vector<256x16xf32>
    %170 = vector.shape_cast %169 : vector<256x16xf32> to vector<16x16x16xf32>
    %cst_174 = arith.constant 0.000000e+00 : f32
    %171 = vector.broadcast %cst_174 : f32 to vector<18x18x16xf32>
    %c0_175 = arith.constant 0 : index
    %c0_176 = arith.constant 0 : index
    %c0_177 = arith.constant 0 : index
    %172 = vector.load %arg15[%c0_175, %c0_176, %c0_177] : memref<18x18x16xf32, #tpu.memory_space<vmem>>, vector<18x18x16xf32>
    tpu.vector_store %arg15[%c0_175, %c0_176, %c0_177], %171 {strides = array<i32>} : memref<18x18x16xf32, #tpu.memory_space<vmem>>, vector<18x18x16xf32>,
    %c1_178 = arith.constant 1 : index
    %c1_179 = arith.constant 1 : index
    %c0_180 = arith.constant 0 : index
    %173 = vector.load %arg15[%c1_178, %c1_179, %c0_180] : memref<18x18x16xf32, #tpu.memory_space<vmem>>, vector<16x16x16xf32>
    tpu.vector_store %arg15[%c1_178, %c1_179, %c0_180], %170 {strides = array<i32>} : memref<18x18x16xf32, #tpu.memory_space<vmem>>, vector<16x16x16xf32>,
    %c0_181 = arith.constant 0 : index
    %c0_182 = arith.constant 0 : index
    %c0_183 = arith.constant 0 : index
    %174 = vector.load %arg15[%c0_181, %c0_182, %c0_183] : memref<18x18x16xf32, #tpu.memory_space<vmem>>, vector<16x16x16xf32>
    %175 = vector.shape_cast %174 : vector<16x16x16xf32> to vector<256x16xf32>
    %176 = arith.truncf %175 : vector<256x16xf32> to vector<256x16xbf16>
    %c0_184 = arith.constant 0 : index
    %c0_185 = arith.constant 0 : index
    %177 = vector.load %arg16[%c0_184, %c0_185] : memref<256x144xbf16, #tpu.memory_space<vmem>>, vector<256x16xbf16>
    tpu.vector_store %arg16[%c0_184, %c0_185], %176 {strides = array<i32>} : memref<256x144xbf16, #tpu.memory_space<vmem>>, vector<256x16xbf16>,
    %c0_186 = arith.constant 0 : index
    %c1_187 = arith.constant 1 : index
    %c0_188 = arith.constant 0 : index
    %178 = vector.load %arg15[%c0_186, %c1_187, %c0_188] : memref<18x18x16xf32, #tpu.memory_space<vmem>>, vector<16x16x16xf32>
    %179 = vector.shape_cast %178 : vector<16x16x16xf32> to vector<256x16xf32>
    %180 = arith.truncf %179 : vector<256x16xf32> to vector<256x16xbf16>
    %c0_189 = arith.constant 0 : index
    %c16_190 = arith.constant 16 : index
    %181 = vector.load %arg16[%c0_189, %c16_190] : memref<256x144xbf16, #tpu.memory_space<vmem>>, vector<256x16xbf16>
    tpu.vector_store %arg16[%c0_189, %c16_190], %180 {strides = array<i32>} : memref<256x144xbf16, #tpu.memory_space<vmem>>, vector<256x16xbf16>,
    %c0_191 = arith.constant 0 : index
    %c2_192 = arith.constant 2 : index
    %c0_193 = arith.constant 0 : index
    %182 = vector.load %arg15[%c0_191, %c2_192, %c0_193] : memref<18x18x16xf32, #tpu.memory_space<vmem>>, vector<16x16x16xf32>
    %183 = vector.shape_cast %182 : vector<16x16x16xf32> to vector<256x16xf32>
    %184 = arith.truncf %183 : vector<256x16xf32> to vector<256x16xbf16>
    %c0_194 = arith.constant 0 : index
    %c32_195 = arith.constant 32 : index
    %185 = vector.load %arg16[%c0_194, %c32_195] : memref<256x144xbf16, #tpu.memory_space<vmem>>, vector<256x16xbf16>
    tpu.vector_store %arg16[%c0_194, %c32_195], %184 {strides = array<i32>} : memref<256x144xbf16, #tpu.memory_space<vmem>>, vector<256x16xbf16>,
    %c1_196 = arith.constant 1 : index
    %c0_197 = arith.constant 0 : index
    %c0_198 = arith.constant 0 : index
    %186 = vector.load %arg15[%c1_196, %c0_197, %c0_198] : memref<18x18x16xf32, #tpu.memory_space<vmem>>, vector<16x16x16xf32>
    %187 = vector.shape_cast %186 : vector<16x16x16xf32> to vector<256x16xf32>
    %188 = arith.truncf %187 : vector<256x16xf32> to vector<256x16xbf16>
    %c0_199 = arith.constant 0 : index
    %c48_200 = arith.constant 48 : index
    %189 = vector.load %arg16[%c0_199, %c48_200] : memref<256x144xbf16, #tpu.memory_space<vmem>>, vector<256x16xbf16>
    tpu.vector_store %arg16[%c0_199, %c48_200], %188 {strides = array<i32>} : memref<256x144xbf16, #tpu.memory_space<vmem>>, vector<256x16xbf16>,
    %c1_201 = arith.constant 1 : index
    %c1_202 = arith.constant 1 : index
    %c0_203 = arith.constant 0 : index
    %190 = vector.load %arg15[%c1_201, %c1_202, %c0_203] : memref<18x18x16xf32, #tpu.memory_space<vmem>>, vector<16x16x16xf32>
    %191 = vector.shape_cast %190 : vector<16x16x16xf32> to vector<256x16xf32>
    %192 = arith.truncf %191 : vector<256x16xf32> to vector<256x16xbf16>
    %c0_204 = arith.constant 0 : index
    %c64_205 = arith.constant 64 : index
    %193 = vector.load %arg16[%c0_204, %c64_205] : memref<256x144xbf16, #tpu.memory_space<vmem>>, vector<256x16xbf16>
    tpu.vector_store %arg16[%c0_204, %c64_205], %192 {strides = array<i32>} : memref<256x144xbf16, #tpu.memory_space<vmem>>, vector<256x16xbf16>,
    %c1_206 = arith.constant 1 : index
    %c2_207 = arith.constant 2 : index
    %c0_208 = arith.constant 0 : index
    %194 = vector.load %arg15[%c1_206, %c2_207, %c0_208] : memref<18x18x16xf32, #tpu.memory_space<vmem>>, vector<16x16x16xf32>
    %195 = vector.shape_cast %194 : vector<16x16x16xf32> to vector<256x16xf32>
    %196 = arith.truncf %195 : vector<256x16xf32> to vector<256x16xbf16>
    %c0_209 = arith.constant 0 : index
    %c80_210 = arith.constant 80 : index
    %197 = vector.load %arg16[%c0_209, %c80_210] : memref<256x144xbf16, #tpu.memory_space<vmem>>, vector<256x16xbf16>
    tpu.vector_store %arg16[%c0_209, %c80_210], %196 {strides = array<i32>} : memref<256x144xbf16, #tpu.memory_space<vmem>>, vector<256x16xbf16>,
    %c2_211 = arith.constant 2 : index
    %c0_212 = arith.constant 0 : index
    %c0_213 = arith.constant 0 : index
    %198 = vector.load %arg15[%c2_211, %c0_212, %c0_213] : memref<18x18x16xf32, #tpu.memory_space<vmem>>, vector<16x16x16xf32>
    %199 = vector.shape_cast %198 : vector<16x16x16xf32> to vector<256x16xf32>
    %200 = arith.truncf %199 : vector<256x16xf32> to vector<256x16xbf16>
    %c0_214 = arith.constant 0 : index
    %c96_215 = arith.constant 96 : index
    %201 = vector.load %arg16[%c0_214, %c96_215] : memref<256x144xbf16, #tpu.memory_space<vmem>>, vector<256x16xbf16>
    tpu.vector_store %arg16[%c0_214, %c96_215], %200 {strides = array<i32>} : memref<256x144xbf16, #tpu.memory_space<vmem>>, vector<256x16xbf16>,
    %c2_216 = arith.constant 2 : index
    %c1_217 = arith.constant 1 : index
    %c0_218 = arith.constant 0 : index
    %202 = vector.load %arg15[%c2_216, %c1_217, %c0_218] : memref<18x18x16xf32, #tpu.memory_space<vmem>>, vector<16x16x16xf32>
    %203 = vector.shape_cast %202 : vector<16x16x16xf32> to vector<256x16xf32>
    %204 = arith.truncf %203 : vector<256x16xf32> to vector<256x16xbf16>
    %c0_219 = arith.constant 0 : index
    %c112 = arith.constant 112 : index
    %205 = vector.load %arg16[%c0_219, %c112] : memref<256x144xbf16, #tpu.memory_space<vmem>>, vector<256x16xbf16>
    tpu.vector_store %arg16[%c0_219, %c112], %204 {strides = array<i32>} : memref<256x144xbf16, #tpu.memory_space<vmem>>, vector<256x16xbf16>,
    %c2_220 = arith.constant 2 : index
    %c2_221 = arith.constant 2 : index
    %c0_222 = arith.constant 0 : index
    %206 = vector.load %arg15[%c2_220, %c2_221, %c0_222] : memref<18x18x16xf32, #tpu.memory_space<vmem>>, vector<16x16x16xf32>
    %207 = vector.shape_cast %206 : vector<16x16x16xf32> to vector<256x16xf32>
    %208 = arith.truncf %207 : vector<256x16xf32> to vector<256x16xbf16>
    %c0_223 = arith.constant 0 : index
    %c128_224 = arith.constant 128 : index
    %209 = vector.load %arg16[%c0_223, %c128_224] : memref<256x144xbf16, #tpu.memory_space<vmem>>, vector<256x16xbf16>
    tpu.vector_store %arg16[%c0_223, %c128_224], %208 {strides = array<i32>} : memref<256x144xbf16, #tpu.memory_space<vmem>>, vector<256x16xbf16>,
    %c0_225 = arith.constant 0 : index
    %c0_226 = arith.constant 0 : index
    %210 = vector.load %arg8[%c0_225, %c0_226] : memref<1x144xbf16, #tpu.memory_space<vmem>>, vector<1x144xbf16>
    %c0_227 = arith.constant 0 : index
    %c0_228 = arith.constant 0 : index
    %211 = vector.load %arg16[%c0_227, %c0_228] : memref<256x144xbf16, #tpu.memory_space<vmem>>, vector<256x144xbf16>
    %212 = tpu.transpose %211, [1, 0] : vector<256x144xbf16> -> vector<144x256xbf16>
    %cst_229 = arith.constant dense<0.000000e+00> : vector<1x256xf32>
    %213 = tpu.matmul %210, %212, %cst_229 {dimension_numbers = #tpu.dot_dimension_numbers<[1], [0], [0], [1], [0, 0, 1, 1], [], []>} : vector<1x144xbf16>, vector<144x256xbf16>, vector<1x256xf32> -> vector<1x256xf32>
    %c0_230 = arith.constant 0 : index
    %c0_231 = arith.constant 0 : index
    %214 = vector.load %arg9[%c0_230, %c0_231] : memref<1x1xf32, #tpu.memory_space<vmem>>, vector<1x1xf32>
    %215 = vector.broadcast %214 : vector<1x1xf32> to vector<1x256xf32>
    %216 = arith.addf %213, %215 : vector<1x256xf32>
    %217 = vector.shape_cast %216 : vector<1x256xf32> to vector<1x1x256xf32>
    %c0_232 = arith.constant 0 : index
    %c0_233 = arith.constant 0 : index
    %c0_234 = arith.constant 0 : index
    %218 = vector.load %arg10[%c0_232, %c0_233, %c0_234] : memref<1x1x256xf32, #tpu.memory_space<vmem>>, vector<1x1x256xf32>
    tpu.vector_store %arg10[%c0_232, %c0_233, %c0_234], %217 {strides = array<i32>} : memref<1x1x256xf32, #tpu.memory_space<vmem>>, vector<1x1x256xf32>,
    return
  }
  func.func @transform_0(%arg0: i32) -> (i32, i32, i32, i32) {
    %c0_i32 = arith.constant 0 : i32
    %c0_i32_0 = arith.constant 0 : i32
    %c0_i32_1 = arith.constant 0 : i32
    %c0_i32_2 = arith.constant 0 : i32
    return %arg0, %c0_i32, %c0_i32_0, %c0_i32_1 : i32, i32, i32, i32
  }
  func.func @transform_1(%arg0: i32) -> (i32, i32) {
    %c0_i32 = arith.constant 0 : i32
    %c0_i32_0 = arith.constant 0 : i32
    %c0_i32_1 = arith.constant 0 : i32
    return %c0_i32, %c0_i32_0 : i32, i32
  }
  func.func @transform_2(%arg0: i32) -> (i32, i32) {
    %c0_i32 = arith.constant 0 : i32
    %c0_i32_0 = arith.constant 0 : i32
    %c0_i32_1 = arith.constant 0 : i32
    return %c0_i32, %c0_i32_0 : i32, i32
  }
  func.func @transform_3(%arg0: i32) -> (i32, i32) {
    %c0_i32 = arith.constant 0 : i32
    %c0_i32_0 = arith.constant 0 : i32
    %c0_i32_1 = arith.constant 0 : i32
    return %c0_i32, %c0_i32_0 : i32, i32
  }
  func.func @transform_4(%arg0: i32) -> (i32, i32) {
    %c0_i32 = arith.constant 0 : i32
    %c0_i32_0 = arith.constant 0 : i32
    %c0_i32_1 = arith.constant 0 : i32
    return %c0_i32, %c0_i32_0 : i32, i32
  }
  func.func @transform_5(%arg0: i32) -> (i32, i32) {
    %c0_i32 = arith.constant 0 : i32
    %c0_i32_0 = arith.constant 0 : i32
    %c0_i32_1 = arith.constant 0 : i32
    return %c0_i32, %c0_i32_0 : i32, i32
  }
  func.func @transform_6(%arg0: i32) -> (i32, i32) {
    %c0_i32 = arith.constant 0 : i32
    %c0_i32_0 = arith.constant 0 : i32
    %c0_i32_1 = arith.constant 0 : i32
    return %c0_i32, %c0_i32_0 : i32, i32
  }
  func.func @transform_7(%arg0: i32) -> (i32, i32) {
    %c0_i32 = arith.constant 0 : i32
    %c0_i32_0 = arith.constant 0 : i32
    %c0_i32_1 = arith.constant 0 : i32
    return %c0_i32, %c0_i32_0 : i32, i32
  }
  func.func @transform_8(%arg0: i32) -> (i32, i32) {
    %c0_i32 = arith.constant 0 : i32
    %c0_i32_0 = arith.constant 0 : i32
    %c0_i32_1 = arith.constant 0 : i32
    return %c0_i32, %c0_i32_0 : i32, i32
  }
  func.func @transform_9(%arg0: i32) -> (i32, i32, i32) {
    %c0_i32 = arith.constant 0 : i32
    %c0_i32_0 = arith.constant 0 : i32
    %c0_i32_1 = arith.constant 0 : i32
    return %arg0, %c0_i32, %c0_i32_0 : i32, i32, i32
  }
}

</mosaic_0001>

<bundles_post_ra>
// kernel: small_mask_net_forward.1
= control target key start
LH: loop header
LB: loop body
LE: loop exit
PB: predicated region body
PF: predicated region fallthrough
CT: control target
= control target key end

     0   :  { %s7691_s11 = smov 0   ;;  %s10553_s0 = inlined_call_operand.vmem [shape: bf16[2,16,16,4], index: 0, kind: input, shape index: {}]   ;;  %s10554_s1 = inlined_call_operand.vmem [shape: bf16[100,32], index: 1, kind: input, shape index: {}]   ;;  %s10555_s2 = inlined_call_operand.vmem [shape: f32[1,32], index: 2, kind: input, shape index: {}]   ;;  %s10556_s3 = inlined_call_operand.vmem [shape: f32[1,32], index: 3, kind: input, shape index: {}]   ;;  %s10557_s4 = inlined_call_operand.vmem [shape: bf16[288,16], index: 4, kind: input, shape index: {}]   ;;  %s10558_s5 = inlined_call_operand.vmem [shape: f32[1,16], index: 5, kind: input, shape index: {}]   ;;  %s10559_s6 = inlined_call_operand.vmem [shape: f32[1,16], index: 6, kind: input, shape index: {}]   ;;  %s10560_s7 = inlined_call_operand.vmem [shape: bf16[1,144], index: 7, kind: input, shape index: {}]   ;;  %s10561_s8 = inlined_call_operand.<no memory space> [shape: f32[1,1], index: 8, kind: input, shape index: {}]   ;;  %s10562_s9 = inlined_call_operand.vmem [shape: f32[2,1,256], index: 9, kind: output, shape index: {}]  }
   0x1   :  { %v14_v0 = vstv %s10561_s8 }
   0x2   :  { %15 = vst [vmem:[#allocation8] sm:$0x1] %v14_v0 }
   0x3 LB: > { %s7129_s12 = sadd.s32 4294967295, %s7608_s11   ;;  %p7133_p0 = scmp.ge.s32.totalorder %s7608_s11, 1  ;;  %s7608_s11 = sphi %s7691_s11, %s21_s11  }
   0x4   : > { %p289_p1 = scmp.lt.s32.totalorder %s7608_s11, 3 }
   0x6   : > { %p290_p2 = pnand %p7133_p0, %p289_p1 }
   0x7   : > { %vm10574_vm0 = vcmask (!%p290_p2), 31744   ;;  %vm401_vm1 = vcmask (!%p290_p2), 27648   ;;  %p7701_p3 = scmp.lt.s32.totalorder (!%p290_p2), %s7129_s12, 1  ;;  %v7610_v1 = vmov (!%p290_p2), 0.0   ;;  %s7611_s17 = smov (!%p290_p2), 4   ;;  %vm669_vm2 = vcmask (!%p290_p2), 64544  }
   0x8   : > { %293 = sbr.rel (%p290_p2) target bundleno = 1930 (0x78a), region = 56  ;;  %399 = vst.msk [vmem:[#allocation2] sm:$0xff] (!%p290_p2), %vm10574_vm0, %v7610_v1  ;;  %400 = vst.msk [vmem:[#allocation2 + $0x8] sm:$0xff] (!%p290_p2), %vm10574_vm0, %v7610_v1  ;;  %s7612_s18 = smov (!%p290_p2), 8   ;;  %vm798_vm3 = vcmask (!%p290_p2), 97344   ;;  %vm927_vm4 = vcmask (!%p290_p2), 130144  }
   0x9   : > { %402 = vst.msk [vmem:[#allocation2 + $0x10] sm:$0xf] (!%p290_p2), %vm401_vm1, %v7610_v1  ;;  %405 = vst.msk [vmem:[#allocation2 + $0x28] sm:$0xf] (!%p290_p2), %vm401_vm1, %v7610_v1  ;;  %s7613_s19 = smov (!%p290_p2), 12   ;;  %s10563_s20 = smov (!%p290_p2), 16  }
   0xa   : > { %403 = vst.msk [vmem:[#allocation2 + $0x18] sm:$0xff] (!%p290_p2), %vm10574_vm0, %v7610_v1  ;;  %404 = vst.msk [vmem:[#allocation2 + $0x20] sm:$0xff] (!%p290_p2), %vm10574_vm0, %v7610_v1  ;;  %s10565_s21 = smov (!%p290_p2), 20   ;;  %s7616_s22 = smov (!%p290_p2), 24   ;;  %vm1056_vm5 = vcmask (!%p290_p2), 162944   ;;  %vm10573_vm6 = vcmask (!%p290_p2), 195744  }
   0xb   : > { %406 = vst.msk [vmem:[#allocation2 + $0x30] sm:$0xff] (!%p290_p2), %vm10574_vm0, %v7610_v1  ;;  %407 = vst.msk [vmem:[#allocation2 + $0x38] sm:$0xff] (!%p290_p2), %vm10574_vm0, %v7610_v1  ;;  %s7617_s23 = smov (!%p290_p2), 28   ;;  %s7618_s24 = smov (!%p290_p2), 32   ;;  %vm3780_vm7 = vcmask (!%p290_p2), 1041408   ;;  %vm1315_vm8 = vcmask (!%p290_p2), 228544  }
   0xc   : > { %408 = vst.msk [vmem:[#allocation2 + $0x40] sm:$0xf] (!%p290_p2), %vm401_vm1, %v7610_v1  ;;  %411 = vst.msk [vmem:[#allocation2 + $0x58] sm:$0xf] (!%p290_p2), %vm401_vm1, %v7610_v1  ;;  %s7619_s25 = smov (!%p290_p2), 36   ;;  %s7620_s26 = smov (!%p290_p2), 40  }
   0xd   : > { %409 = vst.msk [vmem:[#allocation2 + $0x48] sm:$0xff] (!%p290_p2), %vm10574_vm0, %v7610_v1  ;;  %410 = vst.msk [vmem:[#allocation2 + $0x50] sm:$0xff] (!%p290_p2), %vm10574_vm0, %v7610_v1  ;;  %s10569_s27 = smov (!%p290_p2), 44   ;;  %s10567_s28 = smov (!%p290_p2), 48   ;;  %vm10597_vm9 = vcmask (!%p290_p2), 261344   ;;  %vm10584_vm10 = vcmask (!%p290_p2), 294144  }
   0xe   : > { %412 = vst.msk [vmem:[#allocation2 + $0x60] sm:$0xff] (!%p290_p2), %vm10574_vm0, %v7610_v1  ;;  %413 = vst.msk [vmem:[#allocation2 + $0x68] sm:$0xff] (!%p290_p2), %vm10574_vm0, %v7610_v1  ;;  %s10571_s29 = smov (!%p290_p2), 52   ;;  %s7624_s30 = smov (!%p290_p2), 56   ;;  %vm10580_vm11 = vcmask (!%p290_p2), 326944   ;;  %vm10595_vm12 = vcmask (!%p290_p2), 359744  }
   0xf   : > { %414 = vst.msk [vmem:[#allocation2 + $0x70] sm:$0xf] %vm401_vm1, %v7610_v1  ;;  %417 = vst.msk [vmem:[#allocation2 + $0x88] sm:$0xf] %vm401_vm1, %v7610_v1  ;;  %s10828_s12 = smov (!%p7701_p3, %s7129_s12), 1  ;;  %v557_v12 = vld [vmem:[#allocation2 + $0x1] sm:$0xff] }
  0x10   : > { %415 = vst.msk [vmem:[#allocation2 + $0x78] sm:$0xff] %vm10574_vm0, %v7610_v1  ;;  %416 = vst.msk [vmem:[#allocation2 + $0x80] sm:$0xff] %vm10574_vm0, %v7610_v1  ;;  %s7218_s13 = sshll.u32 %s10828_s12, 7  ;;  %v558_v13 = vld [vmem:[#allocation2 + $0x9] sm:$0xff]  ;;  %s7625_s10 = smov 60   ;;  %vm10582_vm13 = vcmask 392544  }
  0x11   : > { %418 = vst.msk [vmem:[#allocation2 + $0x90] sm:$0xff] %vm10574_vm0, %v7610_v1  ;;  %419 = vst.msk [vmem:[#allocation2 + $0x98] sm:$0xff] %vm10574_vm0, %v7610_v1  ;;  %s7835_s16 = scalar_lea.vmem %s10553_s0, %s7218_s13  ;;  %v559_v14 = vld [vmem:[#allocation2 + $0x19] sm:$0xff]  ;;  %v589_v19 = vpack.c.bf16 %v558_v13, %v557_v12  ;;  %v560_v20 = vld [vmem:[#allocation2 + $0x21] sm:$0xff]  ;;  %s10593_s8 = smov 64   ;;  %vm10575_vm14 = vcmask 425344  }
  0x12   : > { %420 = vst.msk [vmem:[#allocation2 + $0xa0] sm:$0xf] %vm401_vm1, %v7610_v1  ;;  %423 = vst.msk [vmem:[#allocation2 + $0xb8] sm:$0xf] %vm401_vm1, %v7610_v1  ;;  %v7284_v2 = vld [vmem:[%s7835_s16 + $0x10] sm:$0xff]   ;;  %v7220_v3 = vld [vmem:[%s7835_s16] sm:$0xff]   ;;  %v7849_v26 = vpack.c.bf16 %v560_v20, %v559_v14 }
  0x13   : > { %421 = vst.msk [vmem:[#allocation2 + $0xa8] sm:$0xff] %vm10574_vm0, %v7610_v1  ;;  %422 = vst.msk [vmem:[#allocation2 + $0xb0] sm:$0xff] %vm10574_vm0, %v7610_v1  ;;  %v7286_v4 = vld [vmem:[%s7835_s16 + $0x20] sm:$0xff]   ;;  %v7229_v5 = vunpack.c.l.bf16 %v7284_v2  ;;  %v7230_v6 = vunpack.c.h.bf16 %v7284_v2  ;;  %v7221_v7 = vunpack.c.l.bf16 %v7220_v3  ;;  %v7222_v8 = vunpack.c.h.bf16 %v7220_v3  ;;  %v7283_v9 = vld [vmem:[%s7835_s16 + $0x8] sm:$0xff]   ;;  %621 = vrot.lane.b32.xlu0 %v589_v19, %s7611_s17  ;;  %s10589_s13 = smov 68   ;;  %s10585_s14 = smov 72  }
  0x14   : > { %424 = vst.msk [vmem:[#allocation2 + $0xc0] sm:$0xff] %vm10574_vm0, %v7610_v1  ;;  %425 = vst.msk [vmem:[#allocation2 + $0xc8] sm:$0xff] %vm10574_vm0, %v7610_v1  ;;  %v7288_v10 = vld [vmem:[%s7835_s16 + $0x30] sm:$0xff]   ;;  %v7285_v11 = vld [vmem:[%s7835_s16 + $0x18] sm:$0xff]   ;;  %v7237_v15 = vunpack.c.l.bf16 %v7286_v4  ;;  %v7238_v16 = vunpack.c.h.bf16 %v7286_v4  ;;  %v7225_v17 = vunpack.c.l.bf16 %v7283_v9  ;;  %v7226_v18 = vunpack.c.h.bf16 %v7283_v9  ;;  %s10591_s15 = smov 76  }
  0x15   : > { %426 = vst.msk [vmem:[#allocation2 + $0xd0] sm:$0xf] %vm401_vm1, %v7610_v1  ;;  %429 = vst.msk [vmem:[#allocation2 + $0xe8] sm:$0xf] %vm401_vm1, %v7610_v1  ;;  %v7245_v21 = vunpack.c.l.bf16 %v7288_v10  ;;  %v7246_v22 = vunpack.c.h.bf16 %v7288_v10  ;;  %v7233_v23 = vunpack.c.l.bf16 %v7285_v11  ;;  %v7290_v24 = vld [vmem:[%s7835_s16 + $0x40] sm:$0xff]   ;;  %v7287_v25 = vld [vmem:[%s7835_s16 + $0x28] sm:$0xff]   ;;  %v7234_v27 = vunpack.c.h.bf16 %v7285_v11 }
  0x16   : > { %427 = vst.msk [vmem:[#allocation2 + $0xd8] sm:$0xff] %vm10574_vm0, %v7610_v1  ;;  %428 = vst.msk [vmem:[#allocation2 + $0xe0] sm:$0xff] %vm10574_vm0, %v7610_v1  ;;  %v7253_v28 = vunpack.c.l.bf16 %v7290_v24  ;;  %v7254_v29 = vunpack.c.h.bf16 %v7290_v24  ;;  %v7292_v30 = vld [vmem:[%s7835_s16 + $0x50] sm:$0xff]   ;;  %v7289_v31 = vld [vmem:[%s7835_s16 + $0x38] sm:$0xff]   ;;  %v7241_v33 = vunpack.c.l.bf16 %v7287_v25  ;;  %v7242_v34 = vunpack.c.h.bf16 %v7287_v25 }
  0x17   : > { %430 = vst.msk [vmem:[#allocation2 + $0xf0] sm:$0xff] %vm10574_vm0, %v7610_v1  ;;  %431 = vst.msk [vmem:[#allocation2 + $0xf8] sm:$0xff] %vm10574_vm0, %v7610_v1  ;;  %v7294_v32 = vld [vmem:[%s7835_s16 + $0x60] sm:$0xff]   ;;  %v7261_v35 = vunpack.c.l.bf16 %v7292_v30  ;;  %v7262_v36 = vunpack.c.h.bf16 %v7292_v30  ;;  %v7291_v37 = vld [vmem:[%s7835_s16 + $0x48] sm:$0xff]   ;;  %v7249_v38 = vunpack.c.l.bf16 %v7289_v31  ;;  %v7250_v39 = vunpack.c.h.bf16 %v7289_v31  ;;  %623 = vrot.lane.b32.xlu0 %v7849_v26, %s7611_s17 }
  0x18   : > { %432 = vst.msk [vmem:[#allocation2 + $0x100] sm:$0xf] %vm401_vm1, %v7610_v1  ;;  %435 = vst.msk [vmem:[#allocation2 + $0x118] sm:$0xf] %vm401_vm1, %v7610_v1  ;;  %v7269_v40 = vunpack.c.l.bf16 %v7294_v32  ;;  %v7270_v41 = vunpack.c.h.bf16 %v7294_v32  ;;  %v7293_v42 = vld [vmem:[%s7835_s16 + $0x58] sm:$0xff]   ;;  %v7295_v43 = vld [vmem:[%s7835_s16 + $0x68] sm:$0xff]   ;;  %v7257_v44 = vunpack.c.l.bf16 %v7291_v37  ;;  %v7258_v45 = vunpack.c.h.bf16 %v7291_v37 }
  0x19   : > { %433 = vst.msk [vmem:[#allocation2 + $0x108] sm:$0xff] %vm10574_vm0, %v7610_v1  ;;  %434 = vst.msk [vmem:[#allocation2 + $0x110] sm:$0xff] %vm10574_vm0, %v7610_v1  ;;  %v7265_v46 = vunpack.c.l.bf16 %v7293_v42  ;;  %v7266_v47 = vunpack.c.h.bf16 %v7293_v42  ;;  %v7273_v48 = vunpack.c.l.bf16 %v7295_v43  ;;  %v7274_v49 = vunpack.c.h.bf16 %v7295_v43  ;;  %v687_v24 = vld [vmem:[#allocation2 + $0xa] sm:$0xff] }
  0x1a   : > { %436 = vst.msk [vmem:[#allocation2 + $0x120] sm:$0xff] %vm10574_vm0, %v7610_v1  ;;  %437 = vst.msk [vmem:[#allocation2 + $0x128] sm:$0xff] %vm10574_vm0, %v7610_v1  ;;  %vm10576_vm15 = vcmask 458144  }
  0x1b   : > { %438 = vst.msk [vmem:[#allocation2 + $0x130] sm:$0xf] %vm401_vm1, %v7610_v1  ;;  %441 = vst.msk [vmem:[#allocation2 + $0x148] sm:$0xf] %vm401_vm1, %v7610_v1 }
  0x1c   : > { %439 = vst.msk [vmem:[#allocation2 + $0x138] sm:$0xff] %vm10574_vm0, %v7610_v1  ;;  %440 = vst.msk [vmem:[#allocation2 + $0x140] sm:$0xff] %vm10574_vm0, %v7610_v1 }
  0x1d   : > { %442 = vst.msk [vmem:[#allocation2 + $0x150] sm:$0xff] %vm10574_vm0, %v7610_v1  ;;  %443 = vst.msk [vmem:[#allocation2 + $0x158] sm:$0xff] %vm10574_vm0, %v7610_v1 }
  0x1e   : > { %444 = vst.msk [vmem:[#allocation2 + $0x160] sm:$0xf] %vm401_vm1, %v7610_v1  ;;  %447 = vst.msk [vmem:[#allocation2 + $0x178] sm:$0xf] %vm401_vm1, %v7610_v1 }
  0x1f   : > { %445 = vst.msk [vmem:[#allocation2 + $0x168] sm:$0xff] %vm10574_vm0, %v7610_v1  ;;  %446 = vst.msk [vmem:[#allocation2 + $0x170] sm:$0xff] %vm10574_vm0, %v7610_v1 }
  0x20   : > { %448 = vst.msk [vmem:[#allocation2 + $0x180] sm:$0xff] %vm10574_vm0, %v7610_v1  ;;  %449 = vst.msk [vmem:[#allocation2 + $0x188] sm:$0xff] %vm10574_vm0, %v7610_v1 }
  0x21   : > { %450 = vst.msk [vmem:[#allocation2 + $0x190] sm:$0xf] %vm401_vm1, %v7610_v1  ;;  %453 = vst.msk [vmem:[#allocation2 + $0x1a8] sm:$0xf] %vm401_vm1, %v7610_v1 }
  0x22   : > { %451 = vst.msk [vmem:[#allocation2 + $0x198] sm:$0xff] %vm10574_vm0, %v7610_v1  ;;  %452 = vst.msk [vmem:[#allocation2 + $0x1a0] sm:$0xff] %vm10574_vm0, %v7610_v1 }
  0x23   : > { %454 = vst.msk [vmem:[#allocation2 + $0x1b0] sm:$0xff] %vm10574_vm0, %v7610_v1  ;;  %455 = vst.msk [vmem:[#allocation2 + $0x1b8] sm:$0xff] %vm10574_vm0, %v7610_v1 }
  0x24   : > { %456 = vst.msk [vmem:[#allocation2 + $0x1c0] sm:$0xf] %vm401_vm1, %v7610_v1  ;;  %459 = vst.msk [vmem:[#allocation2 + $0x1d8] sm:$0xf] %vm401_vm1, %v7610_v1  ;;  %vm10577_vm1 = vcmask 490944  }
  0x25   : > { %457 = vst.msk [vmem:[#allocation2 + $0x1c8] sm:$0xff] %vm10574_vm0, %v7610_v1  ;;  %458 = vst.msk [vmem:[#allocation2 + $0x1d0] sm:$0xff] %vm10574_vm0, %v7610_v1 }
  0x26   : > { %465 = vst.msk [vmem:[#allocation2 + $0x62] sm:$0xff] %vm10574_vm0, %v7229_v5  ;;  %466 = vst.msk [vmem:[#allocation2 + $0x6a] sm:$0xff] %vm10574_vm0, %v7230_v6 }
  0x27   : > { %461 = vst.msk [vmem:[#allocation2 + $0x32] sm:$0xff] %vm10574_vm0, %v7221_v7  ;;  %462 = vst.msk [vmem:[#allocation2 + $0x3a] sm:$0xff] %vm10574_vm0, %v7222_v8 }
  0x28   : > { %469 = vst.msk [vmem:[#allocation2 + $0x92] sm:$0xff] %vm10574_vm0, %v7237_v15  ;;  %470 = vst.msk [vmem:[#allocation2 + $0x9a] sm:$0xff] %vm10574_vm0, %v7238_v16 }
  0x29   : > { %463 = vst.msk [vmem:[#allocation2 + $0x4a] sm:$0xff] %vm10574_vm0, %v7225_v17  ;;  %464 = vst.msk [vmem:[#allocation2 + $0x52] sm:$0xff] %vm10574_vm0, %v7226_v18 }
  0x2a   : > { %473 = vst.msk [vmem:[#allocation2 + $0xc2] sm:$0xff] %vm10574_vm0, %v7245_v21  ;;  %474 = vst.msk [vmem:[#allocation2 + $0xca] sm:$0xff] %vm10574_vm0, %v7246_v22 }
  0x2b   : > { %467 = vst.msk [vmem:[#allocation2 + $0x7a] sm:$0xff] %vm10574_vm0, %v7233_v23  ;;  %468 = vst.msk [vmem:[#allocation2 + $0x82] sm:$0xff] %vm10574_vm0, %v7234_v27  ;;  %v686_v23 = vld [vmem:[#allocation2 + $0x2] sm:$0xff] }
  0x2c   : > { %477 = vst.msk [vmem:[#allocation2 + $0xf2] sm:$0xff] %vm10574_vm0, %v7253_v28  ;;  %478 = vst.msk [vmem:[#allocation2 + $0xfa] sm:$0xff] %vm10574_vm0, %v7254_v29  ;;  %v718_v28 = vpack.c.bf16 %v687_v24, %v686_v23 }
  0x2d   : > { %471 = vst.msk [vmem:[#allocation2 + $0xaa] sm:$0xff] %vm10574_vm0, %v7241_v33  ;;  %472 = vst.msk [vmem:[#allocation2 + $0xb2] sm:$0xff] %vm10574_vm0, %v7242_v34  ;;  %v565_v50 = vld [vmem:[#allocation2 + $0x61] sm:$0xff]  ;;  %v566_v51 = vld [vmem:[#allocation2 + $0x69] sm:$0xff] }
  0x2e   : > { %481 = vst.msk [vmem:[#allocation2 + $0x122] sm:$0xff] %vm10574_vm0, %v7261_v35  ;;  %482 = vst.msk [vmem:[#allocation2 + $0x12a] sm:$0xff] %vm10574_vm0, %v7262_v36  ;;  %v561_v52 = vld [vmem:[#allocation2 + $0x31] sm:$0xff]  ;;  %v593_v53 = vpack.c.bf16 %v566_v51, %v565_v50  ;;  %v562_v54 = vld [vmem:[#allocation2 + $0x39] sm:$0xff] }
  0x2f   : > { %475 = vst.msk [vmem:[#allocation2 + $0xda] sm:$0xff] %vm10574_vm0, %v7249_v38  ;;  %476 = vst.msk [vmem:[#allocation2 + $0xe2] sm:$0xff] %vm10574_vm0, %v7250_v39  ;;  %v569_v55 = vld [vmem:[#allocation2 + $0x91] sm:$0xff]  ;;  %v570_v56 = vld [vmem:[#allocation2 + $0x99] sm:$0xff]  ;;  %v7884_v57 = vpack.c.bf16 %v562_v54, %v561_v52 }
  0x30   : > { %485 = vst.msk [vmem:[#allocation2 + $0x152] sm:$0xff] %vm10574_vm0, %v7269_v40  ;;  %486 = vst.msk [vmem:[#allocation2 + $0x15a] sm:$0xff] %vm10574_vm0, %v7270_v41  ;;  %v563_v58 = vld [vmem:[#allocation2 + $0x49] sm:$0xff]  ;;  %v564_v59 = vld [vmem:[#allocation2 + $0x51] sm:$0xff]  ;;  %629 = vrot.lane.b32.xlu0 %v593_v53, %s7611_s17  ;;  %v595_v60 = vpack.c.bf16 %v570_v56, %v569_v55 }
  0x31   : > { %479 = vst.msk [vmem:[#allocation2 + $0x10a] sm:$0xff] %vm10574_vm0, %v7257_v44  ;;  %480 = vst.msk [vmem:[#allocation2 + $0x112] sm:$0xff] %vm10574_vm0, %v7258_v45  ;;  %625 = vrot.lane.b32.xlu1 %v7884_v57, %s7611_s17  ;;  %v592_v61 = vpack.c.bf16 %v564_v59, %v563_v58  ;;  %v573_v62 = vld [vmem:[#allocation2 + $0xc1] sm:$0xff]  ;;  %v574_v63 = vld [vmem:[#allocation2 + $0xc9] sm:$0xff] }
  0x32   : > { %483 = vst.msk [vmem:[#allocation2 + $0x13a] sm:$0xff] %vm10574_vm0, %v7265_v46  ;;  %484 = vst.msk [vmem:[#allocation2 + $0x142] sm:$0xff] %vm10574_vm0, %v7266_v47  ;;  %v567_v0 = vld [vmem:[#allocation2 + $0x79] sm:$0xff]  ;;  %v568_v2 = vld [vmem:[#allocation2 + $0x81] sm:$0xff]  ;;  %v597_v3 = vpack.c.bf16 %v574_v63, %v573_v62 }
  0x33   : > { %487 = vst.msk [vmem:[#allocation2 + $0x16a] sm:$0xff] %vm10574_vm0, %v7273_v48  ;;  %488 = vst.msk [vmem:[#allocation2 + $0x172] sm:$0xff] %vm10574_vm0, %v7274_v49  ;;  %v594_v4 = vpack.c.bf16 %v568_v2, %v567_v0  ;;  %v577_v5 = vld [vmem:[#allocation2 + $0xf1] sm:$0xff]  ;;  %v578_v6 = vld [vmem:[#allocation2 + $0xf9] sm:$0xff] }
  0x34   : > { %633 = vrot.lane.b32.xlu0 %v595_v60, %s7611_s17  ;;  %v571_v7 = vld [vmem:[#allocation2 + $0xa9] sm:$0xff]  ;;  %v572_v8 = vld [vmem:[#allocation2 + $0xb1] sm:$0xff]  ;;  %v599_v9 = vpack.c.bf16 %v578_v6, %v577_v5  ;;  %v691_v31 = vld [vmem:[#allocation2 + $0x3a] sm:$0xff] }
  0x35   : > { %627 = vrot.lane.b32.xlu1 %v592_v61, %s7611_s17  ;;  %v596_v10 = vpack.c.bf16 %v572_v8, %v571_v7  ;;  %v581_v11 = vld [vmem:[#allocation2 + $0x121] sm:$0xff]  ;;  %v582_v12 = vld [vmem:[#allocation2 + $0x129] sm:$0xff]  ;;  %v690_v30 = vld [vmem:[#allocation2 + $0x32] sm:$0xff] }
  0x36   : > { %v575_v13 = vld [vmem:[#allocation2 + $0xd9] sm:$0xff]  ;;  %v576_v14 = vld [vmem:[#allocation2 + $0xe1] sm:$0xff]  ;;  %v601_v15 = vpack.c.bf16 %v582_v12, %v581_v11  ;;  %v7900_v34 = vpack.c.bf16 %v691_v31, %v690_v30  ;;  %v695_v37 = vld [vmem:[#allocation2 + $0x6a] sm:$0xff] }
  0x37   : > { %v598_v16 = vpack.c.bf16 %v576_v14, %v575_v13  ;;  %v585_v17 = vld [vmem:[#allocation2 + $0x151] sm:$0xff]  ;;  %v586_v18 = vld [vmem:[#allocation2 + $0x159] sm:$0xff]  ;;  %v694_v36 = vld [vmem:[#allocation2 + $0x62] sm:$0xff] }
  0x38   : > { %637 = vrot.lane.b32.xlu0 %v597_v3, %s7611_s17  ;;  %v579_v19 = vld [vmem:[#allocation2 + $0x109] sm:$0xff]  ;;  %v580_v20 = vld [vmem:[#allocation2 + $0x111] sm:$0xff]  ;;  %v603_v21 = vpack.c.bf16 %v586_v18, %v585_v17  ;;  %v688_v38 = vld [vmem:[#allocation2 + $0x1a] sm:$0xff]  ;;  %v7905_v40 = vpack.c.bf16 %v695_v37, %v694_v36 }
  0x39   : > { %631 = vrot.lane.b32.xlu1 %v594_v4, %s7611_s17  ;;  %v600_v22 = vpack.c.bf16 %v580_v20, %v579_v19  ;;  %v583_v25 = vld [vmem:[#allocation2 + $0x139] sm:$0xff]  ;;  %v584_v27 = vld [vmem:[#allocation2 + $0x141] sm:$0xff]  ;;  %v692_v46 = vld [vmem:[#allocation2 + $0x4a] sm:$0xff] }
  0x3a   : > { %v602_v29 = vpack.c.bf16 %v584_v27, %v583_v25  ;;  %v587_v32 = vld [vmem:[#allocation2 + $0x169] sm:$0xff]  ;;  %v588_v33 = vld [vmem:[#allocation2 + $0x171] sm:$0xff]  ;;  %v699_v43 = vld [vmem:[#allocation2 + $0x9a] sm:$0xff] }
  0x3b   : > { %v604_v35 = vpack.c.bf16 %v588_v33, %v587_v32  ;;  %v689_v39 = vld [vmem:[#allocation2 + $0x22] sm:$0xff]  ;;  %v698_v41 = vld [vmem:[#allocation2 + $0x92] sm:$0xff]  ;;  %v703_v53 = vld [vmem:[#allocation2 + $0xca] sm:$0xff] }
  0x3c   : > { %641 = vrot.lane.b32.xlu0 %v599_v9, %s7611_s17  ;;  %v7908_v42 = vpack.c.bf16 %v689_v39, %v688_v38  ;;  %v494_v44 = vld [vmem:[#allocation2 + $0x8] sm:$0xff]  ;;  %v493_v45 = vld [vmem:[#allocation2] sm:$0xff]  ;;  %v693_v47 = vld [vmem:[#allocation2 + $0x52] sm:$0xff]  ;;  %v724_v51 = vpack.c.bf16 %v699_v43, %v698_v41 }
  0x3d   : > { %635 = vrot.lane.b32.xlu1 %v596_v10, %s7611_s17  ;;  %v525_v48 = vpack.c.bf16 %v494_v44, %v493_v45  ;;  %v495_v49 = vld [vmem:[#allocation2 + $0x18] sm:$0xff]  ;;  %v496_v50 = vld [vmem:[#allocation2 + $0x20] sm:$0xff]  ;;  %v7917_v55 = vpack.c.bf16 %v693_v47, %v692_v46  ;;  %v502_v58 = vld [vmem:[#allocation2 + $0x68] sm:$0xff] }
  0x3e   : > { %v702_v52 = vld [vmem:[#allocation2 + $0xc2] sm:$0xff]  ;;  %v7913_v54 = vpack.c.bf16 %v496_v50, %v495_v49  ;;  %v497_v59 = vld [vmem:[#allocation2 + $0x30] sm:$0xff]  ;;  %v696_v60 = vld [vmem:[#allocation2 + $0x7a] sm:$0xff] }
  0x3f   : > { %541 = vst.msk [vmem:[#allocation3] sm:$0xff] %vm10574_vm0, %v525_v48  ;;  %v501_v56 = vld [vmem:[#allocation2 + $0x60] sm:$0xff]  ;;  %v498_v63 = vld [vmem:[#allocation2 + $0x38] sm:$0xff]  ;;  %v505_v4 = vld [vmem:[#allocation2 + $0x90] sm:$0xff]  ;;  %v726_v5 = vpack.c.bf16 %v703_v53, %v702_v52 }
  0x40   : > { %645 = vrot.lane.b32.xlu0 %v601_v15, %s7611_s17  ;;  %v697_v61 = vld [vmem:[#allocation2 + $0x82] sm:$0xff]  ;;  %542 = vst.msk [vmem:[#allocation3 + $0x8] sm:$0xff] %vm10574_vm0, %v7913_v54  ;;  %v7921_v62 = vpack.c.bf16 %v502_v58, %v501_v56  ;;  %v706_v0 = vld [vmem:[#allocation2 + $0xf2] sm:$0xff]  ;;  %v707_v2 = vld [vmem:[#allocation2 + $0xfa] sm:$0xff]  ;;  %v7923_v3 = vpack.c.bf16 %v498_v63, %v497_v59 }
  0x41   : > { %639 = vrot.lane.b32.xlu1 %v598_v16, %s7611_s17  ;;  %v506_v6 = vld [vmem:[#allocation2 + $0x98] sm:$0xff]  ;;  %v499_v7 = vld [vmem:[#allocation2 + $0x48] sm:$0xff]  ;;  %v500_v8 = vld [vmem:[#allocation2 + $0x50] sm:$0xff]  ;;  %v723_v9 = vpack.c.bf16 %v697_v61, %v696_v60  ;;  %v728_v23 = vpack.c.bf16 %v707_v2, %v706_v0 }
  0x42   : > { %545 = vst.msk [vmem:[#allocation3 + $0x20] sm:$0xff] %vm10574_vm0, %v7921_v62  ;;  %v700_v10 = vld [vmem:[#allocation2 + $0xaa] sm:$0xff]  ;;  %v701_v11 = vld [vmem:[#allocation2 + $0xb2] sm:$0xff]  ;;  %543 = vst.msk [vmem:[#allocation3 + $0x10] sm:$0xff] %vm10574_vm0, %v7923_v3  ;;  %v7932_v12 = vpack.c.bf16 %v506_v6, %v505_v4  ;;  %v7934_v13 = vpack.c.bf16 %v500_v8, %v499_v7 }
  0x43   : > { %v509_v14 = vld [vmem:[#allocation2 + $0xc0] sm:$0xff]  ;;  %v510_v15 = vld [vmem:[#allocation2 + $0xc8] sm:$0xff]  ;;  %v503_v16 = vld [vmem:[#allocation2 + $0x78] sm:$0xff]  ;;  %v725_v30 = vpack.c.bf16 %v701_v11, %v700_v10 }
  0x44   : > { %649 = vrot.lane.b32.xlu0 %v603_v21, %s7611_s17  ;;  %v504_v17 = vld [vmem:[#allocation2 + $0x80] sm:$0xff]  ;;  %v711_v19 = vld [vmem:[#allocation2 + $0x12a] sm:$0xff]  ;;  %547 = vst.msk [vmem:[#allocation3 + $0x30] sm:$0xff] %vm10574_vm0, %v7932_v12  ;;  %544 = vst.msk [vmem:[#allocation3 + $0x18] sm:$0xff] %vm10574_vm0, %v7934_v13  ;;  %v7940_v20 = vpack.c.bf16 %v510_v15, %v509_v14 }
  0x45   : > { %643 = vrot.lane.b32.xlu1 %v600_v22, %s7611_s17  ;;  %v710_v18 = vld [vmem:[#allocation2 + $0x122] sm:$0xff]  ;;  %v7942_v21 = vpack.c.bf16 %v504_v17, %v503_v16  ;;  %v513_v22 = vld [vmem:[#allocation2 + $0xf0] sm:$0xff]  ;;  %v704_v24 = vld [vmem:[#allocation2 + $0xda] sm:$0xff] }
  0x46   : > { %v705_v25 = vld [vmem:[#allocation2 + $0xe2] sm:$0xff]  ;;  %v514_v27 = vld [vmem:[#allocation2 + $0xf8] sm:$0xff]  ;;  %549 = vst.msk [vmem:[#allocation3 + $0x40] sm:$0xff] %vm10574_vm0, %v7940_v20  ;;  %v521_v39 = vld [vmem:[#allocation2 + $0x150] sm:$0xff]  ;;  %v730_v50 = vpack.c.bf16 %v711_v19, %v710_v18 }
  0x47   : > { %546 = vst.msk [vmem:[#allocation3 + $0x28] sm:$0xff] %vm10574_vm0, %v7942_v21  ;;  %v7950_v31 = vpack.c.bf16 %v514_v27, %v513_v22  ;;  %v517_v33 = vld [vmem:[#allocation2 + $0x120] sm:$0xff]  ;;  %v511_v36 = vld [vmem:[#allocation2 + $0xd8] sm:$0xff]  ;;  %v515_v47 = vld [vmem:[#allocation2 + $0x108] sm:$0xff]  ;;  %v727_v58 = vpack.c.bf16 %v705_v25, %v704_v24 }
  0x48   : > { %750 = vrot.lane.b32.xlu0 %v718_v28, %s7612_s18  ;;  %v507_v28 = vld [vmem:[#allocation2 + $0xa8] sm:$0xff]  ;;  %v512_v38 = vld [vmem:[#allocation2 + $0xe0] sm:$0xff]  ;;  %v522_v41 = vld [vmem:[#allocation2 + $0x158] sm:$0xff] }
  0x49   : > { %647 = vrot.lane.b32.xlu1 %v602_v29, %s7611_s17  ;;  %v508_v29 = vld [vmem:[#allocation2 + $0xb0] sm:$0xff]  ;;  %v715_v44 = vld [vmem:[#allocation2 + $0x15a] sm:$0xff]  ;;  %551 = vst.msk [vmem:[#allocation3 + $0x50] sm:$0xff] %vm10574_vm0, %v7950_v31  ;;  %v7958_v45 = vpack.c.bf16 %v512_v38, %v511_v36  ;;  %v539_v46 = vpack.c.bf16 %v522_v41, %v521_v39  ;;  %v523_v53 = vld [vmem:[#allocation2 + $0x168] sm:$0xff] }
  0x4a   : > { %v7952_v32 = vpack.c.bf16 %v508_v29, %v507_v28  ;;  %v714_v43 = vld [vmem:[#allocation2 + $0x152] sm:$0xff]  ;;  %v520_v52 = vld [vmem:[#allocation2 + $0x140] sm:$0xff]  ;;  %v708_v59 = vld [vmem:[#allocation2 + $0x10a] sm:$0xff] }
  0x4b   : > { %v516_v48 = vld [vmem:[#allocation2 + $0x110] sm:$0xff]  ;;  %v519_v49 = vld [vmem:[#allocation2 + $0x138] sm:$0xff]  ;;  %550 = vst.msk [vmem:[#allocation3 + $0x48] sm:$0xff] %vm10574_vm0, %v7958_v45  ;;  %555 = vst.msk [vmem:[#allocation3 + $0x70] sm:$0xff] %vm10574_vm0, %v539_v46  ;;  %v732_v4 = vpack.c.bf16 %v715_v44, %v714_v43 }
  0x4c   : > { %754 = vrot.lane.b32.xlu0 %v7900_v34, %s7612_s18  ;;  %548 = vst.msk [vmem:[#allocation3 + $0x38] sm:$0xff] %vm10574_vm0, %v7952_v32  ;;  %v524_v56 = vld [vmem:[#allocation2 + $0x170] sm:$0xff]  ;;  %v538_v61 = vpack.c.bf16 %v520_v52, %v519_v49  ;;  %v815_v0 = vld [vmem:[#allocation2 + $0x3] sm:$0xff]  ;;  %v712_v6 = vld [vmem:[#allocation2 + $0x13a] sm:$0xff] }
  0x4d   : > { %651 = vrot.lane.b32.xlu1 %v604_v35, %s7611_s17  ;;  %v518_v35 = vld [vmem:[#allocation2 + $0x128] sm:$0xff]  ;;  %v709_v60 = vld [vmem:[#allocation2 + $0x112] sm:$0xff]  ;;  %v540_v63 = vpack.c.bf16 %v524_v56, %v523_v53  ;;  %v817_v19 = vld [vmem:[#allocation2 + $0x1b] sm:$0xff]  ;;  %s10587_s17 = smov 80  }
  0x4e   : > { %v537_v37 = vpack.c.bf16 %v518_v35, %v517_v33  ;;  %v816_v2 = vld [vmem:[#allocation2 + $0xb] sm:$0xff]  ;;  %554 = vst.msk [vmem:[#allocation3 + $0x68] sm:$0xff] %vm10574_vm0, %v538_v61  ;;  %v713_v7 = vld [vmem:[#allocation2 + $0x142] sm:$0xff]  ;;  %v819_v8 = vld [vmem:[#allocation2 + $0x33] sm:$0xff] }
  0x4f   : > { %556 = vst.msk [vmem:[#allocation3 + $0x78] sm:$0xff] %vm10574_vm0, %v540_v63  ;;  %v847_v10 = vpack.c.bf16 %v816_v2, %v815_v0  ;;  %v716_v11 = vld [vmem:[#allocation2 + $0x16a] sm:$0xff]  ;;  %v717_v14 = vld [vmem:[#allocation2 + $0x172] sm:$0xff]  ;;  %v731_v15 = vpack.c.bf16 %v713_v7, %v712_v6  ;;  %v828_v28 = vld [vmem:[#allocation2 + $0x9b] sm:$0xff] }
  0x50   : > { %758 = vrot.lane.b32.xlu0 %v7905_v40, %s7612_s18  ;;  %553 = vst.msk [vmem:[#allocation3 + $0x60] sm:$0xff] %vm10574_vm0, %v537_v37  ;;  %v823_v16 = vld [vmem:[#allocation2 + $0x63] sm:$0xff]  ;;  %v824_v18 = vld [vmem:[#allocation2 + $0x6b] sm:$0xff]  ;;  %v827_v27 = vld [vmem:[#allocation2 + $0x93] sm:$0xff] }
  0x51   : > { %752 = vrot.lane.b32.xlu1 %v7908_v42, %s7612_s18  ;;  %v818_v22 = vld [vmem:[#allocation2 + $0x23] sm:$0xff]  ;;  %v7979_v24 = vpack.c.bf16 %v824_v18, %v823_v16  ;;  %v821_v29 = vld [vmem:[#allocation2 + $0x4b] sm:$0xff]  ;;  %v853_v33 = vpack.c.bf16 %v828_v28, %v827_v27  ;;  %v825_v38 = vld [vmem:[#allocation2 + $0x7b] sm:$0xff] }
  0x52   : > { %v7982_v25 = vpack.c.bf16 %v818_v22, %v817_v19  ;;  %v831_v36 = vld [vmem:[#allocation2 + $0xc3] sm:$0xff]  ;;  %v832_v37 = vld [vmem:[#allocation2 + $0xcb] sm:$0xff]  ;;  %v835_v44 = vld [vmem:[#allocation2 + $0xf3] sm:$0xff] }
  0x53   : > { %v826_v39 = vld [vmem:[#allocation2 + $0x83] sm:$0xff]  ;;  %v855_v41 = vpack.c.bf16 %v832_v37, %v831_v36  ;;  %v836_v46 = vld [vmem:[#allocation2 + $0xfb] sm:$0xff]  ;;  %v840_v52 = vld [vmem:[#allocation2 + $0x12b] sm:$0xff] }
  0x54   : > { %762 = vrot.lane.b32.xlu0 %v724_v51, %s7612_s18  ;;  %v536_v51 = vpack.c.bf16 %v516_v48, %v515_v47  ;;  %v852_v43 = vpack.c.bf16 %v826_v39, %v825_v38  ;;  %v829_v47 = vld [vmem:[#allocation2 + $0xab] sm:$0xff]  ;;  %v830_v48 = vld [vmem:[#allocation2 + $0xb3] sm:$0xff]  ;;  %v857_v49 = vpack.c.bf16 %v836_v46, %v835_v44  ;;  %v833_v53 = vld [vmem:[#allocation2 + $0xdb] sm:$0xff] }
  0x55   : > { %756 = vrot.lane.b32.xlu1 %v7917_v55, %s7612_s18  ;;  %v834_v56 = vld [vmem:[#allocation2 + $0xe3] sm:$0xff]  ;;  %v844_v61 = vld [vmem:[#allocation2 + $0x15b] sm:$0xff]  ;;  %v837_v63 = vld [vmem:[#allocation2 + $0x10b] sm:$0xff] }
  0x56   : > { %552 = vst.msk [vmem:[#allocation3 + $0x58] sm:$0xff] %vm10574_vm0, %v536_v51  ;;  %v839_v51 = vld [vmem:[#allocation2 + $0x123] sm:$0xff]  ;;  %v838_v0 = vld [vmem:[#allocation2 + $0x113] sm:$0xff]  ;;  %v841_v7 = vld [vmem:[#allocation2 + $0x13b] sm:$0xff]  ;;  %vm3252_vm0 = vcmask 720544  }
  0x57   : > { %v945_v6 = vld [vmem:[#allocation2 + $0xc] sm:$0xff]  ;;  %v952_v22 = vld [vmem:[#allocation2 + $0x64] sm:$0xff]  ;;  %v946_v27 = vld [vmem:[#allocation2 + $0x1c] sm:$0xff] }
  0x58   : > { %766 = vrot.lane.b32.xlu0 %v726_v5, %s7612_s18  ;;  %v729_v5 = vpack.c.bf16 %v709_v60, %v708_v59  ;;  %v856_v59 = vpack.c.bf16 %v834_v56, %v833_v53  ;;  %v843_v60 = vld [vmem:[#allocation2 + $0x153] sm:$0xff]  ;;  %v947_v28 = vld [vmem:[#allocation2 + $0x24] sm:$0xff]  ;;  %v957_v36 = vld [vmem:[#allocation2 + $0x9c] sm:$0xff] }
  0x59   : > { %760 = vrot.lane.b32.xlu1 %v723_v9, %s7612_s18  ;;  %v820_v9 = vld [vmem:[#allocation2 + $0x3b] sm:$0xff]  ;;  %v861_v2 = vpack.c.bf16 %v844_v61, %v843_v60  ;;  %v846_v16 = vld [vmem:[#allocation2 + $0x173] sm:$0xff] }
  0x5a   : > { %v7974_v17 = vpack.c.bf16 %v820_v9, %v819_v8  ;;  %v842_v8 = vld [vmem:[#allocation2 + $0x143] sm:$0xff]  ;;  %v950_v37 = vld [vmem:[#allocation2 + $0x4c] sm:$0xff]  ;;  %v951_v38 = vld [vmem:[#allocation2 + $0x54] sm:$0xff] }
  0x5b   : > { %v961_v44 = vld [vmem:[#allocation2 + $0xcc] sm:$0xff]  ;;  %v954_v46 = vld [vmem:[#allocation2 + $0x7c] sm:$0xff]  ;;  %v959_v53 = vld [vmem:[#allocation2 + $0xb4] sm:$0xff] }
  0x5c   : > { %770 = vrot.lane.b32.xlu0 %v728_v23, %s7612_s18  ;;  %v733_v23 = vpack.c.bf16 %v717_v14, %v716_v11  ;;  %v948_v11 = vld [vmem:[#allocation2 + $0x34] sm:$0xff]  ;;  %v949_v14 = vld [vmem:[#allocation2 + $0x3c] sm:$0xff]  ;;  %v969_v60 = vld [vmem:[#allocation2 + $0x12c] sm:$0xff] }
  0x5d   : > { %764 = vrot.lane.b32.xlu1 %v725_v30, %s7612_s18  ;;  %v822_v30 = vld [vmem:[#allocation2 + $0x53] sm:$0xff]  ;;  %v8002_v18 = vpack.c.bf16 %v949_v14, %v948_v11 }
  0x5e   : > { %v7988_v35 = vpack.c.bf16 %v822_v30, %v821_v29  ;;  %v8010_v30 = vpack.c.bf16 %v947_v28, %v946_v27  ;;  %v974_v27 = vld [vmem:[#allocation2 + $0x16c] sm:$0xff]  ;;  %v975_v28 = vld [vmem:[#allocation2 + $0x174] sm:$0xff] }
  0x60   : > { %774 = vrot.lane.b32.xlu0 %v730_v50, %s7612_s18  ;;  %v854_v50 = vpack.c.bf16 %v830_v48, %v829_v47  ;;  %v955_v47 = vld [vmem:[#allocation2 + $0x84] sm:$0xff] }
  0x61   : > { %768 = vrot.lane.b32.xlu1 %v727_v58, %s7612_s18  ;;  %v859_v58 = vpack.c.bf16 %v840_v52, %v839_v51  ;;  %v965_v51 = vld [vmem:[#allocation2 + $0xfc] sm:$0xff]  ;;  %v958_v52 = vld [vmem:[#allocation2 + $0xac] sm:$0xff] }
  0x64   : > { %778 = vrot.lane.b32.xlu0 %v732_v4, %s7612_s18  ;;  %v858_v4 = vpack.c.bf16 %v838_v0, %v837_v63  ;;  %v962_v63 = vld [vmem:[#allocation2 + $0xdc] sm:$0xff]  ;;  %v963_v0 = vld [vmem:[#allocation2 + $0xe4] sm:$0xff] }
  0x65   : > { %772 = vrot.lane.b32.xlu1 %v729_v5, %s7612_s18  ;;  %v944_v5 = vld [vmem:[#allocation2 + $0x4] sm:$0xff] }
  0x66   : > { %v976_v9 = vpack.c.bf16 %v945_v6, %v944_v5  ;;  %v972_v5 = vld [vmem:[#allocation2 + $0x154] sm:$0xff]  ;;  %v973_v6 = vld [vmem:[#allocation2 + $0x15c] sm:$0xff] }
  0x68   : > { %879 = vrot.lane.b32.xlu0 %v847_v10, %s7613_s19  ;;  %v860_v10 = vpack.c.bf16 %v842_v8, %v841_v7  ;;  %v966_v8 = vld [vmem:[#allocation2 + $0x10c] sm:$0xff] }
  0x69   : > { %776 = vrot.lane.b32.xlu1 %v731_v15, %s7612_s18  ;;  %v845_v15 = vld [vmem:[#allocation2 + $0x16b] sm:$0xff] }
  0x6a   : > { %v862_v19 = vpack.c.bf16 %v846_v16, %v845_v15  ;;  %v970_v15 = vld [vmem:[#allocation2 + $0x13c] sm:$0xff]  ;;  %v971_v16 = vld [vmem:[#allocation2 + $0x144] sm:$0xff] }
  0x6c   : > { %883 = vrot.lane.b32.xlu0 %v7974_v17, %s7613_s19 }
  0x6d   : > { %780 = vrot.lane.b32.xlu1 %v733_v23, %s7612_s18  ;;  %v953_v23 = vld [vmem:[#allocation2 + $0x6c] sm:$0xff]  ;;  %s7631_s18 = smov 84  }
  0x6e   : > { %v8007_v29 = vpack.c.bf16 %v953_v23, %v952_v22  ;;  %v989_v22 = vpack.c.bf16 %v971_v16, %v970_v15 }
  0x70   : > { %887 = vrot.lane.b32.xlu0 %v7979_v24, %s7613_s19 }
  0x71   : > { %881 = vrot.lane.b32.xlu1 %v7982_v25, %s7613_s19 }
  0x74   : > { %891 = vrot.lane.b32.xlu0 %v853_v33, %s7613_s19  ;;  %v956_v33 = vld [vmem:[#allocation2 + $0x94] sm:$0xff] }
  0x75   : > { %885 = vrot.lane.b32.xlu1 %v7988_v35, %s7613_s19  ;;  %v982_v39 = vpack.c.bf16 %v957_v36, %v956_v33  ;;  %v991_v36 = vpack.c.bf16 %v975_v28, %v974_v27  ;;  %v1854_v28 = vld [vmem:[#allocation2 + $0x79] sm:$0xff] }
  0x78   : > { %895 = vrot.lane.b32.xlu0 %v855_v41, %s7613_s19  ;;  %v8016_v41 = vpack.c.bf16 %v951_v38, %v950_v37 }
  0x79   : > { %889 = vrot.lane.b32.xlu1 %v852_v43, %s7613_s19  ;;  %v960_v43 = vld [vmem:[#allocation2 + $0xc4] sm:$0xff] }
  0x7a   : > { %v984_v48 = vpack.c.bf16 %v961_v44, %v960_v43 }
  0x7c   : > { %899 = vrot.lane.b32.xlu0 %v857_v49, %s7613_s19  ;;  %v8021_v49 = vpack.c.bf16 %v955_v47, %v954_v46 }
  0x7d   : > { %893 = vrot.lane.b32.xlu1 %v854_v50, %s7613_s19  ;;  %v964_v50 = vld [vmem:[#allocation2 + $0xf4] sm:$0xff] }
  0x7e   : > { %v986_v56 = vpack.c.bf16 %v965_v51, %v964_v50 }
  0x80   : > { %903 = vrot.lane.b32.xlu0 %v859_v58, %s7613_s19  ;;  %v983_v58 = vpack.c.bf16 %v959_v53, %v958_v52 }
  0x81   : > { %897 = vrot.lane.b32.xlu1 %v856_v59, %s7613_s19  ;;  %v968_v59 = vld [vmem:[#allocation2 + $0x124] sm:$0xff] }
  0x84   : > { %907 = vrot.lane.b32.xlu0 %v861_v2, %s7613_s19  ;;  %v988_v2 = vpack.c.bf16 %v969_v60, %v968_v59 }
  0x85   : > { %901 = vrot.lane.b32.xlu1 %v858_v4, %s7613_s19  ;;  %v622_v61 = vpop.permute.xlu0 %621  ;;  %v985_v4 = vpack.c.bf16 %v963_v0, %v962_v63  ;;  %v1209_v63 = vld [vmem:[#allocation2 + $0x61] sm:$0xff]  ;;  %v1210_v0 = vld [vmem:[#allocation2 + $0x69] sm:$0xff] }
  0x86   : > { %670 = vst.msk [vmem:[#allocation3] sm:$0xff] %vm669_vm2, %v622_v61 }
  0x88   : > { %1008 = vrot.lane.b32.xlu0 %v976_v9, %s10563_s20  ;;  %v967_v9 = vld [vmem:[#allocation2 + $0x114] sm:$0xff] }
  0x89   : > { %905 = vrot.lane.b32.xlu1 %v860_v10, %s7613_s19  ;;  %v624_v7 = vpop.permute.xlu0 %623  ;;  %v990_v10 = vpack.c.bf16 %v973_v6, %v972_v5  ;;  %v987_v11 = vpack.c.bf16 %v967_v9, %v966_v8 }
  0x8a   : > { %671 = vst.msk [vmem:[#allocation3 + $0x8] sm:$0xff] %vm669_vm2, %v624_v7 }
  0x8c   : > { %1012 = vrot.lane.b32.xlu0 %v8002_v18, %s10563_s20 }
  0x8d   : > { %909 = vrot.lane.b32.xlu1 %v862_v19, %s7613_s19  ;;  %s10600_s19 = smov 48  }
  0x90   : > { %1016 = vrot.lane.b32.xlu0 %v8007_v29, %s10563_s20 }
  0x91   : > { %1010 = vrot.lane.b32.xlu1 %v8010_v30, %s10563_s20 }
  0x94   : > { %1020 = vrot.lane.b32.xlu0 %v982_v39, %s10563_s20 }
  0x95   : > { %1014 = vrot.lane.b32.xlu1 %v8016_v41, %s10563_s20 }
  0x98   : > { %1024 = vrot.lane.b32.xlu0 %v984_v48, %s10563_s20 }
  0x99   : > { %1018 = vrot.lane.b32.xlu1 %v8021_v49, %s10563_s20 }
  0x9c   : > { %1028 = vrot.lane.b32.xlu0 %v986_v56, %s10563_s20  ;;  %v1850_v56 = vld [vmem:[#allocation2 + $0x49] sm:$0xff] }
  0x9d   : > { %1022 = vrot.lane.b32.xlu1 %v983_v58, %s10563_s20  ;;  %v1851_v58 = vld [vmem:[#allocation2 + $0x51] sm:$0xff] }
  0x9e   : > { %v1881_v59 = vpack.c.bf16 %v1851_v58, %v1850_v56  ;;  %v7574_v58 = vld [vmem:[%s10554_s1 + $0x18] sm:$0xff]  }
  0xa0   : > { %1032 = vrot.lane.b32.xlu0 %v988_v2, %s10563_s20 }
  0xa1   : > { %1026 = vrot.lane.b32.xlu1 %v985_v4, %s10563_s20  ;;  %v8121_v4 = vpack.c.bf16 %v1210_v0, %v1209_v63 }
  0xa2   : > { %v630_v14 = vpop.permute.xlu0 %629 }
  0xa3   : > { %674 = vst.msk [vmem:[#allocation3 + $0x20] sm:$0xff] %vm669_vm2, %v630_v14  ;;  %v626_v19 = vpop.permute.xlu1 %625 }
  0xa4   : > { %672 = vst.msk [vmem:[#allocation3 + $0x10] sm:$0xff] %vm669_vm2, %v626_v19  ;;  %1036 = vrot.lane.b32.xlu0 %v990_v10, %s10563_s20 }
  0xa5   : > { %1030 = vrot.lane.b32.xlu1 %v987_v11, %s10563_s20 }
  0xa6   : > { %v634_v23 = vpop.permute.xlu0 %633 }
  0xa7   : > { %676 = vst.msk [vmem:[#allocation3 + $0x30] sm:$0xff] %vm669_vm2, %v634_v23  ;;  %v628_v33 = vpop.permute.xlu1 %627 }
  0xa8   : > { %673 = vst.msk [vmem:[#allocation3 + $0x18] sm:$0xff] %vm669_vm2, %v628_v33  ;;  %1138 = vrot.lane.b32.xlu0 %v7913_v54, %s10565_s21  ;;  %v1855_v33 = vld [vmem:[#allocation2 + $0x81] sm:$0xff] }
  0xa9   : > { %1034 = vrot.lane.b32.xlu1 %v989_v22, %s10563_s20 }
  0xaa   : > { %v638_v37 = vpop.permute.xlu0 %637 }
  0xab   : > { %678 = vst.msk [vmem:[#allocation3 + $0x40] sm:$0xff] %vm669_vm2, %v638_v37  ;;  %v632_v38 = vpop.permute.xlu1 %631 }
  0xac   : > { %675 = vst.msk [vmem:[#allocation3 + $0x28] sm:$0xff] %vm669_vm2, %v632_v38  ;;  %1142 = vrot.lane.b32.xlu0 %v7934_v13, %s10565_s21 }
  0xad   : > { %1038 = vrot.lane.b32.xlu1 %v991_v36, %s10563_s20  ;;  %s7632_s20 = smov 88  }
  0xae   : > { %v642_v39 = vpop.permute.xlu0 %641 }
  0xaf   : > { %680 = vst.msk [vmem:[#allocation3 + $0x50] sm:$0xff] %vm669_vm2, %v642_v39  ;;  %v636_v43 = vpop.permute.xlu1 %635  ;;  %v1983_v39 = vld [vmem:[#allocation2 + $0x7a] sm:$0xff] }
  0xb0   : > { %677 = vst.msk [vmem:[#allocation3 + $0x38] sm:$0xff] %vm669_vm2, %v636_v43  ;;  %1146 = vrot.lane.b32.xlu0 %v7942_v21, %s10565_s21  ;;  %v1984_v43 = vld [vmem:[#allocation2 + $0x82] sm:$0xff] }
  0xb1   : > { %1140 = vrot.lane.b32.xlu1 %v7923_v3, %s10565_s21 }
  0xb2   : > { %v646_v54 = vpop.permute.xlu0 %645 }
  0xb3   : > { %682 = vst.msk [vmem:[#allocation3 + $0x60] sm:$0xff] %vm669_vm2, %v646_v54  ;;  %v640_v44 = vpop.permute.xlu1 %639  ;;  %v1981_v54 = vld [vmem:[#allocation2 + $0x62] sm:$0xff] }
  0xb4   : > { %679 = vst.msk [vmem:[#allocation3 + $0x48] sm:$0xff] %vm669_vm2, %v640_v44  ;;  %1150 = vrot.lane.b32.xlu0 %v7952_v32, %s10565_s21  ;;  %v1982_v44 = vld [vmem:[#allocation2 + $0x6a] sm:$0xff] }
  0xb5   : > { %1144 = vrot.lane.b32.xlu1 %v7921_v62, %s10565_s21 }
  0xb6   : > { %v650_v46 = vpop.permute.xlu0 %649 }
  0xb7   : > { %684 = vst.msk [vmem:[#allocation3 + $0x70] sm:$0xff] %vm669_vm2, %v650_v46  ;;  %v644_v47 = vpop.permute.xlu1 %643  ;;  %v8195_v46 = vpack.c.bf16 %v1984_v43, %v1983_v39  ;;  %v2887_v43 = vld [vmem:[#allocation2 + $0x94] sm:$0xff] }
  0xb8   : > { %681 = vst.msk [vmem:[#allocation3 + $0x58] sm:$0xff] %vm669_vm2, %v644_v47  ;;  %1154 = vrot.lane.b32.xlu0 %v7958_v45, %s10565_s21  ;;  %v7571_v47 = vld [vmem:[%s10554_s1] sm:$0xff]  }
  0xb9   : > { %1148 = vrot.lane.b32.xlu1 %v7932_v12, %s10565_s21  ;;  %7451 = vmatprep.subr.bf16.mxu0 %v7571_v47 }
  0xba   : > { %v751_v48 = vpop.permute.xlu0 %750  ;;  %7452 = vmatpush3.bf16.msra.mxu0 %v7571_v47  ;;  %v3147_v47 = vld [vmem:[#allocation2 + $0xb1] sm:$0xff] }
  0xbb   : > { %799 = vst.msk [vmem:[#allocation3] sm:$0xff] %vm798_vm3, %v751_v48  ;;  %v648_v32 = vpop.permute.xlu1 %647  ;;  %v2011_v48 = vpack.c.bf16 %v1982_v44, %v1981_v54 }
  0xbc   : > { %683 = vst.msk [vmem:[#allocation3 + $0x68] sm:$0xff] %vm669_vm2, %v648_v32  ;;  %1267 = vrot.lane.b32.xlu0 %v7849_v26, %s7616_s22 }
  0xbd   : > { %1152 = vrot.lane.b32.xlu1 %v7940_v20, %s10565_s21 }
  0xbe   : > { %v755_v50 = vpop.permute.xlu0 %754 }
  0xbf   : > { %801 = vst.msk [vmem:[#allocation3 + $0x10] sm:$0xff] %vm798_vm3, %v755_v50  ;;  %v652_v45 = vpop.permute.xlu1 %651 }
  0xc0   : > { %685 = vst.msk [vmem:[#allocation3 + $0x78] sm:$0xff] %vm669_vm2, %v652_v45  ;;  %1396 = vrot.lane.b32.xlu0 %v7908_v42, %s7617_s23  ;;  %v7572_v45 = vld [vmem:[%s10554_s1 + $0x8] sm:$0xff]   ;;  %vm10578_vm2 = vcmask 523744  }
  0xc1   : > { %1156 = vrot.lane.b32.xlu1 %v7950_v31, %s10565_s21  ;;  %7453 = vmatprep.subr.bf16.mxu0 %v7572_v45  ;;  %s10601_s21 = smov 52  }
  0xc2   : > { %v759_v51 = vpop.permute.xlu0 %758  ;;  %7454 = vmatpush3.bf16.msra.mxu0 %v7572_v45 }
  0xc3   : > { %803 = vst.msk [vmem:[#allocation3 + $0x20] sm:$0xff] %vm798_vm3, %v759_v51  ;;  %v753_v26 = vpop.permute.xlu1 %752  ;;  %v2112_v51 = vld [vmem:[#allocation2 + $0x7b] sm:$0xff] }
  0xc4   : > { %800 = vst.msk [vmem:[#allocation3 + $0x8] sm:$0xff] %vm798_vm3, %v753_v26  ;;  %1525 = vrot.lane.b32.xlu0 %v7982_v25, %s7618_s24 }
  0xc5   : > { %1269 = vrot.lane.b32.xlu1 %v7884_v57, %s7616_s22 }
  0xc6   : > { %v763_v20 = vpop.permute.xlu0 %762 }
  0xc7   : > { %805 = vst.msk [vmem:[#allocation3 + $0x30] sm:$0xff] %vm798_vm3, %v763_v20  ;;  %v757_v42 = vpop.permute.xlu1 %756  ;;  %v2110_v20 = vld [vmem:[#allocation2 + $0x63] sm:$0xff] }
  0xc8   : > { %802 = vst.msk [vmem:[#allocation3 + $0x18] sm:$0xff] %vm798_vm3, %v757_v42  ;;  %1654 = vrot.lane.b32.xlu0 %v8010_v30, %s7619_s25  ;;  %v2111_v42 = vld [vmem:[#allocation2 + $0x6b] sm:$0xff] }
  0xc9   : > { %1398 = vrot.lane.b32.xlu1 %v7900_v34, %s7617_s23 }
  0xca   : > { %v767_v31 = vpop.permute.xlu0 %766 }
  0xcb   : > { %807 = vst.msk [vmem:[#allocation3 + $0x40] sm:$0xff] %vm798_vm3, %v767_v31  ;;  %v761_v25 = vpop.permute.xlu1 %760 }
  0xcc   : > { %804 = vst.msk [vmem:[#allocation3 + $0x28] sm:$0xff] %vm798_vm3, %v761_v25  ;;  %1783 = vrot.lane.b32.xlu0 %v7923_v3, %s7620_s26 }
  0xcd   : > { %1527 = vrot.lane.b32.xlu1 %v7974_v17, %s7618_s24 }
  0xce   : > { %v771_v52 = vpop.permute.xlu0 %770 }
  0xcf   : > { %809 = vst.msk [vmem:[#allocation3 + $0x50] sm:$0xff] %vm798_vm3, %v771_v52  ;;  %v765_v30 = vpop.permute.xlu1 %764  ;;  %v7573_v52 = vld [vmem:[%s10554_s1 + $0x10] sm:$0xff]  }
  0xd0   : > { %806 = vst.msk [vmem:[#allocation3 + $0x38] sm:$0xff] %vm798_vm3, %v765_v30  ;;  %1912 = vrot.lane.b32.xlu0 %v7884_v57, %s10569_s27  ;;  %v2140_v30 = vpack.c.bf16 %v2111_v42, %v2110_v20  ;;  %7455 = vmatprep.subr.bf16.mxu0 %v7573_v52  ;;  %v3275_v42 = vld [vmem:[#allocation2 + $0xaa] sm:$0xff] }
  0xd1   : > { %1656 = vrot.lane.b32.xlu1 %v8002_v18, %s7619_s25  ;;  %7456 = vmatpush3.bf16.msra.mxu0 %v7573_v52 }
  0xd2   : > { %v775_v53 = vpop.permute.xlu0 %774  ;;  %7457 = vmatprep.subr.bf16.mxu0 %v7574_v58 }
  0xd3   : > { %811 = vst.msk [vmem:[#allocation3 + $0x60] sm:$0xff] %vm798_vm3, %v775_v53  ;;  %v769_v3 = vpop.permute.xlu1 %768 }
  0xd4   : > { %808 = vst.msk [vmem:[#allocation3 + $0x48] sm:$0xff] %vm798_vm3, %v769_v3  ;;  %2041 = vrot.lane.b32.xlu0 %v7900_v34, %s10567_s28 }
  0xd5   : > { %1785 = vrot.lane.b32.xlu1 %v7934_v13, %s7620_s26  ;;  %7458 = vmatpush3.bf16.msra.mxu0 %v7574_v58 }
  0xd6   : > { %v779_v57 = vpop.permute.xlu0 %778 }
  0xd7   : > { %813 = vst.msk [vmem:[#allocation3 + $0x70] sm:$0xff] %vm798_vm3, %v779_v57  ;;  %v773_v60 = vpop.permute.xlu1 %772  ;;  %v2240_v57 = vld [vmem:[#allocation2 + $0x6c] sm:$0xff] }
  0xd8   : > { %810 = vst.msk [vmem:[#allocation3 + $0x58] sm:$0xff] %vm798_vm3, %v773_v60  ;;  %2170 = vrot.lane.b32.xlu0 %v7974_v17, %s10571_s29 }
  0xd9   : > { %1914 = vrot.lane.b32.xlu1 %v1881_v59, %s10569_s27 }
  0xda   : > { %v880_v61 = vpop.permute.xlu0 %879 }
  0xdb   : > { %928 = vst.msk [vmem:[#allocation3] sm:$0xff] %vm927_vm4, %v880_v61  ;;  %v777_v34 = vpop.permute.xlu1 %776  ;;  %v7575_v61 = vld [vmem:[%s10554_s1 + $0x20] sm:$0xff]  }
  0xdc   : > { %812 = vst.msk [vmem:[#allocation3 + $0x68] sm:$0xff] %vm798_vm3, %v777_v34  ;;  %2299 = vrot.lane.b32.xlu0 %v8002_v18, %s7624_s30  ;;  %7459 = vmatprep.subr.bf16.mxu0 %v7575_v61 }
  0xdd   : > { %2043 = vrot.lane.b32.xlu1 %v7917_v55, %s10567_s28  ;;  %7460 = vmatpush3.bf16.msra.mxu0 %v7575_v61 }
  0xde   : > { %v884_v2 = vpop.permute.xlu0 %883 }
  0xdf   : > { %930 = vst.msk [vmem:[#allocation3 + $0x10] sm:$0xff] %vm927_vm4, %v884_v2  ;;  %v781_v17 = vpop.permute.xlu1 %780  ;;  %v7576_v2 = vld [vmem:[%s10554_s1 + $0x28] sm:$0xff]  }
  0xe0   : > { %814 = vst.msk [vmem:[#allocation3 + $0x78] sm:$0xff] %vm798_vm3, %v781_v17  ;;  %2301 = vrot.lane.b32.xlu0 %v8016_v41, %s7624_s30  ;;  %7461 = vmatprep.subr.bf16.mxu0 %v7576_v2  ;;  %vm2606_vm3 = vcmask 556544  }
  0xe1   : > { %2172 = vrot.lane.b32.xlu1 %v7988_v35, %s10571_s29  ;;  %7462 = vmatpush3.bf16.msra.mxu0 %v7576_v2 }
  0xe2   : > { %v888_v18 = vpop.permute.xlu0 %887 }
  0xe3   : > { %932 = vst.msk [vmem:[#allocation3 + $0x20] sm:$0xff] %vm927_vm4, %v888_v18  ;;  %v882_v5 = vpop.permute.xlu1 %881  ;;  %v3529_v18 = vld [vmem:[#allocation2 + $0x7c] sm:$0xff] }
  0xe4   : > { %929 = vst.msk [vmem:[#allocation3 + $0x8] sm:$0xff] %vm927_vm4, %v882_v5  ;;  %1273 = vrot.lane.b32.xlu0 %v8121_v4, %s7616_s22  ;;  %v3530_v5 = vld [vmem:[#allocation2 + $0x84] sm:$0xff] }
  0xe5   : > { %1271 = vrot.lane.b32.xlu1 %v1881_v59, %s7616_s22 }
  0xe6   : > { %v892_v6 = vpop.permute.xlu0 %891 }
  0xe7   : > { %934 = vst.msk [vmem:[#allocation3 + $0x30] sm:$0xff] %vm927_vm4, %v892_v6  ;;  %v886_v7 = vpop.permute.xlu1 %885 }
  0xe8   : > { %931 = vst.msk [vmem:[#allocation3 + $0x18] sm:$0xff] %vm927_vm4, %v886_v7  ;;  %2431 = vrot.lane.b32.xlu0 %v7921_v62, %s7625_s10 }
  0xe9   : > { %2429 = vrot.lane.b32.xlu1 %v7934_v13, %s7625_s10 }
  0xea   : > { %v896_v8 = vpop.permute.xlu0 %895 }
  0xeb   : > { %936 = vst.msk [vmem:[#allocation3 + $0x40] sm:$0xff] %vm927_vm4, %v896_v8  ;;  %v890_v9 = vpop.permute.xlu1 %889 }
  0xec   : > { %933 = vst.msk [vmem:[#allocation3 + $0x28] sm:$0xff] %vm927_vm4, %v890_v9  ;;  %1402 = vrot.lane.b32.xlu0 %v7905_v40, %s7617_s23  ;;  %v8257_v9 = vpack.c.bf16 %v3530_v5, %v3529_v18 }
  0xed   : > { %1400 = vrot.lane.b32.xlu1 %v7917_v55, %s7617_s23 }
  0xee   : > { %v900_v10 = vpop.permute.xlu0 %899 }
  0xef   : > { %938 = vst.msk [vmem:[#allocation3 + $0x50] sm:$0xff] %vm927_vm4, %v900_v10  ;;  %v894_v11 = vpop.permute.xlu1 %893 }
  0xf0   : > { %935 = vst.msk [vmem:[#allocation3 + $0x38] sm:$0xff] %vm927_vm4, %v894_v11  ;;  %2560 = vrot.lane.b32.xlu0 %v8121_v4, %s10593_s8 }
  0xf1   : > { %2558 = vrot.lane.b32.xlu1 %v1881_v59, %s10593_s8  ;;  %v2239_v59 = vld [vmem:[#allocation2 + $0x64] sm:$0xff] }
  0xf2   : > { %v904_v13 = vpop.permute.xlu0 %903  ;;  %v2269_v34 = vpack.c.bf16 %v2240_v57, %v2239_v59  ;;  %v3405_v59 = vld [vmem:[#allocation2 + $0xb3] sm:$0xff] }
  0xf3   : > { %940 = vst.msk [vmem:[#allocation3 + $0x60] sm:$0xff] %vm927_vm4, %v904_v13  ;;  %v898_v14 = vpop.permute.xlu1 %897  ;;  %v2500_v13 = vld [vmem:[#allocation2 + $0x91] sm:$0xff] }
  0xf4   : > { %937 = vst.msk [vmem:[#allocation3 + $0x48] sm:$0xff] %vm927_vm4, %v898_v14  ;;  %1531 = vrot.lane.b32.xlu0 %v7979_v24, %s7618_s24  ;;  %v2501_v14 = vld [vmem:[#allocation2 + $0x99] sm:$0xff] }
  0xf5   : > { %1529 = vrot.lane.b32.xlu1 %v7988_v35, %s7618_s24 }
  0xf6   : > { %v908_v15 = vpop.permute.xlu0 %907 }
  0xf7   : > { %942 = vst.msk [vmem:[#allocation3 + $0x70] sm:$0xff] %vm927_vm4, %v908_v15  ;;  %v902_v16 = vpop.permute.xlu1 %901 }
  0xf8   : > { %939 = vst.msk [vmem:[#allocation3 + $0x58] sm:$0xff] %vm927_vm4, %v902_v16  ;;  %2689 = vrot.lane.b32.xlu0 %v7905_v40, %s10589_s13 }
  0xf9   : > { %2687 = vrot.lane.b32.xlu1 %v7917_v55, %s10589_s13 }
  0xfa   : > { %v1009_v19 = vpop.permute.xlu0 %1008 }
  0xfb   : > { %1057 = vst.msk [vmem:[#allocation3] sm:$0xff] %vm1056_vm5, %v1009_v19  ;;  %v906_v22 = vpop.permute.xlu1 %905  ;;  %v2629_v19 = vld [vmem:[#allocation2 + $0x92] sm:$0xff] }
  0xfc   : > { %941 = vst.msk [vmem:[#allocation3 + $0x68] sm:$0xff] %vm927_vm4, %v906_v22  ;;  %1660 = vrot.lane.b32.xlu0 %v8007_v29, %s7619_s25  ;;  %v2630_v22 = vld [vmem:[#allocation2 + $0x9a] sm:$0xff] }
  0xfd   : > { %1658 = vrot.lane.b32.xlu1 %v8016_v41, %s7619_s25 }
  0xfe   : > { %v1013_v23 = vpop.permute.xlu0 %1012 }
  0xff   : > { %1059 = vst.msk [vmem:[#allocation3 + $0x10] sm:$0xff] %vm1056_vm5, %v1013_v23  ;;  %v910_v40 = vpop.permute.xlu1 %909 }
 0x100   : > { %943 = vst.msk [vmem:[#allocation3 + $0x78] sm:$0xff] %vm927_vm4, %v910_v40  ;;  %2818 = vrot.lane.b32.xlu0 %v7979_v24, %s10585_s14  ;;  %v8280_v40 = vpack.c.bf16 %v2630_v22, %v2629_v19  ;;  %vm2735_vm4 = vcmask 589344  }
 0x101   : > { %2816 = vrot.lane.b32.xlu1 %v7988_v35, %s10585_s14  ;;  %v8181_v35 = vpack.c.bf16 %v1855_v33, %v1854_v28  ;;  %v2758_v33 = vld [vmem:[#allocation2 + $0x93] sm:$0xff] }
 0x102   : > { %v1017_v55 = vpop.permute.xlu0 %1016 }
 0x103   : > { %1061 = vst.msk [vmem:[#allocation3 + $0x20] sm:$0xff] %vm1056_vm5, %v1017_v55  ;;  %v1011_v27 = vpop.permute.xlu1 %1010  ;;  %v3015_v55 = vld [vmem:[#allocation2 + $0x90] sm:$0xff] }
 0x104   : > { %1058 = vst.msk [vmem:[#allocation3 + $0x8] sm:$0xff] %vm1056_vm5, %v1011_v27  ;;  %1789 = vrot.lane.b32.xlu0 %v7942_v21, %s7620_s26  ;;  %v3016_v27 = vld [vmem:[#allocation2 + $0x98] sm:$0xff] }
 0x105   : > { %1787 = vrot.lane.b32.xlu1 %v7921_v62, %s7620_s26 }
 0x106   : > { %v1021_v36 = vpop.permute.xlu0 %1020 }
 0x107   : > { %1063 = vst.msk [vmem:[#allocation3 + $0x30] sm:$0xff] %vm1056_vm5, %v1021_v36  ;;  %v1015_v24 = vpop.permute.xlu1 %1014  ;;  %v2759_v36 = vld [vmem:[#allocation2 + $0x9b] sm:$0xff] }
 0x108   : > { %1060 = vst.msk [vmem:[#allocation3 + $0x18] sm:$0xff] %vm1056_vm5, %v1015_v24  ;;  %2947 = vrot.lane.b32.xlu0 %v8007_v29, %s10591_s15 }
 0x109   : > { %2945 = vrot.lane.b32.xlu1 %v8016_v41, %s10591_s15 }
 0x10a   : > { %v1025_v37 = vpop.permute.xlu0 %1024 }
 0x10b   : > { %1065 = vst.msk [vmem:[#allocation3 + $0x40] sm:$0xff] %vm1056_vm5, %v1025_v37  ;;  %v1019_v38 = vpop.permute.xlu1 %1018  ;;  %v8286_v37 = vpack.c.bf16 %v3016_v27, %v3015_v55  ;;  %v2505_v55 = vld [vmem:[#allocation2 + $0xc9] sm:$0xff] }
 0x10c   : > { %1062 = vst.msk [vmem:[#allocation3 + $0x28] sm:$0xff] %vm1056_vm5, %v1019_v38  ;;  %1918 = vrot.lane.b32.xlu0 %v8181_v35, %s10569_s27  ;;  %v8290_v38 = vpack.c.bf16 %v2759_v36, %v2758_v33  ;;  %v2633_v36 = vld [vmem:[#allocation2 + $0xc2] sm:$0xff] }
 0x10d   : > { %1916 = vrot.lane.b32.xlu1 %v8121_v4, %s10569_s27  ;;  %s7633_s27 = smov 92  }
 0x10e   : > { %v1029_v29 = vpop.permute.xlu0 %1028 }
 0x10f   : > { %1067 = vst.msk [vmem:[#allocation3 + $0x50] sm:$0xff] %vm1056_vm5, %v1029_v29  ;;  %v1023_v41 = vpop.permute.xlu1 %1022  ;;  %v2888_v29 = vld [vmem:[#allocation2 + $0x9c] sm:$0xff] }
 0x110   : > { %1064 = vst.msk [vmem:[#allocation3 + $0x38] sm:$0xff] %vm1056_vm5, %v1023_v41  ;;  %3077 = vrot.lane.b32.xlu0 %v7942_v21, %s10587_s17  ;;  %v8298_v44 = vpack.c.bf16 %v2888_v29, %v2887_v43  ;;  %v3146_v41 = vld [vmem:[#allocation2 + $0xa9] sm:$0xff] }
 0x111   : > { %3075 = vrot.lane.b32.xlu1 %v7921_v62, %s10587_s17  ;;  %v2113_v62 = vld [vmem:[#allocation2 + $0x83] sm:$0xff]  ;;  %v2763_v29 = vld [vmem:[#allocation2 + $0xcb] sm:$0xff] }
 0x112   : > { %v1033_v32 = vpop.permute.xlu0 %1032  ;;  %v8214_v25 = vpack.c.bf16 %v2113_v62, %v2112_v51  ;;  %v8304_v51 = vpack.c.bf16 %v3147_v47, %v3146_v41  ;;  %v2762_v43 = vld [vmem:[#allocation2 + $0xc3] sm:$0xff] }
 0x113   : > { %1069 = vst.msk [vmem:[#allocation3 + $0x60] sm:$0xff] %vm1056_vm5, %v1033_v32  ;;  %v1027_v50 = vpop.permute.xlu1 %1026  ;;  %v3017_v32 = vld [vmem:[#allocation2 + $0xa8] sm:$0xff] }
 0x114   : > { %1066 = vst.msk [vmem:[#allocation3 + $0x48] sm:$0xff] %vm1056_vm5, %v1027_v50  ;;  %2047 = vrot.lane.b32.xlu0 %v8195_v46, %s10567_s28  ;;  %v3018_v50 = vld [vmem:[#allocation2 + $0xb0] sm:$0xff]  ;;  %v2891_v47 = vld [vmem:[#allocation2 + $0xc4] sm:$0xff] }
 0x115   : > { %2045 = vrot.lane.b32.xlu1 %v2011_v48, %s10567_s28  ;;  %v8308_v62 = vpack.c.bf16 %v3018_v50, %v3017_v32  ;;  %s10599_s28 = smov 44  }
 0x116   : > { %v1037_v26 = vpop.permute.xlu0 %1036 }
 0x117   : > { %1071 = vst.msk [vmem:[#allocation3 + $0x70] sm:$0xff] %vm1056_vm5, %v1037_v26  ;;  %v1031_v31 = vpop.permute.xlu1 %1030 }
 0x118   : > { %1068 = vst.msk [vmem:[#allocation3 + $0x58] sm:$0xff] %vm1056_vm5, %v1031_v31  ;;  %3206 = vrot.lane.b32.xlu0 %v8181_v35, %s7631_s18  ;;  %v3276_v31 = vld [vmem:[#allocation2 + $0xb2] sm:$0xff] }
 0x119   : > { %3204 = vrot.lane.b32.xlu1 %v8121_v4, %s7631_s18 }
 0x11a   : > { %v1139_v53 = vpop.permute.xlu0 %1138 }
 0x11b   : > { %1187 = vst.msk [vmem:[#allocation3] sm:$0xff] %vm10573_vm6, %v1139_v53  ;;  %v1035_v56 = vpop.permute.xlu1 %1034  ;;  %v8320_v53 = vpack.c.bf16 %v3276_v31, %v3275_v42  ;;  %v3022_v42 = vld [vmem:[#allocation2 + $0xe0] sm:$0xff] }
 0x11c   : > { %1070 = vst.msk [vmem:[#allocation3 + $0x68] sm:$0xff] %vm1056_vm5, %v1035_v56  ;;  %2176 = vrot.lane.b32.xlu0 %v8214_v25, %s10571_s29 }
 0x11d   : > { %2174 = vrot.lane.b32.xlu1 %v2140_v30, %s10571_s29  ;;  %s7634_s29 = smov 96  }
 0x11e   : > { %v1143_v3 = vpop.permute.xlu0 %1142 }
 0x11f   : > { %1189 = vst.msk [vmem:[#allocation3 + $0x10] sm:$0xff] %vm10573_vm6, %v1143_v3  ;;  %v1039_v60 = vpop.permute.xlu1 %1038  ;;  %v3404_v3 = vld [vmem:[#allocation2 + $0xab] sm:$0xff] }
 0x120   : > { %1072 = vst.msk [vmem:[#allocation3 + $0x78] sm:$0xff] %vm1056_vm5, %v1039_v60  ;;  %3335 = vrot.lane.b32.xlu0 %v8195_v46, %s7632_s20  ;;  %vm2864_vm5 = vcmask 622144  }
 0x121   : > { %3333 = vrot.lane.b32.xlu1 %v2011_v48, %s7632_s20 }
 0x122   : > { %v1147_v63 = vpop.permute.xlu0 %1146 }
 0x123   : > { %1191 = vst.msk [vmem:[#allocation3 + $0x20] sm:$0xff] %vm10573_vm6, %v1147_v63  ;;  %v1141_v0 = vpop.permute.xlu1 %1140  ;;  %v3533_v63 = vld [vmem:[#allocation2 + $0xac] sm:$0xff] }
 0x124   : > { %1188 = vst.msk [vmem:[#allocation3 + $0x8] sm:$0xff] %vm10573_vm6, %v1141_v0  ;;  %2305 = vrot.lane.b32.xlu0 %v8021_v49, %s7624_s30  ;;  %v7577_v49 = vld [vmem:[%s10554_s1 + $0x30] ss:$0 sps:$4 sm:$0x33]   ;;  %v3534_v0 = vld [vmem:[#allocation2 + $0xb4] sm:$0xff] }
 0x125   : > { %2303 = vrot.lane.b32.xlu1 %v2269_v34, %s7624_s30  ;;  %7533 = vmatprep.subr.msk.bf16.mxu0 %vm3780_vm7, %v7577_v49  ;;  %v3782_v7 = vsel %vm3780_vm7, %v7577_v49, 0  ;;  %vm2993_vm7 = vcmask 654944  }
 0x126   : > { %v1151_v17 = vpop.permute.xlu0 %1150  ;;  %7464 = vmatpush3.bf16.msra.mxu0 %v3782_v7 }
 0x127   : > { %1193 = vst.msk [vmem:[#allocation3 + $0x30] sm:$0xff] %vm10573_vm6, %v1151_v17  ;;  %v1145_v4 = vpop.permute.xlu1 %1144 }
 0x128   : > { %1190 = vst.msk [vmem:[#allocation3 + $0x18] sm:$0xff] %vm10573_vm6, %v1145_v4  ;;  %3464 = vrot.lane.b32.xlu0 %v8214_v25, %s7633_s27 }
 0x129   : > { %3462 = vrot.lane.b32.xlu1 %v2140_v30, %s7633_s27 }
 0x12a   : > { %v1155_v6 = vpop.permute.xlu0 %1154 }
 0x12b   : > { %1195 = vst.msk [vmem:[#allocation3 + $0x40] sm:$0xff] %vm10573_vm6, %v1155_v6  ;;  %v1149_v8 = vpop.permute.xlu1 %1148 }
 0x12c   : > { %1192 = vst.msk [vmem:[#allocation3 + $0x28] sm:$0xff] %vm10573_vm6, %v1149_v8  ;;  %2435 = vrot.lane.b32.xlu0 %v7932_v12, %s7625_s10 }
 0x12d   : > { %2433 = vrot.lane.b32.xlu1 %v7942_v21, %s7625_s10  ;;  %v8272_v21 = vpack.c.bf16 %v2501_v14, %v2500_v13 }
 0x12e   : > { %v1268_v10 = vpop.permute.xlu0 %1267 }
 0x12f   : > { %1316 = vst.msk [vmem:[#allocation3] sm:$0xff] %vm1315_vm8, %v1268_v10  ;;  %v1153_v11 = vpop.permute.xlu1 %1152 }
 0x130   : > { %1194 = vst.msk [vmem:[#allocation3 + $0x38] sm:$0xff] %vm10573_vm6, %v1153_v11  ;;  %3593 = vrot.lane.b32.xlu0 %v8257_v9, %s7634_s29 }
 0x131   : > { %3591 = vrot.lane.b32.xlu1 %v2269_v34, %s7634_s29 }
 0x132   : > { %v1397_v12 = vpop.permute.xlu0 %1396 }
 0x133   : > { %1445 = vst.msk [vmem:[#allocation3] sm:$0xff] %vm10597_vm9, %v1397_v12  ;;  %v1157_v15 = vpop.permute.xlu1 %1156 }
 0x134   : > { %1196 = vst.msk [vmem:[#allocation3 + $0x48] sm:$0xff] %vm10573_vm6, %v1157_v15  ;;  %2691 = vrot.lane.b32.xlu0 %v8195_v46, %s10589_s13  ;;  %vm3123_vm6 = vcmask 687744  }
 0x135   : > { %2562 = vrot.lane.b32.xlu1 %v8181_v35, %s10593_s8 }
 0x136   : > { %v1526_v16 = vpop.permute.xlu0 %1525 }
 0x137   : > { %1574 = vst.msk [vmem:[#allocation3] sm:$0xff] %vm10584_vm10, %v1526_v16  ;;  %v1270_v23 = vpop.permute.xlu1 %1269  ;;  %v2376_v16 = vld [vmem:[#allocation2 + $0xc8] sm:$0xff] }
 0x138   : > { %1317 = vst.msk [vmem:[#allocation3 + $0x8] sm:$0xff] %vm1315_vm8, %v1270_v23  ;;  %2820 = vrot.lane.b32.xlu0 %v8214_v25, %s10585_s14 }
 0x139   : > { %2564 = vrot.lane.b32.xlu1 %v8272_v21, %s10593_s8 }
 0x13a   : > { %v1655_v28 = vpop.permute.xlu0 %1654 }
 0x13b   : > { %1703 = vst.msk [vmem:[#allocation3] sm:$0xff] %vm10580_vm11, %v1655_v28  ;;  %v1399_v24 = vpop.permute.xlu1 %1398 }
 0x13c   : > { %1446 = vst.msk [vmem:[#allocation3 + $0x8] sm:$0xff] %vm10597_vm9, %v1399_v24  ;;  %2949 = vrot.lane.b32.xlu0 %v8257_v9, %s10591_s15  ;;  %v2634_v24 = vld [vmem:[#allocation2 + $0xca] sm:$0xff] }
 0x13d   : > { %2693 = vrot.lane.b32.xlu1 %v8280_v40, %s10589_s13 }
 0x13e   : > { %v1784_v39 = vpop.permute.xlu0 %1783 }
 0x13f   : > { %1832 = vst.msk [vmem:[#allocation3] sm:$0xff] %vm10595_vm12, %v1784_v39  ;;  %v1528_v54 = vpop.permute.xlu1 %1527 }
 0x140   : > { %1575 = vst.msk [vmem:[#allocation3 + $0x8] sm:$0xff] %vm10584_vm10, %v1528_v54  ;;  %3079 = vrot.lane.b32.xlu0 %v8286_v37, %s10587_s17 }
 0x141   : > { %2822 = vrot.lane.b32.xlu1 %v8290_v38, %s10585_s14 }
 0x142   : > { %v1913_v48 = vpop.permute.xlu0 %1912 }
 0x143   : > { %1961 = vst.msk [vmem:[#allocation3] sm:$0xff] %vm10582_vm13, %v1913_v48  ;;  %v1657_v45 = vpop.permute.xlu1 %1656  ;;  %v2892_v48 = vld [vmem:[#allocation2 + $0xcc] sm:$0xff] }
 0x144   : > { %1704 = vst.msk [vmem:[#allocation3 + $0x8] sm:$0xff] %vm10580_vm11, %v1657_v45  ;;  %3208 = vrot.lane.b32.xlu0 %v8272_v21, %s7631_s18  ;;  %v8432_v50 = vpack.c.bf16 %v2892_v48, %v2891_v47  ;;  %v3150_v45 = vld [vmem:[#allocation2 + $0xd9] sm:$0xff] }
 0x145   : > { %2951 = vrot.lane.b32.xlu1 %v8298_v44, %s10591_s15 }
 0x146   : > { %v2042_v26 = vpop.permute.xlu0 %2041 }
 0x147   : > { %2090 = vst.msk [vmem:[#allocation3] sm:$0xff] %vm10575_vm14, %v2042_v26  ;;  %v1786_v20 = vpop.permute.xlu1 %1785 }
 0x148   : > { %1833 = vst.msk [vmem:[#allocation3 + $0x8] sm:$0xff] %vm10595_vm12, %v1786_v20  ;;  %3210 = vrot.lane.b32.xlu0 %v8304_v51, %s7631_s18  ;;  %v3021_v20 = vld [vmem:[#allocation2 + $0xd8] sm:$0xff] }
 0x149   : > { %3081 = vrot.lane.b32.xlu1 %v8308_v62, %s10587_s17 }
 0x14a   : > { %v2171_v52 = vpop.permute.xlu0 %2170 }
 0x14b   : > { %2219 = vst.msk [vmem:[#allocation3] sm:$0xff] %vm10576_vm15, %v2171_v52  ;;  %v1915_v30 = vpop.permute.xlu1 %1914 }
 0x14c   : > { %1962 = vst.msk [vmem:[#allocation3 + $0x8] sm:$0xff] %vm10582_vm13, %v1915_v30  ;;  %1277 = vrot.lane.b32.xlu0 %v8272_v21, %s7616_s22  ;;  %v8442_v30 = vpack.c.bf16 %v3022_v42, %v3021_v20  ;;  %v2895_v20 = vld [vmem:[#allocation2 + $0xf4] sm:$0xff]  ;;  %v2896_v42 = vld [vmem:[#allocation2 + $0xfc] sm:$0xff] }
 0x14d   : > { %1275 = vrot.lane.b32.xlu1 %v8181_v35, %s7616_s22  ;;  %v8333_v35 = vpack.c.bf16 %v3405_v59, %v3404_v3  ;;  %v3279_v3 = vld [vmem:[#allocation2 + $0xda] sm:$0xff]  ;;  %v3280_v59 = vld [vmem:[#allocation2 + $0xe2] sm:$0xff] }
 0x14e   : > { %v2300_v56 = vpop.permute.xlu0 %2299 }
 0x14f   : > { %2348 = vst.msk [vmem:[#allocation3] sm:$0xff] %vm10577_vm1, %v2300_v56  ;;  %v2044_v58 = vpop.permute.xlu1 %2043 }
 0x150   : > { %2091 = vst.msk [vmem:[#allocation3 + $0x8] sm:$0xff] %vm10575_vm14, %v2044_v58  ;;  %3339 = vrot.lane.b32.xlu0 %v8320_v53, %s7632_s20 }
 0x151   : > { %3337 = vrot.lane.b32.xlu1 %v8280_v40, %s7632_s20 }
 0x152   : > { %v2302_v57 = vpop.permute.xlu0 %2301 }
 0x153   : > { %v2173_v60 = vpop.permute.xlu1 %2172 }
 0x154   : > { %2220 = vst.msk [vmem:[#allocation3 + $0x8] sm:$0xff] %vm10576_vm15, %v2173_v60  ;;  %1406 = vrot.lane.b32.xlu0 %v8280_v40, %s7617_s23 }
 0x155   : > { %2349 = vst.msk [vmem:[#allocation3 + $0x8] sm:$0xff] %vm10577_vm1, %v2302_v57  ;;  %1404 = vrot.lane.b32.xlu1 %v8195_v46, %s7617_s23  ;;  %v8348_v46 = vpack.c.bf16 %v3534_v0, %v3533_v63  ;;  %v3408_v0 = vld [vmem:[#allocation2 + $0xdb] sm:$0xff] }
 0x156   : > { %v1274_v61 = vpop.permute.xlu0 %1273 }
 0x157   : > { %1319 = vst.msk [vmem:[#allocation3 + $0x18] sm:$0xff] %vm1315_vm8, %v1274_v61  ;;  %v1272_v34 = vpop.permute.xlu1 %1271  ;;  %v8454_v61 = vpack.c.bf16 %v3280_v59, %v3279_v3 }
 0x158   : > { %1318 = vst.msk [vmem:[#allocation3 + $0x10] sm:$0xff] %vm1315_vm8, %v1272_v34  ;;  %3468 = vrot.lane.b32.xlu0 %v8333_v35, %s7633_s27 }
 0x159   : > { %3466 = vrot.lane.b32.xlu1 %v8290_v38, %s7633_s27 }
 0x15a   : > { %v2432_v2 = vpop.permute.xlu0 %2431 }
 0x15b   : > { %2479 = vst.msk [vmem:[#allocation3 + $0x8] sm:$0xff] %vm10578_vm2, %v2432_v2  ;;  %v2430_v17 = vpop.permute.xlu1 %2429  ;;  %v3409_v2 = vld [vmem:[#allocation2 + $0xe3] sm:$0xff] }
 0x15c   : > { %2478 = vst.msk [vmem:[#allocation3] sm:$0xff] %vm10578_vm2, %v2430_v17  ;;  %1535 = vrot.lane.b32.xlu0 %v8290_v38, %s7618_s24 }
 0x15d   : > { %1533 = vrot.lane.b32.xlu1 %v8214_v25, %s7618_s24 }
 0x15e   : > { %v1403_v4 = vpop.permute.xlu0 %1402 }
 0x15f   : > { %1448 = vst.msk [vmem:[#allocation3 + $0x18] sm:$0xff] %vm10597_vm9, %v1403_v4  ;;  %v1401_v49 = vpop.permute.xlu1 %1400 }
 0x160   : > { %1447 = vst.msk [vmem:[#allocation3 + $0x10] sm:$0xff] %vm10597_vm9, %v1401_v49  ;;  %3597 = vrot.lane.b32.xlu0 %v8348_v46, %s7634_s29 }
 0x161   : > { %3595 = vrot.lane.b32.xlu1 %v8298_v44, %s7634_s29 }
 0x162   : > { %v2561_v18 = vpop.permute.xlu0 %2560 }
 0x163   : > { %2608 = vst.msk [vmem:[#allocation3 + $0x8] sm:$0xff] %vm2606_vm3, %v2561_v18  ;;  %v2559_v5 = vpop.permute.xlu1 %2558 }
 0x164   : > { %2607 = vst.msk [vmem:[#allocation3] sm:$0xff] %vm2606_vm3, %v2559_v5  ;;  %1791 = vrot.lane.b32.xlu0 %v8286_v37, %s7620_s26  ;;  %v3537_v5 = vld [vmem:[#allocation2 + $0xdc] sm:$0xff] }
 0x165   : > { %1662 = vrot.lane.b32.xlu1 %v8257_v9, %s7619_s25 }
 0x166   : > { %v1532_v25 = vpop.permute.xlu0 %1531 }
 0x167   : > { %1577 = vst.msk [vmem:[#allocation3 + $0x18] sm:$0xff] %vm10584_vm10, %v1532_v25  ;;  %v1530_v6 = vpop.permute.xlu1 %1529  ;;  %v3538_v25 = vld [vmem:[#allocation2 + $0xe4] sm:$0xff] }
 0x168   : > { %1576 = vst.msk [vmem:[#allocation3 + $0x10] sm:$0xff] %vm10584_vm10, %v1530_v6  ;;  %1920 = vrot.lane.b32.xlu0 %v8272_v21, %s10599_s28  ;;  %v2375_v21 = vld [vmem:[#allocation2 + $0xc0] sm:$0xff] }
 0x169   : > { %1664 = vrot.lane.b32.xlu1 %v8298_v44, %s7619_s25  ;;  %v8400_v22 = vpack.c.bf16 %v2376_v16, %v2375_v21 }
 0x16a   : > { %v2690_v7 = vpop.permute.xlu0 %2689 }
 0x16b   : > { %2737 = vst.msk [vmem:[#allocation3 + $0x8] sm:$0xff] %vm2735_vm4, %v2690_v7  ;;  %v2688_v8 = vpop.permute.xlu1 %2687 }
 0x16c   : > { %2736 = vst.msk [vmem:[#allocation3] sm:$0xff] %vm2735_vm4, %v2688_v8  ;;  %2049 = vrot.lane.b32.xlu0 %v8280_v40, %s10600_s19  ;;  %v2504_v40 = vld [vmem:[#allocation2 + $0xc1] sm:$0xff] }
 0x16d   : > { %1793 = vrot.lane.b32.xlu1 %v8308_v62, %s7620_s26  ;;  %v8408_v28 = vpack.c.bf16 %v2505_v55, %v2504_v40 }
 0x16e   : > { %v1661_v9 = vpop.permute.xlu0 %1660 }
 0x16f   : > { %1706 = vst.msk [vmem:[#allocation3 + $0x18] sm:$0xff] %vm10580_vm11, %v1661_v9  ;;  %v1659_v10 = vpop.permute.xlu1 %1658 }
 0x170   : > { %1705 = vst.msk [vmem:[#allocation3 + $0x10] sm:$0xff] %vm10580_vm11, %v1659_v10  ;;  %2178 = vrot.lane.b32.xlu0 %v8290_v38, %s10601_s21  ;;  %v8416_v38 = vpack.c.bf16 %v2634_v24, %v2633_v36 }
 0x171   : > { %1922 = vrot.lane.b32.xlu1 %v8304_v51, %s10599_s28 }
 0x172   : > { %v2819_v11 = vpop.permute.xlu0 %2818 }
 0x173   : > { %2866 = vst.msk [vmem:[#allocation3 + $0x8] sm:$0xff] %vm2864_vm5, %v2819_v11  ;;  %v2817_v12 = vpop.permute.xlu1 %2816 }
 0x174   : > { %2865 = vst.msk [vmem:[#allocation3] sm:$0xff] %vm2864_vm5, %v2817_v12  ;;  %2307 = vrot.lane.b32.xlu0 %v8298_v44, %s7624_s30  ;;  %v8424_v44 = vpack.c.bf16 %v2763_v29, %v2762_v43 }
 0x175   : > { %2051 = vrot.lane.b32.xlu1 %v8320_v53, %s10600_s19 }
 0x176   : > { %v1790_v13 = vpop.permute.xlu0 %1789 }
 0x177   : > { %1835 = vst.msk [vmem:[#allocation3 + $0x18] sm:$0xff] %vm10595_vm12, %v1790_v13  ;;  %v1788_v14 = vpop.permute.xlu1 %1787 }
 0x178   : > { %1834 = vst.msk [vmem:[#allocation3 + $0x10] sm:$0xff] %vm10595_vm12, %v1788_v14  ;;  %2437 = vrot.lane.b32.xlu0 %v8308_v62, %s7625_s10  ;;  %v3151_v62 = vld [vmem:[#allocation2 + $0xe1] sm:$0xff] }
 0x179   : > { %2180 = vrot.lane.b32.xlu1 %v8333_v35, %s10601_s21  ;;  %v8438_v52 = vpack.c.bf16 %v3151_v62, %v3150_v45 }
 0x17a   : > { %v2948_v15 = vpop.permute.xlu0 %2947 }
 0x17b   : > { %2995 = vst.msk [vmem:[#allocation3 + $0x8] sm:$0xff] %vm2993_vm7, %v2948_v15  ;;  %v2946_v19 = vpop.permute.xlu1 %2945 }
 0x17c   : > { %2994 = vst.msk [vmem:[#allocation3] sm:$0xff] %vm2993_vm7, %v2946_v19  ;;  %2566 = vrot.lane.b32.xlu0 %v8304_v51, %s10593_s8 }
 0x17d   : > { %2309 = vrot.lane.b32.xlu1 %v8348_v46, %s7624_s30 }
 0x17e   : > { %v1919_v23 = vpop.permute.xlu0 %1918 }
 0x17f   : > { %1964 = vst.msk [vmem:[#allocation3 + $0x18] sm:$0xff] %vm10582_vm13, %v1919_v23  ;;  %v1917_v27 = vpop.permute.xlu1 %1916 }
 0x180   : > { %1963 = vst.msk [vmem:[#allocation3 + $0x10] sm:$0xff] %vm10582_vm13, %v1917_v27  ;;  %2695 = vrot.lane.b32.xlu0 %v8320_v53, %s10589_s13  ;;  %v2379_v27 = vld [vmem:[#allocation2 + $0xf0] sm:$0xff] }
 0x181   : > { %2439 = vrot.lane.b32.xlu1 %v8400_v22, %s7625_s10 }
 0x182   : > { %v3078_v33 = vpop.permute.xlu0 %3077 }
 0x183   : > { %3125 = vst.msk [vmem:[#allocation3 + $0x8] sm:$0xff] %vm3123_vm6, %v3078_v33  ;;  %v3076_v37 = vpop.permute.xlu1 %3075 }
 0x184   : > { %3124 = vst.msk [vmem:[#allocation3] sm:$0xff] %vm3123_vm6, %v3076_v37  ;;  %2824 = vrot.lane.b32.xlu0 %v8333_v35, %s10585_s14  ;;  %v2508_v37 = vld [vmem:[#allocation2 + $0xf1] sm:$0xff] }
 0x185   : > { %2568 = vrot.lane.b32.xlu1 %v8408_v28, %s10593_s8 }
 0x186   : > { %v2048_v39 = vpop.permute.xlu0 %2047 }
 0x187   : > { %2093 = vst.msk [vmem:[#allocation3 + $0x18] sm:$0xff] %vm10575_vm14, %v2048_v39  ;;  %v2046_v54 = vpop.permute.xlu1 %2045 }
 0x188   : > { %2092 = vst.msk [vmem:[#allocation3 + $0x10] sm:$0xff] %vm10575_vm14, %v2046_v54  ;;  %2953 = vrot.lane.b32.xlu0 %v8348_v46, %s10591_s15  ;;  %vm3381_vm14 = vcmask 753344   ;;  %v2637_v54 = vld [vmem:[#allocation2 + $0xf2] sm:$0xff] }
 0x189   : > { %2697 = vrot.lane.b32.xlu1 %v8416_v38, %s10589_s13 }
 0x18a   : > { %v3207_v41 = vpop.permute.xlu0 %3206 }
 0x18b   : > { %3254 = vst.msk [vmem:[#allocation3 + $0x8] sm:$0xff] %vm3252_vm0, %v3207_v41  ;;  %v3205_v32 = vpop.permute.xlu1 %3204 }
 0x18c   : > { %3253 = vst.msk [vmem:[#allocation3] sm:$0xff] %vm3252_vm0, %v3205_v32  ;;  %3083 = vrot.lane.b32.xlu0 %v8400_v22, %s10587_s17  ;;  %v2766_v32 = vld [vmem:[#allocation2 + $0xf3] sm:$0xff] }
 0x18d   : > { %2826 = vrot.lane.b32.xlu1 %v8424_v44, %s10585_s14 }
 0x18e   : > { %v2177_v26 = vpop.permute.xlu0 %2176 }
 0x18f   : > { %2222 = vst.msk [vmem:[#allocation3 + $0x18] sm:$0xff] %vm10576_vm15, %v2177_v26  ;;  %v2175_v31 = vpop.permute.xlu1 %2174 }
 0x190   : > { %2221 = vst.msk [vmem:[#allocation3 + $0x10] sm:$0xff] %vm10576_vm15, %v2175_v31  ;;  %3212 = vrot.lane.b32.xlu0 %v8408_v28, %s7631_s18  ;;  %vm10596_vm15 = vcmask 786144  }
 0x191   : > { %2955 = vrot.lane.b32.xlu1 %v8432_v50, %s10591_s15 }
 0x192   : > { %v3336_v56 = vpop.permute.xlu0 %3335 }
 0x193   : > { %3383 = vst.msk [vmem:[#allocation3 + $0x8] sm:$0xff] %vm3381_vm14, %v3336_v56  ;;  %v3334_v58 = vpop.permute.xlu1 %3333  ;;  %v3154_v56 = vld [vmem:[#allocation2 + $0x109] sm:$0xff] }
 0x194   : > { %3382 = vst.msk [vmem:[#allocation3] sm:$0xff] %vm3381_vm14, %v3334_v58  ;;  %3214 = vrot.lane.b32.xlu0 %v8438_v52, %s7631_s18  ;;  %v3155_v58 = vld [vmem:[#allocation2 + $0x111] sm:$0xff] }
 0x195   : > { %3085 = vrot.lane.b32.xlu1 %v8442_v30, %s10587_s17 }
 0x196   : > { %v2306_v57 = vpop.permute.xlu0 %2305 }
 0x197   : > { %2351 = vst.msk [vmem:[#allocation3 + $0x18] sm:$0xff] %vm10577_vm1, %v2306_v57  ;;  %v2304_v60 = vpop.permute.xlu1 %2303  ;;  %v3025_v57 = vld [vmem:[#allocation2 + $0x108] sm:$0xff] }
 0x198   : > { %2350 = vst.msk [vmem:[#allocation3 + $0x10] sm:$0xff] %vm10577_vm1, %v2304_v60  ;;  %1281 = vrot.lane.b32.xlu0 %v8408_v28, %s7616_s22  ;;  %vm10579_vm1 = vcmask 818944   ;;  %v3026_v60 = vld [vmem:[#allocation2 + $0x110] sm:$0xff] }
 0x199   : > { %1279 = vrot.lane.b32.xlu1 %v8304_v51, %s7616_s22  ;;  %v8468_v51 = vpack.c.bf16 %v3409_v2, %v3408_v0  ;;  %v8575_v0 = vpack.c.bf16 %v3155_v58, %v3154_v56  ;;  %v8580_v2 = vpack.c.bf16 %v3026_v60, %v3025_v57  ;;  %v2899_v60 = vld [vmem:[#allocation2 + $0x124] sm:$0xff] }
 0x19a   : > { %v3465_v34 = vpop.permute.xlu0 %3464 }
 0x19b   : > { %3512 = vst.msk [vmem:[#allocation3 + $0x8] sm:$0xff] %vm10596_vm15, %v3465_v34  ;;  %v3463_v63 = vpop.permute.xlu1 %3462 }
 0x19c   : > { %3511 = vst.msk [vmem:[#allocation3] sm:$0xff] %vm10596_vm15, %v3463_v63  ;;  %3343 = vrot.lane.b32.xlu0 %v8454_v61, %s7632_s20 }
 0x19d   : > { %3341 = vrot.lane.b32.xlu1 %v8416_v38, %s7632_s20 }
 0x19e   : > { %v2436_v17 = vpop.permute.xlu0 %2435 }
 0x19f   : > { %2481 = vst.msk [vmem:[#allocation3 + $0x18] sm:$0xff] %vm10578_vm2, %v2436_v17  ;;  %v2434_v4 = vpop.permute.xlu1 %2433 }
 0x1a0   : > { %2480 = vst.msk [vmem:[#allocation3 + $0x10] sm:$0xff] %vm10578_vm2, %v2434_v4  ;;  %1410 = vrot.lane.b32.xlu0 %v8416_v38, %s7617_s23  ;;  %vm10581_vm2 = vcmask 818176  }
 0x1a1   : > { %1408 = vrot.lane.b32.xlu1 %v8320_v53, %s7617_s23  ;;  %v8481_v53 = vpack.c.bf16 %v3538_v25, %v3537_v5 }
 0x1a2   : > { %v3594_v49 = vpop.permute.xlu0 %3593 }
 0x1a3   : > { %3641 = vst.msk [vmem:[#allocation3 + $0x8] sm:$0xff] %vm10579_vm1, %v3594_v49  ;;  %v3592_v18 = vpop.permute.xlu1 %3591  ;;  %v3283_v49 = vld [vmem:[#allocation2 + $0x10a] sm:$0xff] }
 0x1a4   : > { %3640 = vst.msk [vmem:[#allocation3] sm:$0xff] %vm10579_vm1, %v3592_v18  ;;  %3472 = vrot.lane.b32.xlu0 %v8468_v51, %s7633_s27  ;;  %v3284_v18 = vld [vmem:[#allocation2 + $0x112] sm:$0xff] }
 0x1a5   : > { %3470 = vrot.lane.b32.xlu1 %v8424_v44, %s7633_s27 }
 0x1a6   : > { %v2692_v6 = vpop.permute.xlu0 %2691 }
 0x1a7   : > { %v2563_v7 = vpop.permute.xlu1 %2562 }
 0x1a8   : > { %2609 = vst.msk [vmem:[#allocation3 + $0x10] sm:$0xff] %vm2606_vm3, %v2563_v7  ;;  %1539 = vrot.lane.b32.xlu0 %v8424_v44, %s7618_s24 }
 0x1a9   : > { %2738 = vst.msk [vmem:[#allocation3 + $0x10] sm:$0xff] %vm2735_vm4, %v2692_v6  ;;  %1537 = vrot.lane.b32.xlu1 %v8333_v35, %s7618_s24  ;;  %v8592_v6 = vpack.c.bf16 %v3284_v18, %v3283_v49 }
 0x1aa   : > { %v2821_v8 = vpop.permute.xlu0 %2820  ;;  %v3657_v9 = vld [vmem:[#allocation3 + $0x8] sm:$0xff] }
 0x1ab   : > { %2867 = vst.msk [vmem:[#allocation3 + $0x10] sm:$0xff] %vm2864_vm5, %v2821_v8  ;;  %v2565_v10 = vpop.permute.xlu1 %2564  ;;  %v3656_v11 = vld [vmem:[#allocation3] sm:$0xff] }
 0x1ac   : > { %2610 = vst.msk [vmem:[#allocation3 + $0x18] sm:$0xff] %vm2606_vm3, %v2565_v10  ;;  %7465 = vmatprep.mubr.msk.bf16.mxu0 %vm10581_vm2, %v3656_v11  ;;  %3601 = vrot.lane.b32.xlu0 %v8481_v53, %s7634_s29  ;;  %v3413_v10 = vld [vmem:[#allocation2 + $0x113] sm:$0xff] }
 0x1ad   : > { %3599 = vrot.lane.b32.xlu1 %v8432_v50, %s7634_s29  ;;  %7466 = vmatmul.mubr.msk.bf16.vlgmr.msra.gmra.mrb[0].mxu0 %vm10581_vm2, %v3657_v9  ;;  %v3412_v9 = vld [vmem:[#allocation2 + $0x10b] sm:$0xff] }
 0x1ae   : > { %v2950_v35 = vpop.permute.xlu0 %2949 }
 0x1af   : > { %2996 = vst.msk [vmem:[#allocation3 + $0x10] sm:$0xff] %vm2993_vm7, %v2950_v35  ;;  %v2694_v12 = vpop.permute.xlu1 %2693 }
 0x1b0   : > { %2739 = vst.msk [vmem:[#allocation3 + $0x18] sm:$0xff] %vm2735_vm4, %v2694_v12  ;;  %1795 = vrot.lane.b32.xlu0 %v8400_v22, %s7620_s26 }
 0x1b1   : > { %1666 = vrot.lane.b32.xlu1 %v8348_v46, %s7619_s25 }
 0x1b2   : > { %v3080_v13 = vpop.permute.xlu0 %3079 }
 0x1b3   : > { %3126 = vst.msk [vmem:[#allocation3 + $0x10] sm:$0xff] %vm3123_vm6, %v3080_v13  ;;  %v2823_v14 = vpop.permute.xlu1 %2822 }
 0x1b4   : > { %2868 = vst.msk [vmem:[#allocation3 + $0x18] sm:$0xff] %vm2864_vm5, %v2823_v14  ;;  %1924 = vrot.lane.b32.xlu0 %v8408_v28, %s10599_s28  ;;  %v2380_v28 = vld [vmem:[#allocation2 + $0xf8] sm:$0xff]  ;;  %v3541_v14 = vld [vmem:[#allocation2 + $0x10c] sm:$0xff] }
 0x1b5   : > { %1668 = vrot.lane.b32.xlu1 %v8432_v50, %s7619_s25  ;;  %v8536_v36 = vpack.c.bf16 %v2380_v28, %v2379_v27 }
 0x1b6   : > { %v3209_v15 = vpop.permute.xlu0 %3208 }
 0x1b7   : > { %3255 = vst.msk [vmem:[#allocation3 + $0x10] sm:$0xff] %vm3252_vm0, %v3209_v15  ;;  %v2952_v21 = vpop.permute.xlu1 %2951  ;;  %v3542_v15 = vld [vmem:[#allocation2 + $0x114] sm:$0xff] }
 0x1b8   : > { %2997 = vst.msk [vmem:[#allocation3 + $0x18] sm:$0xff] %vm2993_vm7, %v2952_v21  ;;  %2053 = vrot.lane.b32.xlu0 %v8416_v38, %s10600_s19  ;;  %v2509_v38 = vld [vmem:[#allocation2 + $0xf9] sm:$0xff] }
 0x1b9   : > { %1797 = vrot.lane.b32.xlu1 %v8442_v30, %s7620_s26  ;;  %v8544_v43 = vpack.c.bf16 %v2509_v38, %v2508_v37 }
 0x1ba   : > { %v3211_v46 = vpop.permute.xlu0 %3210 }
 0x1bb   : > { %v3082_v16 = vpop.permute.xlu1 %3081 }
 0x1bc   : > { %3127 = vst.msk [vmem:[#allocation3 + $0x18] sm:$0xff] %vm3123_vm6, %v3082_v16  ;;  %2182 = vrot.lane.b32.xlu0 %v8424_v44, %s10601_s21  ;;  %v2638_v44 = vld [vmem:[#allocation2 + $0xfa] sm:$0xff] }
 0x1bd   : > { %3256 = vst.msk [vmem:[#allocation3 + $0x18] sm:$0xff] %vm3252_vm0, %v3211_v46  ;;  %1926 = vrot.lane.b32.xlu1 %v8438_v52, %s10599_s28  ;;  %v8552_v47 = vpack.c.bf16 %v2638_v44, %v2637_v54 }
 0x1be   : > { %v1278_v19 = vpop.permute.xlu0 %1277 }
 0x1bf   : > { %1321 = vst.msk [vmem:[#allocation3 + $0x28] sm:$0xff] %vm1315_vm8, %v1278_v19  ;;  %v1276_v22 = vpop.permute.xlu1 %1275 }
 0x1c0   : > { %1320 = vst.msk [vmem:[#allocation3 + $0x20] sm:$0xff] %vm1315_vm8, %v1276_v22  ;;  %2311 = vrot.lane.b32.xlu0 %v8432_v50, %s7624_s30  ;;  %v2767_v50 = vld [vmem:[#allocation2 + $0xfb] sm:$0xff] }
 0x1c1   : > { %2055 = vrot.lane.b32.xlu1 %v8454_v61, %s10600_s19  ;;  %v8560_v62 = vpack.c.bf16 %v2767_v50, %v2766_v32 }
 0x1c2   : > { %v3340_v23 = vpop.permute.xlu0 %3339 }
 0x1c3   : > { %3385 = vst.msk [vmem:[#allocation3 + $0x18] sm:$0xff] %vm3381_vm14, %v3340_v23  ;;  %v3338_v40 = vpop.permute.xlu1 %3337 }
 0x1c4   : > { %3384 = vst.msk [vmem:[#allocation3 + $0x10] sm:$0xff] %vm3381_vm14, %v3338_v40  ;;  %2441 = vrot.lane.b32.xlu0 %v8442_v30, %s7625_s10  ;;  %v8568_v30 = vpack.c.bf16 %v2896_v42, %v2895_v20 }
 0x1c5   : > { %2184 = vrot.lane.b32.xlu1 %v8468_v51, %s10601_s21 }
 0x1c6   : > { %v1407_v55 = vpop.permute.xlu0 %1406 }
 0x1c7   : > { %1450 = vst.msk [vmem:[#allocation3 + $0x28] sm:$0xff] %vm10597_vm9, %v1407_v55  ;;  %v1405_v33 = vpop.permute.xlu1 %1404 }
 0x1c8   : > { %1449 = vst.msk [vmem:[#allocation3 + $0x20] sm:$0xff] %vm10597_vm9, %v1405_v33  ;;  %2570 = vrot.lane.b32.xlu0 %v8438_v52, %s10593_s8 }
 0x1c9   : > { %2313 = vrot.lane.b32.xlu1 %v8481_v53, %s7624_s30 }
 0x1ca   : > { %v3469_v24 = vpop.permute.xlu0 %3468 }
 0x1cb   : > { %3514 = vst.msk [vmem:[#allocation3 + $0x18] sm:$0xff] %vm10596_vm15, %v3469_v24  ;;  %v3467_v39 = vpop.permute.xlu1 %3466 }
 0x1cc   : > { %3513 = vst.msk [vmem:[#allocation3 + $0x10] sm:$0xff] %vm10596_vm15, %v3467_v39  ;;  %2699 = vrot.lane.b32.xlu0 %v8454_v61, %s10589_s13  ;;  %v2383_v39 = vld [vmem:[#allocation2 + $0x120] sm:$0xff] }
 0x1cd   : > { %2443 = vrot.lane.b32.xlu1 %v8536_v36, %s7625_s10 }
 0x1ce   : > { %v1536_v29 = vpop.permute.xlu0 %1535 }
 0x1cf   : > { %1579 = vst.msk [vmem:[#allocation3 + $0x28] sm:$0xff] %vm10584_vm10, %v1536_v29  ;;  %v1534_v41 = vpop.permute.xlu1 %1533 }
 0x1d0   : > { %1578 = vst.msk [vmem:[#allocation3 + $0x20] sm:$0xff] %vm10584_vm10, %v1534_v41  ;;  %2828 = vrot.lane.b32.xlu0 %v8468_v51, %s10585_s14  ;;  %v2512_v41 = vld [vmem:[#allocation2 + $0x121] sm:$0xff] }
 0x1d1   : > { %2572 = vrot.lane.b32.xlu1 %v8544_v43, %s10593_s8 }
 0x1d2   : > { %v3598_v48 = vpop.permute.xlu0 %3597 }
 0x1d3   : > { %3643 = vst.msk [vmem:[#allocation3 + $0x18] sm:$0xff] %vm10579_vm1, %v3598_v48  ;;  %v3596_v45 = vpop.permute.xlu1 %3595 }
 0x1d4   : > { %3642 = vst.msk [vmem:[#allocation3 + $0x10] sm:$0xff] %vm10579_vm1, %v3596_v45  ;;  %2957 = vrot.lane.b32.xlu0 %v8481_v53, %s10591_s15  ;;  %vm10602_vm1 = vcmask 425344   ;;  %v2641_v45 = vld [vmem:[#allocation2 + $0x122] sm:$0xff] }
 0x1d5   : > { %2701 = vrot.lane.b32.xlu1 %v8552_v47, %s10589_s13 }
 0x1d6   : > { %v1792_v26 = vpop.permute.xlu0 %1791 }
 0x1d7   : > { %v1663_v31 = vpop.permute.xlu1 %1662 }
 0x1d8   : > { %1707 = vst.msk [vmem:[#allocation3 + $0x20] sm:$0xff] %vm10580_vm11, %v1663_v31  ;;  %3087 = vrot.lane.b32.xlu0 %v8536_v36, %s10587_s17  ;;  %v2770_v31 = vld [vmem:[#allocation2 + $0x123] sm:$0xff] }
 0x1d9   : > { %1836 = vst.msk [vmem:[#allocation3 + $0x20] sm:$0xff] %vm10595_vm12, %v1792_v26  ;;  %2830 = vrot.lane.b32.xlu1 %v8560_v62, %s10585_s14 }
 0x1da   : > { %v1921_v3 = vpop.permute.xlu0 %1920  ;;  %v3659_v59 = vld [vmem:[#allocation3 + $0x18] sm:$0xff] }
 0x1db   : > { %1965 = vst.msk [vmem:[#allocation3 + $0x20] sm:$0xff] %vm10582_vm13, %v1921_v3  ;;  %v1665_v34 = vpop.permute.xlu1 %1664  ;;  %v3658_v63 = vld [vmem:[#allocation3 + $0x10] sm:$0xff]  ;;  %v3029_v3 = vld [vmem:[#allocation2 + $0x138] sm:$0xff] }
 0x1dc   : > { %1708 = vst.msk [vmem:[#allocation3 + $0x28] sm:$0xff] %vm10580_vm11, %v1665_v34  ;;  %7469 = vmatprep.mubr.msk.bf16.mxu0 %vm10581_vm2, %v3658_v63  ;;  %3216 = vrot.lane.b32.xlu0 %v8544_v43, %s7631_s18  ;;  %vm10603_vm11 = vcmask 458144   ;;  %v2900_v34 = vld [vmem:[#allocation2 + $0x12c] sm:$0xff] }
 0x1dd   : > { %2959 = vrot.lane.b32.xlu1 %v8568_v30, %s10591_s15  ;;  %7470 = vmatmul.mubr.msk.bf16.gmra.mrb[4].mxu0 %vm10581_vm2, %v3659_v59  ;;  %vm10605_vm2 = vcmask 425344   ;;  %v3030_v59 = vld [vmem:[#allocation2 + $0x140] sm:$0xff] }
 0x1de   : > { %v2050_v17 = vpop.permute.xlu0 %2049 }
 0x1df   : > { %2094 = vst.msk [vmem:[#allocation3 + $0x20] sm:$0xff] %vm10602_vm1, %v2050_v17  ;;  %v1794_v4 = vpop.permute.xlu1 %1793  ;;  %vm10604_vm1 = vcmask 490944   ;;  %v8809_v17 = vpack.c.bf16 %v3030_v59, %v3029_v3  ;;  %v2516_v59 = vld [vmem:[#allocation2 + $0x151] sm:$0xff] }
 0x1e0   : > { %1837 = vst.msk [vmem:[#allocation3 + $0x28] sm:$0xff] %vm10595_vm12, %v1794_v4  ;;  %3218 = vrot.lane.b32.xlu0 %v8575_v0, %s7631_s18  ;;  %v8814_v4 = vpack.c.bf16 %v2900_v34, %v2899_v60 }
 0x1e1   : > { %3089 = vrot.lane.b32.xlu1 %v8580_v2, %s10587_s17 }
 0x1e2   : > { %v2179_v5 = vpop.permute.xlu0 %2178 }
 0x1e3   : > { %2223 = vst.msk [vmem:[#allocation3 + $0x20] sm:$0xff] %vm10603_vm11, %v2179_v5  ;;  %v1923_v25 = vpop.permute.xlu1 %1922  ;;  %vm10606_vm11 = vcmask 523744  }
 0x1e4   : > { %1966 = vst.msk [vmem:[#allocation3 + $0x28] sm:$0xff] %vm10582_vm13, %v1923_v25  ;;  %1285 = vrot.lane.b32.xlu0 %v8544_v43, %s7616_s22  ;;  %vm10607_vm13 = vcmask 458144  }
 0x1e5   : > { %1283 = vrot.lane.b32.xlu1 %v8438_v52, %s7616_s22  ;;  %v8606_v52 = vpack.c.bf16 %v3413_v10, %v3412_v9 }
 0x1e6   : > { %v2308_v7 = vpop.permute.xlu0 %2307 }
 0x1e7   : > { %2352 = vst.msk [vmem:[#allocation3 + $0x20] sm:$0xff] %vm10604_vm1, %v2308_v7  ;;  %v2052_v8 = vpop.permute.xlu1 %2051  ;;  %v3158_v7 = vld [vmem:[#allocation2 + $0x139] sm:$0xff] }
 0x1e8   : > { %2095 = vst.msk [vmem:[#allocation3 + $0x28] sm:$0xff] %vm10605_vm2, %v2052_v8  ;;  %3347 = vrot.lane.b32.xlu0 %v8592_v6, %s7632_s20  ;;  %vm10608_vm2 = vmmov %vm10604_vm1  ;;  %vm10583_vm1 = vcmask 261120   ;;  %v3159_v8 = vld [vmem:[#allocation2 + $0x141] sm:$0xff] }
 0x1e9   : > { %3345 = vrot.lane.b32.xlu1 %v8552_v47, %s7632_s20  ;;  %4056 = vst.msk [vmem:[#allocation4 + $0x30] sm:$0xff] %vm10583_vm1, %v7610_v1  ;;  %4057 = vst.msk [vmem:[#allocation4 + $0x38] sm:$0xff] %vm10583_vm1, %v7610_v1 }
 0x1ea   : > { %v2438_v11 = vpop.permute.xlu0 %2437  ;;  %4049 = vst.msk [vmem:[#allocation4] sm:$0xff] %vm10583_vm1, %v7610_v1  ;;  %4050 = vst.msk [vmem:[#allocation4 + $0x8] sm:$0xff] %vm10583_vm1, %v7610_v1 }
 0x1eb   : > { %2482 = vst.msk [vmem:[#allocation3 + $0x20] sm:$0xff] %vm10606_vm11, %v2438_v11  ;;  %v2181_v35 = vpop.permute.xlu1 %2180  ;;  %v8828_v11 = vpack.c.bf16 %v3159_v8, %v3158_v7  ;;  %v2774_v7 = vld [vmem:[#allocation2 + $0x153] sm:$0xff]  ;;  %v2775_v8 = vld [vmem:[#allocation2 + $0x15b] sm:$0xff] }
 0x1ec   : > { %2224 = vst.msk [vmem:[#allocation3 + $0x28] sm:$0xff] %vm10607_vm13, %v2181_v35  ;;  %1414 = vrot.lane.b32.xlu0 %v8552_v47, %s7617_s23  ;;  %vm10609_vm13 = vmmov %vm10606_vm11  ;;  %vm4051_vm11 = vcmask 254976   ;;  %v7296_v35 = vld [vmem:[%s7835_s16 + $0x70] sm:$0xff]  }
 0x1ed   : > { %1412 = vrot.lane.b32.xlu1 %v8454_v61, %s7617_s23  ;;  %v8620_v61 = vpack.c.bf16 %v3542_v15, %v3541_v14  ;;  %4053 = vst.msk [vmem:[#allocation4 + $0x18] sm:$0xff] %vm10583_vm1, %v7610_v1  ;;  %4054 = vst.msk [vmem:[#allocation4 + $0x20] sm:$0xff] %vm10583_vm1, %v7610_v1 }
 0x1ee   : > { %v2567_v12 = vpop.permute.xlu0 %2566  ;;  %4059 = vst.msk [vmem:[#allocation4 + $0x48] sm:$0xff] %vm10583_vm1, %v7610_v1  ;;  %4060 = vst.msk [vmem:[#allocation4 + $0x50] sm:$0xff] %vm10583_vm1, %v7610_v1 }
 0x1ef   : > { %2611 = vst.msk [vmem:[#allocation3 + $0x20] sm:$0xff] %vm2606_vm3, %v2567_v12  ;;  %v2310_v13 = vpop.permute.xlu1 %2309  ;;  %v7277_v12 = vunpack.c.l.bf16 %v7296_v35 }
 0x1f0   : > { %2353 = vst.msk [vmem:[#allocation3 + $0x28] sm:$0xff] %vm10608_vm2, %v2310_v13  ;;  %3476 = vrot.lane.b32.xlu0 %v8606_v52, %s7633_s27  ;;  %vm10610_vm2 = vcmask 818944   ;;  %v7278_v13 = vunpack.c.h.bf16 %v7296_v35  ;;  %v3033_v35 = vld [vmem:[#allocation2 + $0x168] sm:$0xff] }
 0x1f1   : > { %3474 = vrot.lane.b32.xlu1 %v8560_v62, %s7633_s27  ;;  %4062 = vst.msk [vmem:[#allocation4 + $0x60] sm:$0xff] %vm10583_vm1, %v7610_v1  ;;  %4063 = vst.msk [vmem:[#allocation4 + $0x68] sm:$0xff] %vm10583_vm1, %v7610_v1 }
 0x1f2   : > { %v2696_v21 = vpop.permute.xlu0 %2695  ;;  %4065 = vst.msk [vmem:[#allocation4 + $0x78] sm:$0xff] %vm10583_vm1, %v7610_v1  ;;  %4066 = vst.msk [vmem:[#allocation4 + $0x80] sm:$0xff] %vm10583_vm1, %v7610_v1 }
 0x1f3   : > { %2740 = vst.msk [vmem:[#allocation3 + $0x20] sm:$0xff] %vm2735_vm4, %v2696_v21  ;;  %v2440_v46 = vpop.permute.xlu1 %2439  ;;  %v3287_v21 = vld [vmem:[#allocation2 + $0x13a] sm:$0xff] }
 0x1f4   : > { %2483 = vst.msk [vmem:[#allocation3 + $0x28] sm:$0xff] %vm10609_vm13, %v2440_v46  ;;  %1543 = vrot.lane.b32.xlu0 %v8560_v62, %s7618_s24  ;;  %vm10611_vm13 = vmmov %vm10610_vm2 }
 0x1f5   : > { %1541 = vrot.lane.b32.xlu1 %v8468_v51, %s7618_s24  ;;  %4068 = vst.msk [vmem:[#allocation4 + $0x90] sm:$0xff] %vm10583_vm1, %v7610_v1  ;;  %4069 = vst.msk [vmem:[#allocation4 + $0x98] sm:$0xff] %vm10583_vm1, %v7610_v1 }
 0x1f6   : > { %v2825_v16 = vpop.permute.xlu0 %2824  ;;  %4071 = vst.msk [vmem:[#allocation4 + $0xa8] sm:$0xff] %vm10583_vm1, %v7610_v1  ;;  %4072 = vst.msk [vmem:[#allocation4 + $0xb0] sm:$0xff] %vm10583_vm1, %v7610_v1 }
 0x1f7   : > { %2869 = vst.msk [vmem:[#allocation3 + $0x20] sm:$0xff] %vm2864_vm5, %v2825_v16  ;;  %v2569_v19 = vpop.permute.xlu1 %2568 }
 0x1f8   : > { %2612 = vst.msk [vmem:[#allocation3 + $0x28] sm:$0xff] %vm2606_vm3, %v2569_v19  ;;  %3605 = vrot.lane.b32.xlu0 %v8620_v61, %s7634_s29 }
 0x1f9   : > { %3603 = vrot.lane.b32.xlu1 %v8568_v30, %s7634_s29  ;;  %4074 = vst.msk [vmem:[#allocation4 + $0xc0] sm:$0xff] %vm10583_vm1, %v7610_v1  ;;  %4075 = vst.msk [vmem:[#allocation4 + $0xc8] sm:$0xff] %vm10583_vm1, %v7610_v1 }
 0x1fa   : > { %v2954_v22 = vpop.permute.xlu0 %2953  ;;  %4077 = vst.msk [vmem:[#allocation4 + $0xd8] sm:$0xff] %vm10583_vm1, %v7610_v1  ;;  %4078 = vst.msk [vmem:[#allocation4 + $0xe0] sm:$0xff] %vm10583_vm1, %v7610_v1 }
 0x1fb   : > { %2998 = vst.msk [vmem:[#allocation3 + $0x20] sm:$0xff] %vm2993_vm7, %v2954_v22  ;;  %v2698_v23 = vpop.permute.xlu1 %2697 }
 0x1fc   : > { %2741 = vst.msk [vmem:[#allocation3 + $0x28] sm:$0xff] %vm2735_vm4, %v2698_v23  ;;  %1799 = vrot.lane.b32.xlu0 %v8536_v36, %s7620_s26 }
 0x1fd   : > { %1670 = vrot.lane.b32.xlu1 %v8481_v53, %s7619_s25  ;;  %4080 = vst.msk [vmem:[#allocation4 + $0xf0] sm:$0xff] %vm10583_vm1, %v7610_v1  ;;  %4081 = vst.msk [vmem:[#allocation4 + $0xf8] sm:$0xff] %vm10583_vm1, %v7610_v1 }
 0x1fe   : > { %v3084_v51 = vpop.permute.xlu0 %3083  ;;  %4083 = vst.msk [vmem:[#allocation4 + $0x108] sm:$0xff] %vm10583_vm1, %v7610_v1  ;;  %4084 = vst.msk [vmem:[#allocation4 + $0x110] sm:$0xff] %vm10583_vm1, %v7610_v1 }
 0x1ff   : > { %3128 = vst.msk [vmem:[#allocation3 + $0x20] sm:$0xff] %vm3123_vm6, %v3084_v51  ;;  %v2827_v40 = vpop.permute.xlu1 %2826  ;;  %v3416_v51 = vld [vmem:[#allocation2 + $0x13b] sm:$0xff] }
 0x200   : > { %2870 = vst.msk [vmem:[#allocation3 + $0x28] sm:$0xff] %vm2864_vm5, %v2827_v40  ;;  %1928 = vrot.lane.b32.xlu0 %v8544_v43, %s10599_s28  ;;  %v2384_v43 = vld [vmem:[#allocation2 + $0x128] sm:$0xff] }
 0x201   : > { %1672 = vrot.lane.b32.xlu1 %v8568_v30, %s7619_s25  ;;  %4086 = vst.msk [vmem:[#allocation4 + $0x120] sm:$0xff] %vm10583_vm1, %v7610_v1  ;;  %4087 = vst.msk [vmem:[#allocation4 + $0x128] sm:$0xff] %vm10583_vm1, %v7610_v1  ;;  %v8780_v54 = vpack.c.bf16 %v2384_v43, %v2383_v39  ;;  %v3417_v40 = vld [vmem:[#allocation2 + $0x143] sm:$0xff] }
 0x202   : > { %v3213_v55 = vpop.permute.xlu0 %3212  ;;  %4089 = vst.msk [vmem:[#allocation4 + $0x138] sm:$0xff] %vm10583_vm1, %v7610_v1  ;;  %4090 = vst.msk [vmem:[#allocation4 + $0x140] sm:$0xff] %vm10583_vm1, %v7610_v1 }
 0x203   : > { %3257 = vst.msk [vmem:[#allocation3 + $0x20] sm:$0xff] %vm3252_vm0, %v3213_v55  ;;  %v2956_v27 = vpop.permute.xlu1 %2955 }
 0x204   : > { %2999 = vst.msk [vmem:[#allocation3 + $0x28] sm:$0xff] %vm2993_vm7, %v2956_v27  ;;  %2057 = vrot.lane.b32.xlu0 %v8552_v47, %s10600_s19  ;;  %v2513_v47 = vld [vmem:[#allocation2 + $0x129] sm:$0xff] }
 0x205   : > { %1801 = vrot.lane.b32.xlu1 %v8580_v2, %s7620_s26  ;;  %4092 = vst.msk [vmem:[#allocation4 + $0x150] sm:$0xff] %vm10583_vm1, %v7610_v1  ;;  %4093 = vst.msk [vmem:[#allocation4 + $0x158] sm:$0xff] %vm10583_vm1, %v7610_v1  ;;  %v8788_v32 = vpack.c.bf16 %v2513_v47, %v2512_v41 }
 0x206   : > { %v3215_v53 = vpop.permute.xlu0 %3214  ;;  %4095 = vst.msk [vmem:[#allocation4 + $0x168] sm:$0xff] %vm10583_vm1, %v7610_v1  ;;  %4096 = vst.msk [vmem:[#allocation4 + $0x170] sm:$0xff] %vm10583_vm1, %v7610_v1 }
 0x207   : > { %4098 = vst.msk [vmem:[#allocation4 + $0x180] sm:$0xff] %vm10583_vm1, %v7610_v1  ;;  %4099 = vst.msk [vmem:[#allocation4 + $0x188] sm:$0xff] %vm10583_vm1, %v7610_v1  ;;  %v3086_v28 = vpop.permute.xlu1 %3085 }
 0x208   : > { %4101 = vst.msk [vmem:[#allocation4 + $0x198] sm:$0xff] %vm10583_vm1, %v7610_v1  ;;  %4102 = vst.msk [vmem:[#allocation4 + $0x1a0] sm:$0xff] %vm10583_vm1, %v7610_v1  ;;  %2186 = vrot.lane.b32.xlu0 %v8560_v62, %s10601_s21  ;;  %v2642_v62 = vld [vmem:[#allocation2 + $0x12a] sm:$0xff] }
 0x209   : > { %3129 = vst.msk [vmem:[#allocation3 + $0x28] sm:$0xff] %vm3123_vm6, %v3086_v28  ;;  %1930 = vrot.lane.b32.xlu1 %v8575_v0, %s10599_s28  ;;  %v8796_v20 = vpack.c.bf16 %v2642_v62, %v2641_v45 }
 0x20a   : > { %4058 = vst.msk [vmem:[#allocation4 + $0x40] sm:$0x3] %vm4051_vm11, %v7610_v1  ;;  %4052 = vst.msk [vmem:[#allocation4 + $0x10] sm:$0x3] %vm4051_vm11, %v7610_v1  ;;  %v1282_v33 = vpop.permute.xlu0 %1281 }
 0x20b   : > { %4055 = vst.msk [vmem:[#allocation4 + $0x28] sm:$0x3] %vm4051_vm11, %v7610_v1  ;;  %4061 = vst.msk [vmem:[#allocation4 + $0x58] sm:$0x3] %vm4051_vm11, %v7610_v1  ;;  %v1280_v36 = vpop.permute.xlu1 %1279 }
 0x20c   : > { %4064 = vst.msk [vmem:[#allocation4 + $0x70] sm:$0x3] %vm4051_vm11, %v7610_v1  ;;  %4067 = vst.msk [vmem:[#allocation4 + $0x88] sm:$0x3] %vm4051_vm11, %v7610_v1  ;;  %2315 = vrot.lane.b32.xlu0 %v8568_v30, %s7624_s30  ;;  %v2771_v30 = vld [vmem:[#allocation2 + $0x12b] sm:$0xff] }
 0x20d   : > { %4070 = vst.msk [vmem:[#allocation4 + $0xa0] sm:$0x3] %vm4051_vm11, %v7610_v1  ;;  %4073 = vst.msk [vmem:[#allocation4 + $0xb8] sm:$0x3] %vm4051_vm11, %v7610_v1  ;;  %2059 = vrot.lane.b32.xlu1 %v8592_v6, %s10600_s19  ;;  %v8804_v58 = vpack.c.bf16 %v2771_v30, %v2770_v31  ;;  %v2387_v31 = vld [vmem:[#allocation2 + $0x150] sm:$0xff]  ;;  %v2388_v30 = vld [vmem:[#allocation2 + $0x158] sm:$0xff] }
 0x20e   : > { %4076 = vst.msk [vmem:[#allocation4 + $0xd0] sm:$0x3] %vm4051_vm11, %v7610_v1  ;;  %4079 = vst.msk [vmem:[#allocation4 + $0xe8] sm:$0x3] %vm4051_vm11, %v7610_v1  ;;  %v3344_v24 = vpop.permute.xlu0 %3343 }
 0x20f   : > { %4082 = vst.msk [vmem:[#allocation4 + $0x100] sm:$0x3] %vm4051_vm11, %v7610_v1  ;;  %4085 = vst.msk [vmem:[#allocation4 + $0x118] sm:$0x3] %vm4051_vm11, %v7610_v1  ;;  %v3342_v37 = vpop.permute.xlu1 %3341 }
 0x210   : > { %4088 = vst.msk [vmem:[#allocation4 + $0x130] sm:$0x3] %vm4051_vm11, %v7610_v1  ;;  %4091 = vst.msk [vmem:[#allocation4 + $0x148] sm:$0x3] %vm4051_vm11, %v7610_v1  ;;  %2445 = vrot.lane.b32.xlu0 %v8580_v2, %s7625_s10 }
 0x211   : > { %4094 = vst.msk [vmem:[#allocation4 + $0x160] sm:$0x3] %vm4051_vm11, %v7610_v1  ;;  %4097 = vst.msk [vmem:[#allocation4 + $0x178] sm:$0x3] %vm4051_vm11, %v7610_v1  ;;  %2188 = vrot.lane.b32.xlu1 %v8606_v52, %s10601_s21 }
 0x212   : > { %4100 = vst.msk [vmem:[#allocation4 + $0x190] sm:$0x3] %vm4051_vm11, %v7610_v1  ;;  %4103 = vst.msk [vmem:[#allocation4 + $0x1a8] sm:$0x3] %vm4051_vm11, %v7610_v1  ;;  %v1411_v38 = vpop.permute.xlu0 %1410  ;;  %vm10612_vm11 = vcmask 326944  }
 0x213   : > { %3258 = vst.msk [vmem:[#allocation3 + $0x28] sm:$0xff] %vm3252_vm0, %v3215_v53  ;;  %v1409_v29 = vpop.permute.xlu1 %1408  ;;  %v7297_v53 = vld [vmem:[%s7835_s16 + $0x78] sm:$0xff]   ;;  %s10634_s16 = smov 72  }
 0x214   : > { %1323 = vst.msk [vmem:[#allocation3 + $0x38] sm:$0xff] %vm1315_vm8, %v1282_v33  ;;  %1322 = vst.msk [vmem:[#allocation3 + $0x30] sm:$0xff] %vm1315_vm8, %v1280_v36  ;;  %2574 = vrot.lane.b32.xlu0 %v8575_v0, %s10593_s8  ;;  %v7281_v28 = vunpack.c.l.bf16 %v7297_v53  ;;  %v7282_v33 = vunpack.c.h.bf16 %v7297_v53 }
 0x215   : > { %3387 = vst.msk [vmem:[#allocation3 + $0x28] sm:$0xff] %vm3381_vm14, %v3344_v24  ;;  %3386 = vst.msk [vmem:[#allocation3 + $0x20] sm:$0xff] %vm3381_vm14, %v3342_v37  ;;  %2317 = vrot.lane.b32.xlu1 %v8620_v61, %s7624_s30  ;;  %v3545_v37 = vld [vmem:[#allocation2 + $0x13c] sm:$0xff] }
 0x216   : > { %1452 = vst.msk [vmem:[#allocation3 + $0x38] sm:$0xff] %vm10597_vm9, %v1411_v38  ;;  %1451 = vst.msk [vmem:[#allocation3 + $0x30] sm:$0xff] %vm10597_vm9, %v1409_v29  ;;  %v3473_v44 = vpop.permute.xlu0 %3472 }
 0x217   : > { %3516 = vst.msk [vmem:[#allocation3 + $0x28] sm:$0xff] %vm10596_vm15, %v3473_v44  ;;  %v3471_v48 = vpop.permute.xlu1 %3470 }
 0x218   : > { %3515 = vst.msk [vmem:[#allocation3 + $0x20] sm:$0xff] %vm10596_vm15, %v3471_v48  ;;  %2703 = vrot.lane.b32.xlu0 %v8592_v6, %s10589_s13 }
 0x219   : > { %2447 = vrot.lane.b32.xlu1 %v8780_v54, %s7625_s10 }
 0x21a   : > { %v1540_v50 = vpop.permute.xlu0 %1539 }
 0x21b   : > { %1581 = vst.msk [vmem:[#allocation3 + $0x38] sm:$0xff] %vm10584_vm10, %v1540_v50  ;;  %v1538_v26 = vpop.permute.xlu1 %1537 }
 0x21c   : > { %1580 = vst.msk [vmem:[#allocation3 + $0x30] sm:$0xff] %vm10584_vm10, %v1538_v26  ;;  %2832 = vrot.lane.b32.xlu0 %v8606_v52, %s10585_s14  ;;  %vm10617_vm10 = vcmask 425344  }
 0x21d   : > { %2576 = vrot.lane.b32.xlu1 %v8788_v32, %s10593_s8 }
 0x21e   : > { %v3602_v42 = vpop.permute.xlu0 %3601 }
 0x21f   : > { %3645 = vst.msk [vmem:[#allocation3 + $0x28] sm:$0xff] %vm10610_vm2, %v3602_v42  ;;  %v3600_v56 = vpop.permute.xlu1 %3599  ;;  %vm10613_vm2 = vcmask 392544  }
 0x220   : > { %3644 = vst.msk [vmem:[#allocation3 + $0x20] sm:$0xff] %vm10611_vm13, %v3600_v56  ;;  %2961 = vrot.lane.b32.xlu0 %v8620_v61, %s10591_s15  ;;  %vm10614_vm13 = vmmov %vm10612_vm11 }
 0x221   : > { %2705 = vrot.lane.b32.xlu1 %v8796_v20, %s10589_s13 }
 0x222   : > { %v1796_v57 = vpop.permute.xlu0 %1795 }
 0x223   : > { %v1667_v63 = vpop.permute.xlu1 %1666 }
 0x224   : > { %1709 = vst.msk [vmem:[#allocation3 + $0x30] sm:$0xff] %vm10612_vm11, %v1667_v63  ;;  %3091 = vrot.lane.b32.xlu0 %v8780_v54, %s10587_s17  ;;  %vm10615_vm11 = vcmask 818176  }
 0x225   : > { %1838 = vst.msk [vmem:[#allocation3 + $0x30] sm:$0xff] %vm10595_vm12, %v1796_v57  ;;  %2834 = vrot.lane.b32.xlu1 %v8804_v58, %s10585_s14  ;;  %vm10616_vm1 = vmmov %vm10615_vm11  ;;  %s10618_s14 = smov 20   ;;  %v2517_v57 = vld [vmem:[#allocation2 + $0x159] sm:$0xff] }
 0x226   : > { %v1925_v49 = vpop.permute.xlu0 %1924  ;;  %v3661_v18 = vld [vmem:[#allocation3 + $0x28] sm:$0xff]  ;;  %v8936_v34 = vpack.c.bf16 %v2517_v57, %v2516_v59  ;;  %v3421_v59 = vld [vmem:[#allocation2 + $0x173] sm:$0xff] }
 0x227   : > { %1967 = vst.msk [vmem:[#allocation3 + $0x30] sm:$0xff] %vm10613_vm2, %v1925_v49  ;;  %v1669_v5 = vpop.permute.xlu1 %1668  ;;  %v3660_v25 = vld [vmem:[#allocation3 + $0x20] sm:$0xff]  ;;  %vm10620_vm2 = vcmask 31744  }
 0x228   : > { %1710 = vst.msk [vmem:[#allocation3 + $0x38] sm:$0xff] %vm10614_vm13, %v1669_v5  ;;  %7473 = vmatprep.mubr.msk.bf16.mxu0 %vm10615_vm11, %v3660_v25  ;;  %3093 = vrot.lane.b32.xlu0 %v8809_v17, %s10587_s17  ;;  %vm10622_vm13 = vcmask 392544   ;;  %vm10623_vm11 = vcmask 490944   ;;  %v2646_v49 = vld [vmem:[#allocation2 + $0x15a] sm:$0xff] }
 0x229   : > { %2963 = vrot.lane.b32.xlu1 %v8814_v4, %s10591_s15  ;;  %7474 = vmatmul.mubr.msk.bf16.gmra.mrb[8].mxu0 %vm10616_vm1, %v3661_v18  ;;  %vm10619_vm1 = vcmask 458144   ;;  %489 = vst.msk [vmem:[#allocation2 + $0x182] sm:$0xff] %vm10620_vm2, %v7277_v12  ;;  %v3034_v12 = vld [vmem:[#allocation2 + $0x170] sm:$0xff] }
 0x22a   : > { %v2054_v9 = vpop.permute.xlu0 %2053 }
 0x22b   : > { %2096 = vst.msk [vmem:[#allocation3 + $0x30] sm:$0xff] %vm10617_vm10, %v2054_v9  ;;  %v1798_v10 = vpop.permute.xlu1 %1797  ;;  %vm10621_vm10 = vmmov %vm10620_vm2  ;;  %vm10625_vm2 = vcmask 523744  }
 0x22c   : > { %1839 = vst.msk [vmem:[#allocation3 + $0x38] sm:$0xff] %vm10595_vm12, %v1798_v10  ;;  %1160 = vrot.lane.b32.xlu0 %v8780_v54, %s10618_s14  ;;  %v8952_v10 = vpack.c.bf16 %v2775_v8, %v2774_v7 }
 0x22d   : > { %1158 = vrot.lane.b32.xlu1 %v8580_v2, %s10618_s14  ;;  %490 = vst.msk [vmem:[#allocation2 + $0x18a] sm:$0xff] %vm10621_vm10, %v7278_v13  ;;  %v3288_v2 = vld [vmem:[#allocation2 + $0x142] sm:$0xff]  ;;  %vm10626_vm10 = vcmask 458144  }
 0x22e   : > { %v2183_v14 = vpop.permute.xlu0 %2182  ;;  %v8845_v19 = vpack.c.bf16 %v3288_v2, %v3287_v21  ;;  %v2904_v21 = vld [vmem:[#allocation2 + $0x15c] sm:$0xff] }
 0x22f   : > { %2225 = vst.msk [vmem:[#allocation3 + $0x30] sm:$0xff] %vm10619_vm1, %v2183_v14  ;;  %v1927_v15 = vpop.permute.xlu1 %1926  ;;  %vm10624_vm1 = vcmask 425344  }
 0x230   : > { %1968 = vst.msk [vmem:[#allocation3 + $0x38] sm:$0xff] %vm10622_vm13, %v1927_v15  ;;  %3222 = vrot.lane.b32.xlu0 %v8828_v11, %s7631_s18  ;;  %vm10627_vm13 = vmmov %vm10623_vm11  ;;  %v2903_v15 = vld [vmem:[#allocation2 + $0x154] sm:$0xff] }
 0x231   : > { %3220 = vrot.lane.b32.xlu1 %v8788_v32, %s7631_s18 }
 0x232   : > { %v2312_v46 = vpop.permute.xlu0 %2311 }
 0x233   : > { %2354 = vst.msk [vmem:[#allocation3 + $0x30] sm:$0xff] %vm10623_vm11, %v2312_v46  ;;  %v2056_v16 = vpop.permute.xlu1 %2055  ;;  %vm10628_vm11 = vcmask 31744  }
 0x234   : > { %2097 = vst.msk [vmem:[#allocation3 + $0x38] sm:$0xff] %vm10624_vm1, %v2056_v16  ;;  %1289 = vrot.lane.b32.xlu0 %v8788_v32, %s7616_s22  ;;  %vm10629_vm1 = vmmov %vm10628_vm11  ;;  %v8959_v16 = vpack.c.bf16 %v3034_v12, %v3033_v35  ;;  %v3550_v35 = vld [vmem:[#allocation2 + $0x174] sm:$0xff] }
 0x235   : > { %1287 = vrot.lane.b32.xlu1 %v8575_v0, %s7616_s22  ;;  %v8859_v0 = vpack.c.bf16 %v3417_v40, %v3416_v51  ;;  %491 = vst.msk [vmem:[#allocation2 + $0x19a] sm:$0xff] %vm10628_vm11, %v7281_v28  ;;  %vm10632_vm11 = vcmask 818944   ;;  %v3162_v40 = vld [vmem:[#allocation2 + $0x169] sm:$0xff] }
 0x236   : > { %v2442_v22 = vpop.permute.xlu0 %2441  ;;  %492 = vst.msk [vmem:[#allocation2 + $0x1a2] sm:$0xff] %vm10629_vm1, %v7282_v33  ;;  %vm10633_vm1 = vmmov %vm10632_vm11 }
 0x237   : > { %2484 = vst.msk [vmem:[#allocation3 + $0x30] sm:$0xff] %vm10625_vm2, %v2442_v22  ;;  %v2185_v23 = vpop.permute.xlu1 %2184  ;;  %v8964_v22 = vpack.c.bf16 %v2904_v21, %v2903_v15 }
 0x238   : > { %2226 = vst.msk [vmem:[#allocation3 + $0x38] sm:$0xff] %vm10626_vm10, %v2185_v23  ;;  %3351 = vrot.lane.b32.xlu0 %v8845_v19, %s7632_s20  ;;  %vm10630_vm10 = vcmask 294144  }
 0x239   : > { %3349 = vrot.lane.b32.xlu1 %v8796_v20, %s7632_s20 }
 0x23a   : > { %v2571_v55 = vpop.permute.xlu0 %2570 }
 0x23b   : > { %2613 = vst.msk [vmem:[#allocation3 + $0x30] sm:$0xff] %vm2606_vm3, %v2571_v55  ;;  %v2314_v27 = vpop.permute.xlu1 %2313  ;;  %v3163_v55 = vld [vmem:[#allocation2 + $0x171] sm:$0xff] }
 0x23c   : > { %2355 = vst.msk [vmem:[#allocation3 + $0x38] sm:$0xff] %vm10627_vm13, %v2314_v27  ;;  %1418 = vrot.lane.b32.xlu0 %v8796_v20, %s7617_s23  ;;  %vm10631_vm13 = vmmov %vm10630_vm10  ;;  %v8976_v28 = vpack.c.bf16 %v3163_v55, %v3162_v40 }
 0x23d   : > { %1416 = vrot.lane.b32.xlu1 %v8592_v6, %s7617_s23  ;;  %v3546_v6 = vld [vmem:[#allocation2 + $0x144] sm:$0xff] }
 0x23e   : > { %v2700_v36 = vpop.permute.xlu0 %2699  ;;  %v8876_v43 = vpack.c.bf16 %v3546_v6, %v3545_v37  ;;  %v8992_v6 = vld [vmem:[%s10556_s3] ss:$0 sm:$0xff] }
 0x23f   : > { %2742 = vst.msk [vmem:[#allocation3 + $0x30] sm:$0xff] %vm2735_vm4, %v2700_v36  ;;  %v2444_v24 = vpop.permute.xlu1 %2443  ;;  %v8983_v36 = vld [vmem:[%s10555_s2] ss:$0 sm:$0xff] }
 0x240   : > { %2485 = vst.msk [vmem:[#allocation3 + $0x38] sm:$0xff] %vm10625_vm2, %v2444_v24  ;;  %3480 = vrot.lane.b32.xlu0 %v8859_v0, %s7633_s27  ;;  %vm10635_vm2 = vcmask 326944  }
 0x241   : > { %3478 = vrot.lane.b32.xlu1 %v8804_v58, %s7633_s27 }
 0x242   : > { %v2829_v38 = vpop.permute.xlu0 %2828 }
 0x243   : > { %2871 = vst.msk [vmem:[#allocation3 + $0x30] sm:$0xff] %vm2864_vm5, %v2829_v38  ;;  %v2573_v39 = vpop.permute.xlu1 %2572 }
 0x244   : > { %2614 = vst.msk [vmem:[#allocation3 + $0x38] sm:$0xff] %vm2606_vm3, %v2573_v39  ;;  %1547 = vrot.lane.b32.xlu0 %v8804_v58, %s7618_s24  ;;  %v3291_v39 = vld [vmem:[#allocation2 + $0x16a] sm:$0xff] }
 0x245   : > { %1545 = vrot.lane.b32.xlu1 %v8606_v52, %s7618_s24 }
 0x246   : > { %v2958_v29 = vpop.permute.xlu0 %2957 }
 0x247   : > { %3000 = vst.msk [vmem:[#allocation3 + $0x30] sm:$0xff] %vm2993_vm7, %v2958_v29  ;;  %v2702_v44 = vpop.permute.xlu1 %2701  ;;  %v3292_v29 = vld [vmem:[#allocation2 + $0x172] sm:$0xff] }
 0x248   : > { %2743 = vst.msk [vmem:[#allocation3 + $0x38] sm:$0xff] %vm2735_vm4, %v2702_v44  ;;  %3609 = vrot.lane.b32.xlu0 %v8876_v43, %s7634_s29 }
 0x249   : > { %3607 = vrot.lane.b32.xlu1 %v8814_v4, %s7634_s29 }
 0x24a   : > { %v3088_v41 = vpop.permute.xlu0 %3087 }
 0x24b   : > { %3130 = vst.msk [vmem:[#allocation3 + $0x30] sm:$0xff] %vm3123_vm6, %v3088_v41  ;;  %v2831_v47 = vpop.permute.xlu1 %2830 }
 0x24c   : > { %2872 = vst.msk [vmem:[#allocation3 + $0x38] sm:$0xff] %vm2864_vm5, %v2831_v47  ;;  %1803 = vrot.lane.b32.xlu0 %v8780_v54, %s7620_s26 }
 0x24d   : > { %1674 = vrot.lane.b32.xlu1 %v8620_v61, %s7619_s25 }
 0x24e   : > { %v3217_v52 = vpop.permute.xlu0 %3216 }
 0x24f   : > { %3259 = vst.msk [vmem:[#allocation3 + $0x30] sm:$0xff] %vm3252_vm0, %v3217_v52  ;;  %v2960_v48 = vpop.permute.xlu1 %2959 }
 0x250   : > { %3001 = vst.msk [vmem:[#allocation3 + $0x38] sm:$0xff] %vm2993_vm7, %v2960_v48  ;;  %1932 = vrot.lane.b32.xlu0 %v8788_v32, %s10599_s28 }
 0x251   : > { %1676 = vrot.lane.b32.xlu1 %v8814_v4, %s7619_s25 }
 0x252   : > { %v3219_v50 = vpop.permute.xlu0 %3218 }
 0x253   : > { %v3090_v45 = vpop.permute.xlu1 %3089 }
 0x254   : > { %3131 = vst.msk [vmem:[#allocation3 + $0x38] sm:$0xff] %vm3123_vm6, %v3090_v45  ;;  %2061 = vrot.lane.b32.xlu0 %v8796_v20, %s10600_s19 }
 0x255   : > { %3260 = vst.msk [vmem:[#allocation3 + $0x38] sm:$0xff] %vm3252_vm0, %v3219_v50  ;;  %1805 = vrot.lane.b32.xlu1 %v8809_v17, %s7620_s26 }
 0x256   : > { %v1286_v61 = vpop.permute.xlu0 %1285 }
 0x257   : > { %1325 = vst.msk [vmem:[#allocation3 + $0x48] sm:$0xff] %vm1315_vm8, %v1286_v61  ;;  %v1284_v54 = vpop.permute.xlu1 %1283 }
 0x258   : > { %1324 = vst.msk [vmem:[#allocation3 + $0x40] sm:$0xff] %vm1315_vm8, %v1284_v54  ;;  %2190 = vrot.lane.b32.xlu0 %v8804_v58, %s10601_s21  ;;  %v8928_v58 = vpack.c.bf16 %v2388_v30, %v2387_v31 }
 0x259   : > { %1934 = vrot.lane.b32.xlu1 %v8828_v11, %s10599_s28 }
 0x25a   : > { %v3348_v32 = vpop.permute.xlu0 %3347 }
 0x25b   : > { %3389 = vst.msk [vmem:[#allocation3 + $0x38] sm:$0xff] %vm3381_vm14, %v3348_v32  ;;  %v3346_v62 = vpop.permute.xlu1 %3345  ;;  %v9006_v32 = vpack.c.bf16 %v3292_v29, %v3291_v39 }
 0x25c   : > { %3388 = vst.msk [vmem:[#allocation3 + $0x30] sm:$0xff] %vm3381_vm14, %v3346_v62  ;;  %2319 = vrot.lane.b32.xlu0 %v8814_v4, %s7624_s30  ;;  %v2645_v4 = vld [vmem:[#allocation2 + $0x152] sm:$0xff] }
 0x25d   : > { %2063 = vrot.lane.b32.xlu1 %v8845_v19, %s10600_s19  ;;  %v8944_v5 = vpack.c.bf16 %v2646_v49, %v2645_v4 }
 0x25e   : > { %v1415_v26 = vpop.permute.xlu0 %1414 }
 0x25f   : > { %1454 = vst.msk [vmem:[#allocation3 + $0x48] sm:$0xff] %vm10597_vm9, %v1415_v26  ;;  %v1413_v20 = vpop.permute.xlu1 %1412 }
 0x260   : > { %1453 = vst.msk [vmem:[#allocation3 + $0x40] sm:$0xff] %vm10597_vm9, %v1413_v20  ;;  %2449 = vrot.lane.b32.xlu0 %v8809_v17, %s7625_s10 }
 0x261   : > { %2192 = vrot.lane.b32.xlu1 %v8859_v0, %s10601_s21 }
 0x262   : > { %v3477_v42 = vpop.permute.xlu0 %3476 }
 0x263   : > { %3518 = vst.msk [vmem:[#allocation3 + $0x38] sm:$0xff] %vm10596_vm15, %v3477_v42  ;;  %v3475_v56 = vpop.permute.xlu1 %3474 }
 0x264   : > { %3517 = vst.msk [vmem:[#allocation3 + $0x30] sm:$0xff] %vm10596_vm15, %v3475_v56  ;;  %2578 = vrot.lane.b32.xlu0 %v8828_v11, %s10593_s8  ;;  %vm10650_vm15 = vcmask 490944  }
 0x265   : > { %2321 = vrot.lane.b32.xlu1 %v8876_v43, %s7624_s30 }
 0x266   : > { %v1544_v3 = vpop.permute.xlu0 %1543 }
 0x267   : > { %1583 = vst.msk [vmem:[#allocation3 + $0x48] sm:$0xff] %vm10630_vm10, %v1544_v3  ;;  %v1542_v60 = vpop.permute.xlu1 %1541  ;;  %vm10636_vm10 = vcmask 392544  }
 0x268   : > { %1582 = vst.msk [vmem:[#allocation3 + $0x40] sm:$0xff] %vm10631_vm13, %v1542_v60  ;;  %2707 = vrot.lane.b32.xlu0 %v8845_v19, %s10589_s13  ;;  %vm10637_vm13 = vmmov %vm10635_vm2 }
 0x269   : > { %2451 = vrot.lane.b32.xlu1 %v8928_v58, %s7625_s10 }
 0x26a   : > { %v3606_v63 = vpop.permute.xlu0 %3605 }
 0x26b   : > { %3647 = vst.msk [vmem:[#allocation3 + $0x38] sm:$0xff] %vm10632_vm11, %v3606_v63  ;;  %v3604_v18 = vpop.permute.xlu1 %3603  ;;  %vm10638_vm11 = vcmask 818176  }
 0x26c   : > { %3646 = vst.msk [vmem:[#allocation3 + $0x30] sm:$0xff] %vm10633_vm1, %v3604_v18  ;;  %2836 = vrot.lane.b32.xlu0 %v8859_v0, %s10634_s16  ;;  %vm10639_vm1 = vmmov %vm10638_vm11 }
 0x26d   : > { %2580 = vrot.lane.b32.xlu1 %v8936_v34, %s10593_s8  ;;  %s10662_s8 = smov 64  }
 0x26e   : > { %v1800_v25 = vpop.permute.xlu0 %1799 }
 0x26f   : > { %v1671_v9 = vpop.permute.xlu1 %1670 }
 0x270   : > { %1711 = vst.msk [vmem:[#allocation3 + $0x40] sm:$0xff] %vm10635_vm2, %v1671_v9  ;;  %2965 = vrot.lane.b32.xlu0 %v8876_v43, %s10591_s15  ;;  %vm10640_vm2 = vcmask 425344  }
 0x271   : > { %1840 = vst.msk [vmem:[#allocation3 + $0x40] sm:$0xff] %vm10595_vm12, %v1800_v25  ;;  %2709 = vrot.lane.b32.xlu1 %v8944_v5, %s10589_s13  ;;  %v3549_v25 = vld [vmem:[#allocation2 + $0x16c] sm:$0xff]  ;;  %s10668_s13 = smov 68  }
 0x272   : > { %v1929_v13 = vpop.permute.xlu0 %1928  ;;  %v3663_v14 = vld [vmem:[#allocation3 + $0x38] sm:$0xff] }
 0x273   : > { %1969 = vst.msk [vmem:[#allocation3 + $0x40] sm:$0xff] %vm10636_vm10, %v1929_v13  ;;  %v1673_v2 = vpop.permute.xlu1 %1672  ;;  %v3662_v46 = vld [vmem:[#allocation3 + $0x30] sm:$0xff]  ;;  %vm10641_vm10 = vcmask 458144  }
 0x274   : > { %1712 = vst.msk [vmem:[#allocation3 + $0x48] sm:$0xff] %vm10637_vm13, %v1673_v2  ;;  %7477 = vmatprep.mubr.msk.bf16.mxu0 %vm10638_vm11, %v3662_v46  ;;  %3095 = vrot.lane.b32.xlu0 %v8928_v58, %s10587_s17  ;;  %vm10642_vm13 = vcmask 392544   ;;  %vm10643_vm11 = vcmask 490944  }
 0x275   : > { %2838 = vrot.lane.b32.xlu1 %v8952_v10, %s10634_s16  ;;  %7478 = vmatmul.mubr.msk.bf16.gmra.mrb[12].mxu0 %vm10639_vm1, %v3663_v14  ;;  %vm10644_vm1 = vmmov %vm10640_vm2 }
 0x276   : > { %v2058_v23 = vpop.permute.xlu0 %2057 }
 0x277   : > { %2098 = vst.msk [vmem:[#allocation3 + $0x40] sm:$0xff] %vm10640_vm2, %v2058_v23  ;;  %v1802_v51 = vpop.permute.xlu1 %1801 }
 0x278   : > { %1841 = vst.msk [vmem:[#allocation3 + $0x48] sm:$0xff] %vm10595_vm12, %v1802_v51  ;;  %3097 = vrot.lane.b32.xlu0 %v8959_v16, %s10587_s17  ;;  %s10680_s17 = smov 80  }
 0x279   : > { %2967 = vrot.lane.b32.xlu1 %v8964_v22, %s10591_s15  ;;  %s10673_s15 = smov 76  }
 0x27a   : > { %v2187_v27 = vpop.permute.xlu0 %2186 }
 0x27b   : > { %2227 = vst.msk [vmem:[#allocation3 + $0x40] sm:$0xff] %vm10641_vm10, %v2187_v27  ;;  %v1931_v53 = vpop.permute.xlu1 %1930  ;;  %vm10645_vm10 = vcmask 523744  }
 0x27c   : > { %1970 = vst.msk [vmem:[#allocation3 + $0x48] sm:$0xff] %vm10642_vm13, %v1931_v53  ;;  %1164 = vrot.lane.b32.xlu0 %v8928_v58, %s10618_s14  ;;  %v9052_v53 = vpack.c.bf16 %v3550_v35, %v3549_v25  ;;  %v2650_v35 = vld [vmem:[#allocation2 + $0x18a] sm:$0xff] }
 0x27d   : > { %1162 = vrot.lane.b32.xlu1 %v8809_v17, %s10618_s14 }
 0x27e   : > { %v2316_v33 = vpop.permute.xlu0 %2315 }
 0x27f   : > { %2356 = vst.msk [vmem:[#allocation3 + $0x40] sm:$0xff] %vm10643_vm11, %v2316_v33  ;;  %v2060_v24 = vpop.permute.xlu1 %2059  ;;  %vm10646_vm11 = vcmask 458144  }
 0x280   : > { %2099 = vst.msk [vmem:[#allocation3 + $0x48] sm:$0xff] %vm10644_vm1, %v2060_v24  ;;  %3226 = vrot.lane.b32.xlu0 %v8976_v28, %s7631_s18  ;;  %v7467_v37 = vpop.f32.mrb[0].mxu0 }
 0x281   : > { %v3827_v17 = vadd.f32 %v7467_v37, %v8983_v36  ;;  %3224 = vrot.lane.b32.xlu1 %v8936_v34, %s7631_s18  ;;  %v3818_v38 = vpop.f32.mrb[1].mxu0 }
 0x282   : > { %v3819_v44 = vadd.f32 %v8983_v36, %v3818_v38  ;;  %v2446_v41 = vpop.permute.xlu0 %2445  ;;  %v7468_v47 = vpop.f32.mrb[2].mxu0 }
 0x283   : > { %vm3947_vm2 = vcmp.ge.f32.partialorder %v3827_v17, 0.0  ;;  %v3986_v52 = vmul.f32 %v8992_v6, %v3827_v17  ;;  %2486 = vst.msk [vmem:[#allocation3 + $0x40] sm:$0xff] %vm10645_vm10, %v2446_v41  ;;  %v3830_v48 = vadd.f32 %v7468_v47, %v8983_v36  ;;  %v2189_v50 = vpop.permute.xlu1 %2188  ;;  %v3821_v45 = vpop.f32.mrb[3].mxu0  ;;  %vm10647_vm10 = vcmask 261120  }
 0x284   : > { %vm3945_vm13 = vcmp.ge.f32.partialorder %v3819_v44, 0.0  ;;  %v3984_v61 = vmul.f32 %v8992_v6, %v3819_v44  ;;  %2228 = vst.msk [vmem:[#allocation3 + $0x48] sm:$0xff] %vm10646_vm11, %v2189_v50  ;;  %v3822_v54 = vadd.f32 %v8983_v36, %v3821_v45  ;;  %1293 = vrot.lane.b32.xlu0 %v8936_v34, %s7616_s22  ;;  %vm10648_vm11 = vmmov %vm10647_vm10  ;;  %v2391_v45 = vld [vmem:[#allocation2 + $0x180] sm:$0xff] }
 0x285   : > { %v4018_v62 = vsel %vm3947_vm2, %v3827_v17, %v3986_v52  ;;  %vm3948_vm1 = vcmp.ge.f32.partialorder %v3830_v48, 0.0  ;;  %v3987_v26 = vmul.f32 %v8992_v6, %v3830_v48  ;;  %1291 = vrot.lane.b32.xlu1 %v8828_v11, %s7616_s22  ;;  %vm10649_vm2 = vmmov %vm10647_vm10  ;;  %v3420_v11 = vld [vmem:[#allocation2 + $0x16b] sm:$0xff] }
 0x286   : > { %4107 = vst.msk [vmem:[#allocation4 + $0x31] sm:$0xff] %vm10647_vm10, %v4018_v62  ;;  %v4016_v20 = vsel %vm3945_vm13, %v3819_v44, %v3984_v61  ;;  %vm3946_vm12 = vcmp.ge.f32.partialorder %v3822_v54, 0.0  ;;  %v3985_v42 = vmul.f32 %v8992_v6, %v3822_v54  ;;  %v2575_v31 = vpop.permute.xlu0 %2574  ;;  %vm10651_vm10 = vmmov %vm10649_vm2  ;;  %vm10652_vm13 = vcmask 523744   ;;  %v2392_v61 = vld [vmem:[#allocation2 + $0x188] sm:$0xff] }
 0x287   : > { %4105 = vst.msk [vmem:[#allocation4 + $0x19] sm:$0xff] %vm10648_vm11, %v4016_v20  ;;  %v4019_v30 = vsel %vm3948_vm1, %v3830_v48, %v3987_v26  ;;  %v2318_v56 = vpop.permute.xlu1 %2317  ;;  %v9026_v63 = vpack.c.bf16 %v3421_v59, %v3420_v11  ;;  %vm10655_vm1 = vmmov %vm10649_vm2 }
 0x288   : > { %2615 = vst.msk [vmem:[#allocation3 + $0x40] sm:$0xff] %vm2606_vm3, %v2575_v31  ;;  %v4017_v3 = vsel %vm3946_vm12, %v3822_v54, %v3985_v42  ;;  %3355 = vrot.lane.b32.xlu0 %v9006_v32, %s7632_s20  ;;  %vm10653_vm12 = vmmov %vm10649_vm2 }
 0x289   : > { %4108 = vst.msk [vmem:[#allocation4 + $0x39] sm:$0xff] %vm10649_vm2, %v4019_v30  ;;  %3353 = vrot.lane.b32.xlu1 %v8944_v5, %s7632_s20  ;;  %vm10656_vm11 = vmmov %vm10655_vm1 }
 0x28a   : > { %2357 = vst.msk [vmem:[#allocation3 + $0x48] sm:$0xff] %vm10650_vm15, %v2318_v56  ;;  %v2704_v57 = vpop.permute.xlu0 %2703  ;;  %vm10654_vm15 = vmmov %vm10649_vm2 }
 0x28b   : > { %4106 = vst.msk [vmem:[#allocation4 + $0x21] sm:$0xff] %vm10651_vm10, %v4017_v3  ;;  %v2448_v60 = vpop.permute.xlu1 %2447  ;;  %vm10657_vm2 = vmmov %vm10655_vm1  ;;  %vm10658_vm10 = vcmask 195744   ;;  %v9116_v3 = vpack.c.bf16 %v2392_v61, %v2391_v45 }
 0x28c   : > { %2744 = vst.msk [vmem:[#allocation3 + $0x40] sm:$0xff] %vm2735_vm4, %v2704_v57  ;;  %1422 = vrot.lane.b32.xlu0 %v8944_v5, %s7617_s23 }
 0x28d   : > { %2487 = vst.msk [vmem:[#allocation3 + $0x48] sm:$0xff] %vm10652_vm13, %v2448_v60  ;;  %1420 = vrot.lane.b32.xlu1 %v8845_v19, %s7617_s23  ;;  %v4909_v4 = vld [vmem:[#allocation4 + $0x31] sm:$0xff]  ;;  %vm10659_vm13 = vmmov %vm10658_vm10  ;;  %v2520_v60 = vld [vmem:[#allocation2 + $0x181] sm:$0xff] }
 0x28e   : > { %v2833_v49 = vpop.permute.xlu0 %2832  ;;  %v4459_v9 = vld [vmem:[#allocation4 + $0x18] sm:$0xff]  ;;  %v4141_v14 = vld [vmem:[#allocation4 + $0x30] sm:$0xff] }
 0x28f   : > { %2873 = vst.msk [vmem:[#allocation3 + $0x40] sm:$0xff] %vm2864_vm5, %v2833_v49  ;;  %v2577_v18 = vpop.permute.xlu1 %2576  ;;  %v4203_v21 = vld [vmem:[#allocation4 + $0x19] sm:$0xff] }
 0x290   : > { %v4910_v7 = vld [vmem:[#allocation4 + $0x39] sm:$0xff]  ;;  %2616 = vst.msk [vmem:[#allocation3 + $0x48] sm:$0xff] %vm2606_vm3, %v2577_v18  ;;  %3484 = vrot.lane.b32.xlu0 %v9026_v63, %s7633_s27 }
 0x291   : > { %v4654_v8 = vld [vmem:[#allocation4 + $0x32] sm:$0xff]  ;;  %v9034_v12 = vpack.c.bf16 %v4910_v7, %v4909_v4  ;;  %v4655_v13 = vld [vmem:[#allocation4 + $0x3a] sm:$0xff]  ;;  %3482 = vrot.lane.b32.xlu1 %v8952_v10, %s7633_s27  ;;  %v2521_v4 = vld [vmem:[#allocation2 + $0x189] sm:$0xff] }
 0x292   : > { %v9038_v19 = vpack.c.bf16 %v4655_v13, %v4654_v8  ;;  %v4460_v15 = vld [vmem:[#allocation4 + $0x20] sm:$0xff]  ;;  %v2962_v46 = vpop.permute.xlu0 %2961  ;;  %v4142_v40 = vld [vmem:[#allocation4 + $0x38] sm:$0xff]  ;;  %v9129_v7 = vpack.c.bf16 %v2521_v4, %v2520_v60 }
 0x293   : > { %v4204_v2 = vld [vmem:[#allocation4 + $0x21] sm:$0xff]  ;;  %v9040_v23 = vpack.c.bf16 %v4460_v15, %v4459_v9  ;;  %4637 = vst.msk [vmem:[#allocation5 + $0x20] sm:$0xff] %vm10653_vm12, %v9034_v12  ;;  %v2706_v55 = vpop.permute.xlu1 %2705  ;;  %v4171_v27 = vpack.c.bf16 %v4142_v40, %v4141_v14 }
 0x294   : > { %v9042_v51 = vpack.c.bf16 %v4204_v2, %v4203_v21  ;;  %3002 = vst.msk [vmem:[#allocation3 + $0x40] sm:$0xff] %vm2993_vm7, %v2962_v46  ;;  %1551 = vrot.lane.b32.xlu0 %v8952_v10, %s7618_s24  ;;  %v2649_v9 = vld [vmem:[#allocation2 + $0x182] sm:$0xff]  ;;  %v2779_v46 = vld [vmem:[#allocation2 + $0x18b] sm:$0xff] }
 0x295   : > { %5085 = vst.msk [vmem:[#allocation5 + $0x10] sm:$0xff] %vm10654_vm15, %v9038_v19  ;;  %1549 = vrot.lane.b32.xlu1 %v8859_v0, %s7618_s24  ;;  %vm10660_vm15 = vcmask 786144   ;;  %v9137_v14 = vpack.c.bf16 %v2650_v35, %v2649_v9  ;;  %v2778_v2 = vld [vmem:[#allocation2 + $0x183] sm:$0xff] }
 0x296   : > { %2745 = vst.msk [vmem:[#allocation3 + $0x48] sm:$0xff] %vm2735_vm4, %v2706_v55  ;;  %v3092_v33 = vpop.permute.xlu0 %3091  ;;  %v3037_v55 = vld [vmem:[#allocation2 + $0x198] sm:$0xff] }
 0x297   : > { %4636 = vst.msk [vmem:[#allocation5 + $0x8] sm:$0xff] %vm10655_vm1, %v9042_v51  ;;  %v2835_v24 = vpop.permute.xlu1 %2834 }
 0x298   : > { %4186 = vst.msk [vmem:[#allocation5 + $0x18] sm:$0xff] %vm10656_vm11, %v9040_v23  ;;  %3613 = vrot.lane.b32.xlu0 %v9052_v53, %s7634_s29  ;;  %vm10661_vm11 = vmmov %vm10660_vm15 }
 0x299   : > { %4187 = vst.msk [vmem:[#allocation5 + $0x30] sm:$0xff] %vm10657_vm2, %v4171_v27  ;;  %3611 = vrot.lane.b32.xlu1 %v8964_v22, %s7634_s29  ;;  %v3038_v27 = vld [vmem:[#allocation2 + $0x1a0] sm:$0xff] }
 0x29a   : > { %3132 = vst.msk [vmem:[#allocation3 + $0x40] sm:$0xff] %vm3123_vm6, %v3092_v33  ;;  %v3094_v37 = vpop.permute.xlu0 %3093 }
 0x29b   : > { %2874 = vst.msk [vmem:[#allocation3 + $0x48] sm:$0xff] %vm2864_vm5, %v2835_v24  ;;  %v2964_v17 = vpop.permute.xlu1 %2963 }
 0x29c   : > { %3003 = vst.msk [vmem:[#allocation3 + $0x48] sm:$0xff] %vm2993_vm7, %v2964_v17  ;;  %1807 = vrot.lane.b32.xlu0 %v8928_v58, %s7620_s26 }
 0x29d   : > { %3133 = vst.msk [vmem:[#allocation3 + $0x48] sm:$0xff] %vm3123_vm6, %v3094_v37  ;;  %1678 = vrot.lane.b32.xlu1 %v8876_v43, %s7619_s25 }
 0x29e   : > { %v1161_v0 = vpop.permute.xlu0 %1160 }
 0x29f   : > { %1198 = vst.msk [vmem:[#allocation3 + $0x58] sm:$0xff] %vm10658_vm10, %v1161_v0  ;;  %v1159_v38 = vpop.permute.xlu1 %1158  ;;  %vm10663_vm10 = vcmask 261120  }
 0x2a0   : > { %1197 = vst.msk [vmem:[#allocation3 + $0x50] sm:$0xff] %vm10659_vm13, %v1159_v38  ;;  %1936 = vrot.lane.b32.xlu0 %v8936_v34, %s10599_s28  ;;  %v2907_v38 = vld [vmem:[#allocation2 + $0x184] sm:$0xff] }
 0x2a1   : > { %1680 = vrot.lane.b32.xlu1 %v8964_v22, %s7619_s25 }
 0x2a2   : > { %v3223_v39 = vpop.permute.xlu0 %3222 }
 0x2a3   : > { %3262 = vst.msk [vmem:[#allocation3 + $0x48] sm:$0xff] %vm3252_vm0, %v3223_v39  ;;  %v3221_v58 = vpop.permute.xlu1 %3220 }
 0x2a4   : > { %3261 = vst.msk [vmem:[#allocation3 + $0x40] sm:$0xff] %vm3252_vm0, %v3221_v58  ;;  %2065 = vrot.lane.b32.xlu0 %v8944_v5, %s10600_s19 }
 0x2a5   : > { %1809 = vrot.lane.b32.xlu1 %v8959_v16, %s7620_s26 }
 0x2a6   : > { %v1290_v43 = vpop.permute.xlu0 %1289 }
 0x2a7   : > { %1327 = vst.msk [vmem:[#allocation3 + $0x58] sm:$0xff] %vm1315_vm8, %v1290_v43  ;;  %v1288_v29 = vpop.permute.xlu1 %1287 }
 0x2a8   : > { %1326 = vst.msk [vmem:[#allocation3 + $0x50] sm:$0xff] %vm1315_vm8, %v1288_v29  ;;  %2194 = vrot.lane.b32.xlu0 %v8952_v10, %s10601_s21  ;;  %v9149_v29 = vpack.c.bf16 %v2779_v46, %v2778_v2 }
 0x2a9   : > { %1938 = vrot.lane.b32.xlu1 %v8976_v28, %s10599_s28 }
 0x2aa   : > { %v3352_v34 = vpop.permute.xlu0 %3351 }
 0x2ab   : > { %3391 = vst.msk [vmem:[#allocation3 + $0x48] sm:$0xff] %vm3381_vm14, %v3352_v34  ;;  %v3350_v44 = vpop.permute.xlu1 %3349 }
 0x2ac   : > { %3390 = vst.msk [vmem:[#allocation3 + $0x40] sm:$0xff] %vm3381_vm14, %v3350_v44  ;;  %2323 = vrot.lane.b32.xlu0 %v8964_v22, %s7624_s30 }
 0x2ad   : > { %2067 = vrot.lane.b32.xlu1 %v9006_v32, %s10600_s19 }
 0x2ae   : > { %v1419_v5 = vpop.permute.xlu0 %1418 }
 0x2af   : > { %1456 = vst.msk [vmem:[#allocation3 + $0x58] sm:$0xff] %vm10597_vm9, %v1419_v5  ;;  %v1417_v41 = vpop.permute.xlu1 %1416 }
 0x2b0   : > { %1455 = vst.msk [vmem:[#allocation3 + $0x50] sm:$0xff] %vm10597_vm9, %v1417_v41  ;;  %2453 = vrot.lane.b32.xlu0 %v8959_v16, %s7625_s10  ;;  %v7471_v10 = vpop.f32.mrb[4].mxu0 }
 0x2b1   : > { %2196 = vrot.lane.b32.xlu1 %v9026_v63, %s10601_s21  ;;  %v3843_v47 = vadd.f32 %v7471_v10, %v8983_v36  ;;  %v3834_v52 = vpop.f32.mrb[5].mxu0 }
 0x2b2   : > { %v3835_v22 = vadd.f32 %v8983_v36, %v3834_v52  ;;  %v3481_v48 = vpop.permute.xlu0 %3480  ;;  %v7472_v50 = vpop.f32.mrb[6].mxu0 }
 0x2b3   : > { %vm3951_vm12 = vcmp.ge.f32.partialorder %v3843_v47, 0.0  ;;  %v3990_v54 = vmul.f32 %v8992_v6, %v3843_v47  ;;  %3520 = vst.msk [vmem:[#allocation3 + $0x48] sm:$0xff] %vm10660_vm15, %v3481_v48  ;;  %v3479_v62 = vpop.permute.xlu1 %3478  ;;  %v3846_v26 = vadd.f32 %v7472_v50, %v8983_v36  ;;  %v3837_v20 = vpop.f32.mrb[7].mxu0  ;;  %vm10664_vm15 = vmmov %vm10663_vm10 }
 0x2b4   : > { %vm3949_vm1 = vcmp.ge.f32.partialorder %v3835_v22, 0.0  ;;  %v3988_v42 = vmul.f32 %v8992_v6, %v3835_v22  ;;  %3519 = vst.msk [vmem:[#allocation3 + $0x40] sm:$0xff] %vm10661_vm11, %v3479_v62  ;;  %v3838_v31 = vadd.f32 %v8983_v36, %v3837_v20  ;;  %2582 = vrot.lane.b32.xlu0 %v8976_v28, %s10662_s8  ;;  %vm10666_vm11 = vmmov %vm10663_vm10  ;;  %v9164_v62 = vpack.c.bf16 %v3038_v27, %v3037_v55  ;;  %v3553_v55 = vld [vmem:[#allocation2 + $0x19c] sm:$0xff]  ;;  %v3554_v27 = vld [vmem:[#allocation2 + $0x1a4] sm:$0xff] }
 0x2b5   : > { %v4022_v30 = vsel %vm3951_vm12, %v3843_v47, %v3990_v54  ;;  %vm3952_vm2 = vcmp.ge.f32.partialorder %v3846_v26, 0.0  ;;  %v3991_v56 = vmul.f32 %v8992_v6, %v3846_v26  ;;  %2325 = vrot.lane.b32.xlu1 %v9052_v53, %s7624_s30  ;;  %vm10665_vm12 = vcmask 294144   ;;  %v2908_v47 = vld [vmem:[#allocation2 + $0x18c] sm:$0xff] }
 0x2b6   : > { %4111 = vst.msk [vmem:[#allocation4 + $0x61] sm:$0xff] %vm10663_vm10, %v4022_v30  ;;  %v4020_v11 = vsel %vm3949_vm1, %v3835_v22, %v3988_v42  ;;  %vm3950_vm13 = vcmp.ge.f32.partialorder %v3838_v31, 0.0  ;;  %v3989_v59 = vmul.f32 %v8992_v6, %v3838_v31  ;;  %v1548_v57 = vpop.permute.xlu0 %1547  ;;  %vm10667_vm9 = vmmov %vm10665_vm12  ;;  %v9173_v20 = vpack.c.bf16 %v2908_v47, %v2907_v38  ;;  %v3166_v30 = vld [vmem:[#allocation2 + $0x199] sm:$0xff] }
 0x2b7   : > { %4109 = vst.msk [vmem:[#allocation4 + $0x49] sm:$0xff] %vm10664_vm15, %v4020_v11  ;;  %v4023_v49 = vsel %vm3952_vm2, %v3846_v26, %v3991_v56  ;;  %v1546_v18 = vpop.permute.xlu1 %1545  ;;  %vm10669_vm1 = vmmov %vm10663_vm10  ;;  %vm10670_vm2 = vcmask 818944   ;;  %v3167_v56 = vld [vmem:[#allocation2 + $0x1a1] sm:$0xff] }
 0x2b8   : > { %1585 = vst.msk [vmem:[#allocation3 + $0x58] sm:$0xff] %vm10665_vm12, %v1548_v57  ;;  %v4021_v25 = vsel %vm3950_vm13, %v3838_v31, %v3989_v59  ;;  %2711 = vrot.lane.b32.xlu0 %v9006_v32, %s10668_s13  ;;  %vm10671_vm10 = vmmov %vm10670_vm2  ;;  %vm10674_vm13 = vcmask 359744   ;;  %v9187_v57 = vpack.c.bf16 %v3167_v56, %v3166_v30 }
 0x2b9   : > { %4112 = vst.msk [vmem:[#allocation4 + $0x69] sm:$0xff] %vm10666_vm11, %v4023_v49  ;;  %2455 = vrot.lane.b32.xlu1 %v9116_v3, %s7625_s10  ;;  %vm10675_vm15 = vmmov %vm10669_vm1  ;;  %vm10677_vm11 = vcmask 392544   ;;  %v3295_v49 = vld [vmem:[#allocation2 + $0x19a] sm:$0xff] }
 0x2ba   : > { %1584 = vst.msk [vmem:[#allocation3 + $0x50] sm:$0xff] %vm10667_vm9, %v1546_v18  ;;  %v3610_v8 = vpop.permute.xlu0 %3609  ;;  %vm10672_vm9 = vcmask 326944   ;;  %vm10676_vm12 = vmmov %vm10669_vm1  ;;  %v3296_v18 = vld [vmem:[#allocation2 + $0x1a2] sm:$0xff] }
 0x2bb   : > { %4110 = vst.msk [vmem:[#allocation4 + $0x51] sm:$0xff] %vm10669_vm1, %v4021_v25  ;;  %v3608_v13 = vpop.permute.xlu1 %3607  ;;  %vm10678_vm1 = vmmov %vm10672_vm9 }
 0x2bc   : > { %3649 = vst.msk [vmem:[#allocation3 + $0x48] sm:$0xff] %vm10670_vm2, %v3610_v8  ;;  %2840 = vrot.lane.b32.xlu0 %v9026_v63, %s10634_s16  ;;  %vm10679_vm2 = vcmask 818176  }
 0x2bd   : > { %3648 = vst.msk [vmem:[#allocation3 + $0x40] sm:$0xff] %vm10671_vm10, %v3608_v13  ;;  %2584 = vrot.lane.b32.xlu1 %v9129_v7, %s10662_s8  ;;  %v4913_v15 = vld [vmem:[#allocation4 + $0x61] sm:$0xff]  ;;  %vm10681_vm10 = vmmov %vm10676_vm12 }
 0x2be   : > { %v1804_v21 = vpop.permute.xlu0 %1803  ;;  %v4911_v33 = vld [vmem:[#allocation4 + $0x49] sm:$0xff]  ;;  %v4145_v5 = vld [vmem:[#allocation4 + $0x60] sm:$0xff] }
 0x2bf   : > { %v1675_v40 = vpop.permute.xlu1 %1674  ;;  %v4143_v58 = vld [vmem:[#allocation4 + $0x48] sm:$0xff]  ;;  %v3424_v13 = vld [vmem:[#allocation2 + $0x19b] sm:$0xff] }
 0x2c0   : > { %v4914_v24 = vld [vmem:[#allocation4 + $0x69] sm:$0xff]  ;;  %1713 = vst.msk [vmem:[#allocation3 + $0x50] sm:$0xff] %vm10672_vm9, %v1675_v40  ;;  %2969 = vrot.lane.b32.xlu0 %v9052_v53, %s10673_s15  ;;  %vm10682_vm9 = vmmov %vm10681_vm10 }
 0x2c1   : > { %v4658_v37 = vld [vmem:[#allocation4 + $0x62] sm:$0xff]  ;;  %v9142_v39 = vpack.c.bf16 %v4914_v24, %v4913_v15  ;;  %1842 = vst.msk [vmem:[#allocation3 + $0x50] sm:$0xff] %vm10674_vm13, %v1804_v21  ;;  %2713 = vrot.lane.b32.xlu1 %v9137_v14, %s10668_s13  ;;  %v4659_v44 = vld [vmem:[#allocation4 + $0x6a] sm:$0xff]  ;;  %vm10683_vm13 = vmmov %vm10679_vm2 }
 0x2c2   : > { %v5039_v17 = vld [vmem:[#allocation4 + $0x4a] sm:$0xff]  ;;  %v5040_v0 = vld [vmem:[#allocation4 + $0x52] sm:$0xff]  ;;  %v1933_v41 = vpop.permute.xlu0 %1932  ;;  %v9153_v22 = vpack.c.bf16 %v4659_v44, %v4658_v37 }
 0x2c3   : > { %v9144_v43 = vpack.c.bf16 %v5040_v0, %v5039_v17  ;;  %v4912_v34 = vld [vmem:[#allocation4 + $0x51] sm:$0xff]  ;;  %v3665_v10 = vld [vmem:[#allocation3 + $0x48] sm:$0xff]  ;;  %4639 = vst.msk [vmem:[#allocation5 + $0x50] sm:$0xff] %vm10675_vm15, %v9142_v39  ;;  %v1677_v50 = vpop.permute.xlu1 %1676  ;;  %vm10684_vm15 = vmmov %vm10682_vm9 }
 0x2c4   : > { %v9151_v52 = vpack.c.bf16 %v4912_v34, %v4911_v33  ;;  %v4144_v48 = vld [vmem:[#allocation4 + $0x50] sm:$0xff]  ;;  %1971 = vst.msk [vmem:[#allocation3 + $0x50] sm:$0xff] %vm10677_vm11, %v1933_v41  ;;  %v3664_v45 = vld [vmem:[#allocation3 + $0x40] sm:$0xff]  ;;  %v4146_v54 = vld [vmem:[#allocation4 + $0x68] sm:$0xff]  ;;  %3099 = vrot.lane.b32.xlu0 %v9116_v3, %s10680_s17  ;;  %vm10686_vm11 = vcmask 425344  }
 0x2c5   : > { %5086 = vst.msk [vmem:[#allocation5 + $0x28] sm:$0xff] %vm10676_vm12, %v9144_v43  ;;  %v4172_v61 = vpack.c.bf16 %v4144_v48, %v4143_v58  ;;  %7481 = vmatprep.mubr.msk.bf16.mxu0 %vm10679_vm2, %v3664_v45  ;;  %v4173_v26 = vpack.c.bf16 %v4146_v54, %v4145_v5  ;;  %2842 = vrot.lane.b32.xlu1 %v9149_v29, %s10634_s16  ;;  %vm10685_vm12 = vmmov %vm10682_vm9  ;;  %vm10688_vm2 = vcmask 458144   ;;  %v3425_v15 = vld [vmem:[#allocation2 + $0x1a3] sm:$0xff] }
 0x2c6   : > { %1714 = vst.msk [vmem:[#allocation3 + $0x58] sm:$0xff] %vm10678_vm1, %v1677_v50  ;;  %7482 = vmatmul.mubr.msk.bf16.gmra.mrb[16].mxu0 %vm10683_vm13, %v3665_v10  ;;  %v2062_v42 = vpop.permute.xlu0 %2061  ;;  %vm10687_vm1 = vcmask 359744   ;;  %vm10691_vm13 = vmmov %vm10686_vm11 }
 0x2c7   : > { %5087 = vst.msk [vmem:[#allocation5 + $0x40] sm:$0xff] %vm10681_vm10, %v9153_v22  ;;  %v1806_v31 = vpop.permute.xlu1 %1805  ;;  %vm10689_vm10 = vcmask 392544  }
 0x2c8   : > { %4638 = vst.msk [vmem:[#allocation5 + $0x38] sm:$0xff] %vm10682_vm9, %v9151_v52  ;;  %3101 = vrot.lane.b32.xlu0 %v9164_v62, %s10680_s17  ;;  %vm10690_vm9 = vcmask 490944  }
 0x2c9   : > { %4188 = vst.msk [vmem:[#allocation5 + $0x48] sm:$0xff] %vm10684_vm15, %v4172_v61  ;;  %2971 = vrot.lane.b32.xlu1 %v9173_v20, %s10673_s15  ;;  %vm10692_vm15 = vcmask 523744  }
 0x2ca   : > { %4189 = vst.msk [vmem:[#allocation5 + $0x60] sm:$0xff] %vm10685_vm12, %v4173_v26  ;;  %v2191_v11 = vpop.permute.xlu0 %2190  ;;  %vm10693_vm12 = vmmov %vm10688_vm2 }
 0x2cb   : > { %2100 = vst.msk [vmem:[#allocation3 + $0x50] sm:$0xff] %vm10686_vm11, %v2062_v42  ;;  %v1935_v59 = vpop.permute.xlu1 %1934  ;;  %vm10694_vm11 = vmmov %vm10690_vm9 }
 0x2cc   : > { %1843 = vst.msk [vmem:[#allocation3 + $0x58] sm:$0xff] %vm10687_vm1, %v1806_v31  ;;  %1168 = vrot.lane.b32.xlu0 %v9116_v3, %s10618_s14  ;;  %vm10695_vm1 = vmmov %vm10692_vm15 }
 0x2cd   : > { %2229 = vst.msk [vmem:[#allocation3 + $0x50] sm:$0xff] %vm10688_vm2, %v2191_v11  ;;  %1166 = vrot.lane.b32.xlu1 %v8959_v16, %s10618_s14  ;;  %v9201_v16 = vpack.c.bf16 %v3296_v18, %v3295_v49  ;;  %vm10696_vm2 = vcmask 195744   ;;  %v2524_v18 = vld [vmem:[#allocation2 + $0x1b1] sm:$0xff]  ;;  %s7635_s14 = smov 112  }
 0x2ce   : > { %1972 = vst.msk [vmem:[#allocation3 + $0x58] sm:$0xff] %vm10689_vm10, %v1935_v59  ;;  %v2320_v60 = vpop.permute.xlu0 %2319  ;;  %vm10697_vm10 = vmmov %vm10696_vm2  ;;  %v2395_v59 = vld [vmem:[#allocation2 + $0x1b0] sm:$0xff] }
 0x2cf   : > { %2358 = vst.msk [vmem:[#allocation3 + $0x50] sm:$0xff] %vm10690_vm9, %v2320_v60  ;;  %v2064_v4 = vpop.permute.xlu1 %2063  ;;  %v2396_v60 = vld [vmem:[#allocation2 + $0x1b8] sm:$0xff] }
 0x2d0   : > { %2101 = vst.msk [vmem:[#allocation3 + $0x58] sm:$0xff] %vm10691_vm13, %v2064_v4  ;;  %3230 = vrot.lane.b32.xlu0 %v9187_v57, %s7631_s18  ;;  %vm10698_vm13 = vcmask 261344  }
 0x2d1   : > { %3228 = vrot.lane.b32.xlu1 %v9129_v7, %s7631_s18 }
 0x2d2   : > { %v2450_v25 = vpop.permute.xlu0 %2449 }
 0x2d3   : > { %2488 = vst.msk [vmem:[#allocation3 + $0x50] sm:$0xff] %vm10692_vm15, %v2450_v25  ;;  %v2193_v8 = vpop.permute.xlu1 %2192  ;;  %v2525_v25 = vld [vmem:[#allocation2 + $0x1b9] sm:$0xff] }
 0x2d4   : > { %2230 = vst.msk [vmem:[#allocation3 + $0x58] sm:$0xff] %vm10693_vm12, %v2193_v8  ;;  %1297 = vrot.lane.b32.xlu0 %v9129_v7, %s7616_s22  ;;  %vm10699_vm12 = vmmov %vm10698_vm13 }
 0x2d5   : > { %1295 = vrot.lane.b32.xlu1 %v8976_v28, %s7616_s22  ;;  %v9215_v28 = vpack.c.bf16 %v3425_v15, %v3424_v13  ;;  %v2653_v13 = vld [vmem:[#allocation2 + $0x1b2] sm:$0xff]  ;;  %v2654_v15 = vld [vmem:[#allocation2 + $0x1ba] sm:$0xff] }
 0x2d6   : > { %v2579_v9 = vpop.permute.xlu0 %2578 }
 0x2d7   : > { %2617 = vst.msk [vmem:[#allocation3 + $0x50] sm:$0xff] %vm2606_vm3, %v2579_v9  ;;  %v2322_v35 = vpop.permute.xlu1 %2321 }
 0x2d8   : > { %2359 = vst.msk [vmem:[#allocation3 + $0x58] sm:$0xff] %vm10694_vm11, %v2322_v35  ;;  %3359 = vrot.lane.b32.xlu0 %v9201_v16, %s7632_s20 }
 0x2d9   : > { %3357 = vrot.lane.b32.xlu1 %v9137_v14, %s7632_s20 }
 0x2da   : > { %v2708_v21 = vpop.permute.xlu0 %2707 }
 0x2db   : > { %2746 = vst.msk [vmem:[#allocation3 + $0x50] sm:$0xff] %vm2735_vm4, %v2708_v21  ;;  %v2452_v2 = vpop.permute.xlu1 %2451 }
 0x2dc   : > { %2489 = vst.msk [vmem:[#allocation3 + $0x58] sm:$0xff] %vm10695_vm1, %v2452_v2  ;;  %1426 = vrot.lane.b32.xlu0 %v9137_v14, %s7617_s23  ;;  %vm10700_vm1 = vcmask 261120  }
 0x2dd   : > { %1424 = vrot.lane.b32.xlu1 %v9006_v32, %s7617_s23  ;;  %v9229_v32 = vpack.c.bf16 %v3554_v27, %v3553_v55 }
 0x2de   : > { %v2837_v46 = vpop.permute.xlu0 %2836 }
 0x2df   : > { %2875 = vst.msk [vmem:[#allocation3 + $0x50] sm:$0xff] %vm2864_vm5, %v2837_v46  ;;  %v2581_v40 = vpop.permute.xlu1 %2580 }
 0x2e0   : > { %2618 = vst.msk [vmem:[#allocation3 + $0x58] sm:$0xff] %vm2606_vm3, %v2581_v40  ;;  %3488 = vrot.lane.b32.xlu0 %v9215_v28, %s7633_s27 }
 0x2e1   : > { %3486 = vrot.lane.b32.xlu1 %v9149_v29, %s7633_s27 }
 0x2e2   : > { %v2966_v33 = vpop.permute.xlu0 %2965 }
 0x2e3   : > { %3004 = vst.msk [vmem:[#allocation3 + $0x50] sm:$0xff] %vm2993_vm7, %v2966_v33  ;;  %v2710_v24 = vpop.permute.xlu1 %2709 }
 0x2e4   : > { %2747 = vst.msk [vmem:[#allocation3 + $0x58] sm:$0xff] %vm2735_vm4, %v2710_v24  ;;  %1555 = vrot.lane.b32.xlu0 %v9149_v29, %s7618_s24 }
 0x2e5   : > { %1553 = vrot.lane.b32.xlu1 %v9026_v63, %s7618_s24 }
 0x2e6   : > { %v3096_v37 = vpop.permute.xlu0 %3095 }
 0x2e7   : > { %3134 = vst.msk [vmem:[#allocation3 + $0x50] sm:$0xff] %vm3123_vm6, %v3096_v37  ;;  %v2839_v17 = vpop.permute.xlu1 %2838  ;;  %v2670_v37 = vpack.c.bf16 %v2654_v15, %v2653_v13  ;;  %v4652_v15 = vld [vmem:[#allocation4 + $0x1a] sm:$0xff] }
 0x2e8   : > { %2876 = vst.msk [vmem:[#allocation3 + $0x58] sm:$0xff] %vm2864_vm5, %v2839_v17  ;;  %3617 = vrot.lane.b32.xlu0 %v9229_v32, %s7634_s29 }
 0x2e9   : > { %3615 = vrot.lane.b32.xlu1 %v9173_v20, %s7634_s29 }
 0x2ea   : > { %v3098_v0 = vpop.permute.xlu0 %3097 }
 0x2eb   : > { %v2968_v38 = vpop.permute.xlu1 %2967 }
 0x2ec   : > { %3005 = vst.msk [vmem:[#allocation3 + $0x58] sm:$0xff] %vm2993_vm7, %v2968_v38  ;;  %1811 = vrot.lane.b32.xlu0 %v9116_v3, %s7620_s26 }
 0x2ed   : > { %3135 = vst.msk [vmem:[#allocation3 + $0x58] sm:$0xff] %vm3123_vm6, %v3098_v0  ;;  %1682 = vrot.lane.b32.xlu1 %v9052_v53, %s7619_s25 }
 0x2ee   : > { %v1165_v63 = vpop.permute.xlu0 %1164 }
 0x2ef   : > { %1200 = vst.msk [vmem:[#allocation3 + $0x68] sm:$0xff] %vm10696_vm2, %v1165_v63  ;;  %v1163_v58 = vpop.permute.xlu1 %1162 }
 0x2f0   : > { %1199 = vst.msk [vmem:[#allocation3 + $0x60] sm:$0xff] %vm10697_vm10, %v1163_v58  ;;  %1940 = vrot.lane.b32.xlu0 %v9129_v7, %s10599_s28  ;;  %vm10701_vm10 = vmmov %vm10700_vm1 }
 0x2f1   : > { %1684 = vrot.lane.b32.xlu1 %v9173_v20, %s7619_s25 }
 0x2f2   : > { %v3227_v34 = vpop.permute.xlu0 %3226 }
 0x2f3   : > { %3264 = vst.msk [vmem:[#allocation3 + $0x58] sm:$0xff] %vm3252_vm0, %v3227_v34  ;;  %v3225_v3 = vpop.permute.xlu1 %3224  ;;  %v2782_v34 = vld [vmem:[#allocation2 + $0x1b3] sm:$0xff] }
 0x2f4   : > { %3263 = vst.msk [vmem:[#allocation3 + $0x50] sm:$0xff] %vm3252_vm0, %v3225_v3  ;;  %2069 = vrot.lane.b32.xlu0 %v9137_v14, %s10600_s19  ;;  %v2783_v3 = vld [vmem:[#allocation2 + $0x1bb] sm:$0xff] }
 0x2f5   : > { %1813 = vrot.lane.b32.xlu1 %v9164_v62, %s7620_s26 }
 0x2f6   : > { %v1294_v53 = vpop.permute.xlu0 %1293 }
 0x2f7   : > { %1329 = vst.msk [vmem:[#allocation3 + $0x68] sm:$0xff] %vm1315_vm8, %v1294_v53  ;;  %v1292_v44 = vpop.permute.xlu1 %1291 }
 0x2f8   : > { %1328 = vst.msk [vmem:[#allocation3 + $0x60] sm:$0xff] %vm1315_vm8, %v1292_v44  ;;  %2198 = vrot.lane.b32.xlu0 %v9149_v29, %s10601_s21 }
 0x2f9   : > { %1942 = vrot.lane.b32.xlu1 %v9187_v57, %s10599_s28 }
 0x2fa   : > { %v3356_v7 = vpop.permute.xlu0 %3355 }
 0x2fb   : > { %3393 = vst.msk [vmem:[#allocation3 + $0x58] sm:$0xff] %vm3381_vm14, %v3356_v7  ;;  %v3354_v5 = vpop.permute.xlu1 %3353 }
 0x2fc   : > { %3392 = vst.msk [vmem:[#allocation3 + $0x50] sm:$0xff] %vm3381_vm14, %v3354_v5  ;;  %2327 = vrot.lane.b32.xlu0 %v9173_v20, %s7624_s30  ;;  %v7475_v14 = vpop.f32.mrb[8].mxu0 }
 0x2fd   : > { %2071 = vrot.lane.b32.xlu1 %v9201_v16, %s10600_s19  ;;  %v3859_v41 = vadd.f32 %v7475_v14, %v8983_v36  ;;  %v3850_v10 = vpop.f32.mrb[9].mxu0 }
 0x2fe   : > { %v3851_v29 = vadd.f32 %v8983_v36, %v3850_v10  ;;  %v1423_v47 = vpop.permute.xlu0 %1422  ;;  %v7476_v48 = vpop.f32.mrb[10].mxu0 }
 0x2ff   : > { %vm3955_vm9 = vcmp.ge.f32.partialorder %v3859_v41, 0.0  ;;  %v3994_v50 = vmul.f32 %v8992_v6, %v3859_v41  ;;  %1458 = vst.msk [vmem:[#allocation3 + $0x68] sm:$0xff] %vm10698_vm13, %v1423_v47  ;;  %v1421_v45 = vpop.permute.xlu1 %1420  ;;  %v3862_v61 = vadd.f32 %v7476_v48, %v8983_v36  ;;  %v3853_v54 = vpop.f32.mrb[11].mxu0  ;;  %vm10702_vm13 = vcmask 786144   ;;  %v2911_v47 = vld [vmem:[#allocation2 + $0x1b4] sm:$0xff]  ;;  %v2912_v48 = vld [vmem:[#allocation2 + $0x1bc] sm:$0xff] }
 0x300   : > { %vm3953_vm15 = vcmp.ge.f32.partialorder %v3851_v29, 0.0  ;;  %v3992_v26 = vmul.f32 %v8992_v6, %v3851_v29  ;;  %1457 = vst.msk [vmem:[#allocation3 + $0x60] sm:$0xff] %vm10699_vm12, %v1421_v45  ;;  %v3854_v20 = vadd.f32 %v8983_v36, %v3853_v54  ;;  %2457 = vrot.lane.b32.xlu0 %v9164_v62, %s7625_s10  ;;  %vm10704_vm12 = vmmov %vm10702_vm13  ;;  %v7578_v45 = vld [vmem:[%s10557_s4 + $0x40] sm:$0xff]   ;;  %v2928_v54 = vpack.c.bf16 %v2912_v48, %v2911_v47 }
 0x301   : > { %v4026_v42 = vsel %vm3955_vm9, %v3859_v41, %v3994_v50  ;;  %vm3956_vm11 = vcmp.ge.f32.partialorder %v3862_v61, 0.0  ;;  %v3995_v31 = vmul.f32 %v8992_v6, %v3862_v61  ;;  %2200 = vrot.lane.b32.xlu1 %v9215_v28, %s10601_s21  ;;  %vm10703_vm9 = vmmov %vm10700_vm1  ;;  %v2799_v41 = vpack.c.bf16 %v2783_v3, %v2782_v34  ;;  %7321 = vmatprep.subr.bf16.mxu1 %v7578_v45  ;;  %v4781_v34 = vld [vmem:[#allocation4 + $0x30] sm:$0xff] }
 0x302   : > { %4115 = vst.msk [vmem:[#allocation4 + $0x91] sm:$0xff] %vm10700_vm1, %v4026_v42  ;;  %v4024_v30 = vsel %vm3953_vm15, %v3851_v29, %v3992_v26  ;;  %vm3954_vm2 = vcmp.ge.f32.partialorder %v3854_v20, 0.0  ;;  %v3993_v56 = vmul.f32 %v8992_v6, %v3854_v20  ;;  %v3485_v11 = vpop.permute.xlu0 %3484  ;;  %vm10705_vm15 = vmmov %vm10700_vm1  ;;  %v2412_v6 = vpack.c.bf16 %v2396_v60, %v2395_v59  ;;  %v3042_v42 = vld [vmem:[#allocation2 + $0x1d0] sm:$0xff] }
 0x303   : > { %4113 = vst.msk [vmem:[#allocation4 + $0x79] sm:$0xff] %vm10701_vm10, %v4024_v30  ;;  %v4027_v36 = vsel %vm3956_vm11, %v3862_v61, %v3995_v31  ;;  %v3483_v62 = vpop.permute.xlu1 %3482  ;;  %vm10706_vm11 = vcmask 294144   ;;  %v7579_v61 = vld [vmem:[%s10557_s4] sm:$0xff]   ;;  %v7580_v30 = vld [vmem:[%s10557_s4 + $0x48] sm:$0xff]  }
 0x304   : > { %3522 = vst.msk [vmem:[#allocation3 + $0x58] sm:$0xff] %vm10702_vm13, %v3485_v11  ;;  %v4025_v4 = vsel %vm3954_vm2, %v3854_v20, %v3993_v56  ;;  %2586 = vrot.lane.b32.xlu0 %v9187_v57, %s10662_s8  ;;  %vm10707_vm1 = vmmov %vm10706_vm11  ;;  %v9298_v57 = vpack.c.bf16 %v2525_v25, %v2524_v18  ;;  %vm10708_vm2 = vcmask 818944   ;;  %v3041_v20 = vld [vmem:[#allocation2 + $0x1c8] sm:$0xff]  ;;  %7322 = vmatpush3.bf16.msra.mxu1 %v7579_v61  ;;  %v7591_v61 = vld [vmem:[%s10557_s4 + $0x70] sm:$0xff]  }
 0x305   : > { %4116 = vst.msk [vmem:[#allocation4 + $0x99] sm:$0xff] %vm10703_vm9, %v4027_v36  ;;  %2329 = vrot.lane.b32.xlu1 %v9229_v32, %s7624_s30  ;;  %vm10709_vm10 = vmmov %vm10708_vm2  ;;  %v7581_v56 = vld [vmem:[%s10557_s4 + $0x8] sm:$0xff]   ;;  %v3058_v11 = vpack.c.bf16 %v3042_v42, %v3041_v20  ;;  %7323 = vmatprep.subr.bf16.mxu1 %v7580_v30  ;;  %v3171_v36 = vld [vmem:[#allocation2 + $0x1d1] sm:$0xff] }
 0x306   : > { %3521 = vst.msk [vmem:[#allocation3 + $0x50] sm:$0xff] %vm10704_vm12, %v3483_v62  ;;  %v1552_v49 = vpop.permute.xlu0 %1551  ;;  %vm10710_vm13 = vmmov %vm10703_vm9  ;;  %vm10711_vm12 = vcmask 326944   ;;  %v3170_v60 = vld [vmem:[#allocation2 + $0x1c9] sm:$0xff] }
 0x307   : > { %4114 = vst.msk [vmem:[#allocation4 + $0x81] sm:$0xff] %vm10705_vm15, %v4025_v4  ;;  %v1550_v8 = vpop.permute.xlu1 %1549  ;;  %vm10712_vm15 = vmmov %vm10703_vm9  ;;  %v7582_v4 = vld [vmem:[%s10557_s4 + $0x50] sm:$0xff]  }
 0x308   : > { %1587 = vst.msk [vmem:[#allocation3 + $0x68] sm:$0xff] %vm10706_vm11, %v1552_v49  ;;  %2715 = vrot.lane.b32.xlu0 %v9201_v16, %s10668_s13  ;;  %vm10713_vm11 = vmmov %vm10703_vm9  ;;  %7324 = vmatpush3.bf16.msra.mxu1 %v7581_v56  ;;  %v3187_v49 = vpack.c.bf16 %v3171_v36, %v3170_v60  ;;  %v3299_v25 = vld [vmem:[#allocation2 + $0x1ca] sm:$0xff] }
 0x309   : > { %1586 = vst.msk [vmem:[#allocation3 + $0x60] sm:$0xff] %vm10707_vm1, %v1550_v8  ;;  %2459 = vrot.lane.b32.xlu1 %v2412_v6, %s7625_s10  ;;  %v4917_v9 = vld [vmem:[#allocation4 + $0x91] sm:$0xff]  ;;  %vm10714_vm1 = vmmov %vm10703_vm9  ;;  %7325 = vmatprep.subr.bf16.mxu1 %v7582_v4  ;;  %v4783_v4 = vld [vmem:[#allocation4 + $0x48] sm:$0xff] }
 0x30a   : > { %v3614_v35 = vpop.permute.xlu0 %3613  ;;  %v4915_v21 = vld [vmem:[#allocation4 + $0x79] sm:$0xff]  ;;  %v4149_v24 = vld [vmem:[#allocation4 + $0x90] sm:$0xff] }
 0x30b   : > { %3651 = vst.msk [vmem:[#allocation3 + $0x58] sm:$0xff] %vm10708_vm2, %v3614_v35  ;;  %v3612_v2 = vpop.permute.xlu1 %3611  ;;  %v4147_v55 = vld [vmem:[#allocation4 + $0x78] sm:$0xff]  ;;  %vm10715_vm2 = vcmask 359744   ;;  %v3557_v3 = vld [vmem:[#allocation2 + $0x1cc] sm:$0xff] }
 0x30c   : > { %v4918_v46 = vld [vmem:[#allocation4 + $0x99] sm:$0xff]  ;;  %3650 = vst.msk [vmem:[#allocation3 + $0x50] sm:$0xff] %vm10709_vm10, %v3612_v2  ;;  %2844 = vrot.lane.b32.xlu0 %v9215_v28, %s10634_s16  ;;  %vm10716_vm10 = vmmov %vm10714_vm1  ;;  %v4653_v2 = vld [vmem:[#allocation4 + $0x22] sm:$0xff] }
 0x30d   : > { %v4662_v40 = vld [vmem:[#allocation4 + $0x92] sm:$0xff]  ;;  %v9304_v33 = vpack.c.bf16 %v4918_v46, %v4917_v9  ;;  %2588 = vrot.lane.b32.xlu1 %v9298_v57, %s10662_s8  ;;  %v4663_v38 = vld [vmem:[#allocation4 + $0x9a] sm:$0xff]  ;;  %v4331_v30 = vld [vmem:[#allocation4 + $0xa] sm:$0xff] }
 0x30e   : > { %v4916_v16 = vld [vmem:[#allocation4 + $0x81] sm:$0xff]  ;;  %v1808_v58 = vpop.permute.xlu0 %1807  ;;  %v9312_v28 = vpack.c.bf16 %v4663_v38, %v4662_v40  ;;  %v4150_v7 = vld [vmem:[#allocation4 + $0x98] sm:$0xff]  ;;  %v3428_v46 = vld [vmem:[#allocation2 + $0x1cb] sm:$0xff] }
 0x30f   : > { %v4660_v27 = vld [vmem:[#allocation4 + $0x7a] sm:$0xff]  ;;  %v9308_v17 = vpack.c.bf16 %v4916_v16, %v4915_v21  ;;  %v4661_v0 = vld [vmem:[#allocation4 + $0x82] sm:$0xff]  ;;  %4641 = vst.msk [vmem:[#allocation5 + $0x80] sm:$0xff] %vm10710_vm13, %v9304_v33  ;;  %v1679_v5 = vpop.permute.xlu1 %1678  ;;  %v4175_v14 = vpack.c.bf16 %v4150_v7, %v4149_v24  ;;  %vm10717_vm13 = vcmask 392544   ;;  %v3300_v8 = vld [vmem:[#allocation2 + $0x1d2] sm:$0xff] }
 0x310   : > { %v4148_v63 = vld [vmem:[#allocation4 + $0x80] sm:$0xff]  ;;  %v9310_v53 = vpack.c.bf16 %v4661_v0, %v4660_v27  ;;  %1715 = vst.msk [vmem:[#allocation3 + $0x60] sm:$0xff] %vm10711_vm12, %v1679_v5  ;;  %2973 = vrot.lane.b32.xlu0 %v9229_v32, %s10673_s15  ;;  %v7584_v9 = vld [vmem:[%s10557_s4 + $0x58] sm:$0xff]   ;;  %v3316_v13 = vpack.c.bf16 %v3300_v8, %v3299_v25  ;;  %v4138_v27 = vld [vmem:[#allocation4 + $0x8] sm:$0xff] }
 0x311   : > { %v4174_v44 = vpack.c.bf16 %v4148_v63, %v4147_v55  ;;  %4640 = vst.msk [vmem:[#allocation5 + $0x68] sm:$0xff] %vm10703_vm9, %v9308_v17  ;;  %2717 = vrot.lane.b32.xlu1 %v2670_v37, %s10668_s13  ;;  %vm10718_vm9 = vmmov %vm10711_vm12  ;;  %vm10719_vm12 = vcmask 818176   ;;  %v7585_v35 = vld [vmem:[%s10557_s4 + $0x18] sm:$0xff]   ;;  %v4137_v16 = vld [vmem:[#allocation4] sm:$0xff] }
 0x312   : > { %5088 = vst.msk [vmem:[#allocation5 + $0x58] sm:$0xff] %vm10712_vm15, %v9310_v53  ;;  %v1937_v10 = vpop.permute.xlu0 %1936  ;;  %v3667_v29 = vld [vmem:[#allocation3 + $0x58] sm:$0xff]  ;;  %vm10720_vm15 = vmmov %vm10719_vm12  ;;  %v7586_v24 = vld [vmem:[%s10557_s4 + $0x60] sm:$0xff]  }
 0x313   : > { %5089 = vst.msk [vmem:[#allocation5 + $0x70] sm:$0xff] %vm10713_vm11, %v9312_v28  ;;  %v1681_v32 = vpop.permute.xlu1 %1680  ;;  %v3666_v50 = vld [vmem:[#allocation3 + $0x50] sm:$0xff]  ;;  %vm10721_vm11 = vcmask 425344   ;;  %v7587_v0 = vld [vmem:[%s10557_s4 + $0x20] sm:$0xff]   ;;  %v4782_v5 = vld [vmem:[#allocation4 + $0x38] sm:$0xff] }
 0x314   : > { %4190 = vst.msk [vmem:[#allocation5 + $0x78] sm:$0xff] %vm10714_vm1, %v4174_v44  ;;  %7485 = vmatprep.mubr.msk.bf16.mxu0 %vm10719_vm12, %v3666_v50  ;;  %3103 = vrot.lane.b32.xlu0 %v2412_v6, %s10680_s17  ;;  %vm10722_vm1 = vmmov %vm10715_vm2  ;;  %v7583_v6 = vld [vmem:[%s10557_s4 + $0x10] sm:$0xff]   ;;  %vm10727_vm12 = vcmask 523744   ;;  %v9399_v48 = vpack.c.bf16 %v4782_v5, %v4781_v34  ;;  %v4787_v34 = vld [vmem:[#allocation4 + $0x78] sm:$0xff] }
 0x315   : > { %1844 = vst.msk [vmem:[#allocation3 + $0x60] sm:$0xff] %vm10715_vm2, %v1808_v58  ;;  %2846 = vrot.lane.b32.xlu1 %v2799_v41, %s10634_s16  ;;  %7486 = vmatmul.mubr.msk.bf16.gmra.mrb[20].mxu0 %vm10720_vm15, %v3667_v29  ;;  %vm10723_vm2 = vcmask 458144   ;;  %v3429_v40 = vld [vmem:[#allocation2 + $0x1d3] sm:$0xff]  ;;  %v9382_v58 = vpack.c.bf16 %v4653_v2, %v4652_v15  ;;  %v4202_v50 = vld [vmem:[#allocation4 + $0x9] sm:$0xff] }
 0x316   : > { %4191 = vst.msk [vmem:[#allocation5 + $0x90] sm:$0xff] %vm10716_vm10, %v4175_v14  ;;  %v2066_v26 = vpop.permute.xlu0 %2065  ;;  %vm10724_vm10 = vmmov %vm10717_vm13  ;;  %7326 = vmatpush3.bf16.msra.mxu1 %v7583_v6  ;;  %v3445_v38 = vpack.c.bf16 %v3429_v40, %v3428_v46  ;;  %v3558_v44 = vld [vmem:[#allocation2 + $0x1d4] sm:$0xff]  ;;  %v7588_v14 = vld [vmem:[%s10557_s4 + $0x68] sm:$0xff]  }
 0x317   : > { %1973 = vst.msk [vmem:[#allocation3 + $0x60] sm:$0xff] %vm10717_vm13, %v1937_v10  ;;  %v1810_v31 = vpop.permute.xlu1 %1809  ;;  %vm10725_vm13 = vcmask 490944   ;;  %7327 = vmatprep.subr.bf16.mxu1 %v7584_v9  ;;  %vm10728_vm15 = vmmov %vm10723_vm2  ;;  %v7590_v10 = vld [vmem:[%s10557_s4 + $0x28] sm:$0xff]   ;;  %v3574_v29 = vpack.c.bf16 %v3558_v44, %v3557_v3  ;;  %v4784_v6 = vld [vmem:[#allocation4 + $0x50] sm:$0xff] }
 0x318   : > { %1716 = vst.msk [vmem:[#allocation3 + $0x68] sm:$0xff] %vm10718_vm9, %v1681_v32  ;;  %3232 = vrot.lane.b32.xlu0 %v9298_v57, %s7631_s18  ;;  %vm10726_vm9 = vmmov %vm10721_vm11  ;;  %v4201_v32 = vld [vmem:[#allocation4 + $0x1] sm:$0xff]  ;;  %v9468_v40 = vld [vmem:[%s10555_s2] ss:$0 sm:$0xff] }
 0x319   : > { %2102 = vst.msk [vmem:[#allocation3 + $0x60] sm:$0xff] %vm10721_vm11, %v2066_v26  ;;  %2975 = vrot.lane.b32.xlu1 %v2928_v54, %s10673_s15  ;;  %vm10729_vm11 = vcmask 261120   ;;  %v7593_v26 = vld [vmem:[%s10557_s4 + $0x30] sm:$0xff]   ;;  %v4233_v20 = vpack.c.bf16 %v4202_v50, %v4201_v32  ;;  %v4786_v15 = vld [vmem:[#allocation4 + $0x68] sm:$0xff]  ;;  %v4788_v3 = vld [vmem:[#allocation4 + $0x80] sm:$0xff] }
 0x31a   : > { %1845 = vst.msk [vmem:[#allocation3 + $0x68] sm:$0xff] %vm10722_vm1, %v1810_v31  ;;  %v2195_v59 = vpop.permute.xlu0 %2194  ;;  %7328 = vmatpush3.bf16.msra.mxu1 %v7585_v35  ;;  %vm10730_vm1 = vmmov %vm10725_vm13  ;;  %v4330_v31 = vld [vmem:[#allocation4 + $0x2] sm:$0xff] }
 0x31b   : > { %2231 = vst.msk [vmem:[#allocation3 + $0x60] sm:$0xff] %vm10723_vm2, %v2195_v59  ;;  %v1939_v62 = vpop.permute.xlu1 %1938  ;;  %7329 = vmatprep.subr.bf16.mxu1 %v7586_v24  ;;  %vm10731_vm2 = vmmov %vm10727_vm12  ;;  %v7595_v59 = vld [vmem:[%s10557_s4 + $0x38] sm:$0xff]   ;;  %v4362_v60 = vpack.c.bf16 %v4331_v30, %v4330_v31 }
 0x31c   : > { %1974 = vst.msk [vmem:[#allocation3 + $0x68] sm:$0xff] %vm10724_vm10, %v1939_v62  ;;  %3361 = vrot.lane.b32.xlu0 %v2670_v37, %s7632_s20  ;;  %v4169_v37 = vpack.c.bf16 %v4138_v27, %v4137_v16  ;;  %vm10732_vm10 = vcmask 195744   ;;  %v4790_v31 = vld [vmem:[#allocation4 + $0x98] sm:$0xff] }
 0x31d   : > { %3105 = vrot.lane.b32.xlu1 %v3058_v11, %s10680_s17  ;;  %v7594_v11 = vld [vmem:[%s10557_s4 + $0x78] sm:$0xff]  }
 0x31e   : > { %v2324_v18 = vpop.permute.xlu0 %2323  ;;  %4185 = vst.msk [vmem:[#allocation5] sm:$0xff] %vm10729_vm11, %v4169_v37  ;;  %7330 = vmatpush3.bf16.msra.mxu1 %v7587_v0  ;;  %v9475_v0 = vld [vmem:[%s10556_s3] ss:$0 sm:$0xff] }
 0x31f   : > { %2360 = vst.msk [vmem:[#allocation3 + $0x60] sm:$0xff] %vm10725_vm13, %v2324_v18  ;;  %v2068_v57 = vpop.permute.xlu1 %2067  ;;  %7331 = vmatprep.subr.bf16.mxu1 %v7588_v14  ;;  %v9431_v18 = vpack.c.bf16 %v4784_v6, %v4783_v4  ;;  %vm10733_vm13 = vmmov %vm10732_vm10 }
 0x320   : > { %2103 = vst.msk [vmem:[#allocation3 + $0x68] sm:$0xff] %vm10726_vm9, %v2068_v57  ;;  %3490 = vrot.lane.b32.xlu0 %v2799_v41, %s7633_s27  ;;  %v7589_v41 = vld [vmem:[%s10557_s4 + $0x80] sm:$0xff]  }
 0x321   : > { %3234 = vrot.lane.b32.xlu1 %v3187_v49, %s7631_s18  ;;  %7497 = vmatprep.subr.bf16.mxu0 %v7589_v41  ;;  %s10826_s18 = smov 16  }
 0x322   : > { %v2454_v21 = vpop.permute.xlu0 %2453  ;;  %7332 = vmatpush3.bf16.msra.mxu1 %v7590_v10  ;;  %7498 = vmatpush3.bf16.msra.mxu0 %v7589_v41 }
 0x323   : > { %2490 = vst.msk [vmem:[#allocation3 + $0x60] sm:$0xff] %vm10727_vm12, %v2454_v21  ;;  %v2197_v55 = vpop.permute.xlu1 %2196  ;;  %7333 = vmatprep.subr.bf16.mxu1 %v7591_v61  ;;  %v4336_v61 = vld [vmem:[#allocation4 + $0x4a] sm:$0xff] }
 0x324   : > { %2232 = vst.msk [vmem:[#allocation3 + $0x68] sm:$0xff] %vm10728_vm15, %v2197_v55  ;;  %3619 = vrot.lane.b32.xlu0 %v2928_v54, %s7634_s29  ;;  %v7592_v54 = vld [vmem:[%s10557_s4 + $0x88] sm:$0xff]   ;;  %vm10734_vm15 = vmmov %vm10729_vm11 }
 0x325   : > { %3363 = vrot.lane.b32.xlu1 %v3316_v13, %s7632_s20  ;;  %7499 = vmatprep.subr.bf16.mxu0 %v7592_v54  ;;  %v4785_v13 = vld [vmem:[#allocation4 + $0x60] sm:$0xff] }
 0x326   : > { %v2583_v63 = vpop.permute.xlu0 %2582  ;;  %7334 = vmatpush3.bf16.msra.mxu1 %v7593_v26  ;;  %7500 = vmatpush3.bf16.msra.mxu0 %v7592_v54  ;;  %v9451_v21 = vpack.c.bf16 %v4786_v15, %v4785_v13  ;;  %v4337_v54 = vld [vmem:[#allocation4 + $0x52] sm:$0xff] }
 0x327   : > { %2619 = vst.msk [vmem:[#allocation3 + $0x60] sm:$0xff] %vm2606_vm3, %v2583_v63  ;;  %v2326_v7 = vpop.permute.xlu1 %2325  ;;  %7335 = vmatprep.subr.bf16.mxu1 %v7594_v11  ;;  %v4365_v11 = vpack.c.bf16 %v4337_v54, %v4336_v61 }
 0x328   : > { %2361 = vst.msk [vmem:[#allocation3 + $0x68] sm:$0xff] %vm10730_vm1, %v2326_v7  ;;  %4716 = vrot.lane.b32.xlu0 %v9382_v58, %s7618_s24  ;;  %vm10735_vm1 = vmmov %vm10734_vm15 }
 0x329   : > { %3492 = vrot.lane.b32.xlu1 %v3445_v38, %s7633_s27 }
 0x32a   : > { %v2712_v47 = vpop.permute.xlu0 %2711  ;;  %7336 = vmatpush3.bf16.msra.mxu1 %v7595_v59 }
 0x32b   : > { %2748 = vst.msk [vmem:[#allocation3 + $0x60] sm:$0xff] %vm2735_vm4, %v2712_v47  ;;  %v2456_v45 = vpop.permute.xlu1 %2455  ;;  %v9490_v47 = vpack.c.bf16 %v4788_v3, %v4787_v34 }
 0x32c   : > { %2491 = vst.msk [vmem:[#allocation3 + $0x68] sm:$0xff] %vm10731_vm2, %v2456_v45  ;;  %4845 = vrot.lane.b32.xlu0 %v9399_v48, %s10662_s8  ;;  %vm10736_vm2 = vcmask 261344  }
 0x32d   : > { %3621 = vrot.lane.b32.xlu1 %v3574_v29, %s7634_s29 }
 0x32e   : > { %v2841_v42 = vpop.permute.xlu0 %2840 }
 0x32f   : > { %2877 = vst.msk [vmem:[#allocation3 + $0x60] sm:$0xff] %vm2864_vm5, %v2841_v42  ;;  %v2585_v56 = vpop.permute.xlu1 %2584  ;;  %v4789_v42 = vld [vmem:[#allocation4 + $0x90] sm:$0xff] }
 0x330   : > { %2620 = vst.msk [vmem:[#allocation3 + $0x68] sm:$0xff] %vm2606_vm3, %v2585_v56  ;;  %4973 = vrot.lane.b32.xlu0 %v9034_v12, %s7634_s29 }
 0x331   : > { %4265 = vrot.lane.b32.xlu1 %v4233_v20, %s7618_s24 }
 0x332   : > { %v2970_v36 = vpop.permute.xlu0 %2969 }
 0x333   : > { %3006 = vst.msk [vmem:[#allocation3 + $0x60] sm:$0xff] %vm2993_vm7, %v2970_v36  ;;  %v2714_v62 = vpop.permute.xlu1 %2713 }
 0x334   : > { %2749 = vst.msk [vmem:[#allocation3 + $0x68] sm:$0xff] %vm2735_vm4, %v2714_v62  ;;  %4718 = vrot.lane.b32.xlu0 %v9038_v19, %s7618_s24 }
 0x335   : > { %4394 = vrot.lane.b32.xlu1 %v4362_v60, %s10662_s8 }
 0x336   : > { %v3100_v49 = vpop.permute.xlu0 %3099 }
 0x337   : > { %3136 = vst.msk [vmem:[#allocation3 + $0x60] sm:$0xff] %vm3123_vm6, %v3100_v49  ;;  %v2843_v25 = vpop.permute.xlu1 %2842 }
 0x338   : > { %2878 = vst.msk [vmem:[#allocation3 + $0x68] sm:$0xff] %vm2864_vm5, %v2843_v25  ;;  %4847 = vrot.lane.b32.xlu0 %v9431_v18, %s10662_s8 }
 0x339   : > { %4523 = vrot.lane.b32.xlu1 %v9040_v23, %s7634_s29 }
 0x33a   : > { %v3102_v8 = vpop.permute.xlu0 %3101 }
 0x33b   : > { %v2972_v57 = vpop.permute.xlu1 %2971 }
 0x33c   : > { %3007 = vst.msk [vmem:[#allocation3 + $0x68] sm:$0xff] %vm2993_vm7, %v2972_v57  ;;  %4975 = vrot.lane.b32.xlu0 %v9151_v52, %s7634_s29 }
 0x33d   : > { %3137 = vst.msk [vmem:[#allocation3 + $0x68] sm:$0xff] %vm3123_vm6, %v3102_v8  ;;  %4267 = vrot.lane.b32.xlu1 %v9042_v51, %s7618_s24 }
 0x33e   : > { %v1169_v9 = vpop.permute.xlu0 %1168 }
 0x33f   : > { %1202 = vst.msk [vmem:[#allocation3 + $0x78] sm:$0xff] %vm10732_vm10, %v1169_v9  ;;  %v1167_v35 = vpop.permute.xlu1 %1166  ;;  %vm10737_vm10 = vmmov %vm10735_vm1  ;;  %v4817_v9 = vpack.c.bf16 %v4790_v31, %v4789_v42 }
 0x340   : > { %1201 = vst.msk [vmem:[#allocation3 + $0x70] sm:$0xff] %vm10733_vm13, %v1167_v35  ;;  %4720 = vrot.lane.b32.xlu0 %v9144_v43, %s7618_s24  ;;  %vm10738_vm13 = vmmov %vm10736_vm2 }
 0x341   : > { %4396 = vrot.lane.b32.xlu1 %v9382_v58, %s10662_s8 }
 0x342   : > { %v3231_v23 = vpop.permute.xlu0 %3230 }
 0x343   : > { %3266 = vst.msk [vmem:[#allocation3 + $0x68] sm:$0xff] %vm3252_vm0, %v3231_v23  ;;  %v3229_v51 = vpop.permute.xlu1 %3228 }
 0x344   : > { %3265 = vst.msk [vmem:[#allocation3 + $0x60] sm:$0xff] %vm3252_vm0, %v3229_v51  ;;  %4849 = vrot.lane.b32.xlu0 %v9451_v21, %s10662_s8 }
 0x345   : > { %4525 = vrot.lane.b32.xlu1 %v9399_v48, %s7634_s29 }
 0x346   : > { %v1298_v2 = vpop.permute.xlu0 %1297 }
 0x347   : > { %1331 = vst.msk [vmem:[#allocation3 + $0x78] sm:$0xff] %vm1315_vm8, %v1298_v2  ;;  %v1296_v43 = vpop.permute.xlu1 %1295 }
 0x348   : > { %1330 = vst.msk [vmem:[#allocation3 + $0x70] sm:$0xff] %vm1315_vm8, %v1296_v43  ;;  %v7479_v46 = vpop.f32.mrb[12].mxu0  ;;  %4977 = vrot.lane.b32.xlu0 %v9142_v39, %s7634_s29 }
 0x349   : > { %4269 = vrot.lane.b32.xlu1 %v9034_v12, %s7618_s24  ;;  %v3875_v55 = vadd.f32 %v9468_v40, %v7479_v46  ;;  %v3866_v16 = vpop.f32.mrb[13].mxu0 }
 0x34a   : > { %v3867_v27 = vadd.f32 %v9468_v40, %v3866_v16  ;;  %v3360_v24 = vpop.permute.xlu0 %3359  ;;  %v7480_v37 = vpop.f32.mrb[14].mxu0 }
 0x34b   : > { %vm3959_vm8 = vcmp.ge.f32.partialorder %v3875_v55, 0.0  ;;  %v3998_v12 = vmul.f32 %v9475_v0, %v3875_v55  ;;  %3395 = vst.msk [vmem:[#allocation3 + $0x68] sm:$0xff] %vm3381_vm14, %v3360_v24  ;;  %v3358_v38 = vpop.permute.xlu1 %3357  ;;  %v3878_v63 = vadd.f32 %v9468_v40, %v7480_v37  ;;  %v3869_v58 = vpop.f32.mrb[15].mxu0 }
 0x34c   : > { %vm3957_vm9 = vcmp.ge.f32.partialorder %v3867_v27, 0.0  ;;  %v3996_v44 = vmul.f32 %v9475_v0, %v3867_v27  ;;  %3394 = vst.msk [vmem:[#allocation3 + $0x60] sm:$0xff] %vm3381_vm14, %v3358_v38  ;;  %v3870_v7 = vadd.f32 %v9468_v40, %v3869_v58  ;;  %4722 = vrot.lane.b32.xlu0 %v9153_v22, %s7618_s24 }
 0x34d   : > { %v4030_v5 = vsel %vm3959_vm8, %v3875_v55, %v3998_v12  ;;  %vm3960_vm12 = vcmp.ge.f32.partialorder %v3878_v63, 0.0  ;;  %v3999_v14 = vmul.f32 %v9475_v0, %v3878_v63  ;;  %4398 = vrot.lane.b32.xlu1 %v9038_v19, %s10662_s8  ;;  %vm10739_vm8 = vmmov %vm10735_vm1 }
 0x34e   : > { %4119 = vst.msk [vmem:[#allocation4 + $0xc1] sm:$0xff] %vm10734_vm15, %v4030_v5  ;;  %v4028_v41 = vsel %vm3957_vm9, %v3867_v27, %v3996_v44  ;;  %vm3958_vm11 = vcmp.ge.f32.partialorder %v3870_v7, 0.0  ;;  %v3997_v10 = vmul.f32 %v9475_v0, %v3870_v7  ;;  %v1427_v29 = vpop.permute.xlu0 %1426  ;;  %vm10740_vm9 = vcmask 786144  }
 0x34f   : > { %4117 = vst.msk [vmem:[#allocation4 + $0xa9] sm:$0xff] %vm10735_vm1, %v4028_v41  ;;  %v4031_v48 = vsel %vm3960_vm12, %v3878_v63, %v3999_v14  ;;  %v1425_v32 = vpop.permute.xlu1 %1424  ;;  %vm10741_vm12 = vmmov %vm10740_vm9  ;;  %vm10742_vm15 = vcmask 294144  }
 0x350   : > { %1460 = vst.msk [vmem:[#allocation3 + $0x78] sm:$0xff] %vm10736_vm2, %v1427_v29  ;;  %v4029_v50 = vsel %vm3958_vm11, %v3870_v7, %v3997_v10  ;;  %4851 = vrot.lane.b32.xlu0 %v9490_v47, %s10662_s8  ;;  %vm10743_vm11 = vmmov %vm10742_vm15  ;;  %vm10744_vm2 = vcmask 818944  }
 0x351   : > { %4120 = vst.msk [vmem:[#allocation4 + $0xc9] sm:$0xff] %vm10737_vm10, %v4031_v48  ;;  %4527 = vrot.lane.b32.xlu1 %v9431_v18, %s7634_s29  ;;  %vm10745_vm10 = vmmov %vm10735_vm1 }
 0x352   : > { %1459 = vst.msk [vmem:[#allocation3 + $0x70] sm:$0xff] %vm10738_vm13, %v1425_v32  ;;  %v3489_v19 = vpop.permute.xlu0 %3488  ;;  %vm10746_vm13 = vmmov %vm10744_vm2 }
 0x353   : > { %4118 = vst.msk [vmem:[#allocation4 + $0xb1] sm:$0xff] %vm10739_vm8, %v4029_v50  ;;  %v3487_v45 = vpop.permute.xlu1 %3486  ;;  %vm10747_vm8 = vmmov %vm10735_vm1 }
 0x354   : > { %3524 = vst.msk [vmem:[#allocation3 + $0x68] sm:$0xff] %vm10740_vm9, %v3489_v19  ;;  %4979 = vrot.lane.b32.xlu0 %v9308_v17, %s7634_s29  ;;  %vm10748_vm9 = vmmov %vm10735_vm1 }
 0x355   : > { %3523 = vst.msk [vmem:[#allocation3 + $0x60] sm:$0xff] %vm10741_vm12, %v3487_v45  ;;  %4271 = vrot.lane.b32.xlu1 %v9151_v52, %s7618_s24  ;;  %v4921_v26 = vld [vmem:[#allocation4 + $0xc1] sm:$0xff]  ;;  %vm10749_vm12 = vmmov %vm10735_vm1 }
 0x356   : > { %v1556_v20 = vpop.permute.xlu0 %1555  ;;  %v4919_v30 = vld [vmem:[#allocation4 + $0xa9] sm:$0xff]  ;;  %v4153_v6 = vld [vmem:[#allocation4 + $0xc0] sm:$0xff] }
 0x357   : > { %1589 = vst.msk [vmem:[#allocation3 + $0x78] sm:$0xff] %vm10742_vm15, %v1556_v20  ;;  %v1554_v56 = vpop.permute.xlu1 %1553  ;;  %v4151_v36 = vld [vmem:[#allocation4 + $0xa8] sm:$0xff]  ;;  %vm10750_vm15 = vmmov %vm10735_vm1  ;;  %v4793_v3 = vld [vmem:[#allocation4 + $0xc0] sm:$0xff] }
 0x358   : > { %v4922_v59 = vld [vmem:[#allocation4 + $0xc9] sm:$0xff]  ;;  %1588 = vst.msk [vmem:[#allocation3 + $0x70] sm:$0xff] %vm10743_vm11, %v1554_v56  ;;  %4724 = vrot.lane.b32.xlu0 %v9310_v53, %s7618_s24  ;;  %vm10751_vm11 = vcmask 326944  }
 0x359   : > { %v4666_v60 = vld [vmem:[#allocation4 + $0xc2] sm:$0xff]  ;;  %v9511_v52 = vpack.c.bf16 %v4922_v59, %v4921_v26  ;;  %4400 = vrot.lane.b32.xlu1 %v4365_v11, %s10662_s8  ;;  %v4667_v25 = vld [vmem:[#allocation4 + $0xca] sm:$0xff] }
 0x35a   : > { %v4920_v62 = vld [vmem:[#allocation4 + $0xb1] sm:$0xff]  ;;  %v3618_v57 = vpop.permute.xlu0 %3617  ;;  %v9518_v13 = vpack.c.bf16 %v4667_v25, %v4666_v60  ;;  %v4154_v23 = vld [vmem:[#allocation4 + $0xc8] sm:$0xff] }
 0x35b   : > { %v4664_v4 = vld [vmem:[#allocation4 + $0xaa] sm:$0xff]  ;;  %v9514_v49 = vpack.c.bf16 %v4920_v62, %v4919_v30  ;;  %v4665_v18 = vld [vmem:[#allocation4 + $0xb2] sm:$0xff]  ;;  %4643 = vst.msk [vmem:[#allocation5 + $0xb0] sm:$0xff] %vm10735_vm1, %v9511_v52  ;;  %v3616_v51 = vpop.permute.xlu1 %3615  ;;  %v4177_v2 = vpack.c.bf16 %v4154_v23, %v4153_v6  ;;  %vm10752_vm1 = vcmask 359744  }
 0x35c   : > { %v4152_v8 = vld [vmem:[#allocation4 + $0xb0] sm:$0xff]  ;;  %v9516_v35 = vpack.c.bf16 %v4665_v18, %v4664_v4  ;;  %3653 = vst.msk [vmem:[#allocation3 + $0x68] sm:$0xff] %vm10744_vm2, %v3618_v57  ;;  %4853 = vrot.lane.b32.xlu0 %v4817_v9, %s10662_s8  ;;  %vm10753_vm2 = vcmask 392544   ;;  %v4791_v24 = vld [vmem:[#allocation4 + $0xa8] sm:$0xff] }
 0x35d   : > { %v4176_v15 = vpack.c.bf16 %v4152_v8, %v4151_v36  ;;  %4642 = vst.msk [vmem:[#allocation5 + $0x98] sm:$0xff] %vm10745_vm10, %v9514_v49  ;;  %4529 = vrot.lane.b32.xlu1 %v9451_v21, %s7634_s29  ;;  %v4792_v37 = vld [vmem:[#allocation4 + $0xb0] sm:$0xff]  ;;  %vm10754_vm10 = vmmov %vm10751_vm11  ;;  %v4794_v44 = vld [vmem:[#allocation4 + $0xc8] sm:$0xff] }
 0x35e   : > { %3652 = vst.msk [vmem:[#allocation3 + $0x60] sm:$0xff] %vm10746_vm13, %v3616_v51  ;;  %v1812_v43 = vpop.permute.xlu0 %1811  ;;  %vm10755_vm13 = vcmask 818176   ;;  %v4818_v12 = vpack.c.bf16 %v4792_v37, %v4791_v24  ;;  %v4819_v5 = vpack.c.bf16 %v4794_v44, %v4793_v3 }
 0x35f   : > { %5090 = vst.msk [vmem:[#allocation5 + $0x88] sm:$0xff] %vm10747_vm8, %v9516_v35  ;;  %v1683_v46 = vpop.permute.xlu1 %1682  ;;  %vm10756_vm8 = vmmov %vm10755_vm13 }
 0x360   : > { %5091 = vst.msk [vmem:[#allocation5 + $0xa0] sm:$0xff] %vm10748_vm9, %v9518_v13  ;;  %4981 = vrot.lane.b32.xlu0 %v9304_v33, %s7634_s29  ;;  %vm10757_vm9 = vcmask 425344  }
 0x361   : > { %4192 = vst.msk [vmem:[#allocation5 + $0xa8] sm:$0xff] %vm10749_vm12, %v4176_v15  ;;  %4273 = vrot.lane.b32.xlu1 %v9142_v39, %s7618_s24  ;;  %vm10758_vm12 = vmmov %vm10752_vm1 }
 0x362   : > { %4193 = vst.msk [vmem:[#allocation5 + $0xc0] sm:$0xff] %vm10750_vm15, %v4177_v2  ;;  %v1941_v55 = vpop.permute.xlu0 %1940  ;;  %vm10759_vm15 = vcmask 458144  }
 0x363   : > { %1717 = vst.msk [vmem:[#allocation3 + $0x70] sm:$0xff] %vm10751_vm11, %v1683_v46  ;;  %v3669_v16 = vld [vmem:[#allocation3 + $0x68] sm:$0xff]  ;;  %v1685_v27 = vpop.permute.xlu1 %1684  ;;  %vm10760_vm11 = vmmov %vm10753_vm2 }
 0x364   : > { %1846 = vst.msk [vmem:[#allocation3 + $0x70] sm:$0xff] %vm10752_vm1, %v1812_v43  ;;  %4726 = vrot.lane.b32.xlu0 %v9312_v28, %s7618_s24  ;;  %vm10761_vm1 = vcmask 490944  }
 0x365   : > { %1975 = vst.msk [vmem:[#allocation3 + $0x70] sm:$0xff] %vm10753_vm2, %v1941_v55  ;;  %v3668_v21 = vld [vmem:[#allocation3 + $0x60] sm:$0xff]  ;;  %4402 = vrot.lane.b32.xlu1 %v9153_v22, %s10662_s8  ;;  %vm10762_vm2 = vmmov %vm10757_vm9 }
 0x366   : > { %1718 = vst.msk [vmem:[#allocation3 + $0x78] sm:$0xff] %vm10754_vm10, %v1685_v27  ;;  %7489 = vmatprep.mubr.msk.bf16.mxu0 %vm10755_vm13, %v3668_v21  ;;  %v2070_v39 = vpop.permute.xlu0 %2069  ;;  %vm10763_vm10 = vcmask 523744   ;;  %vm10764_vm13 = vmmov %vm10759_vm15 }
 0x367   : > { %7490 = vmatmul.mubr.msk.bf16.gmra.mrb[24].mxu0 %vm10756_vm8, %v3669_v16  ;;  %2104 = vst.msk [vmem:[#allocation3 + $0x70] sm:$0xff] %vm10757_vm9, %v2070_v39  ;;  %v1814_v38 = vpop.permute.xlu1 %1813  ;;  %vm10765_vm8 = vmmov %vm10761_vm1  ;;  %v5103_v16 = vld [vmem:[#allocation5 + $0x10] sm:$0xff] }
 0x368   : > { %1847 = vst.msk [vmem:[#allocation3 + $0x78] sm:$0xff] %vm10758_vm12, %v1814_v38  ;;  %4855 = vrot.lane.b32.xlu0 %v4818_v12, %s10662_s8  ;;  %vm10766_vm9 = vmmov %vm10763_vm10 }
 0x369   : > { %4531 = vrot.lane.b32.xlu1 %v9490_v47, %s7634_s29 }
 0x36a   : > { %v2199_v63 = vpop.permute.xlu0 %2198 }
 0x36b   : > { %2233 = vst.msk [vmem:[#allocation3 + $0x70] sm:$0xff] %vm10759_vm15, %v2199_v63  ;;  %v1943_v58 = vpop.permute.xlu1 %1942  ;;  %vm10770_vm15 = vcmask 261120  }
 0x36c   : > { %1976 = vst.msk [vmem:[#allocation3 + $0x78] sm:$0xff] %vm10760_vm11, %v1943_v58  ;;  %4983 = vrot.lane.b32.xlu0 %v9514_v49, %s7634_s29 }
 0x36d   : > { %4275 = vrot.lane.b32.xlu1 %v9308_v17, %s7618_s24 }
 0x36e   : > { %v2328_v22 = vpop.permute.xlu0 %2327 }
 0x36f   : > { %2362 = vst.msk [vmem:[#allocation3 + $0x70] sm:$0xff] %vm10761_vm1, %v2328_v22  ;;  %v2072_v34 = vpop.permute.xlu1 %2071  ;;  %vm10771_vm1 = vmmov %vm10770_vm15 }
 0x370   : > { %2105 = vst.msk [vmem:[#allocation3 + $0x78] sm:$0xff] %vm10762_vm2, %v2072_v34  ;;  %4728 = vrot.lane.b32.xlu0 %v9516_v35, %s7618_s24  ;;  %vm10772_vm2 = vcmask 818176  }
 0x371   : > { %4404 = vrot.lane.b32.xlu1 %v9310_v53, %s10662_s8 }
 0x372   : > { %v2458_v7 = vpop.permute.xlu0 %2457 }
 0x373   : > { %2492 = vst.msk [vmem:[#allocation3 + $0x70] sm:$0xff] %vm10763_vm10, %v2458_v7  ;;  %v2201_v14 = vpop.permute.xlu1 %2200  ;;  %vm10773_vm10 = vmmov %vm10771_vm1 }
 0x374   : > { %2234 = vst.msk [vmem:[#allocation3 + $0x78] sm:$0xff] %vm10764_vm13, %v2201_v14  ;;  %4857 = vrot.lane.b32.xlu0 %v4819_v5, %s10662_s8 }
 0x375   : > { %4533 = vrot.lane.b32.xlu1 %v4817_v9, %s7634_s29 }
 0x376   : > { %v2587_v17 = vpop.permute.xlu0 %2586 }
 0x377   : > { %2621 = vst.msk [vmem:[#allocation3 + $0x70] sm:$0xff] %vm2606_vm3, %v2587_v17  ;;  %v2330_v41 = vpop.permute.xlu1 %2329 }
 0x378   : > { %2363 = vst.msk [vmem:[#allocation3 + $0x78] sm:$0xff] %vm10765_vm8, %v2330_v41  ;;  %4985 = vrot.lane.b32.xlu0 %v9511_v52, %s7634_s29  ;;  %vm4571_vm8 = vcmask 1048320  }
 0x379   : > { %4277 = vrot.lane.b32.xlu1 %v9304_v33, %s7618_s24 }
 0x37a   : > { %v2716_v53 = vpop.permute.xlu0 %2715 }
 0x37b   : > { %2750 = vst.msk [vmem:[#allocation3 + $0x70] sm:$0xff] %vm2735_vm4, %v2716_v53  ;;  %v2460_v10 = vpop.permute.xlu1 %2459 }
 0x37c   : > { %2493 = vst.msk [vmem:[#allocation3 + $0x78] sm:$0xff] %vm10766_vm9, %v2460_v10  ;;  %4730 = vrot.lane.b32.xlu0 %v9518_v13, %s7618_s24  ;;  %vm10775_vm9 = vmmov %vm10771_vm1 }
 0x37d   : > { %4406 = vrot.lane.b32.xlu1 %v9312_v28, %s10662_s8 }
 0x37e   : > { %v2845_v29 = vpop.permute.xlu0 %2844 }
 0x37f   : > { %2879 = vst.msk [vmem:[#allocation3 + $0x70] sm:$0xff] %vm2864_vm5, %v2845_v29  ;;  %v2589_v47 = vpop.permute.xlu1 %2588 }
 0x380   : > { %2622 = vst.msk [vmem:[#allocation3 + $0x78] sm:$0xff] %vm2606_vm3, %v2589_v47  ;;  %vm10767_vm3 = vcmask 786144  }
 0x381   : > { %4535 = vrot.lane.b32.xlu1 %v4818_v12, %s7634_s29 }
 0x382   : > { %v2974_v33 = vpop.permute.xlu0 %2973 }
 0x383   : > { %3008 = vst.msk [vmem:[#allocation3 + $0x70] sm:$0xff] %vm2993_vm7, %v2974_v33  ;;  %v2718_v48 = vpop.permute.xlu1 %2717 }
 0x384   : > { %2751 = vst.msk [vmem:[#allocation3 + $0x78] sm:$0xff] %vm2735_vm4, %v2718_v48  ;;  %vm10768_vm4 = vcmask 818944   ;;  %v5106_v48 = vld [vmem:[#allocation5 + $0x28] sm:$0xff] }
 0x385   : > { %4279 = vrot.lane.b32.xlu1 %v9514_v49, %s7618_s24  ;;  %vm10774_vm13 = vmmov %vm10768_vm4 }
 0x386   : > { %v3104_v32 = vpop.permute.xlu0 %3103 }
 0x387   : > { %3138 = vst.msk [vmem:[#allocation3 + $0x70] sm:$0xff] %vm3123_vm6, %v3104_v32  ;;  %v2847_v28 = vpop.permute.xlu1 %2846  ;;  %v5109_v32 = vld [vmem:[#allocation5 + $0x40] sm:$0xff] }
 0x388   : > { %2880 = vst.msk [vmem:[#allocation3 + $0x78] sm:$0xff] %vm2864_vm5, %v2847_v28 }
 0x389   : > { %4408 = vrot.lane.b32.xlu1 %v9516_v35, %s10662_s8 }
 0x38a   : > { %v3233_v50 = vpop.permute.xlu0 %3232 }
 0x38b   : > { %3267 = vst.msk [vmem:[#allocation3 + $0x70] sm:$0xff] %vm3252_vm0, %v3233_v50  ;;  %v2976_v19 = vpop.permute.xlu1 %2975 }
 0x38c   : > { %3009 = vst.msk [vmem:[#allocation3 + $0x78] sm:$0xff] %vm2993_vm7, %v2976_v19  ;;  %vm4442_vm7 = vcmask 785920  }
 0x38d   : > { %4537 = vrot.lane.b32.xlu1 %v4819_v5, %s7634_s29 }
 0x38e   : > { %v3362_v45 = vpop.permute.xlu0 %3361 }
 0x38f   : > { %3396 = vst.msk [vmem:[#allocation3 + $0x70] sm:$0xff] %vm3381_vm14, %v3362_v45  ;;  %v3106_v61 = vpop.permute.xlu1 %3105 }
 0x390   : > { %3139 = vst.msk [vmem:[#allocation3 + $0x78] sm:$0xff] %vm3123_vm6, %v3106_v61  ;;  %vm4313_vm6 = vcmask 523520  }
 0x391   : > { %4281 = vrot.lane.b32.xlu1 %v9511_v52, %s7618_s24 }
 0x392   : > { %v3491_v54 = vpop.permute.xlu0 %3490 }
 0x393   : > { %3525 = vst.msk [vmem:[#allocation3 + $0x70] sm:$0xff] %vm10767_vm3, %v3491_v54  ;;  %v3235_v26 = vpop.permute.xlu1 %3234 }
 0x394   : > { %3268 = vst.msk [vmem:[#allocation3 + $0x78] sm:$0xff] %vm3252_vm0, %v3235_v26  ;;  %v5112_v26 = vld [vmem:[#allocation5 + $0x58] sm:$0xff] }
 0x395   : > { %4410 = vrot.lane.b32.xlu1 %v9518_v13, %s10662_s8 }
 0x396   : > { %v3620_v20 = vpop.permute.xlu0 %3619 }
 0x397   : > { %3654 = vst.msk [vmem:[#allocation3 + $0x70] sm:$0xff] %vm10768_vm4, %v3620_v20  ;;  %v3364_v42 = vpop.permute.xlu1 %3363  ;;  %vm10777_vm4 = vmmov %vm10771_vm1  ;;  %v5115_v20 = vld [vmem:[#allocation5 + $0x70] sm:$0xff] }
 0x398   : > { %3397 = vst.msk [vmem:[#allocation3 + $0x78] sm:$0xff] %vm3381_vm14, %v3364_v42  ;;  %vm10769_vm14 = vmmov %vm10767_vm3 }
 0x399   : > { %v7483_v31 = vpop.f32.mrb[16].mxu0  ;;  %vm10776_vm3 = vmmov %vm10772_vm2 }
 0x39a   : > { %v3891_v30 = vadd.f32 %v9468_v40, %v7483_v31  ;;  %v3882_v56 = vpop.f32.mrb[17].mxu0  ;;  %v4717_v60 = vpop.permute.xlu0 %4716 }
 0x39b   : > { %v3883_v11 = vadd.f32 %v9468_v40, %v3882_v56  ;;  %v7484_v59 = vpop.f32.mrb[18].mxu0  ;;  %4764 = vst.msk [vmem:[#allocation5 + $0x8] sm:$0xff] %vm4313_vm6, %v4717_v60  ;;  %v3493_v4 = vpop.permute.xlu1 %3492  ;;  %v5121_v60 = vld [vmem:[#allocation5 + $0xa0] sm:$0xff] }
 0x39c   : > { %vm3963_vm5 = vcmp.ge.f32.partialorder %v3891_v30, 0.0  ;;  %v4002_v36 = vmul.f32 %v9475_v0, %v3891_v30  ;;  %v3894_v62 = vadd.f32 %v9468_v40, %v7484_v59  ;;  %v3885_v52 = vpop.f32.mrb[19].mxu0  ;;  %3526 = vst.msk [vmem:[#allocation3 + $0x78] sm:$0xff] %vm10769_vm14, %v3493_v4  ;;  %v5118_v59 = vld [vmem:[#allocation5 + $0x88] sm:$0xff] }
 0x39d   : > { %vm3961_vm0 = vcmp.ge.f32.partialorder %v3883_v11, 0.0  ;;  %v4000_v6 = vmul.f32 %v9475_v0, %v3883_v11  ;;  %v3886_v49 = vadd.f32 %v9468_v40, %v3885_v52 }
 0x39e   : > { %v4034_v18 = vsel %vm3963_vm5, %v3891_v30, %v4002_v36  ;;  %vm3964_vm12 = vcmp.ge.f32.partialorder %v3894_v62, 0.0  ;;  %v4003_v25 = vmul.f32 %v9475_v0, %v3894_v62  ;;  %v4846_v9 = vpop.permute.xlu0 %4845  ;;  %v3670_v35 = vld [vmem:[#allocation3 + $0x70] sm:$0xff]  ;;  %vm10778_vm5 = vmmov %vm10771_vm1 }
 0x39f   : > { %4123 = vst.msk [vmem:[#allocation4 + $0xf1] sm:$0xff] %vm10770_vm15, %v4034_v18  ;;  %v4032_v8 = vsel %vm3961_vm0, %v3883_v11, %v4000_v6  ;;  %vm3962_vm11 = vcmp.ge.f32.partialorder %v3886_v49, 0.0  ;;  %v4001_v57 = vmul.f32 %v9475_v0, %v3886_v49  ;;  %v3622_v15 = vpop.permute.xlu1 %3621  ;;  %7493 = vmatprep.mubr.msk.bf16.mxu0 %vm10772_vm2, %v3670_v35  ;;  %vm10779_vm0 = vmmov %vm10771_vm1 }
 0x3a0   : > { %4121 = vst.msk [vmem:[#allocation4 + $0xd9] sm:$0xff] %vm10771_vm1, %v4032_v8  ;;  %v4035_v13 = vsel %vm3964_vm12, %v3894_v62, %v4003_v25  ;;  %vm10780_vm14 = vmmov %vm10779_vm0 }
 0x3a1   : > { %4893 = vst.msk [vmem:[#allocation5 + $0x8] sm:$0xff] %vm4442_vm7, %v4846_v9  ;;  %v4033_v23 = vsel %vm3962_vm11, %v3886_v49, %v4001_v57  ;;  %vm10781_vm12 = vmmov %vm10779_vm0 }
 0x3a2   : > { %4124 = vst.msk [vmem:[#allocation4 + $0xf9] sm:$0xff] %vm10773_vm10, %v4035_v13  ;;  %v4974_v51 = vpop.permute.xlu0 %4973  ;;  %vm10782_vm15 = vmmov %vm10779_vm0 }
 0x3a3   : > { %3655 = vst.msk [vmem:[#allocation3 + $0x78] sm:$0xff] %vm10774_vm13, %v3622_v15  ;;  %v4266_v2 = vpop.permute.xlu1 %4265  ;;  %vm10783_vm11 = vmmov %vm10779_vm0 }
 0x3a4   : > { %4122 = vst.msk [vmem:[#allocation4 + $0xe1] sm:$0xff] %vm10775_vm9, %v4033_v23  ;;  %vm10784_vm1 = vmmov %vm10779_vm0 }
 0x3a5   : > { %5021 = vst.msk [vmem:[#allocation5 + $0x8] sm:$0xff] %vm4571_vm8, %v4974_v51  ;;  %vm10785_vm2 = vmmov %vm10779_vm0 }
 0x3a6   : > { %4314 = vst.msk [vmem:[#allocation5] sm:$0xff] %vm4313_vm6, %v4266_v2  ;;  %v4797_v43 = vld [vmem:[#allocation4 + $0xf0] sm:$0xff]  ;;  %v4719_v55 = vpop.permute.xlu0 %4718  ;;  %vm10786_vm10 = vmmov %vm10779_vm0 }
 0x3a7   : > { %v4925_v46 = vld [vmem:[#allocation4 + $0xf1] sm:$0xff]  ;;  %v4923_v21 = vld [vmem:[#allocation4 + $0xd9] sm:$0xff]  ;;  %4765 = vst.msk [vmem:[#allocation5 + $0x20] sm:$0xff] %vm4313_vm6, %v4719_v55  ;;  %v4395_v24 = vpop.permute.xlu1 %4394  ;;  %vm10787_vm13 = vmmov %vm10779_vm0 }
 0x3a8   : > { %v4795_v27 = vld [vmem:[#allocation4 + $0xd8] sm:$0xff]  ;;  %4443 = vst.msk [vmem:[#allocation5] sm:$0xff] %vm4442_vm7, %v4395_v24  ;;  %vm10788_vm9 = vmmov %vm10779_vm0 }
 0x3a9   : > { %v4798_v39 = vld [vmem:[#allocation4 + $0xf8] sm:$0xff] }
 0x3aa   : > { %v3671_v37 = vld [vmem:[#allocation3 + $0x78] sm:$0xff]  ;;  %v4821_v22 = vpack.c.bf16 %v4798_v39, %v4797_v43  ;;  %v4848_v17 = vpop.permute.xlu0 %4847 }
 0x3ab   : > { %v4926_v12 = vld [vmem:[#allocation4 + $0xf9] sm:$0xff]  ;;  %7494 = vmatmul.mubr.msk.bf16.gmra.mrb[28].mxu0 %vm10776_vm3, %v3671_v37  ;;  %v4924_v63 = vld [vmem:[#allocation4 + $0xe1] sm:$0xff]  ;;  %v4524_v29 = vpop.permute.xlu1 %4523  ;;  %4894 = vst.msk [vmem:[#allocation5 + $0x20] sm:$0xff] %vm4442_vm7, %v4848_v17  ;;  %vm10789_vm3 = vmmov %vm10779_vm0 }
 0x3ac   : > { %v4796_v38 = vld [vmem:[#allocation4 + $0xe0] sm:$0xff]  ;;  %v4949_v34 = vpack.c.bf16 %v4926_v12, %v4925_v46  ;;  %7501 = vmatprep.mubr.msk.bf16.mxu0 %vm10777_vm4, %v5103_v16  ;;  %v4948_v44 = vpack.c.bf16 %v4924_v63, %v4923_v21  ;;  %v4670_v5 = vld [vmem:[#allocation4 + $0xf2] sm:$0xff]  ;;  %4195 = vst.msk [vmem:[#allocation5 + $0xf0] sm:$0xff] %vm10778_vm5, %v4821_v22  ;;  %vm10790_vm4 = vmmov %vm10779_vm0 }
 0x3ad   : > { %v4668_v58 = vld [vmem:[#allocation4 + $0xda] sm:$0xff]  ;;  %v4820_v3 = vpack.c.bf16 %v4796_v38, %v4795_v27  ;;  %v4669_v7 = vld [vmem:[#allocation4 + $0xe2] sm:$0xff]  ;;  %4572 = vst.msk [vmem:[#allocation5] sm:$0xff] %vm4571_vm8, %v4524_v29  ;;  %vm10791_vm5 = vmmov %vm10779_vm0 }
 0x3ae   : > { %v4671_v14 = vld [vmem:[#allocation4 + $0xfa] sm:$0xff]  ;;  %v4692_v53 = vpack.c.bf16 %v4669_v7, %v4668_v58  ;;  %4645 = vst.msk [vmem:[#allocation5 + $0xe0] sm:$0xff] %vm10779_vm0, %v4949_v34  ;;  %v4976_v47 = vpop.permute.xlu0 %4975 }
 0x3af   : > { %v5102_v41 = vld [vmem:[#allocation5 + $0x8] sm:$0xff]  ;;  %v4693_v10 = vpack.c.bf16 %v4671_v14, %v4670_v5  ;;  %4859 = vrot.lane.b32.xlu0 %v4820_v3, %s10662_s8  ;;  %4539 = vrot.lane.b32.xlu1 %v4820_v3, %s7634_s29  ;;  %4194 = vst.msk [vmem:[#allocation5 + $0xd8] sm:$0xff] %vm10780_vm14, %v4820_v3  ;;  %v4268_v33 = vpop.permute.xlu1 %4267 }
 0x3b0   : > { %4644 = vst.msk [vmem:[#allocation5 + $0xc8] sm:$0xff] %vm10781_vm12, %v4948_v44  ;;  %5380 = vmatprep.mubr.bf16.mxu1 %v5102_v41 }
 0x3b1   : > { %5092 = vst.msk [vmem:[#allocation5 + $0xb8] sm:$0xff] %vm10782_vm15, %v4692_v53  ;;  %vm10792_vm15 = vmmov %vm10784_vm1 }
 0x3b2   : > { %5093 = vst.msk [vmem:[#allocation5 + $0xd0] sm:$0xff] %vm10783_vm11, %v4693_v10  ;;  %v4721_v28 = vpop.permute.xlu0 %4720 }
 0x3b3   : > { %5022 = vst.msk [vmem:[#allocation5 + $0x20] sm:$0xff] %vm4571_vm8, %v4976_v47  ;;  %4987 = vrot.lane.b32.xlu0 %v4948_v44, %s7634_s29  ;;  %4283 = vrot.lane.b32.xlu1 %v4948_v44, %s7618_s24  ;;  %v4397_v50 = vpop.permute.xlu1 %4396 }
 0x3b4   : > { %4315 = vst.msk [vmem:[#allocation5 + $0x18] sm:$0xff] %vm4313_vm6, %v4268_v33  ;;  %7502 = vmatmul.mubr.msk.bf16.vlgmr.msra.gmra.mrb[32].mxu0 %vm10784_vm1, %v5106_v48  ;;  %4766 = vst.msk [vmem:[#allocation5 + $0x38] sm:$0xff] %vm4313_vm6, %v4721_v28  ;;  %v5101_v19 = vld [vmem:[#allocation5] sm:$0xff] }
 0x3b5   : > { %7505 = vmatprep.mubr.msk.bf16.mxu0 %vm10785_vm2, %v5109_v32  ;;  %4444 = vst.msk [vmem:[#allocation5 + $0x18] sm:$0xff] %vm4442_vm7, %v4397_v50  ;;  %5381 = vmatmul.mubr.bf16.vlgmr.msra.gmra.mrb[0].mxu1 %v5101_v19  ;;  %vm10793_vm2 = vmmov %vm10784_vm1 }
 0x3b6   : > { %v4850_v45 = vpop.permute.xlu0 %4849 }
 0x3b7   : > { %4732 = vrot.lane.b32.xlu0 %v4692_v53, %s7618_s24  ;;  %4412 = vrot.lane.b32.xlu1 %v4692_v53, %s10662_s8  ;;  %v4526_v54 = vpop.permute.xlu1 %4525  ;;  %4895 = vst.msk [vmem:[#allocation5 + $0x38] sm:$0xff] %vm4442_vm7, %v4850_v45 }
 0x3b8   : > { %4573 = vst.msk [vmem:[#allocation5 + $0x18] sm:$0xff] %vm4571_vm8, %v4526_v54  ;;  %v5124_v49 = vld [vmem:[#allocation5 + $0xb8] sm:$0xff] }
 0x3b9   : > { %v5127_v18 = vld [vmem:[#allocation5 + $0xd0] sm:$0xff] }
 0x3ba   : > { %v5105_v61 = vld [vmem:[#allocation5 + $0x20] sm:$0xff]  ;;  %v4978_v42 = vpop.permute.xlu0 %4977 }
 0x3bb   : > { %4861 = vrot.lane.b32.xlu0 %v4821_v22, %s10662_s8  ;;  %4541 = vrot.lane.b32.xlu1 %v4821_v22, %s7634_s29  ;;  %v4270_v31 = vpop.permute.xlu1 %4269  ;;  %5023 = vst.msk [vmem:[#allocation5 + $0x38] sm:$0xff] %vm4571_vm8, %v4978_v42 }
 0x3bc   : > { %5388 = vmatprep.mubr.bf16.mxu1 %v5105_v61  ;;  %7506 = vmatmul.mubr.msk.bf16.gmra.mrb[36].mxu0 %vm10786_vm10, %v5112_v26  ;;  %4316 = vst.msk [vmem:[#allocation5 + $0x30] sm:$0xff] %vm4313_vm6, %v4270_v31  ;;  %vm10794_vm10 = vmmov %vm10784_vm1 }
 0x3bd   : > { %7509 = vmatprep.mubr.msk.bf16.mxu0 %vm10787_vm13, %v5115_v20  ;;  %vm10795_vm13 = vmmov %vm10784_vm1 }
 0x3be   : > { %v4723_v30 = vpop.permute.xlu0 %4722 }
 0x3bf   : > { %4989 = vrot.lane.b32.xlu0 %v4949_v34, %s7634_s29  ;;  %4285 = vrot.lane.b32.xlu1 %v4949_v34, %s7618_s24  ;;  %v4399_v56 = vpop.permute.xlu1 %4398  ;;  %4767 = vst.msk [vmem:[#allocation5 + $0x50] sm:$0xff] %vm4313_vm6, %v4723_v30  ;;  %v5104_v11 = vld [vmem:[#allocation5 + $0x18] sm:$0xff] }
 0x3c0   : > { %4445 = vst.msk [vmem:[#allocation5 + $0x30] sm:$0xff] %vm4442_vm7, %v4399_v56  ;;  %5389 = vmatmul.mubr.bf16.gmra.mrb[4].mxu1 %v5104_v11 }
 0x3c2   : > { %v4852_v36 = vpop.permute.xlu0 %4851  ;;  %v5108_v62 = vld [vmem:[#allocation5 + $0x38] sm:$0xff] }
 0x3c3   : > { %4734 = vrot.lane.b32.xlu0 %v4693_v10, %s7618_s24  ;;  %4414 = vrot.lane.b32.xlu1 %v4693_v10, %s10662_s8  ;;  %4896 = vst.msk [vmem:[#allocation5 + $0x50] sm:$0xff] %vm4442_vm7, %v4852_v36  ;;  %v4528_v4 = vpop.permute.xlu1 %4527 }
 0x3c4   : > { %7510 = vmatmul.mubr.msk.bf16.gmra.mrb[40].mxu0 %vm10788_vm9, %v5118_v59  ;;  %5396 = vmatprep.mubr.bf16.mxu1 %v5108_v62  ;;  %4574 = vst.msk [vmem:[#allocation5 + $0x30] sm:$0xff] %vm4571_vm8, %v4528_v4  ;;  %vm10796_vm9 = vmmov %vm10784_vm1 }
 0x3c5   : > { %7513 = vmatprep.mubr.msk.bf16.mxu0 %vm10789_vm3, %v5121_v60  ;;  %vm10797_vm3 = vmmov %vm10784_vm1 }
 0x3c6   : > { %v4980_v52 = vpop.permute.xlu0 %4979 }
 0x3c7   : > { %5024 = vst.msk [vmem:[#allocation5 + $0x50] sm:$0xff] %vm4571_vm8, %v4980_v52  ;;  %v4272_v6 = vpop.permute.xlu1 %4271 }
 0x3c8   : > { %4317 = vst.msk [vmem:[#allocation5 + $0x48] sm:$0xff] %vm4313_vm6, %v4272_v6 }
 0x3ca   : > { %v4725_v25 = vpop.permute.xlu0 %4724 }
 0x3cb   : > { %4768 = vst.msk [vmem:[#allocation5 + $0x68] sm:$0xff] %vm4313_vm6, %v4725_v25  ;;  %v4401_v8 = vpop.permute.xlu1 %4400  ;;  %v5107_v57 = vld [vmem:[#allocation5 + $0x30] sm:$0xff] }
 0x3cc   : > { %7514 = vmatmul.mubr.msk.bf16.gmra.mrb[44].mxu0 %vm10790_vm4, %v5124_v49  ;;  %4446 = vst.msk [vmem:[#allocation5 + $0x48] sm:$0xff] %vm4442_vm7, %v4401_v8  ;;  %5397 = vmatmul.mubr.bf16.gmra.mrb[8].mxu1 %v5107_v57  ;;  %vm10798_vm4 = vmmov %vm10784_vm1 }
 0x3cd   : > { %7517 = vmatprep.mubr.msk.bf16.mxu0 %vm10791_vm5, %v5127_v18  ;;  %vm10799_vm5 = vmmov %vm10784_vm1 }
 0x3ce   : > { %v4854_v9 = vpop.permute.xlu0 %4853  ;;  %v5111_v35 = vld [vmem:[#allocation5 + $0x50] sm:$0xff] }
 0x3cf   : > { %4897 = vst.msk [vmem:[#allocation5 + $0x68] sm:$0xff] %vm4442_vm7, %v4854_v9  ;;  %v4530_v13 = vpop.permute.xlu1 %4529  ;;  %5404 = vmatprep.mubr.bf16.mxu1 %v5111_v35 }
 0x3d0   : > { %4575 = vst.msk [vmem:[#allocation5 + $0x48] sm:$0xff] %vm4571_vm8, %v4530_v13 }
 0x3d2   : > { %v4982_v15 = vpop.permute.xlu0 %4981 }
 0x3d3   : > { %5025 = vst.msk [vmem:[#allocation5 + $0x68] sm:$0xff] %vm4571_vm8, %v4982_v15  ;;  %v4274_v23 = vpop.permute.xlu1 %4273 }
 0x3d4   : > { %4318 = vst.msk [vmem:[#allocation5 + $0x60] sm:$0xff] %vm4313_vm6, %v4274_v23 }
 0x3d6   : > { %v4727_v51 = vpop.permute.xlu0 %4726 }
 0x3d7   : > { %4769 = vst.msk [vmem:[#allocation5 + $0x80] sm:$0xff] %vm4313_vm6, %v4727_v51  ;;  %v4403_v2 = vpop.permute.xlu1 %4402  ;;  %v5110_v43 = vld [vmem:[#allocation5 + $0x48] sm:$0xff] }
 0x3d8   : > { %4447 = vst.msk [vmem:[#allocation5 + $0x60] sm:$0xff] %vm4442_vm7, %v4403_v2  ;;  %5405 = vmatmul.mubr.bf16.gmra.mrb[12].mxu1 %v5110_v43 }
 0x3da   : > { %v4856_v46 = vpop.permute.xlu0 %4855  ;;  %v5114_v55 = vld [vmem:[#allocation5 + $0x68] sm:$0xff] }
 0x3db   : > { %4898 = vst.msk [vmem:[#allocation5 + $0x80] sm:$0xff] %vm4442_vm7, %v4856_v46  ;;  %v4532_v16 = vpop.permute.xlu1 %4531  ;;  %5412 = vmatprep.mubr.bf16.mxu1 %v5114_v55 }
 0x3dc   : > { %4576 = vst.msk [vmem:[#allocation5 + $0x60] sm:$0xff] %vm4571_vm8, %v4532_v16 }
 0x3de   : > { %v4984_v27 = vpop.permute.xlu0 %4983 }
 0x3df   : > { %5026 = vst.msk [vmem:[#allocation5 + $0x80] sm:$0xff] %vm4571_vm8, %v4984_v27  ;;  %v4276_v21 = vpop.permute.xlu1 %4275 }
 0x3e0   : > { %4319 = vst.msk [vmem:[#allocation5 + $0x78] sm:$0xff] %vm4313_vm6, %v4276_v21 }
 0x3e2   : > { %v4729_v24 = vpop.permute.xlu0 %4728 }
 0x3e3   : > { %4770 = vst.msk [vmem:[#allocation5 + $0x98] sm:$0xff] %vm4313_vm6, %v4729_v24  ;;  %v4405_v37 = vpop.permute.xlu1 %4404  ;;  %v5113_v39 = vld [vmem:[#allocation5 + $0x60] sm:$0xff] }
 0x3e4   : > { %4448 = vst.msk [vmem:[#allocation5 + $0x78] sm:$0xff] %vm4442_vm7, %v4405_v37  ;;  %5413 = vmatmul.mubr.bf16.gmra.mrb[16].mxu1 %v5113_v39 }
 0x3e6   : > { %v4858_v12 = vpop.permute.xlu0 %4857  ;;  %v5117_v38 = vld [vmem:[#allocation5 + $0x80] sm:$0xff] }
 0x3e7   : > { %4899 = vst.msk [vmem:[#allocation5 + $0x98] sm:$0xff] %vm4442_vm7, %v4858_v12  ;;  %v4534_v63 = vpop.permute.xlu1 %4533  ;;  %5420 = vmatprep.mubr.bf16.mxu1 %v5117_v38 }
 0x3e8   : > { %4577 = vst.msk [vmem:[#allocation5 + $0x78] sm:$0xff] %vm4571_vm8, %v4534_v63  ;;  %v7487_v58 = vpop.f32.mrb[20].mxu0 }
 0x3e9   : > { %v3907_v22 = vadd.f32 %v9468_v40, %v7487_v58  ;;  %v3898_v34 = vpop.f32.mrb[21].mxu0 }
 0x3ea   : > { %v3899_v3 = vadd.f32 %v9468_v40, %v3898_v34  ;;  %v7488_v44 = vpop.f32.mrb[22].mxu0  ;;  %v4986_v7 = vpop.permute.xlu0 %4985  ;;  %v9852_v34 = vld [vmem:[%s10555_s2] ss:$0 sm:$0xff] }
 0x3eb   : > { %vm3967_vm0 = vcmp.ge.f32.partialorder %v3907_v22, 0.0  ;;  %v4006_v5 = vmul.f32 %v9475_v0, %v3907_v22  ;;  %v3910_v14 = vadd.f32 %v9468_v40, %v7488_v44  ;;  %v3901_v17 = vpop.f32.mrb[23].mxu0  ;;  %5027 = vst.msk [vmem:[#allocation5 + $0x98] sm:$0xff] %vm4571_vm8, %v4986_v7  ;;  %v4278_v41 = vpop.permute.xlu1 %4277 }
 0x3ec   : > { %vm3965_vm14 = vcmp.ge.f32.partialorder %v3899_v3, 0.0  ;;  %v4004_v53 = vmul.f32 %v9475_v0, %v3899_v3  ;;  %v3902_v10 = vadd.f32 %v9468_v40, %v3901_v17  ;;  %4320 = vst.msk [vmem:[#allocation5 + $0x90] sm:$0xff] %vm4313_vm6, %v4278_v41 }
 0x3ed   : > { %v4038_v29 = vsel %vm3967_vm0, %v3907_v22, %v4006_v5  ;;  %vm3968_vm12 = vcmp.ge.f32.partialorder %v3910_v14, 0.0  ;;  %v4007_v47 = vmul.f32 %v9475_v0, %v3910_v14  ;;  %vm10800_vm0 = vmmov %vm10784_vm1 }
 0x3ee   : > { %4127 = vst.msk [vmem:[#allocation4 + $0x121] sm:$0xff] %vm10792_vm15, %v4038_v29  ;;  %v4036_v33 = vsel %vm3965_vm14, %v3899_v3, %v4004_v53  ;;  %vm3966_vm11 = vcmp.ge.f32.partialorder %v3902_v10, 0.0  ;;  %v4005_v48 = vmul.f32 %v9475_v0, %v3902_v10  ;;  %v4731_v32 = vpop.permute.xlu0 %4730  ;;  %vm10801_vm14 = vmmov %vm10800_vm0  ;;  %vm5773_vm15 = vcmask 130048  }
 0x3ef   : > { %4125 = vst.msk [vmem:[#allocation4 + $0x109] sm:$0xff] %vm10784_vm1, %v4036_v33  ;;  %v4039_v28 = vsel %vm3968_vm12, %v3910_v14, %v4007_v47  ;;  %v4407_v50 = vpop.permute.xlu1 %4406  ;;  %v5116_v40 = vld [vmem:[#allocation5 + $0x78] sm:$0xff]  ;;  %vm10802_vm12 = vmmov %vm10800_vm0  ;;  %v9859_v14 = vld [vmem:[%s10556_s3] ss:$0 sm:$0xff] }
 0x3f0   : > { %4771 = vst.msk [vmem:[#allocation5 + $0xb0] sm:$0xff] %vm4313_vm6, %v4731_v32  ;;  %v4037_v19 = vsel %vm3966_vm11, %v3902_v10, %v4005_v48  ;;  %5421 = vmatmul.mubr.bf16.gmra.mrb[20].mxu1 %v5116_v40  ;;  %vm5776_vm11 = vcmask 123904  }
 0x3f1   : > { %4128 = vst.msk [vmem:[#allocation4 + $0x129] sm:$0xff] %vm10793_vm2, %v4039_v28 }
 0x3f2   : > { %4449 = vst.msk [vmem:[#allocation5 + $0x90] sm:$0xff] %vm4442_vm7, %v4407_v50  ;;  %v5120_v45 = vld [vmem:[#allocation5 + $0x98] sm:$0xff] }
 0x3f3   : > { %4126 = vst.msk [vmem:[#allocation4 + $0x111] sm:$0xff] %vm10794_vm10, %v4037_v19  ;;  %v4536_v61 = vpop.permute.xlu1 %4535  ;;  %5428 = vmatprep.mubr.bf16.mxu1 %v5120_v45 }
 0x3f4   : > { %4578 = vst.msk [vmem:[#allocation5 + $0x90] sm:$0xff] %vm4571_vm8, %v4536_v61 }
 0x3f5   : > { %v4801_v0 = vld [vmem:[#allocation4 + $0x120] sm:$0xff]  ;;  %5778 = vst.msk [vmem:[#allocation6 + $0x18] sm:$0xff] %vm5773_vm15, %v7610_v1  ;;  %5779 = vst.msk [vmem:[#allocation6 + $0x20] sm:$0xff] %vm5773_vm15, %v7610_v1 }
 0x3f6   : > { %v4799_v54 = vld [vmem:[#allocation4 + $0x108] sm:$0xff]  ;;  %5774 = vst.msk [vmem:[#allocation6] sm:$0xff] %vm5773_vm15, %v7610_v1  ;;  %5775 = vst.msk [vmem:[#allocation6 + $0x8] sm:$0xff] %vm5773_vm15, %v7610_v1 }
 0x3f7   : > { %v4927_v26 = vld [vmem:[#allocation4 + $0x109] sm:$0xff]  ;;  %v4929_v20 = vld [vmem:[#allocation4 + $0x121] sm:$0xff]  ;;  %v4280_v42 = vpop.permute.xlu1 %4279  ;;  %5781 = vst.msk [vmem:[#allocation6 + $0x30] sm:$0xff] %vm5773_vm15, %v7610_v1  ;;  %5782 = vst.msk [vmem:[#allocation6 + $0x38] sm:$0xff] %vm5773_vm15, %v7610_v1 }
 0x3f8   : > { %v5057_v31 = vld [vmem:[#allocation4 + $0x122] sm:$0xff]  ;;  %v5058_v30 = vld [vmem:[#allocation4 + $0x12a] sm:$0xff]  ;;  %4321 = vst.msk [vmem:[#allocation5 + $0xa8] sm:$0xff] %vm4313_vm6, %v4280_v42 }
 0x3f9   : > { %v4802_v56 = vld [vmem:[#allocation4 + $0x128] sm:$0xff]  ;;  %v5079_v36 = vpack.c.bf16 %v5058_v30, %v5057_v31  ;;  %5784 = vst.msk [vmem:[#allocation6 + $0x48] sm:$0xff] %vm5773_vm15, %v7610_v1  ;;  %5785 = vst.msk [vmem:[#allocation6 + $0x50] sm:$0xff] %vm5773_vm15, %v7610_v1 }
 0x3fa   : > { %v4800_v11 = vld [vmem:[#allocation4 + $0x110] sm:$0xff]  ;;  %v4823_v62 = vpack.c.bf16 %v4802_v56, %v4801_v0  ;;  %5787 = vst.msk [vmem:[#allocation6 + $0x60] sm:$0xff] %vm5773_vm15, %v7610_v1  ;;  %5788 = vst.msk [vmem:[#allocation6 + $0x68] sm:$0xff] %vm5773_vm15, %v7610_v1 }
 0x3fb   : > { %v4928_v59 = vld [vmem:[#allocation4 + $0x111] sm:$0xff]  ;;  %v4822_v4 = vpack.c.bf16 %v4800_v11, %v4799_v54  ;;  %v4930_v49 = vld [vmem:[#allocation4 + $0x129] sm:$0xff]  ;;  %5095 = vst.msk [vmem:[#allocation5 + $0x100] sm:$0xff] %vm10795_vm13, %v5079_v36  ;;  %v4409_v8 = vpop.permute.xlu1 %4408  ;;  %v5119_v57 = vld [vmem:[#allocation5 + $0x90] sm:$0xff] }
 0x3fc   : > { %v5055_v60 = vld [vmem:[#allocation4 + $0x10a] sm:$0xff]  ;;  %v4950_v52 = vpack.c.bf16 %v4928_v59, %v4927_v26  ;;  %v5056_v6 = vld [vmem:[#allocation4 + $0x112] sm:$0xff]  ;;  %v4951_v25 = vpack.c.bf16 %v4930_v49, %v4929_v20  ;;  %4197 = vst.msk [vmem:[#allocation5 + $0x120] sm:$0xff] %vm10796_vm9, %v4823_v62  ;;  %5429 = vmatmul.mubr.bf16.gmra.mrb[24].mxu1 %v5119_v57  ;;  %vm10803_vm13 = vmmov %vm10800_vm0 }
 0x3fd   : > { %v5078_v18 = vpack.c.bf16 %v5056_v6, %v5055_v60  ;;  %4863 = vrot.lane.b32.xlu0 %v4822_v4, %s10662_s8  ;;  %4543 = vrot.lane.b32.xlu1 %v4822_v4, %s7634_s29  ;;  %4196 = vst.msk [vmem:[#allocation5 + $0x108] sm:$0xff] %vm10797_vm3, %v4822_v4  ;;  %vm10804_vm3 = vmmov %vm10800_vm0 }
 0x3fe   : > { %4646 = vst.msk [vmem:[#allocation5 + $0xf8] sm:$0xff] %vm10798_vm4, %v4950_v52  ;;  %vm10805_vm4 = vmmov %vm10800_vm0 }
 0x3ff   : > { %4450 = vst.msk [vmem:[#allocation5 + $0xa8] sm:$0xff] %vm4442_vm7, %v4409_v8  ;;  %v4538_v9 = vpop.permute.xlu1 %4537 }
 0x400   : > { %5094 = vst.msk [vmem:[#allocation5 + $0xe8] sm:$0xff] %vm10799_vm5, %v5078_v18  ;;  %vm10806_vm5 = vmmov %vm10800_vm0 }
 0x401   : > { %4647 = vst.msk [vmem:[#allocation5 + $0x110] sm:$0xff] %vm10800_vm0, %v4951_v25  ;;  %4991 = vrot.lane.b32.xlu0 %v4950_v52, %s7634_s29  ;;  %4287 = vrot.lane.b32.xlu1 %v4950_v52, %s7618_s24 }
 0x402   : > { %4579 = vst.msk [vmem:[#allocation5 + $0xa8] sm:$0xff] %vm4571_vm8, %v4538_v9  ;;  %v5133_v35 = vld [vmem:[#allocation5 + $0x100] sm:$0xff] }
 0x403   : > { %v4282_v15 = vpop.permute.xlu1 %4281  ;;  %5790 = vst.msk [vmem:[#allocation6 + $0x78] sm:$0xff] %vm5773_vm15, %v7610_v1  ;;  %5791 = vst.msk [vmem:[#allocation6 + $0x80] sm:$0xff] %vm5773_vm15, %v7610_v1 }
 0x404   : > { %4322 = vst.msk [vmem:[#allocation5 + $0xc0] sm:$0xff] %vm4313_vm6, %v4282_v15 }
 0x405   : > { %4736 = vrot.lane.b32.xlu0 %v5078_v18, %s7618_s24  ;;  %4416 = vrot.lane.b32.xlu1 %v5078_v18, %s10662_s8  ;;  %5793 = vst.msk [vmem:[#allocation6 + $0x90] sm:$0xff] %vm5773_vm15, %v7610_v1  ;;  %5794 = vst.msk [vmem:[#allocation6 + $0x98] sm:$0xff] %vm5773_vm15, %v7610_v1 }
 0x406   : > { %5796 = vst.msk [vmem:[#allocation6 + $0xa8] sm:$0xff] %vm5773_vm15, %v7610_v1  ;;  %5797 = vst.msk [vmem:[#allocation6 + $0xb0] sm:$0xff] %vm5773_vm15, %v7610_v1 }
 0x407   : > { %v5130_v13 = vld [vmem:[#allocation5 + $0xe8] sm:$0xff]  ;;  %v4411_v23 = vpop.permute.xlu1 %4410  ;;  %5799 = vst.msk [vmem:[#allocation6 + $0xc0] sm:$0xff] %vm5773_vm15, %v7610_v1  ;;  %5800 = vst.msk [vmem:[#allocation6 + $0xc8] sm:$0xff] %vm5773_vm15, %v7610_v1 }
 0x408   : > { %7518 = vmatmul.mubr.msk.bf16.gmra.mrb[48].mxu0 %vm10801_vm14, %v5130_v13  ;;  %4451 = vst.msk [vmem:[#allocation5 + $0xc0] sm:$0xff] %vm4442_vm7, %v4411_v23  ;;  %vm10807_vm14 = vmmov %vm10800_vm0 }
 0x409   : > { %7521 = vmatprep.mubr.msk.bf16.mxu0 %vm10802_vm12, %v5133_v35  ;;  %4865 = vrot.lane.b32.xlu0 %v4823_v62, %s10662_s8  ;;  %5802 = vst.msk [vmem:[#allocation6 + $0xd8] sm:$0xff] %vm5773_vm15, %v7610_v1  ;;  %5803 = vst.msk [vmem:[#allocation6 + $0xe0] sm:$0xff] %vm5773_vm15, %v7610_v1  ;;  %v5122_v24 = vld [vmem:[#allocation5 + $0xa8] sm:$0xff] }
 0x40a   : > { %4545 = vrot.lane.b32.xlu1 %v4823_v62, %s7634_s29  ;;  %5805 = vst.msk [vmem:[#allocation6 + $0xf0] sm:$0xff] %vm5773_vm15, %v7610_v1  ;;  %5806 = vst.msk [vmem:[#allocation6 + $0xf8] sm:$0xff] %vm5773_vm15, %v7610_v1 }
 0x40b   : > { %5808 = vst.msk [vmem:[#allocation6 + $0x108] sm:$0xff] %vm5773_vm15, %v7610_v1  ;;  %5809 = vst.msk [vmem:[#allocation6 + $0x110] sm:$0xff] %vm5773_vm15, %v7610_v1 }
 0x40c   : > { %5811 = vst.msk [vmem:[#allocation6 + $0x120] sm:$0xff] %vm5773_vm15, %v7610_v1  ;;  %5812 = vst.msk [vmem:[#allocation6 + $0x128] sm:$0xff] %vm5773_vm15, %v7610_v1 }
 0x40d   : > { %4993 = vrot.lane.b32.xlu0 %v4951_v25, %s7634_s29  ;;  %5814 = vst.msk [vmem:[#allocation6 + $0x138] sm:$0xff] %vm5773_vm15, %v7610_v1  ;;  %5815 = vst.msk [vmem:[#allocation6 + $0x140] sm:$0xff] %vm5773_vm15, %v7610_v1 }
 0x40e   : > { %4289 = vrot.lane.b32.xlu1 %v4951_v25, %s7618_s24  ;;  %5817 = vst.msk [vmem:[#allocation6 + $0x150] sm:$0xff] %vm5773_vm15, %v7610_v1  ;;  %5818 = vst.msk [vmem:[#allocation6 + $0x158] sm:$0xff] %vm5773_vm15, %v7610_v1 }
 0x40f   : > { %5820 = vst.msk [vmem:[#allocation6 + $0x168] sm:$0xff] %vm5773_vm15, %v7610_v1  ;;  %5821 = vst.msk [vmem:[#allocation6 + $0x170] sm:$0xff] %vm5773_vm15, %v7610_v1 }
 0x410   : > { %5823 = vst.msk [vmem:[#allocation6 + $0x180] sm:$0xff] %vm5773_vm15, %v7610_v1  ;;  %5824 = vst.msk [vmem:[#allocation6 + $0x188] sm:$0xff] %vm5773_vm15, %v7610_v1 }
 0x411   : > { %4738 = vrot.lane.b32.xlu0 %v5079_v36, %s7618_s24  ;;  %5826 = vst.msk [vmem:[#allocation6 + $0x198] sm:$0xff] %vm5773_vm15, %v7610_v1  ;;  %5827 = vst.msk [vmem:[#allocation6 + $0x1a0] sm:$0xff] %vm5773_vm15, %v7610_v1 }
 0x412   : > { %4418 = vrot.lane.b32.xlu1 %v5079_v36, %s10662_s8  ;;  %5780 = vst.msk [vmem:[#allocation6 + $0x28] sm:$0x3] %vm5776_vm11, %v7610_v1  ;;  %5777 = vst.msk [vmem:[#allocation6 + $0x10] sm:$0x3] %vm5776_vm11, %v7610_v1 }
 0x413   : > { %5783 = vst.msk [vmem:[#allocation6 + $0x40] sm:$0x3] %vm5776_vm11, %v7610_v1  ;;  %5786 = vst.msk [vmem:[#allocation6 + $0x58] sm:$0x3] %vm5776_vm11, %v7610_v1 }
 0x414   : > { %5789 = vst.msk [vmem:[#allocation6 + $0x70] sm:$0x3] %vm5776_vm11, %v7610_v1  ;;  %5792 = vst.msk [vmem:[#allocation6 + $0x88] sm:$0x3] %vm5776_vm11, %v7610_v1 }
 0x415   : > { %5795 = vst.msk [vmem:[#allocation6 + $0xa0] sm:$0x3] %vm5776_vm11, %v7610_v1  ;;  %5798 = vst.msk [vmem:[#allocation6 + $0xb8] sm:$0x3] %vm5776_vm11, %v7610_v1 }
 0x416   : > { %5801 = vst.msk [vmem:[#allocation6 + $0xd0] sm:$0x3] %vm5776_vm11, %v7610_v1  ;;  %5804 = vst.msk [vmem:[#allocation6 + $0xe8] sm:$0x3] %vm5776_vm11, %v7610_v1 }
 0x417   : > { %5807 = vst.msk [vmem:[#allocation6 + $0x100] sm:$0x3] %vm5776_vm11, %v7610_v1  ;;  %5810 = vst.msk [vmem:[#allocation6 + $0x118] sm:$0x3] %vm5776_vm11, %v7610_v1 }
 0x418   : > { %5813 = vst.msk [vmem:[#allocation6 + $0x130] sm:$0x3] %vm5776_vm11, %v7610_v1  ;;  %5816 = vst.msk [vmem:[#allocation6 + $0x148] sm:$0x3] %vm5776_vm11, %v7610_v1 }
 0x419   : > { %5819 = vst.msk [vmem:[#allocation6 + $0x160] sm:$0x3] %vm5776_vm11, %v7610_v1  ;;  %5822 = vst.msk [vmem:[#allocation6 + $0x178] sm:$0x3] %vm5776_vm11, %v7610_v1 }
 0x41a   : > { %5825 = vst.msk [vmem:[#allocation6 + $0x190] sm:$0x3] %vm5776_vm11, %v7610_v1  ;;  %5828 = vst.msk [vmem:[#allocation6 + $0x1a8] sm:$0x3] %vm5776_vm11, %v7610_v1 }
 0x41b   : > { %vm10808_vm12 = vmmov %vm10800_vm0 }
 0x41c   : > { %vm10809_vm11 = vmmov %vm10800_vm0 }
 0x421   : > { %v4860_v51 = vpop.permute.xlu0 %4859  ;;  %v4540_v2 = vpop.permute.xlu1 %4539 }
 0x422   : > { %4900 = vst.msk [vmem:[#allocation5 + $0xb0] sm:$0xff] %vm4442_vm7, %v4860_v51 }
 0x423   : > { %4580 = vst.msk [vmem:[#allocation5 + $0xc0] sm:$0xff] %vm4571_vm8, %v4540_v2 }
 0x425   : > { %v4988_v43 = vpop.permute.xlu0 %4987  ;;  %v4284_v46 = vpop.permute.xlu1 %4283 }
 0x426   : > { %5028 = vst.msk [vmem:[#allocation5 + $0xb0] sm:$0xff] %vm4571_vm8, %v4988_v43 }
 0x427   : > { %4323 = vst.msk [vmem:[#allocation5 + $0xd8] sm:$0xff] %vm4313_vm6, %v4284_v46 }
 0x429   : > { %v4733_v55 = vpop.permute.xlu0 %4732  ;;  %v4413_v16 = vpop.permute.xlu1 %4412 }
 0x42a   : > { %4772 = vst.msk [vmem:[#allocation5 + $0xc8] sm:$0xff] %vm4313_vm6, %v4733_v55  ;;  %v5125_v58 = vld [vmem:[#allocation5 + $0xc0] sm:$0xff] }
 0x42b   : > { %4452 = vst.msk [vmem:[#allocation5 + $0xd8] sm:$0xff] %vm4442_vm7, %v4413_v16 }
 0x42d   : > { %v4862_v27 = vpop.permute.xlu0 %4861  ;;  %v4542_v1 = vpop.permute.xlu1 %4541  ;;  %v5123_v21 = vld [vmem:[#allocation5 + $0xb0] sm:$0xff] }
 0x42e   : > { %4901 = vst.msk [vmem:[#allocation5 + $0xc8] sm:$0xff] %vm4442_vm7, %v4862_v27  ;;  %5436 = vmatprep.mubr.bf16.mxu1 %v5123_v21 }
 0x42f   : > { %4581 = vst.msk [vmem:[#allocation5 + $0xd8] sm:$0xff] %vm4571_vm8, %v4542_v1  ;;  %5437 = vmatmul.mubr.bf16.gmra.mrb[28].mxu1 %v5122_v24 }
 0x431   : > { %v4990_v37 = vpop.permute.xlu0 %4989  ;;  %v4286_v39 = vpop.permute.xlu1 %4285 }
 0x432   : > { %5029 = vst.msk [vmem:[#allocation5 + $0xc8] sm:$0xff] %vm4571_vm8, %v4990_v37 }
 0x433   : > { %4324 = vst.msk [vmem:[#allocation5 + $0xf0] sm:$0xff] %vm4313_vm6, %v4286_v39 }
 0x435   : > { %v4735_v12 = vpop.permute.xlu0 %4734  ;;  %v4415_v38 = vpop.permute.xlu1 %4414 }
 0x436   : > { %4773 = vst.msk [vmem:[#allocation5 + $0xe0] sm:$0xff] %vm4313_vm6, %v4735_v12  ;;  %v5128_v23 = vld [vmem:[#allocation5 + $0xd8] sm:$0xff] }
 0x437   : > { %4453 = vst.msk [vmem:[#allocation5 + $0xf0] sm:$0xff] %vm4442_vm7, %v4415_v38 }
 0x439   : > { %v5126_v63 = vld [vmem:[#allocation5 + $0xc8] sm:$0xff] }
 0x43a   : > { %5444 = vmatprep.mubr.bf16.mxu1 %v5126_v63  ;;  %v7491_v22 = vpop.f32.mrb[24].mxu0 }
 0x43b   : > { %5445 = vmatmul.mubr.bf16.gmra.mrb[32].mxu1 %v5125_v58  ;;  %v3923_v3 = vadd.f32 %v9852_v34, %v7491_v22  ;;  %v3914_v44 = vpop.f32.mrb[25].mxu0 }
 0x43c   : > { %v3915_v7 = vadd.f32 %v9852_v34, %v3914_v44  ;;  %v7492_v5 = vpop.f32.mrb[26].mxu0 }
 0x43d   : > { %vm3971_vm1 = vcmp.ge.f32.partialorder %v3923_v3, 0.0  ;;  %v4010_v17 = vmul.f32 %v9859_v14, %v3923_v3  ;;  %v3926_v41 = vadd.f32 %v9852_v34, %v7492_v5  ;;  %v3917_v53 = vpop.f32.mrb[27].mxu0 }
 0x43e   : > { %vm3969_vm2 = vcmp.ge.f32.partialorder %v3915_v7, 0.0  ;;  %v4008_v10 = vmul.f32 %v9859_v14, %v3915_v7  ;;  %v3918_v29 = vadd.f32 %v9852_v34, %v3917_v53 }
 0x43f   : > { %v4042_v47 = vsel %vm3971_vm1, %v3923_v3, %v4010_v17  ;;  %vm3972_vm10 = vcmp.ge.f32.partialorder %v3926_v41, 0.0  ;;  %v4011_v33 = vmul.f32 %v9859_v14, %v3926_v41  ;;  %vm10810_vm1 = vmmov %vm10800_vm0 }
 0x440   : > { %4131 = vst.msk [vmem:[#allocation4 + $0x151] sm:$0xff] %vm10803_vm13, %v4042_v47  ;;  %v4040_v48 = vsel %vm3969_vm2, %v3915_v7, %v4008_v10  ;;  %vm3970_vm9 = vcmp.ge.f32.partialorder %v3918_v29, 0.0  ;;  %v4009_v32 = vmul.f32 %v9859_v14, %v3918_v29  ;;  %vm10811_vm2 = vmmov %vm10800_vm0 }
 0x441   : > { %4129 = vst.msk [vmem:[#allocation4 + $0x139] sm:$0xff] %vm10804_vm3, %v4040_v48  ;;  %v4043_v28 = vsel %vm3972_vm10, %v3926_v41, %v4011_v33  ;;  %vm10812_vm10 = vmmov %vm10800_vm0 }
 0x442   : > { %4132 = vst.msk [vmem:[#allocation4 + $0x159] sm:$0xff] %vm10805_vm4, %v4043_v28  ;;  %v4041_v50 = vsel %vm3970_vm9, %v3918_v29, %v4009_v32  ;;  %vm10813_vm13 = vmmov %vm10800_vm0  ;;  %v9922_v29 = vld [vmem:[%s10558_s5] ss:$0 sm:$0xff] }
 0x443   : > { %4130 = vst.msk [vmem:[#allocation4 + $0x141] sm:$0xff] %vm10806_vm5, %v4041_v50  ;;  %vm10814_vm5 = vmmov %vm10800_vm0  ;;  %v9927_v28 = vld [vmem:[%s10559_s6] ss:$0 sm:$0xff] }
 0x447   : > { %v4805_v40 = vld [vmem:[#allocation4 + $0x150] sm:$0xff] }
 0x448   : > { %v4803_v19 = vld [vmem:[#allocation4 + $0x138] sm:$0xff] }
 0x449   : > { %v4931_v45 = vld [vmem:[#allocation4 + $0x139] sm:$0xff]  ;;  %v4933_v61 = vld [vmem:[#allocation4 + $0x151] sm:$0xff] }
 0x44a   : > { %v5061_v0 = vld [vmem:[#allocation4 + $0x152] sm:$0xff]  ;;  %v5062_v54 = vld [vmem:[#allocation4 + $0x15a] sm:$0xff]  ;;  %v5060_v60 = vld [vmem:[#allocation4 + $0x142] sm:$0xff] }
 0x44b   : > { %v4806_v26 = vld [vmem:[#allocation4 + $0x158] sm:$0xff]  ;;  %v4804_v20 = vld [vmem:[#allocation4 + $0x140] sm:$0xff]  ;;  %v5081_v30 = vpack.c.bf16 %v5062_v54, %v5061_v0 }
 0x44c   : > { %v4932_v42 = vld [vmem:[#allocation4 + $0x141] sm:$0xff]  ;;  %v4825_v56 = vpack.c.bf16 %v4806_v26, %v4805_v40  ;;  %v4824_v11 = vpack.c.bf16 %v4804_v20, %v4803_v19  ;;  %v4934_v36 = vld [vmem:[#allocation4 + $0x159] sm:$0xff] }
 0x44d   : > { %v5059_v31 = vld [vmem:[#allocation4 + $0x13a] sm:$0xff]  ;;  %v4952_v59 = vpack.c.bf16 %v4932_v42, %v4931_v45  ;;  %5097 = vst.msk [vmem:[#allocation5 + $0x130] sm:$0xff] %vm10800_vm0, %v5081_v30  ;;  %v4953_v4 = vpack.c.bf16 %v4934_v36, %v4933_v61 }
 0x44e   : > { %v5080_v62 = vpack.c.bf16 %v5060_v60, %v5059_v31  ;;  %4199 = vst.msk [vmem:[#allocation5 + $0x150] sm:$0xff] %vm10807_vm14, %v4825_v56  ;;  %4867 = vrot.lane.b32.xlu0 %v4824_v11, %s10662_s8  ;;  %4547 = vrot.lane.b32.xlu1 %v4824_v11, %s7634_s29  ;;  %vm10815_vm14 = vmmov %vm10810_vm1 }
 0x44f   : > { %4198 = vst.msk [vmem:[#allocation5 + $0x138] sm:$0xff] %vm10808_vm12, %v4824_v11  ;;  %vm10816_vm12 = vmmov %vm10810_vm1 }
 0x450   : > { %4648 = vst.msk [vmem:[#allocation5 + $0x128] sm:$0xff] %vm10809_vm11, %v4952_v59  ;;  %vm10817_vm11 = vmmov %vm10810_vm1 }
 0x451   : > { %5096 = vst.msk [vmem:[#allocation5 + $0x118] sm:$0xff] %vm10810_vm1, %v5080_v62 }
 0x452   : > { %4649 = vst.msk [vmem:[#allocation5 + $0x140] sm:$0xff] %vm10811_vm2, %v4953_v4  ;;  %4995 = vrot.lane.b32.xlu0 %v4952_v59, %s7634_s29  ;;  %4291 = vrot.lane.b32.xlu1 %v4952_v59, %s7618_s24  ;;  %vm10818_vm2 = vmmov %vm10810_vm1 }
 0x454   : > { %v5139_v52 = vld [vmem:[#allocation5 + $0x130] sm:$0xff] }
 0x456   : > { %4740 = vrot.lane.b32.xlu0 %v5080_v62, %s7618_s24  ;;  %4420 = vrot.lane.b32.xlu1 %v5080_v62, %s10662_s8 }
 0x458   : > { %v5136_v6 = vld [vmem:[#allocation5 + $0x118] sm:$0xff] }
 0x459   : > { %7522 = vmatmul.mubr.msk.bf16.gmra.mrb[52].mxu0 %vm10812_vm10, %v5136_v6  ;;  %vm10819_vm10 = vmmov %vm10810_vm1 }
 0x45a   : > { %7525 = vmatprep.mubr.msk.bf16.mxu0 %vm10813_vm13, %v5139_v52  ;;  %4869 = vrot.lane.b32.xlu0 %v4825_v56, %s10662_s8 }
 0x45b   : > { %4549 = vrot.lane.b32.xlu1 %v4825_v56, %s7634_s29 }
 0x45e   : > { %4997 = vrot.lane.b32.xlu0 %v4953_v4, %s7634_s29 }
 0x45f   : > { %4293 = vrot.lane.b32.xlu1 %v4953_v4, %s7618_s24 }
 0x462   : > { %4742 = vrot.lane.b32.xlu0 %v5081_v30, %s7618_s24 }
 0x463   : > { %4422 = vrot.lane.b32.xlu1 %v5081_v30, %s10662_s8 }
 0x46f   : > { %v4864_v49 = vpop.permute.xlu0 %4863  ;;  %v4544_v18 = vpop.permute.xlu1 %4543 }
 0x470   : > { %4902 = vst.msk [vmem:[#allocation5 + $0xe0] sm:$0xff] %vm4442_vm7, %v4864_v49 }
 0x471   : > { %4582 = vst.msk [vmem:[#allocation5 + $0xf0] sm:$0xff] %vm4571_vm8, %v4544_v18 }
 0x473   : > { %v4992_v25 = vpop.permute.xlu0 %4991  ;;  %v4288_v8 = vpop.permute.xlu1 %4287 }
 0x474   : > { %5030 = vst.msk [vmem:[#allocation5 + $0xe0] sm:$0xff] %vm4571_vm8, %v4992_v25 }
 0x475   : > { %4325 = vst.msk [vmem:[#allocation5 + $0x108] sm:$0xff] %vm4313_vm6, %v4288_v8 }
 0x477   : > { %v4737_v57 = vpop.permute.xlu0 %4736  ;;  %v4417_v9 = vpop.permute.xlu1 %4416 }
 0x478   : > { %4774 = vst.msk [vmem:[#allocation5 + $0xf8] sm:$0xff] %vm4313_vm6, %v4737_v57  ;;  %v5131_v53 = vld [vmem:[#allocation5 + $0xf0] sm:$0xff] }
 0x479   : > { %4454 = vst.msk [vmem:[#allocation5 + $0x108] sm:$0xff] %vm4442_vm7, %v4417_v9 }
 0x47b   : > { %v4866_v35 = vpop.permute.xlu0 %4865  ;;  %v5129_v15 = vld [vmem:[#allocation5 + $0xe0] sm:$0xff] }
 0x47c   : > { %v4546_v13 = vpop.permute.xlu1 %4545  ;;  %4903 = vst.msk [vmem:[#allocation5 + $0xf8] sm:$0xff] %vm4442_vm7, %v4866_v35  ;;  %5452 = vmatprep.mubr.bf16.mxu1 %v5129_v15 }
 0x47d   : > { %4583 = vst.msk [vmem:[#allocation5 + $0x108] sm:$0xff] %vm4571_vm8, %v4546_v13  ;;  %5453 = vmatmul.mubr.bf16.gmra.mrb[36].mxu1 %v5128_v23 }
 0x47e   : > { %v7495_v51 = vpop.f32.mrb[28].mxu0 }
 0x47f   : > { %v3939_v2 = vadd.f32 %v9852_v34, %v7495_v51  ;;  %v3930_v43 = vpop.f32.mrb[29].mxu0  ;;  %v4994_v16 = vpop.permute.xlu0 %4993 }
 0x480   : > { %v3931_v46 = vadd.f32 %v9852_v34, %v3930_v43  ;;  %v7496_v55 = vpop.f32.mrb[30].mxu0  ;;  %5031 = vst.msk [vmem:[#allocation5 + $0xf8] sm:$0xff] %vm4571_vm8, %v4994_v16  ;;  %v4290_v21 = vpop.permute.xlu1 %4289  ;;  %v5067_v16 = vld [vmem:[#allocation4 + $0x19a] sm:$0xff] }
 0x481   : > { %vm3975_vm9 = vcmp.ge.f32.partialorder %v3939_v2, 0.0  ;;  %v4014_v27 = vmul.f32 %v9859_v14, %v3939_v2  ;;  %v3942_v1 = vadd.f32 %v9852_v34, %v7496_v55  ;;  %v3933_v24 = vpop.f32.mrb[31].mxu0  ;;  %4326 = vst.msk [vmem:[#allocation5 + $0x120] sm:$0xff] %vm4313_vm6, %v4290_v21 }
 0x482   : > { %vm3973_vm3 = vcmp.ge.f32.partialorder %v3931_v46, 0.0  ;;  %v4012_v37 = vmul.f32 %v9859_v14, %v3931_v46  ;;  %v3934_v39 = vadd.f32 %v9852_v34, %v3933_v24 }
 0x483   : > { %v4046_v12 = vsel %vm3975_vm9, %v3939_v2, %v4014_v27  ;;  %vm3976_vm4 = vcmp.ge.f32.partialorder %v3942_v1, 0.0  ;;  %v4015_v38 = vmul.f32 %v9859_v14, %v3942_v1  ;;  %v4739_v22 = vpop.permute.xlu0 %4738  ;;  %vm10820_vm9 = vmmov %vm10810_vm1  ;;  %v5068_v27 = vld [vmem:[#allocation4 + $0x1a2] sm:$0xff] }
 0x484   : > { %4135 = vst.msk [vmem:[#allocation4 + $0x181] sm:$0xff] %vm10814_vm5, %v4046_v12  ;;  %v4044_v63 = vsel %vm3973_vm3, %v3931_v46, %v4012_v37  ;;  %vm3974_vm0 = vcmp.ge.f32.partialorder %v3934_v39, 0.0  ;;  %v4013_v58 = vmul.f32 %v9859_v14, %v3934_v39  ;;  %v4419_v44 = vpop.permute.xlu1 %4418  ;;  %vm10821_vm3 = vmmov %vm10810_vm1  ;;  %v6055_v37 = vld [vmem:[#allocation6 + $0x2] sm:$0xff] }
 0x485   : > { %4133 = vst.msk [vmem:[#allocation4 + $0x169] sm:$0xff] %vm10815_vm14, %v4044_v63  ;;  %v4047_v3 = vsel %vm3976_vm4, %v3942_v1, %v4015_v38  ;;  %vm10822_vm5 = vmmov %vm10810_vm1 }
 0x486   : > { %4775 = vst.msk [vmem:[#allocation5 + $0x110] sm:$0xff] %vm4313_vm6, %v4739_v22  ;;  %v4045_v34 = vsel %vm3974_vm0, %v3934_v39, %v4013_v58  ;;  %v5084_v39 = vpack.c.bf16 %v5068_v27, %v5067_v16  ;;  %v6056_v22 = vld [vmem:[#allocation6 + $0xa] sm:$0xff]  ;;  %vm10823_vm0 = vmmov %vm10810_vm1 }
 0x487   : > { %4136 = vst.msk [vmem:[#allocation4 + $0x189] sm:$0xff] %vm10816_vm12, %v4047_v3  ;;  %v9914_v7 = vpop.f32.mrb[32].mxu0  ;;  %v5132_v14 = vld [vmem:[#allocation5 + $0xf8] sm:$0xff]  ;;  %vm10824_vm14 = vmmov %vm10823_vm0 }
 0x488   : > { %4455 = vst.msk [vmem:[#allocation5 + $0x120] sm:$0xff] %vm4442_vm7, %v4419_v44  ;;  %v5543_v5 = vpop.f32.mrb[33].mxu0  ;;  %5460 = vmatprep.mubr.bf16.mxu1 %v5132_v14  ;;  %v7337_v10 = vpop.f32.mrb[0].mxu1 }
 0x489   : > { %4134 = vst.msk [vmem:[#allocation4 + $0x171] sm:$0xff] %vm10817_vm11, %v4045_v34  ;;  %v9917_v17 = vpop.f32.mrb[34].mxu0  ;;  %5461 = vmatmul.mubr.bf16.gmra.mrb[40].mxu1 %v5131_v53  ;;  %v7338_v47 = vpop.f32.mrb[1].mxu1 }
 0x48a   : > { %v5546_v41 = vpop.f32.mrb[35].mxu0  ;;  %v7339_v33 = vadd.f32 %v7338_v47, %v7337_v10  ;;  %v7340_v48 = vpop.f32.mrb[2].mxu1  ;;  %5100 = vst.msk [vmem:[#allocation5 + $0x178] sm:$0xff] %vm10824_vm14, %v5084_v39 }
 0x48b   : > { %v7341_v50 = vpop.f32.mrb[3].mxu1  ;;  %v4937_v60 = vld [vmem:[#allocation4 + $0x181] sm:$0xff] }
 0x48c   : > { %v4807_v32 = vld [vmem:[#allocation4 + $0x168] sm:$0xff]  ;;  %v5383_v61 = vadd.f32 %v7339_v33, %v9922_v29  ;;  %v7342_v0 = vadd.f32 %v7341_v50, %v7340_v48  ;;  %v4809_v58 = vld [vmem:[#allocation4 + $0x180] sm:$0xff] }
 0x48d   : > { %v4935_v40 = vld [vmem:[#allocation4 + $0x169] sm:$0xff] }
 0x48e   : > { %v5065_v19 = vld [vmem:[#allocation4 + $0x182] sm:$0xff]  ;;  %v5066_v45 = vld [vmem:[#allocation4 + $0x18a] sm:$0xff]  ;;  %v5544_v62 = vadd.f32 %v5543_v5, %v5383_v61  ;;  %v5386_v4 = vadd.f32 %v7342_v0, %v9922_v29  ;;  %v6087_v5 = vpack.c.bf16 %v6056_v22, %v6055_v37  ;;  %v5863_v61 = vld [vmem:[#allocation6 + $0x8] sm:$0xff] }
 0x48f   : > { %v9930_v54 = vpop.f32.mrb[36].mxu0  ;;  %v9932_v31 = vpack.c.bf16 %v5066_v45, %v5065_v19  ;;  %v4938_v36 = vld [vmem:[#allocation4 + $0x189] sm:$0xff] }
 0x490   : > { %v4808_v26 = vld [vmem:[#allocation4 + $0x170] sm:$0xff]  ;;  %v9934_v30 = vpop.f32.mrb[37].mxu0  ;;  %v9941_v49 = vpack.c.bf16 %v4938_v36, %v4937_v60  ;;  %vm5670_vm13 = vcmp.ge.f32.partialorder %v5544_v62, 0.0  ;;  %v5709_v25 = vmul.f32 %v9927_v28, %v5544_v62  ;;  %v5547_v8 = vadd.f32 %v5546_v41, %v5386_v4  ;;  %v4810_v55 = vld [vmem:[#allocation4 + $0x188] sm:$0xff] }
 0x491   : > { %v4936_v20 = vld [vmem:[#allocation4 + $0x171] sm:$0xff]  ;;  %v4826_v56 = vpack.c.bf16 %v4808_v26, %v4807_v32  ;;  %v9937_v52 = vpop.f32.mrb[38].mxu0  ;;  %5099 = vst.msk [vmem:[#allocation5 + $0x160] sm:$0xff] %vm10810_vm1, %v9932_v31  ;;  %v4827_v3 = vpack.c.bf16 %v4810_v55, %v4809_v58  ;;  %vm10825_vm1 = vmmov %vm10823_vm0 }
 0x492   : > { %v5063_v42 = vld [vmem:[#allocation4 + $0x16a] sm:$0xff]  ;;  %v4954_v11 = vpack.c.bf16 %v4936_v20, %v4935_v40  ;;  %v5064_v59 = vld [vmem:[#allocation4 + $0x172] sm:$0xff]  ;;  %v9943_v18 = vpop.f32.mrb[39].mxu0  ;;  %4651 = vst.msk [vmem:[#allocation5 + $0x170] sm:$0xff] %vm10821_vm3, %v9941_v49  ;;  %v5741_v57 = vsel %vm5670_vm13, %v5544_v62, %v5709_v25  ;;  %vm5671_vm4 = vcmp.ge.f32.partialorder %v5547_v8, 0.0  ;;  %v5710_v9 = vmul.f32 %v9927_v28, %v5547_v8 }
 0x493   : > { %v5082_v6 = vpack.c.bf16 %v5064_v59, %v5063_v42  ;;  %4871 = vrot.lane.b32.xlu0 %v4826_v56, %s10662_s8  ;;  %4551 = vrot.lane.b32.xlu1 %v4826_v56, %s7634_s29  ;;  %4200 = vst.msk [vmem:[#allocation5 + $0x168] sm:$0xff] %vm10818_vm2, %v4826_v56  ;;  %v7343_v13 = vpop.f32.mrb[4].mxu1  ;;  %v5862_v45 = vld [vmem:[#allocation6] sm:$0xff]  ;;  %v4812_v42 = vld [vmem:[#allocation4 + $0x1a0] sm:$0xff]  ;;  %v5148_v56 = vld [vmem:[#allocation5 + $0x178] sm:$0xff] }
 0x494   : > { %4650 = vst.msk [vmem:[#allocation5 + $0x158] sm:$0xff] %vm10819_vm10, %v4954_v11  ;;  %v5742_v35 = vsel %vm5671_vm4, %v5547_v8, %v5710_v9  ;;  %v7344_v23 = vpop.f32.mrb[5].mxu1  ;;  %v4939_v8 = vld [vmem:[#allocation4 + $0x199] sm:$0xff] }
 0x495   : > { %5098 = vst.msk [vmem:[#allocation5 + $0x148] sm:$0xff] %vm10820_vm9, %v5082_v6  ;;  %v7345_v2 = vadd.f32 %v7344_v23, %v7343_v13  ;;  %v7346_v43 = vpop.f32.mrb[6].mxu1 }
 0x496   : > { %5830 = vst.msk [vmem:[#allocation6 + $0x19] sm:$0xff] %vm5773_vm15, %v5741_v57  ;;  %5831 = vst.msk [vmem:[#allocation6 + $0x21] sm:$0xff] %vm5773_vm15, %v5742_v35  ;;  %v7347_v1 = vpop.f32.mrb[7].mxu1  ;;  %v4940_v57 = vld [vmem:[#allocation4 + $0x1a1] sm:$0xff] }
 0x497   : > { %4999 = vrot.lane.b32.xlu0 %v4954_v11, %s7634_s29  ;;  %4295 = vrot.lane.b32.xlu1 %v4954_v11, %s7618_s24  ;;  %v9957_v15 = vpop.f32.mrb[40].mxu0  ;;  %v5391_v12 = vadd.f32 %v7345_v2, %v9922_v29  ;;  %v7348_v38 = vadd.f32 %v7347_v1, %v7346_v43  ;;  %v5894_v11 = vpack.c.bf16 %v5863_v61, %v5862_v45  ;;  %v5926_v2 = vld [vmem:[#allocation6 + $0x1] sm:$0xff]  ;;  %v5927_v43 = vld [vmem:[#allocation6 + $0x9] sm:$0xff] }
 0x498   : > { %v9960_v51 = vpop.f32.mrb[41].mxu0  ;;  %v5145_v63 = vld [vmem:[#allocation5 + $0x160] sm:$0xff]  ;;  %v4956_v13 = vpack.c.bf16 %v4940_v57, %v4939_v8 }
 0x499   : > { %v9962_v46 = vpop.f32.mrb[42].mxu0  ;;  %v5552_v44 = vadd.f32 %v9914_v7, %v5391_v12  ;;  %v5394_v34 = vadd.f32 %v7348_v38, %v9922_v29  ;;  %5910 = vst.msk [vmem:[#allocation7] sm:$0xff] %vm5773_vm15, %v5894_v11 }
 0x49a   : > { %v9964_v21 = vpop.f32.mrb[43].mxu0 }
 0x49b   : > { %4744 = vrot.lane.b32.xlu0 %v5082_v6, %s7618_s24  ;;  %4424 = vrot.lane.b32.xlu1 %v5082_v6, %s10662_s8  ;;  %vm5672_vm12 = vcmp.ge.f32.partialorder %v5552_v44, 0.0  ;;  %v5711_v14 = vmul.f32 %v9927_v28, %v5552_v44  ;;  %v5555_v41 = vadd.f32 %v9917_v17, %v5394_v34  ;;  %v4811_v17 = vld [vmem:[#allocation4 + $0x198] sm:$0xff] }
 0x49c   : > { %v5142_v24 = vld [vmem:[#allocation5 + $0x148] sm:$0xff]  ;;  %v4828_v6 = vpack.c.bf16 %v4812_v42, %v4811_v17 }
 0x49d   : > { %7526 = vmatmul.mubr.msk.bf16.gmra.mrb[56].mxu0 %vm10822_vm5, %v5142_v24  ;;  %v6184_v10 = vld [vmem:[#allocation6 + $0x18] sm:$0xff]  ;;  %v6185_v47 = vld [vmem:[#allocation6 + $0x20] sm:$0xff]  ;;  %v5743_v7 = vsel %vm5672_vm12, %v5552_v44, %v5711_v14  ;;  %vm5673_vm11 = vcmp.ge.f32.partialorder %v5555_v41, 0.0  ;;  %v5712_v32 = vmul.f32 %v9927_v28, %v5555_v41 }
 0x49e   : > { %7529 = vmatprep.mubr.msk.bf16.mxu0 %vm10823_vm0, %v5145_v63  ;;  %v9982_v48 = vpack.c.bf16 %v6185_v47, %v6184_v10  ;;  %v6314_v40 = vld [vmem:[#allocation6 + $0x21] sm:$0xff]  ;;  %5832 = vst.msk [vmem:[#allocation6 + $0x31] sm:$0xff] %vm5773_vm15, %v5743_v7  ;;  %v6313_v20 = vld [vmem:[#allocation6 + $0x19] sm:$0xff]  ;;  %v5958_v63 = vpack.c.bf16 %v5927_v43, %v5926_v2 }
 0x49f   : > { %4873 = vrot.lane.b32.xlu0 %v4827_v3, %s10662_s8  ;;  %4553 = vrot.lane.b32.xlu1 %v4827_v3, %s7634_s29  ;;  %v9978_v53 = vpop.f32.mrb[44].mxu0  ;;  %v5744_v0 = vsel %vm5673_vm11, %v5555_v41, %v5712_v32  ;;  %v7349_v26 = vpop.f32.mrb[8].mxu1  ;;  %v6345_v60 = vpack.c.bf16 %v6314_v40, %v6313_v20  ;;  %v6442_v32 = vld [vmem:[#allocation6 + $0x1a] sm:$0xff]  ;;  %v6443_v40 = vld [vmem:[#allocation6 + $0x22] sm:$0xff] }
 0x4a0   : > { %v9980_v33 = vpop.f32.mrb[45].mxu0  ;;  %5911 = vst.msk [vmem:[#allocation7 + $0x10] sm:$0xff] %vm5773_vm15, %v9982_v48  ;;  %5833 = vst.msk [vmem:[#allocation6 + $0x39] sm:$0xff] %vm5773_vm15, %v5744_v0  ;;  %v7350_v59 = vpop.f32.mrb[9].mxu1 }
 0x4a1   : > { %v9985_v50 = vpop.f32.mrb[46].mxu0  ;;  %v7351_v36 = vadd.f32 %v7350_v59, %v7349_v26  ;;  %v7352_v62 = vpop.f32.mrb[10].mxu1  ;;  %v6474_v26 = vpack.c.bf16 %v6443_v40, %v6442_v32 }
 0x4a2   : > { %v9988_v19 = vpop.f32.mrb[47].mxu0  ;;  %v7353_v4 = vpop.f32.mrb[11].mxu1 }
 0x4a3   : > { %5001 = vrot.lane.b32.xlu0 %v9941_v49, %s7634_s29  ;;  %6119 = vrot.lane.b32.xlu1 %v6087_v5, %s7618_s24  ;;  %v5399_v49 = vadd.f32 %v7351_v36, %v9922_v29  ;;  %v7354_v25 = vadd.f32 %v7353_v4, %v7352_v62 }
 0x4a5   : > { %7530 = vmatmul.mubr.msk.bf16.gmra.mrb[60].mxu0 %vm10825_vm1, %v5148_v56  ;;  %v5560_v9 = vadd.f32 %v9934_v30, %v5399_v49  ;;  %v5402_v35 = vadd.f32 %v7354_v25, %v9922_v29  ;;  %v6572_v23 = vld [vmem:[#allocation6 + $0x30] sm:$0xff] }
 0x4a6   : > { %v5866_v38 = vld [vmem:[#allocation6 + $0x30] sm:$0xff] }
 0x4a7   : > { %4746 = vrot.lane.b32.xlu0 %v9932_v31, %s7618_s24  ;;  %6377 = vrot.lane.b32.xlu1 %v6345_v60, %s10662_s8  ;;  %vm5674_vm2 = vcmp.ge.f32.partialorder %v5560_v9, 0.0  ;;  %v5713_v31 = vmul.f32 %v9927_v28, %v5560_v9  ;;  %v5563_v55 = vadd.f32 %v9943_v18, %v5402_v35  ;;  %v6573_v16 = vld [vmem:[#allocation6 + $0x38] sm:$0xff] }
 0x4a8   : > { %v6830_v27 = vld [vmem:[#allocation6 + $0x32] sm:$0xff]  ;;  %v6831_v1 = vld [vmem:[#allocation6 + $0x3a] sm:$0xff]  ;;  %v6604_v24 = vpack.c.bf16 %v6573_v16, %v6572_v23 }
 0x4a9   : > { %v10007_v37 = vpack.c.bf16 %v6831_v1, %v6830_v27  ;;  %v5867_v30 = vld [vmem:[#allocation6 + $0x38] sm:$0xff]  ;;  %v5745_v39 = vsel %vm5674_vm2, %v5560_v9, %v5713_v31  ;;  %vm5675_vm10 = vcmp.ge.f32.partialorder %v5563_v55, 0.0  ;;  %v5714_v12 = vmul.f32 %v9927_v28, %v5563_v55 }
 0x4aa   : > { %5834 = vst.msk [vmem:[#allocation6 + $0x49] sm:$0xff] %vm5773_vm15, %v5745_v39  ;;  %v5896_v18 = vpack.c.bf16 %v5867_v30, %v5866_v38  ;;  %v6702_v59 = vld [vmem:[#allocation6 + $0x39] sm:$0xff]  ;;  %v6701_v62 = vld [vmem:[#allocation6 + $0x31] sm:$0xff] }
 0x4ab   : > { %4875 = vrot.lane.b32.xlu0 %v4828_v6, %s10662_s8  ;;  %6636 = vrot.lane.b32.xlu1 %v6604_v24, %s7634_s29  ;;  %6878 = vst.msk [vmem:[#allocation7 + $0x8] sm:$0xff] %vm5773_vm15, %v10007_v37  ;;  %v5746_v58 = vsel %vm5675_vm10, %v5563_v55, %v5714_v12  ;;  %v7355_v22 = vpop.f32.mrb[12].mxu1  ;;  %v6733_v6 = vpack.c.bf16 %v6702_v59, %v6701_v62 }
 0x4ac   : > { %5835 = vst.msk [vmem:[#allocation6 + $0x51] sm:$0xff] %vm5773_vm15, %v5746_v58  ;;  %v7356_v3 = vpop.f32.mrb[13].mxu1  ;;  %5912 = vst.msk [vmem:[#allocation7 + $0x20] sm:$0xff] %vm5773_vm15, %v5896_v18 }
 0x4ad   : > { %v7357_v44 = vadd.f32 %v7356_v3, %v7355_v22  ;;  %v7358_v34 = vpop.f32.mrb[14].mxu1 }
 0x4ae   : > { %v7359_v5 = vpop.f32.mrb[15].mxu1 }
 0x4af   : > { %5003 = vrot.lane.b32.xlu0 %v4956_v13, %s7634_s29  ;;  %5992 = vrot.lane.b32.xlu1 %v6345_v60, %s10826_s18  ;;  %v5407_v14 = vadd.f32 %v7357_v44, %v9922_v29  ;;  %v7360_v41 = vadd.f32 %v7359_v5, %v7358_v34 }
 0x4b1   : > { %v5568_v10 = vadd.f32 %v9930_v54, %v5407_v14  ;;  %v5410_v47 = vadd.f32 %v7360_v41, %v9922_v29  ;;  %v6574_v61 = vld [vmem:[#allocation6 + $0x48] sm:$0xff] }
 0x4b2   : > { %v6896_v7 = vld [vmem:[#allocation7 + $0x8] sm:$0xff]  ;;  %v6703_v49 = vld [vmem:[#allocation6 + $0x49] sm:$0xff] }
 0x4b3   : > { %5990 = vrot.lane.b32.xlu0 %v5958_v63, %s10826_s18  ;;  %7199 = vmatprep.subr.msk.bf16.mxu1 %vm5773_vm15, %v6896_v7  ;;  %vm5676_vm13 = vcmp.ge.f32.partialorder %v5568_v10, 0.0  ;;  %v5715_v17 = vmul.f32 %v9927_v28, %v5568_v10  ;;  %v5571_v45 = vadd.f32 %v9937_v52, %v5410_v47  ;;  %v6575_v0 = vld [vmem:[#allocation6 + $0x50] sm:$0xff] }
 0x4b4   : > { %6250 = vrot.lane.b32.xlu1 %v6604_v24, %s10600_s19  ;;  %v6446_v54 = vld [vmem:[#allocation6 + $0x4a] sm:$0xff]  ;;  %v10028_v20 = vpack.c.bf16 %v6575_v0, %v6574_v61  ;;  %v6447_v42 = vld [vmem:[#allocation6 + $0x52] sm:$0xff] }
 0x4b5   : > { %v5747_v56 = vsel %vm5676_vm13, %v5568_v10, %v5715_v17  ;;  %vm5677_vm9 = vcmp.ge.f32.partialorder %v5571_v45, 0.0  ;;  %v5716_v11 = vmul.f32 %v9927_v28, %v5571_v45  ;;  %v6704_v52 = vld [vmem:[#allocation6 + $0x51] sm:$0xff]  ;;  %v5134_v17 = vld [vmem:[#allocation5 + $0x108] sm:$0xff]  ;;  %vm6425_vm13 = vcmask 654848  }
 0x4b6   : > { %5836 = vst.msk [vmem:[#allocation6 + $0x61] sm:$0xff] %vm5773_vm15, %v5747_v56  ;;  %5913 = vst.msk [vmem:[#allocation7 + $0x30] sm:$0xff] %vm5773_vm15, %v10028_v20  ;;  %v10042_v57 = vpack.c.bf16 %v6704_v52, %v6703_v49 }
 0x4b7   : > { %6248 = vrot.lane.b32.xlu0 %v9982_v48, %s10600_s19  ;;  %v10031_v48 = vpack.c.bf16 %v6447_v42, %v6446_v54  ;;  %v5748_v60 = vsel %vm5677_vm9, %v5571_v45, %v5716_v11  ;;  %v7361_v36 = vpop.f32.mrb[16].mxu1  ;;  %vm6554_vm9 = vcmask 786048  }
 0x4b8   : > { %6508 = vrot.lane.b32.xlu1 %v10007_v37, %s10680_s17  ;;  %5837 = vst.msk [vmem:[#allocation6 + $0x69] sm:$0xff] %vm5773_vm15, %v5748_v60  ;;  %v7362_v4 = vpop.f32.mrb[17].mxu1 }
 0x4b9   : > { %6879 = vst.msk [vmem:[#allocation7 + $0x18] sm:$0xff] %vm5773_vm15, %v10031_v48  ;;  %v7363_v25 = vadd.f32 %v7362_v4, %v7361_v36  ;;  %v7364_v8 = vpop.f32.mrb[18].mxu1 }
 0x4ba   : > { %v7365_v9 = vpop.f32.mrb[19].mxu1 }
 0x4bb   : > { %6506 = vrot.lane.b32.xlu0 %v6474_v26, %s10680_s17  ;;  %v5415_v35 = vadd.f32 %v7363_v25, %v9922_v29  ;;  %v7366_v13 = vadd.f32 %v7365_v9, %v7364_v8 }
 0x4bc   : > { %6767 = vrot.lane.b32.xlu1 %v10042_v57, %s7635_s14 }
 0x4bd   : > { %v5576_v23 = vadd.f32 %v9960_v51, %v5415_v35  ;;  %v5418_v2 = vadd.f32 %v7366_v13, %v9922_v29  ;;  %v6576_v55 = vld [vmem:[#allocation6 + $0x60] sm:$0xff] }
 0x4be   : > { %v6705_v35 = vld [vmem:[#allocation6 + $0x61] sm:$0xff] }
 0x4bf   : > { %6765 = vrot.lane.b32.xlu0 %v6733_v6, %s7635_s14  ;;  %vm5678_vm3 = vcmp.ge.f32.partialorder %v5576_v23, 0.0  ;;  %v5717_v16 = vmul.f32 %v9927_v28, %v5576_v23  ;;  %v5579_v27 = vadd.f32 %v9964_v21, %v5418_v2  ;;  %v6577_v51 = vld [vmem:[#allocation6 + $0x68] sm:$0xff] }
 0x4c0   : > { %v4868_v43 = vpop.permute.xlu0 %4867  ;;  %v4548_v31 = vpop.permute.xlu1 %4547  ;;  %6123 = vrot.lane.b32.xlu1 %v10007_v37, %s7618_s24  ;;  %v6448_v1 = vld [vmem:[#allocation6 + $0x62] sm:$0xff]  ;;  %v6449_v24 = vld [vmem:[#allocation6 + $0x6a] sm:$0xff]  ;;  %v6606_v30 = vpack.c.bf16 %v6577_v51, %v6576_v55 }
 0x4c1   : > { %4904 = vst.msk [vmem:[#allocation5 + $0x110] sm:$0xff] %vm4442_vm7, %v4868_v43  ;;  %v10057_v39 = vpack.c.bf16 %v6449_v24, %v6448_v1  ;;  %v5749_v12 = vsel %vm5678_vm3, %v5576_v23, %v5717_v16  ;;  %vm5679_vm4 = vcmp.ge.f32.partialorder %v5579_v27, 0.0  ;;  %v5718_v38 = vmul.f32 %v9927_v28, %v5579_v27  ;;  %v6706_v25 = vld [vmem:[#allocation6 + $0x69] sm:$0xff] }
 0x4c2   : > { %4584 = vst.msk [vmem:[#allocation5 + $0x120] sm:$0xff] %vm4571_vm8, %v4548_v31  ;;  %v6735_v23 = vpack.c.bf16 %v6706_v25, %v6705_v35  ;;  %vm6684_vm3 = vcmask 917248  }
 0x4c3   : > { %6121 = vrot.lane.b32.xlu0 %v6474_v26, %s7618_s24  ;;  %5838 = vst.msk [vmem:[#allocation6 + $0x79] sm:$0xff] %vm5773_vm15, %v5749_v12  ;;  %6880 = vst.msk [vmem:[#allocation7 + $0x28] sm:$0xff] %vm5773_vm15, %v10057_v39  ;;  %v5750_v21 = vsel %vm5679_vm4, %v5579_v27, %v5718_v38  ;;  %v7367_v37 = vpop.f32.mrb[20].mxu1  ;;  %vm6813_vm4 = vcmask 1048448  }
 0x4c4   : > { %v4996_v63 = vpop.permute.xlu0 %4995  ;;  %v4292_v18 = vpop.permute.xlu1 %4291  ;;  %5914 = vst.msk [vmem:[#allocation7 + $0x40] sm:$0xff] %vm5773_vm15, %v6606_v30  ;;  %6381 = vrot.lane.b32.xlu1 %v10042_v57, %s10662_s8  ;;  %5839 = vst.msk [vmem:[#allocation6 + $0x81] sm:$0xff] %vm5773_vm15, %v5750_v21 }
 0x4c5   : > { %5032 = vst.msk [vmem:[#allocation5 + $0x110] sm:$0xff] %vm4571_vm8, %v4996_v63  ;;  %v7368_v58 = vpop.f32.mrb[21].mxu1 }
 0x4c6   : > { %4327 = vst.msk [vmem:[#allocation5 + $0x138] sm:$0xff] %vm4313_vm6, %v4292_v18  ;;  %v7369_v22 = vadd.f32 %v7368_v58, %v7367_v37  ;;  %v7370_v34 = vpop.f32.mrb[22].mxu1 }
 0x4c7   : > { %6379 = vrot.lane.b32.xlu0 %v6733_v6, %s10662_s8  ;;  %v7371_v14 = vpop.f32.mrb[23].mxu1 }
 0x4c8   : > { %v4741_v3 = vpop.permute.xlu0 %4740  ;;  %v4421_v44 = vpop.permute.xlu1 %4420  ;;  %v5423_v5 = vadd.f32 %v7369_v22, %v9922_v29  ;;  %6640 = vrot.lane.b32.xlu1 %v6606_v30, %s7634_s29  ;;  %v7372_v41 = vadd.f32 %v7371_v14, %v7370_v34 }
 0x4c9   : > { %4776 = vst.msk [vmem:[#allocation5 + $0x128] sm:$0xff] %vm4313_vm6, %v4741_v3  ;;  %v5137_v27 = vld [vmem:[#allocation5 + $0x120] sm:$0xff] }
 0x4ca   : > { %4456 = vst.msk [vmem:[#allocation5 + $0x138] sm:$0xff] %vm4442_vm7, %v4421_v44  ;;  %v5584_v10 = vadd.f32 %v9957_v15, %v5423_v5  ;;  %v5426_v40 = vadd.f32 %v7372_v41, %v9922_v29  ;;  %v6578_v15 = vld [vmem:[#allocation6 + $0x78] sm:$0xff] }
 0x4cb   : > { %6638 = vrot.lane.b32.xlu0 %v10028_v20, %s7634_s29  ;;  %v6579_v61 = vld [vmem:[#allocation6 + $0x80] sm:$0xff] }
 0x4cc   : > { %v4870_v47 = vpop.permute.xlu0 %4869  ;;  %v5135_v32 = vld [vmem:[#allocation5 + $0x110] sm:$0xff]  ;;  %vm5680_vm5 = vcmp.ge.f32.partialorder %v5584_v10, 0.0  ;;  %v5719_v45 = vmul.f32 %v9927_v28, %v5584_v10  ;;  %5996 = vrot.lane.b32.xlu1 %v10042_v57, %s10826_s18  ;;  %v6450_v0 = vld [vmem:[#allocation6 + $0x7a] sm:$0xff]  ;;  %v5587_v54 = vadd.f32 %v9962_v46, %v5426_v40  ;;  %v10085_v26 = vpack.c.bf16 %v6579_v61, %v6578_v15  ;;  %v6451_v42 = vld [vmem:[#allocation6 + $0x82] sm:$0xff] }
 0x4cd   : > { %v4550_v7 = vpop.permute.xlu1 %4549  ;;  %4905 = vst.msk [vmem:[#allocation5 + $0x128] sm:$0xff] %vm4442_vm7, %v4870_v47  ;;  %5468 = vmatprep.mubr.bf16.mxu1 %v5135_v32  ;;  %v10087_v52 = vpack.c.bf16 %v6451_v42, %v6450_v0  ;;  %v6708_v8 = vld [vmem:[#allocation6 + $0x81] sm:$0xff]  ;;  %v6707_v2 = vld [vmem:[#allocation6 + $0x79] sm:$0xff] }
 0x4ce   : > { %4585 = vst.msk [vmem:[#allocation5 + $0x138] sm:$0xff] %vm4571_vm8, %v4550_v7  ;;  %5469 = vmatmul.mubr.bf16.gmra.mrb[44].mxu1 %v5134_v17  ;;  %v5751_v56 = vsel %vm5680_vm5, %v5584_v10, %v5719_v45  ;;  %vm5681_vm0 = vcmp.ge.f32.partialorder %v5587_v54, 0.0  ;;  %v5720_v60 = vmul.f32 %v9927_v28, %v5587_v54  ;;  %v6736_v55 = vpack.c.bf16 %v6708_v8, %v6707_v2 }
 0x4cf   : > { %5994 = vrot.lane.b32.xlu0 %v6733_v6, %s10826_s18  ;;  %5840 = vst.msk [vmem:[#allocation6 + $0x91] sm:$0xff] %vm5773_vm15, %v5751_v56  ;;  %5915 = vst.msk [vmem:[#allocation7 + $0x50] sm:$0xff] %vm5773_vm15, %v10085_v26  ;;  %v7373_v46 = vpop.f32.mrb[24].mxu1 }
 0x4d0   : > { %v4998_v11 = vpop.permute.xlu0 %4997  ;;  %6254 = vrot.lane.b32.xlu1 %v6606_v30, %s10600_s19  ;;  %6881 = vst.msk [vmem:[#allocation7 + $0x38] sm:$0xff] %vm5773_vm15, %v10087_v52  ;;  %v5752_v36 = vsel %vm5681_vm0, %v5587_v54, %v5720_v60  ;;  %v7374_v62 = vpop.f32.mrb[25].mxu1 }
 0x4d1   : > { %v4294_v59 = vpop.permute.xlu1 %4293  ;;  %5033 = vst.msk [vmem:[#allocation5 + $0x128] sm:$0xff] %vm4571_vm8, %v4998_v11  ;;  %v7375_v4 = vadd.f32 %v7374_v62, %v7373_v46 }
 0x4d2   : > { %4328 = vst.msk [vmem:[#allocation5 + $0x150] sm:$0xff] %vm4313_vm6, %v4294_v59 }
 0x4d3   : > { %6252 = vrot.lane.b32.xlu0 %v10028_v20, %s10600_s19  ;;  %5841 = vst.msk [vmem:[#allocation6 + $0x99] sm:$0xff] %vm5773_vm15, %v5752_v36  ;;  %v7376_v20 = vpop.f32.mrb[26].mxu1  ;;  %v5431_v57 = vadd.f32 %v7375_v4, %v9922_v29 }
 0x4d4   : > { %v4743_v6 = vpop.permute.xlu0 %4742  ;;  %v7377_v9 = vpop.f32.mrb[27].mxu1  ;;  %6512 = vrot.lane.b32.xlu1 %v10057_v39, %s10680_s17 }
 0x4d5   : > { %v4423_v49 = vpop.permute.xlu1 %4422  ;;  %4777 = vst.msk [vmem:[#allocation5 + $0x140] sm:$0xff] %vm4313_vm6, %v4743_v6  ;;  %v7378_v13 = vadd.f32 %v7377_v9, %v7376_v20  ;;  %v5592_v43 = vadd.f32 %v9980_v33, %v5431_v57 }
 0x4d6   : > { %4457 = vst.msk [vmem:[#allocation5 + $0x150] sm:$0xff] %vm4442_vm7, %v4423_v49  ;;  %v6580_v24 = vld [vmem:[#allocation6 + $0x90] sm:$0xff] }
 0x4d7   : > { %6510 = vrot.lane.b32.xlu0 %v10031_v48, %s10680_s17  ;;  %v5434_v16 = vadd.f32 %v7378_v13, %v9922_v29  ;;  %vm5682_vm14 = vcmp.ge.f32.partialorder %v5592_v43, 0.0  ;;  %v5721_v51 = vmul.f32 %v9927_v28, %v5592_v43  ;;  %v6709_v47 = vld [vmem:[#allocation6 + $0x91] sm:$0xff] }
 0x4d8   : > { %v5138_v31 = vld [vmem:[#allocation5 + $0x128] sm:$0xff]  ;;  %6771 = vrot.lane.b32.xlu1 %v6736_v55, %s7635_s14  ;;  %v5140_v13 = vld [vmem:[#allocation5 + $0x138] sm:$0xff] }
 0x4d9   : > { %5476 = vmatprep.mubr.bf16.mxu1 %v5138_v31  ;;  %v5595_v30 = vadd.f32 %v9988_v19, %v5434_v16  ;;  %v5753_v18 = vsel %vm5682_vm14, %v5592_v43, %v5721_v51 }
 0x4da   : > { %5477 = vmatmul.mubr.bf16.gmra.mrb[48].mxu1 %v5137_v27  ;;  %v6581_v12 = vld [vmem:[#allocation6 + $0x98] sm:$0xff]  ;;  %5842 = vst.msk [vmem:[#allocation6 + $0xa9] sm:$0xff] %vm5773_vm15, %v5753_v18 }
 0x4db   : > { %6769 = vrot.lane.b32.xlu0 %v6735_v23, %s7635_s14  ;;  %v10112_v1 = vpop.f32.mrb[48].mxu0  ;;  %v6452_v38 = vld [vmem:[#allocation6 + $0x92] sm:$0xff]  ;;  %v6453_v63 = vld [vmem:[#allocation6 + $0x9a] sm:$0xff]  ;;  %v6608_v37 = vpack.c.bf16 %v6581_v12, %v6580_v24  ;;  %vm5683_vm12 = vcmp.ge.f32.partialorder %v5595_v30, 0.0  ;;  %v5722_v22 = vmul.f32 %v9927_v28, %v5595_v30 }
 0x4dc   : > { %v10116_v33 = vpop.f32.mrb[49].mxu0  ;;  %v6479_v58 = vpack.c.bf16 %v6453_v63, %v6452_v38  ;;  %6127 = vrot.lane.b32.xlu1 %v10057_v39, %s7618_s24  ;;  %v6710_v41 = vld [vmem:[#allocation6 + $0x99] sm:$0xff] }
 0x4dd   : > { %v10118_v21 = vpop.f32.mrb[50].mxu0  ;;  %5916 = vst.msk [vmem:[#allocation7 + $0x60] sm:$0xff] %vm5773_vm15, %v6608_v37  ;;  %v5754_v19 = vsel %vm5683_vm12, %v5595_v30, %v5722_v22  ;;  %v6737_v32 = vpack.c.bf16 %v6710_v41, %v6709_v47 }
 0x4de   : > { %v10122_v3 = vpop.f32.mrb[51].mxu0  ;;  %6882 = vst.msk [vmem:[#allocation7 + $0x48] sm:$0xff] %vm5773_vm15, %v6479_v58  ;;  %5843 = vst.msk [vmem:[#allocation6 + $0xb1] sm:$0xff] %vm5773_vm15, %v5754_v19 }
 0x4df   : > { %6125 = vrot.lane.b32.xlu0 %v10031_v48, %s7618_s24 }
 0x4e0   : > { %6385 = vrot.lane.b32.xlu1 %v6736_v55, %s10662_s8 }
 0x4e1   : > { %v6582_v48 = vld [vmem:[#allocation6 + $0xa8] sm:$0xff] }
 0x4e2   : > { %v6711_v7 = vld [vmem:[#allocation6 + $0xa9] sm:$0xff] }
 0x4e3   : > { %6383 = vrot.lane.b32.xlu0 %v6735_v23, %s10662_s8 }
 0x4e4   : > { %6644 = vrot.lane.b32.xlu1 %v6608_v37, %s7634_s29 }
 0x4e5   : > { %v6583_v44 = vld [vmem:[#allocation6 + $0xb0] sm:$0xff] }
 0x4e6   : > { %v6454_v34 = vld [vmem:[#allocation6 + $0xaa] sm:$0xff]  ;;  %v6609_v39 = vpack.c.bf16 %v6583_v44, %v6582_v48  ;;  %v6455_v5 = vld [vmem:[#allocation6 + $0xb2] sm:$0xff] }
 0x4e7   : > { %6642 = vrot.lane.b32.xlu0 %v10085_v26, %s7634_s29  ;;  %v10137_v14 = vpack.c.bf16 %v6455_v5, %v6454_v34  ;;  %v6712_v10 = vld [vmem:[#allocation6 + $0xb1] sm:$0xff] }
 0x4e8   : > { %6000 = vrot.lane.b32.xlu1 %v6736_v55, %s10826_s18  ;;  %5917 = vst.msk [vmem:[#allocation7 + $0x70] sm:$0xff] %vm5773_vm15, %v6609_v39  ;;  %v10149_v40 = vpack.c.bf16 %v6712_v10, %v6711_v7 }
 0x4e9   : > { %6883 = vst.msk [vmem:[#allocation7 + $0x58] sm:$0xff] %vm5773_vm15, %v10137_v14 }
 0x4eb   : > { %5998 = vrot.lane.b32.xlu0 %v6735_v23, %s10826_s18 }
 0x4ec   : > { %6258 = vrot.lane.b32.xlu1 %v6608_v37, %s10600_s19 }
 0x4ef   : > { %6256 = vrot.lane.b32.xlu0 %v10085_v26, %s10600_s19 }
 0x4f0   : > { %6516 = vrot.lane.b32.xlu1 %v6479_v58, %s10680_s17 }
 0x4f3   : > { %6514 = vrot.lane.b32.xlu0 %v10087_v52, %s10680_s17 }
 0x4f4   : > { %6775 = vrot.lane.b32.xlu1 %v10149_v40, %s7635_s14 }
 0x4f7   : > { %6773 = vrot.lane.b32.xlu0 %v6737_v32, %s7635_s14 }
 0x4f8   : > { %6131 = vrot.lane.b32.xlu1 %v6479_v58, %s7618_s24 }
 0x4fb   : > { %6129 = vrot.lane.b32.xlu0 %v10087_v52, %s7618_s24 }
 0x4fc   : > { %6389 = vrot.lane.b32.xlu1 %v10149_v40, %s10662_s8 }
 0x4ff   : > { %6387 = vrot.lane.b32.xlu0 %v6737_v32, %s10662_s8 }
 0x502   : > { %v7379_v17 = vpop.f32.mrb[28].mxu1 }
 0x503   : > { %6646 = vrot.lane.b32.xlu0 %v6609_v39, %s7634_s29  ;;  %v7380_v45 = vpop.f32.mrb[29].mxu1 }
 0x504   : > { %v7381_v15 = vadd.f32 %v7380_v45, %v7379_v17  ;;  %v7382_v54 = vpop.f32.mrb[30].mxu1 }
 0x505   : > { %v4872_v61 = vpop.permute.xlu0 %4871  ;;  %v4552_v0 = vpop.permute.xlu1 %4551 }
 0x506   : > { %4906 = vst.msk [vmem:[#allocation5 + $0x140] sm:$0xff] %vm4442_vm7, %v4872_v61  ;;  %v5439_v26 = vadd.f32 %v7381_v15, %v9922_v29  ;;  %v7383_v42 = vpop.f32.mrb[31].mxu1 }
 0x507   : > { %4586 = vst.msk [vmem:[#allocation5 + $0x150] sm:$0xff] %vm4571_vm8, %v4552_v0  ;;  %6002 = vrot.lane.b32.xlu0 %v6737_v32, %s10826_s18  ;;  %v7384_v56 = vadd.f32 %v7383_v42, %v7382_v54 }
 0x508   : > { %v5600_v11 = vadd.f32 %v9978_v53, %v5439_v26 }
 0x509   : > { %v5000_v59 = vpop.permute.xlu0 %4999  ;;  %v4296_v52 = vpop.permute.xlu1 %4295  ;;  %v5442_v60 = vadd.f32 %v7384_v56, %v9922_v29 }
 0x50a   : > { %5034 = vst.msk [vmem:[#allocation5 + $0x140] sm:$0xff] %vm4571_vm8, %v5000_v59  ;;  %vm5684_vm11 = vcmp.ge.f32.partialorder %v5600_v11, 0.0  ;;  %v5723_v46 = vmul.f32 %v9927_v28, %v5600_v11 }
 0x50b   : > { %4329 = vst.msk [vmem:[#allocation5 + $0x168] sm:$0xff] %vm4313_vm6, %v4296_v52  ;;  %6260 = vrot.lane.b32.xlu0 %v6609_v39, %s10600_s19  ;;  %v5603_v36 = vadd.f32 %v9985_v50, %v5442_v60 }
 0x50c   : > { %v5755_v62 = vsel %vm5684_vm11, %v5600_v11, %v5723_v46 }
 0x50d   : > { %v4745_v4 = vpop.permute.xlu0 %4744  ;;  %v4425_v6 = vpop.permute.xlu1 %4424  ;;  %5844 = vst.msk [vmem:[#allocation6 + $0xc1] sm:$0xff] %vm5773_vm15, %v5755_v62  ;;  %vm5685_vm1 = vcmp.ge.f32.partialorder %v5603_v36, 0.0  ;;  %v5724_v53 = vmul.f32 %v9927_v28, %v5603_v36 }
 0x50e   : > { %4778 = vst.msk [vmem:[#allocation5 + $0x158] sm:$0xff] %vm4313_vm6, %v4745_v4  ;;  %v7385_v49 = vpop.f32.mrb[32].mxu1 }
 0x50f   : > { %4458 = vst.msk [vmem:[#allocation5 + $0x168] sm:$0xff] %vm4442_vm7, %v4425_v6  ;;  %6518 = vrot.lane.b32.xlu0 %v10137_v14, %s10680_s17  ;;  %v5756_v25 = vsel %vm5685_vm1, %v5603_v36, %v5724_v53  ;;  %v7386_v20 = vpop.f32.mrb[33].mxu1 }
 0x510   : > { %5845 = vst.msk [vmem:[#allocation6 + $0xc9] sm:$0xff] %vm5773_vm15, %v5756_v25  ;;  %v7387_v50 = vadd.f32 %v7386_v20, %v7385_v49  ;;  %v7388_v35 = vpop.f32.mrb[34].mxu1 }
 0x511   : > { %v4874_v8 = vpop.permute.xlu0 %4873  ;;  %v4554_v57 = vpop.permute.xlu1 %4553  ;;  %v5141_v9 = vld [vmem:[#allocation5 + $0x140] sm:$0xff] }
 0x512   : > { %4907 = vst.msk [vmem:[#allocation5 + $0x158] sm:$0xff] %vm4442_vm7, %v4874_v8  ;;  %5484 = vmatprep.mubr.bf16.mxu1 %v5141_v9  ;;  %v5447_v23 = vadd.f32 %v7387_v50, %v9922_v29  ;;  %v7389_v2 = vpop.f32.mrb[35].mxu1  ;;  %v6898_v50 = vld [vmem:[#allocation7 + $0x18] sm:$0xff] }
 0x513   : > { %4587 = vst.msk [vmem:[#allocation5 + $0x168] sm:$0xff] %vm4571_vm8, %v4554_v57  ;;  %5485 = vmatmul.mubr.bf16.gmra.mrb[52].mxu1 %v5140_v13  ;;  %v7390_v43 = vadd.f32 %v7389_v2, %v7388_v35 }
 0x514   : > { %v5608_v31 = vadd.f32 %v10116_v33, %v5447_v23  ;;  %v6584_v24 = vld [vmem:[#allocation6 + $0xc0] sm:$0xff] }
 0x515   : > { %v5002_v55 = vpop.permute.xlu0 %5001  ;;  %v5450_v16 = vadd.f32 %v7390_v43, %v9922_v29  ;;  %v6120_v51 = vpop.permute.xlu1 %6119  ;;  %v6713_v30 = vld [vmem:[#allocation6 + $0xc1] sm:$0xff]  ;;  %v6900_v43 = vld [vmem:[#allocation7 + $0x28] sm:$0xff] }
 0x516   : > { %5035 = vst.msk [vmem:[#allocation5 + $0x158] sm:$0xff] %vm4571_vm8, %v5002_v55  ;;  %vm5686_vm2 = vcmp.ge.f32.partialorder %v5608_v31, 0.0  ;;  %v5725_v27 = vmul.f32 %v9927_v28, %v5608_v31 }
 0x517   : > { %v5611_v12 = vadd.f32 %v10122_v3, %v5450_v16  ;;  %v6585_v38 = vld [vmem:[#allocation6 + $0xc8] sm:$0xff] }
 0x518   : > { %v6714_v63 = vld [vmem:[#allocation6 + $0xc9] sm:$0xff]  ;;  %v5757_v37 = vsel %vm5686_vm2, %v5608_v31, %v5725_v27  ;;  %v6610_v22 = vpack.c.bf16 %v6585_v38, %v6584_v24 }
 0x519   : > { %v6456_v18 = vld [vmem:[#allocation6 + $0xc2] sm:$0xff]  ;;  %v4747_v58 = vpop.permute.xlu0 %4746  ;;  %v6739_v33 = vpack.c.bf16 %v6714_v63, %v6713_v30  ;;  %v6457_v19 = vld [vmem:[#allocation6 + $0xca] sm:$0xff]  ;;  %5846 = vst.msk [vmem:[#allocation6 + $0xd9] sm:$0xff] %vm5773_vm15, %v5757_v37  ;;  %vm5687_vm10 = vcmp.ge.f32.partialorder %v5611_v12, 0.0  ;;  %v5726_v29 = vmul.f32 %v9927_v28, %v5611_v12  ;;  %v6378_v44 = vpop.permute.xlu1 %6377 }
 0x51a   : > { %4779 = vst.msk [vmem:[#allocation5 + $0x170] sm:$0xff] %vm4313_vm6, %v4747_v58  ;;  %v6481_v48 = vpack.c.bf16 %v6457_v19, %v6456_v18  ;;  %6648 = vrot.lane.b32.xlu1 %v6610_v22, %s7634_s29  ;;  %v5143_v28 = vld [vmem:[#allocation5 + $0x150] sm:$0xff]  ;;  %vm6038_vm6 = vcmask 261248   ;;  %v5146_v56 = vld [vmem:[#allocation5 + $0x168] sm:$0xff] }
 0x51b   : > { %6777 = vrot.lane.b32.xlu0 %v6739_v33, %s7635_s14  ;;  %5918 = vst.msk [vmem:[#allocation7 + $0x80] sm:$0xff] %vm5773_vm15, %v6610_v22  ;;  %v5758_v3 = vsel %vm5687_vm10, %v5611_v12, %v5726_v29  ;;  %v10259_v19 = vld [vmem:[%s10558_s5] ss:$0 sm:$0xff] }
 0x51c   : > { %6884 = vst.msk [vmem:[#allocation7 + $0x68] sm:$0xff] %vm5773_vm15, %v6481_v48  ;;  %5847 = vst.msk [vmem:[#allocation6 + $0xe1] sm:$0xff] %vm5773_vm15, %v5758_v3 }
 0x51d   : > { %v4876_v34 = vpop.permute.xlu0 %4875  ;;  %v5144_v39 = vld [vmem:[#allocation5 + $0x158] sm:$0xff]  ;;  %v6637_v41 = vpop.permute.xlu1 %6636 }
 0x51e   : > { %4908 = vst.msk [vmem:[#allocation5 + $0x170] sm:$0xff] %vm4442_vm7, %v4876_v34  ;;  %5492 = vmatprep.mubr.bf16.mxu1 %v5144_v39  ;;  %6004 = vrot.lane.b32.xlu1 %v10149_v40, %s10826_s18  ;;  %vm6167_vm7 = vcmask 392448  }
 0x51f   : > { %6133 = vrot.lane.b32.xlu0 %v10137_v14, %s7618_s24  ;;  %5493 = vmatmul.mubr.bf16.gmra.mrb[56].mxu1 %v5143_v28  ;;  %v10270_v28 = vld [vmem:[%s10559_s6] ss:$0 sm:$0xff] }
 0x520   : > { %v6586_v10 = vld [vmem:[#allocation6 + $0xd8] sm:$0xff] }
 0x521   : > { %v5004_v5 = vpop.permute.xlu0 %5003  ;;  %v5993_v40 = vpop.permute.xlu1 %5992  ;;  %v6715_v61 = vld [vmem:[#allocation6 + $0xd9] sm:$0xff] }
 0x522   : > { %5036 = vst.msk [vmem:[#allocation5 + $0x170] sm:$0xff] %vm4571_vm8, %v5004_v5  ;;  %6262 = vrot.lane.b32.xlu1 %v6610_v22, %s10600_s19  ;;  %vm6296_vm8 = vcmask 523648  }
 0x523   : > { %6391 = vrot.lane.b32.xlu0 %v6739_v33, %s10662_s8  ;;  %v6587_v47 = vld [vmem:[#allocation6 + $0xe0] sm:$0xff]  ;;  %6040 = vst.msk [vmem:[#allocation7 + $0x10] sm:$0xff] %vm6038_vm6, %v5993_v40 }
 0x524   : > { %v6458_v7 = vld [vmem:[#allocation6 + $0xda] sm:$0xff]  ;;  %v6611_v17 = vpack.c.bf16 %v6587_v47, %v6586_v10  ;;  %v6459_v45 = vld [vmem:[#allocation6 + $0xe2] sm:$0xff] }
 0x525   : > { %v5991_v32 = vpop.permute.xlu0 %5990  ;;  %v6716_v14 = vld [vmem:[#allocation6 + $0xe1] sm:$0xff]  ;;  %v10205_v15 = vpack.c.bf16 %v6459_v45, %v6458_v7 }
 0x526   : > { %6039 = vst.msk [vmem:[#allocation7] sm:$0xff] %vm6038_vm6, %v5991_v32  ;;  %6520 = vrot.lane.b32.xlu1 %v6481_v48, %s10680_s17  ;;  %v10213_v26 = vpack.c.bf16 %v6716_v14, %v6715_v61  ;;  %v6251_v42 = vpop.permute.xlu1 %6250 }
 0x527   : > { %6650 = vrot.lane.b32.xlu0 %v6611_v17, %s7634_s29  ;;  %6168 = vst.msk [vmem:[#allocation7] sm:$0xff] %vm6167_vm7, %v6120_v51 }
 0x528   : > { %5919 = vst.msk [vmem:[#allocation7 + $0x90] sm:$0xff] %vm5773_vm15, %v6611_v17  ;;  %6885 = vst.msk [vmem:[#allocation7 + $0x78] sm:$0xff] %vm5773_vm15, %v10205_v15 }
 0x529   : > { %v6249_v0 = vpop.permute.xlu0 %6248  ;;  %v5147_v54 = vld [vmem:[#allocation5 + $0x170] sm:$0xff] }
 0x52a   : > { %6297 = vst.msk [vmem:[#allocation7] sm:$0xff] %vm6296_vm8, %v6249_v0  ;;  %5500 = vmatprep.mubr.bf16.mxu1 %v5147_v54  ;;  %6779 = vrot.lane.b32.xlu1 %v10213_v26, %s7635_s14  ;;  %v6509_v46 = vpop.permute.xlu1 %6508 }
 0x52b   : > { %6006 = vrot.lane.b32.xlu0 %v6739_v33, %s10826_s18  ;;  %6426 = vst.msk [vmem:[#allocation7] sm:$0xff] %vm6425_vm13, %v6378_v44  ;;  %5501 = vmatmul.mubr.bf16.gmra.mrb[60].mxu1 %v5146_v56  ;;  %v6902_v33 = vld [vmem:[#allocation7 + $0x38] sm:$0xff]  ;;  %v6904_v56 = vld [vmem:[#allocation7 + $0x48] sm:$0xff] }
 0x52c   : > { %v10220_v11 = vpop.f32.mrb[52].mxu0 }
 0x52d   : > { %v10222_v59 = vpop.f32.mrb[53].mxu0  ;;  %v6507_v52 = vpop.permute.xlu0 %6506 }
 0x52e   : > { %v10224_v60 = vpop.f32.mrb[54].mxu0  ;;  %6555 = vst.msk [vmem:[#allocation7] sm:$0xff] %vm6554_vm9, %v6507_v52  ;;  %6135 = vrot.lane.b32.xlu1 %v6481_v48, %s7618_s24  ;;  %v6768_v4 = vpop.permute.xlu1 %6767 }
 0x52f   : > { %v10227_v36 = vpop.f32.mrb[55].mxu0  ;;  %6264 = vrot.lane.b32.xlu0 %v6611_v17, %s10600_s19  ;;  %6685 = vst.msk [vmem:[#allocation7] sm:$0xff] %vm6684_vm3, %v6637_v41 }
 0x531   : > { %v6766_v62 = vpop.permute.xlu0 %6765 }
 0x532   : > { %6814 = vst.msk [vmem:[#allocation7] sm:$0xff] %vm6813_vm4, %v6766_v62  ;;  %6393 = vrot.lane.b32.xlu1 %v10213_v26, %s10662_s8  ;;  %v6124_v53 = vpop.permute.xlu1 %6123 }
 0x533   : > { %6522 = vrot.lane.b32.xlu0 %v10205_v15, %s10680_s17 }
 0x535   : > { %v6122_v6 = vpop.permute.xlu0 %6121 }
 0x536   : > { %6169 = vst.msk [vmem:[#allocation7 + $0x10] sm:$0xff] %vm6167_vm7, %v6122_v6  ;;  %v6382_v20 = vpop.permute.xlu1 %6381 }
 0x537   : > { %6298 = vst.msk [vmem:[#allocation7 + $0x10] sm:$0xff] %vm6296_vm8, %v6251_v42 }
 0x539   : > { %v6380_v49 = vpop.permute.xlu0 %6379  ;;  %v6895_v25 = vld [vmem:[#allocation7] sm:$0xff] }
 0x53a   : > { %6427 = vst.msk [vmem:[#allocation7 + $0x10] sm:$0xff] %vm6425_vm13, %v6380_v49  ;;  %7013 = vmatpush1.bf16.xpose.msra.mxu1 %v6895_v25  ;;  %v6641_v57 = vpop.permute.xlu1 %6640 }
 0x53b   : > { %6556 = vst.msk [vmem:[#allocation7 + $0x10] sm:$0xff] %vm6554_vm9, %v6509_v46  ;;  %7200 = vmatprep.subr.msk.bf16.mxu1 %vm5773_vm15, %v6898_v50 }
 0x53d   : > { %v6639_v8 = vpop.permute.xlu0 %6638 }
 0x53e   : > { %6686 = vst.msk [vmem:[#allocation7 + $0x10] sm:$0xff] %vm6684_vm3, %v6639_v8  ;;  %v5997_v35 = vpop.permute.xlu1 %5996 }
 0x53f   : > { %6815 = vst.msk [vmem:[#allocation7 + $0x10] sm:$0xff] %vm6813_vm4, %v6768_v4 }
 0x540   : > { %6042 = vst.msk [vmem:[#allocation7 + $0x30] sm:$0xff] %vm6038_vm6, %v5997_v35 }
 0x541   : > { %v5995_v9 = vpop.permute.xlu0 %5994 }
 0x542   : > { %6041 = vst.msk [vmem:[#allocation7 + $0x20] sm:$0xff] %vm6038_vm6, %v5995_v9  ;;  %v6255_v23 = vpop.permute.xlu1 %6254 }
 0x543   : > { %6170 = vst.msk [vmem:[#allocation7 + $0x20] sm:$0xff] %vm6167_vm7, %v6124_v53 }
 0x545   : > { %v6253_v13 = vpop.permute.xlu0 %6252 }
 0x546   : > { %6299 = vst.msk [vmem:[#allocation7 + $0x20] sm:$0xff] %vm6296_vm8, %v6253_v13  ;;  %v6897_v2 = vld [vmem:[#allocation7 + $0x10] sm:$0xff]  ;;  %v6513_v55 = vpop.permute.xlu1 %6512 }
 0x547   : > { %6428 = vst.msk [vmem:[#allocation7 + $0x20] sm:$0xff] %vm6425_vm13, %v6382_v20  ;;  %7015 = vmatpush1.bf16.xpose.msra.mxu1 %v6897_v2 }
 0x548   : > { %7201 = vmatprep.subr.msk.bf16.mxu1 %vm5773_vm15, %v6900_v43 }
 0x549   : > { %v6511_v31 = vpop.permute.xlu0 %6510 }
 0x54a   : > { %6557 = vst.msk [vmem:[#allocation7 + $0x20] sm:$0xff] %vm6554_vm9, %v6511_v31  ;;  %v6772_v27 = vpop.permute.xlu1 %6771 }
 0x54b   : > { %6687 = vst.msk [vmem:[#allocation7 + $0x20] sm:$0xff] %vm6684_vm3, %v6641_v57 }
 0x54d   : > { %v6770_v16 = vpop.permute.xlu0 %6769 }
 0x54e   : > { %6816 = vst.msk [vmem:[#allocation7 + $0x20] sm:$0xff] %vm6813_vm4, %v6770_v16  ;;  %v6128_v24 = vpop.permute.xlu1 %6127 }
 0x550   : > { %v7391_v30 = vpop.f32.mrb[36].mxu1 }
 0x551   : > { %v6126_v51 = vpop.permute.xlu0 %6125  ;;  %v7392_v12 = vpop.f32.mrb[37].mxu1 }
 0x552   : > { %6171 = vst.msk [vmem:[#allocation7 + $0x30] sm:$0xff] %vm6167_vm7, %v6126_v51  ;;  %v7393_v38 = vadd.f32 %v7392_v12, %v7391_v30  ;;  %v7394_v63 = vpop.f32.mrb[38].mxu1  ;;  %v6386_v58 = vpop.permute.xlu1 %6385 }
 0x553   : > { %6300 = vst.msk [vmem:[#allocation7 + $0x30] sm:$0xff] %vm6296_vm8, %v6255_v23  ;;  %v7395_v22 = vpop.f32.mrb[39].mxu1 }
 0x554   : > { %v5455_v29 = vadd.f32 %v10259_v19, %v7393_v38  ;;  %v7396_v48 = vadd.f32 %v7395_v22, %v7394_v63 }
 0x555   : > { %v6384_v18 = vpop.permute.xlu0 %6383  ;;  %v6899_v37 = vld [vmem:[#allocation7 + $0x20] sm:$0xff] }
 0x556   : > { %6429 = vst.msk [vmem:[#allocation7 + $0x30] sm:$0xff] %vm6425_vm13, %v6384_v18  ;;  %7017 = vmatpush1.bf16.xpose.msra.mxu1 %v6899_v37  ;;  %v5616_v3 = vadd.f32 %v10112_v1, %v5455_v29  ;;  %v5458_v44 = vadd.f32 %v10259_v19, %v7396_v48  ;;  %v6645_v39 = vpop.permute.xlu1 %6644 }
 0x557   : > { %6558 = vst.msk [vmem:[#allocation7 + $0x30] sm:$0xff] %vm6554_vm9, %v6513_v55  ;;  %7202 = vmatprep.subr.msk.bf16.mxu1 %vm5773_vm15, %v6902_v33 }
 0x558   : > { %vm5688_vm5 = vcmp.ge.f32.partialorder %v5616_v3, 0.0  ;;  %v5727_v5 = vmul.f32 %v10270_v28, %v5616_v3  ;;  %v5619_v41 = vadd.f32 %v10118_v21, %v5458_v44 }
 0x559   : > { %v6643_v34 = vpop.permute.xlu0 %6642 }
 0x55a   : > { %6688 = vst.msk [vmem:[#allocation7 + $0x30] sm:$0xff] %vm6684_vm3, %v6643_v34  ;;  %v5759_v10 = vsel %vm5688_vm5, %v5616_v3, %v5727_v5  ;;  %vm5689_vm0 = vcmp.ge.f32.partialorder %v5619_v41, 0.0  ;;  %v5728_v1 = vmul.f32 %v10270_v28, %v5619_v41  ;;  %v6001_v7 = vpop.permute.xlu1 %6000 }
 0x55b   : > { %6817 = vst.msk [vmem:[#allocation7 + $0x30] sm:$0xff] %vm6813_vm4, %v6772_v27 }
 0x55c   : > { %5848 = vst.msk [vmem:[#allocation6 + $0xf1] sm:$0xff] %vm5773_vm15, %v5759_v10  ;;  %v5760_v32 = vsel %vm5689_vm0, %v5619_v41, %v5728_v1  ;;  %v7397_v40 = vpop.f32.mrb[40].mxu1 }
 0x55d   : > { %v5999_v47 = vpop.permute.xlu0 %5998  ;;  %6044 = vst.msk [vmem:[#allocation7 + $0x50] sm:$0xff] %vm6038_vm6, %v6001_v7  ;;  %v7398_v21 = vpop.f32.mrb[41].mxu1  ;;  %v6908_v7 = vld [vmem:[#allocation7 + $0x68] sm:$0xff] }
 0x55e   : > { %6043 = vst.msk [vmem:[#allocation7 + $0x40] sm:$0xff] %vm6038_vm6, %v5999_v47  ;;  %v7399_v17 = vadd.f32 %v7398_v21, %v7397_v40  ;;  %v7400_v45 = vpop.f32.mrb[42].mxu1  ;;  %v6259_v4 = vpop.permute.xlu1 %6258 }
 0x55f   : > { %6172 = vst.msk [vmem:[#allocation7 + $0x40] sm:$0xff] %vm6167_vm7, %v6128_v24  ;;  %v7401_v61 = vpop.f32.mrb[43].mxu1 }
 0x560   : > { %5849 = vst.msk [vmem:[#allocation6 + $0xf9] sm:$0xff] %vm5773_vm15, %v5760_v32  ;;  %v5463_v54 = vadd.f32 %v10259_v19, %v7399_v17  ;;  %v7402_v42 = vadd.f32 %v7401_v61, %v7400_v45 }
 0x561   : > { %v6257_v14 = vpop.permute.xlu0 %6256 }
 0x562   : > { %6301 = vst.msk [vmem:[#allocation7 + $0x40] sm:$0xff] %vm6296_vm8, %v6257_v14  ;;  %v6901_v0 = vld [vmem:[#allocation7 + $0x30] sm:$0xff]  ;;  %v5624_v52 = vadd.f32 %v10222_v59, %v5463_v54  ;;  %v5466_v46 = vadd.f32 %v10259_v19, %v7402_v42  ;;  %v6517_v43 = vpop.permute.xlu1 %6516  ;;  %v6910_v54 = vld [vmem:[#allocation7 + $0x78] sm:$0xff] }
 0x563   : > { %6430 = vst.msk [vmem:[#allocation7 + $0x40] sm:$0xff] %vm6425_vm13, %v6386_v58  ;;  %7019 = vmatpush1.bf16.xpose.msra.mxu1 %v6901_v0  ;;  %v6588_v6 = vld [vmem:[#allocation6 + $0xf0] sm:$0xff] }
 0x564   : > { %7203 = vmatprep.subr.msk.bf16.mxu1 %vm5773_vm15, %v6904_v56  ;;  %v6717_v53 = vld [vmem:[#allocation6 + $0xf1] sm:$0xff]  ;;  %vm5690_vm14 = vcmp.ge.f32.partialorder %v5624_v52, 0.0  ;;  %v5729_v49 = vmul.f32 %v10270_v28, %v5624_v52  ;;  %v5627_v25 = vadd.f32 %v10227_v36, %v5466_v46 }
 0x565   : > { %v6515_v62 = vpop.permute.xlu0 %6514 }
 0x566   : > { %6559 = vst.msk [vmem:[#allocation7 + $0x40] sm:$0xff] %vm6554_vm9, %v6515_v62  ;;  %v5761_v35 = vsel %vm5690_vm14, %v5624_v52, %v5729_v49  ;;  %vm5691_vm12 = vcmp.ge.f32.partialorder %v5627_v25, 0.0  ;;  %v5730_v13 = vmul.f32 %v10270_v28, %v5627_v25  ;;  %v6776_v30 = vpop.permute.xlu1 %6775 }
 0x567   : > { %6689 = vst.msk [vmem:[#allocation7 + $0x40] sm:$0xff] %vm6684_vm3, %v6645_v39  ;;  %v6589_v20 = vld [vmem:[#allocation6 + $0xf8] sm:$0xff] }
 0x568   : > { %v6718_v50 = vld [vmem:[#allocation6 + $0xf9] sm:$0xff]  ;;  %v6612_v57 = vpack.c.bf16 %v6589_v20, %v6588_v6  ;;  %5850 = vst.msk [vmem:[#allocation6 + $0x109] sm:$0xff] %vm5773_vm15, %v5761_v35  ;;  %v5762_v36 = vsel %vm5691_vm12, %v5627_v25, %v5730_v13 }
 0x569   : > { %v6460_v8 = vld [vmem:[#allocation6 + $0xf2] sm:$0xff]  ;;  %v6741_v59 = vpack.c.bf16 %v6718_v50, %v6717_v53  ;;  %v6461_v9 = vld [vmem:[#allocation6 + $0xfa] sm:$0xff]  ;;  %v6774_v23 = vpop.permute.xlu0 %6773  ;;  %5851 = vst.msk [vmem:[#allocation6 + $0x111] sm:$0xff] %vm5773_vm15, %v5762_v36 }
 0x56a   : > { %v6483_v2 = vpack.c.bf16 %v6461_v9, %v6460_v8  ;;  %6818 = vst.msk [vmem:[#allocation7 + $0x40] sm:$0xff] %vm6813_vm4, %v6774_v23  ;;  %6652 = vrot.lane.b32.xlu1 %v6612_v57, %s7634_s29  ;;  %v6132_v48 = vpop.permute.xlu1 %6131 }
 0x56b   : > { %6781 = vrot.lane.b32.xlu0 %v6741_v59, %s7635_s14  ;;  %5920 = vst.msk [vmem:[#allocation7 + $0xa0] sm:$0xff] %vm5773_vm15, %v6612_v57 }
 0x56c   : > { %6886 = vst.msk [vmem:[#allocation7 + $0x88] sm:$0xff] %vm5773_vm15, %v6483_v2 }
 0x56d   : > { %v6130_v31 = vpop.permute.xlu0 %6129 }
 0x56e   : > { %6173 = vst.msk [vmem:[#allocation7 + $0x50] sm:$0xff] %vm6167_vm7, %v6130_v31  ;;  %6008 = vrot.lane.b32.xlu1 %v10213_v26, %s10826_s18  ;;  %v6390_v1 = vpop.permute.xlu1 %6389 }
 0x56f   : > { %6137 = vrot.lane.b32.xlu0 %v10205_v15, %s7618_s24  ;;  %6302 = vst.msk [vmem:[#allocation7 + $0x50] sm:$0xff] %vm6296_vm8, %v6259_v4  ;;  %v6906_v15 = vld [vmem:[#allocation7 + $0x58] sm:$0xff] }
 0x570   : > { %v10305_v55 = vpop.f32.mrb[56].mxu0  ;;  %v6590_v26 = vld [vmem:[#allocation6 + $0x108] sm:$0xff]  ;;  %v6591_v38 = vld [vmem:[#allocation6 + $0x110] sm:$0xff] }
 0x571   : > { %v10307_v16 = vpop.f32.mrb[57].mxu0  ;;  %v6388_v51 = vpop.permute.xlu0 %6387  ;;  %v6903_v24 = vld [vmem:[#allocation7 + $0x40] sm:$0xff]  ;;  %v6613_v18 = vpack.c.bf16 %v6591_v38, %v6590_v26 }
 0x572   : > { %v10309_v27 = vpop.f32.mrb[58].mxu0  ;;  %6431 = vst.msk [vmem:[#allocation7 + $0x50] sm:$0xff] %vm6425_vm13, %v6388_v51  ;;  %6266 = vrot.lane.b32.xlu1 %v6612_v57, %s10600_s19  ;;  %7021 = vmatpush1.bf16.xpose.msra.mxu1 %v6903_v24  ;;  %v6462_v63 = vld [vmem:[#allocation6 + $0x10a] sm:$0xff]  ;;  %v6463_v37 = vld [vmem:[#allocation6 + $0x112] sm:$0xff] }
 0x573   : > { %v10311_v12 = vpop.f32.mrb[59].mxu0  ;;  %6395 = vrot.lane.b32.xlu0 %v6741_v59, %s10662_s8  ;;  %6560 = vst.msk [vmem:[#allocation7 + $0x50] sm:$0xff] %vm6554_vm9, %v6517_v43  ;;  %7204 = vmatprep.subr.msk.bf16.mxu1 %vm5773_vm15, %v6906_v15  ;;  %v6720_v22 = vld [vmem:[#allocation6 + $0x111] sm:$0xff]  ;;  %v10318_v33 = vpack.c.bf16 %v6463_v37, %v6462_v63  ;;  %v6719_v29 = vld [vmem:[#allocation6 + $0x109] sm:$0xff] }
 0x574   : > { %5921 = vst.msk [vmem:[#allocation7 + $0xb0] sm:$0xff] %vm5773_vm15, %v6613_v18  ;;  %v10327_v3 = vpack.c.bf16 %v6720_v22, %v6719_v29  ;;  %v6912_v57 = vld [vmem:[#allocation7 + $0x88] sm:$0xff] }
 0x575   : > { %v6647_v58 = vpop.permute.xlu0 %6646  ;;  %6887 = vst.msk [vmem:[#allocation7 + $0x98] sm:$0xff] %vm5773_vm15, %v10318_v33 }
 0x576   : > { %6690 = vst.msk [vmem:[#allocation7 + $0x50] sm:$0xff] %vm6684_vm3, %v6647_v58  ;;  %6524 = vrot.lane.b32.xlu1 %v6483_v2, %s10680_s17 }
 0x577   : > { %6654 = vrot.lane.b32.xlu0 %v6613_v18, %s7634_s29  ;;  %6819 = vst.msk [vmem:[#allocation7 + $0x50] sm:$0xff] %vm6813_vm4, %v6776_v30 }
 0x578   : > { %v10329_v44 = vpop.f32.mrb[60].mxu0 }
 0x579   : > { %v6003_v34 = vpop.permute.xlu0 %6002  ;;  %v10331_v39 = vpop.f32.mrb[61].mxu0 }
 0x57a   : > { %6045 = vst.msk [vmem:[#allocation7 + $0x60] sm:$0xff] %vm6038_vm6, %v6003_v34  ;;  %6783 = vrot.lane.b32.xlu1 %v10327_v3, %s7635_s14  ;;  %v10338_v5 = vpop.f32.mrb[62].mxu0 }
 0x57b   : > { %6010 = vrot.lane.b32.xlu0 %v6741_v59, %s10826_s18  ;;  %6174 = vst.msk [vmem:[#allocation7 + $0x60] sm:$0xff] %vm6167_vm7, %v6132_v48  ;;  %v10340_v41 = vpop.f32.mrb[63].mxu0 }
 0x57d   : > { %v6261_v10 = vpop.permute.xlu0 %6260 }
 0x57e   : > { %6303 = vst.msk [vmem:[#allocation7 + $0x60] sm:$0xff] %vm6296_vm8, %v6261_v10  ;;  %6139 = vrot.lane.b32.xlu1 %v6483_v2, %s7618_s24  ;;  %v6905_v47 = vld [vmem:[#allocation7 + $0x50] sm:$0xff] }
 0x57f   : > { %6268 = vrot.lane.b32.xlu0 %v6613_v18, %s10600_s19  ;;  %6432 = vst.msk [vmem:[#allocation7 + $0x60] sm:$0xff] %vm6425_vm13, %v6390_v1  ;;  %7023 = vmatpush1.bf16.xpose.msra.mxu1 %v6905_v47 }
 0x580   : > { %7205 = vmatprep.subr.msk.bf16.mxu1 %vm5773_vm15, %v6908_v7 }
 0x581   : > { %v6519_v32 = vpop.permute.xlu0 %6518 }
 0x582   : > { %6561 = vst.msk [vmem:[#allocation7 + $0x60] sm:$0xff] %vm6554_vm9, %v6519_v32  ;;  %6397 = vrot.lane.b32.xlu1 %v10327_v3, %s10662_s8 }
 0x583   : > { %6526 = vrot.lane.b32.xlu0 %v10318_v33, %s10680_s17 }
 0x58c   : > { %v6649_v40 = vpop.permute.xlu1 %6648 }
 0x58d   : > { %v6778_v21 = vpop.permute.xlu0 %6777  ;;  %6691 = vst.msk [vmem:[#allocation7 + $0x60] sm:$0xff] %vm6684_vm3, %v6649_v40 }
 0x58e   : > { %6820 = vst.msk [vmem:[#allocation7 + $0x60] sm:$0xff] %vm6813_vm4, %v6778_v21 }
 0x590   : > { %v6005_v17 = vpop.permute.xlu1 %6004 }
 0x591   : > { %v6134_v45 = vpop.permute.xlu0 %6133  ;;  %6046 = vst.msk [vmem:[#allocation7 + $0x70] sm:$0xff] %vm6038_vm6, %v6005_v17 }
 0x592   : > { %6175 = vst.msk [vmem:[#allocation7 + $0x70] sm:$0xff] %vm6167_vm7, %v6134_v45 }
 0x594   : > { %v6263_v14 = vpop.permute.xlu1 %6262 }
 0x595   : > { %v6392_v61 = vpop.permute.xlu0 %6391  ;;  %6304 = vst.msk [vmem:[#allocation7 + $0x70] sm:$0xff] %vm6296_vm8, %v6263_v14  ;;  %v6907_v0 = vld [vmem:[#allocation7 + $0x60] sm:$0xff] }
 0x596   : > { %6433 = vst.msk [vmem:[#allocation7 + $0x70] sm:$0xff] %vm6425_vm13, %v6392_v61  ;;  %7025 = vmatpush1.bf16.xpose.msra.mxu1 %v6907_v0 }
 0x597   : > { %7206 = vmatprep.subr.msk.bf16.mxu1 %vm5773_vm15, %v6910_v54 }
 0x598   : > { %v6521_v42 = vpop.permute.xlu1 %6520 }
 0x599   : > { %v6651_v56 = vpop.permute.xlu0 %6650  ;;  %6562 = vst.msk [vmem:[#allocation7 + $0x70] sm:$0xff] %vm6554_vm9, %v6521_v42 }
 0x59a   : > { %6692 = vst.msk [vmem:[#allocation7 + $0x70] sm:$0xff] %vm6684_vm3, %v6651_v56 }
 0x59c   : > { %v6780_v52 = vpop.permute.xlu1 %6779 }
 0x59d   : > { %v6007_v46 = vpop.permute.xlu0 %6006  ;;  %6821 = vst.msk [vmem:[#allocation7 + $0x70] sm:$0xff] %vm6813_vm4, %v6780_v52 }
 0x59e   : > { %6047 = vst.msk [vmem:[#allocation7 + $0x80] sm:$0xff] %vm6038_vm6, %v6007_v46 }
 0x5a0   : > { %v6136_v62 = vpop.permute.xlu1 %6135 }
 0x5a1   : > { %v6265_v4 = vpop.permute.xlu0 %6264  ;;  %6176 = vst.msk [vmem:[#allocation7 + $0x80] sm:$0xff] %vm6167_vm7, %v6136_v62  ;;  %v7403_v6 = vpop.f32.mrb[44].mxu1 }
 0x5a2   : > { %6305 = vst.msk [vmem:[#allocation7 + $0x80] sm:$0xff] %vm6296_vm8, %v6265_v4  ;;  %v7404_v53 = vpop.f32.mrb[45].mxu1 }
 0x5a3   : > { %v7405_v49 = vadd.f32 %v7404_v53, %v7403_v6  ;;  %v7406_v8 = vpop.f32.mrb[46].mxu1 }
 0x5a4   : > { %v6394_v25 = vpop.permute.xlu1 %6393  ;;  %v6909_v50 = vld [vmem:[#allocation7 + $0x70] sm:$0xff]  ;;  %v7407_v9 = vpop.f32.mrb[47].mxu1 }
 0x5a5   : > { %v6523_v20 = vpop.permute.xlu0 %6522  ;;  %6434 = vst.msk [vmem:[#allocation7 + $0x80] sm:$0xff] %vm6425_vm13, %v6394_v25  ;;  %7027 = vmatpush1.bf16.xpose.msra.mxu1 %v6909_v50  ;;  %v5471_v59 = vadd.f32 %v10259_v19, %v7405_v49  ;;  %v7408_v35 = vadd.f32 %v7407_v9, %v7406_v8  ;;  %v6914_v49 = vld [vmem:[#allocation7 + $0x98] sm:$0xff] }
 0x5a6   : > { %6563 = vst.msk [vmem:[#allocation7 + $0x80] sm:$0xff] %vm6554_vm9, %v6523_v20  ;;  %7207 = vmatprep.subr.msk.bf16.mxu1 %vm5773_vm15, %v6912_v57 }
 0x5a7   : > { %v5632_v13 = vadd.f32 %v10220_v11, %v5471_v59  ;;  %v5474_v23 = vadd.f32 %v10259_v19, %v7408_v35 }
 0x5a9   : > { %vm5692_vm11 = vcmp.ge.f32.partialorder %v5632_v13, 0.0  ;;  %v5731_v2 = vmul.f32 %v10270_v28, %v5632_v13  ;;  %v5635_v36 = vadd.f32 %v10224_v60, %v5474_v23 }
 0x5ab   : > { %v5763_v43 = vsel %vm5692_vm11, %v5632_v13, %v5731_v2  ;;  %vm5693_vm1 = vcmp.ge.f32.partialorder %v5635_v36, 0.0  ;;  %v5732_v31 = vmul.f32 %v10270_v28, %v5635_v36 }
 0x5ac   : > { %5852 = vst.msk [vmem:[#allocation6 + $0x121] sm:$0xff] %vm5773_vm15, %v5763_v43 }
 0x5ad   : > { %v7409_v51 = vpop.f32.mrb[48].mxu1  ;;  %v5764_v24 = vsel %vm5693_vm1, %v5635_v36, %v5732_v31 }
 0x5ae   : > { %v7410_v30 = vpop.f32.mrb[49].mxu1  ;;  %5853 = vst.msk [vmem:[#allocation6 + $0x129] sm:$0xff] %vm5773_vm15, %v5764_v24 }
 0x5af   : > { %v7411_v15 = vadd.f32 %v7410_v30, %v7409_v51  ;;  %v7412_v11 = vpop.f32.mrb[50].mxu1 }
 0x5b0   : > { %v7413_v26 = vpop.f32.mrb[51].mxu1 }
 0x5b1   : > { %v5479_v38 = vadd.f32 %v10259_v19, %v7411_v15  ;;  %v7414_v63 = vadd.f32 %v7413_v26, %v7412_v11 }
 0x5b3   : > { %v5640_v18 = vadd.f32 %v10307_v16, %v5479_v38  ;;  %v5482_v60 = vadd.f32 %v10259_v19, %v7414_v63  ;;  %v6592_v22 = vld [vmem:[#allocation6 + $0x120] sm:$0xff] }
 0x5b4   : > { %v6721_v7 = vld [vmem:[#allocation6 + $0x121] sm:$0xff] }
 0x5b5   : > { %vm5694_vm2 = vcmp.ge.f32.partialorder %v5640_v18, 0.0  ;;  %v5733_v37 = vmul.f32 %v10270_v28, %v5640_v18  ;;  %v5643_v58 = vadd.f32 %v10311_v12, %v5482_v60  ;;  %v6593_v29 = vld [vmem:[#allocation6 + $0x128] sm:$0xff] }
 0x5b6   : > { %v6722_v48 = vld [vmem:[#allocation6 + $0x129] sm:$0xff]  ;;  %v6614_v47 = vpack.c.bf16 %v6593_v29, %v6592_v22 }
 0x5b7   : > { %v6464_v34 = vld [vmem:[#allocation6 + $0x122] sm:$0xff]  ;;  %v5765_v10 = vsel %vm5694_vm2, %v5640_v18, %v5733_v37  ;;  %vm5695_vm10 = vcmp.ge.f32.partialorder %v5643_v58, 0.0  ;;  %v5734_v1 = vmul.f32 %v10270_v28, %v5643_v58  ;;  %v6465_v32 = vld [vmem:[#allocation6 + $0x12a] sm:$0xff]  ;;  %v6743_v16 = vpack.c.bf16 %v6722_v48, %v6721_v7 }
 0x5b8   : > { %5854 = vst.msk [vmem:[#allocation6 + $0x139] sm:$0xff] %vm5773_vm15, %v5765_v10  ;;  %v6485_v40 = vpack.c.bf16 %v6465_v32, %v6464_v34  ;;  %6656 = vrot.lane.b32.xlu1 %v6614_v47, %s7634_s29  ;;  %5922 = vst.msk [vmem:[#allocation7 + $0xc0] sm:$0xff] %vm5773_vm15, %v6614_v47 }
 0x5b9   : > { %v5766_v21 = vsel %vm5695_vm10, %v5643_v58, %v5734_v1  ;;  %6785 = vrot.lane.b32.xlu0 %v6743_v16, %s7635_s14 }
 0x5ba   : > { %5855 = vst.msk [vmem:[#allocation6 + $0x141] sm:$0xff] %vm5773_vm15, %v5766_v21  ;;  %6888 = vst.msk [vmem:[#allocation7 + $0xa8] sm:$0xff] %vm5773_vm15, %v6485_v40 }
 0x5bc   : > { %6012 = vrot.lane.b32.xlu1 %v10327_v3, %s10826_s18 }
 0x5bd   : > { %6141 = vrot.lane.b32.xlu0 %v10318_v33, %s7618_s24 }
 0x5bf   : > { %v6594_v12 = vld [vmem:[#allocation6 + $0x138] sm:$0xff] }
 0x5c0   : > { %6270 = vrot.lane.b32.xlu1 %v6614_v47, %s10600_s19  ;;  %v6723_v33 = vld [vmem:[#allocation6 + $0x139] sm:$0xff] }
 0x5c1   : > { %v6595_v17 = vld [vmem:[#allocation6 + $0x140] sm:$0xff]  ;;  %6399 = vrot.lane.b32.xlu0 %v6743_v16, %s10662_s8  ;;  %v6916_v37 = vld [vmem:[#allocation7 + $0xa8] sm:$0xff] }
 0x5c2   : > { %v6466_v45 = vld [vmem:[#allocation6 + $0x13a] sm:$0xff]  ;;  %v6615_v14 = vpack.c.bf16 %v6595_v17, %v6594_v12  ;;  %v6467_v61 = vld [vmem:[#allocation6 + $0x142] sm:$0xff] }
 0x5c3   : > { %v10394_v0 = vpack.c.bf16 %v6467_v61, %v6466_v45  ;;  %v6724_v54 = vld [vmem:[#allocation6 + $0x141] sm:$0xff] }
 0x5c4   : > { %5923 = vst.msk [vmem:[#allocation7 + $0xd0] sm:$0xff] %vm5773_vm15, %v6615_v14  ;;  %6528 = vrot.lane.b32.xlu1 %v6485_v40, %s10680_s17  ;;  %v10401_v3 = vpack.c.bf16 %v6724_v54, %v6723_v33 }
 0x5c5   : > { %6889 = vst.msk [vmem:[#allocation7 + $0xb8] sm:$0xff] %vm5773_vm15, %v10394_v0  ;;  %6658 = vrot.lane.b32.xlu0 %v6615_v14, %s7634_s29 }
 0x5c8   : > { %6787 = vrot.lane.b32.xlu1 %v10401_v3, %s7635_s14 }
 0x5c9   : > { %6014 = vrot.lane.b32.xlu0 %v6743_v16, %s10826_s18 }
 0x5cc   : > { %6143 = vrot.lane.b32.xlu1 %v6485_v40, %s7618_s24 }
 0x5cd   : > { %6272 = vrot.lane.b32.xlu0 %v6615_v14, %s10600_s19 }
 0x5d0   : > { %6401 = vrot.lane.b32.xlu1 %v10401_v3, %s10662_s8 }
 0x5d1   : > { %6530 = vrot.lane.b32.xlu0 %v10394_v0, %s10680_s17 }
 0x5dc   : > { %v6653_v42 = vpop.permute.xlu1 %6652 }
 0x5dd   : > { %v6782_v56 = vpop.permute.xlu0 %6781  ;;  %6693 = vst.msk [vmem:[#allocation7 + $0x80] sm:$0xff] %vm6684_vm3, %v6653_v42 }
 0x5de   : > { %6822 = vst.msk [vmem:[#allocation7 + $0x80] sm:$0xff] %vm6813_vm4, %v6782_v56 }
 0x5e0   : > { %v6009_v52 = vpop.permute.xlu1 %6008 }
 0x5e1   : > { %v6138_v46 = vpop.permute.xlu0 %6137  ;;  %6048 = vst.msk [vmem:[#allocation7 + $0x90] sm:$0xff] %vm6038_vm6, %v6009_v52 }
 0x5e2   : > { %6177 = vst.msk [vmem:[#allocation7 + $0x90] sm:$0xff] %vm6167_vm7, %v6138_v46 }
 0x5e4   : > { %v6267_v62 = vpop.permute.xlu1 %6266 }
 0x5e5   : > { %v6396_v4 = vpop.permute.xlu0 %6395  ;;  %6306 = vst.msk [vmem:[#allocation7 + $0x90] sm:$0xff] %vm6296_vm8, %v6267_v62  ;;  %v6911_v6 = vld [vmem:[#allocation7 + $0x80] sm:$0xff] }
 0x5e6   : > { %6435 = vst.msk [vmem:[#allocation7 + $0x90] sm:$0xff] %vm6425_vm13, %v6396_v4  ;;  %v7415_v53 = vpop.f32.mrb[52].mxu1  ;;  %7029 = vmatpush1.bf16.xpose.msra.mxu1 %v6911_v6 }
 0x5e7   : > { %v7416_v25 = vpop.f32.mrb[53].mxu1  ;;  %7208 = vmatprep.subr.msk.bf16.mxu1 %vm5773_vm15, %v6914_v49 }
 0x5e8   : > { %v7417_v20 = vadd.f32 %v7416_v25, %v7415_v53  ;;  %v7418_v50 = vpop.f32.mrb[54].mxu1  ;;  %v6525_v8 = vpop.permute.xlu1 %6524 }
 0x5e9   : > { %6564 = vst.msk [vmem:[#allocation7 + $0x90] sm:$0xff] %vm6554_vm9, %v6525_v8  ;;  %v6655_v57 = vpop.permute.xlu0 %6654  ;;  %v7419_v59 = vpop.f32.mrb[55].mxu1 }
 0x5ea   : > { %v5487_v9 = vadd.f32 %v10259_v19, %v7417_v20  ;;  %6694 = vst.msk [vmem:[#allocation7 + $0x90] sm:$0xff] %vm6684_vm3, %v6655_v57  ;;  %v7420_v35 = vadd.f32 %v7419_v59, %v7418_v50 }
 0x5ec   : > { %v5648_v13 = vadd.f32 %v10305_v55, %v5487_v9  ;;  %v5490_v23 = vadd.f32 %v10259_v19, %v7420_v35  ;;  %v6784_v2 = vpop.permute.xlu1 %6783 }
 0x5ed   : > { %6823 = vst.msk [vmem:[#allocation7 + $0x90] sm:$0xff] %vm6813_vm4, %v6784_v2  ;;  %v6011_v36 = vpop.permute.xlu0 %6010 }
 0x5ee   : > { %vm5696_vm5 = vcmp.ge.f32.partialorder %v5648_v13, 0.0  ;;  %v5735_v43 = vmul.f32 %v10270_v28, %v5648_v13  ;;  %v5651_v31 = vadd.f32 %v10309_v27, %v5490_v23  ;;  %6049 = vst.msk [vmem:[#allocation7 + $0xa0] sm:$0xff] %vm6038_vm6, %v6011_v36 }
 0x5f0   : > { %v5767_v51 = vsel %vm5696_vm5, %v5648_v13, %v5735_v43  ;;  %vm5697_vm0 = vcmp.ge.f32.partialorder %v5651_v31, 0.0  ;;  %v5736_v24 = vmul.f32 %v10270_v28, %v5651_v31  ;;  %v6140_v30 = vpop.permute.xlu1 %6139 }
 0x5f1   : > { %5856 = vst.msk [vmem:[#allocation6 + $0x151] sm:$0xff] %vm5773_vm15, %v5767_v51  ;;  %v6269_v55 = vpop.permute.xlu0 %6268  ;;  %v6860_v51 = vld [vmem:[#allocation6 + $0x19a] sm:$0xff] }
 0x5f2   : > { %6178 = vst.msk [vmem:[#allocation7 + $0xa0] sm:$0xff] %vm6167_vm7, %v6140_v30  ;;  %v5768_v15 = vsel %vm5697_vm0, %v5651_v31, %v5736_v24  ;;  %v7421_v11 = vpop.f32.mrb[56].mxu1  ;;  %v6861_v24 = vld [vmem:[#allocation6 + $0x1a2] sm:$0xff] }
 0x5f3   : > { %6307 = vst.msk [vmem:[#allocation7 + $0xa0] sm:$0xff] %vm6296_vm8, %v6269_v55  ;;  %v7422_v26 = vpop.f32.mrb[57].mxu1  ;;  %v6877_v30 = vpack.c.bf16 %v6861_v24, %v6860_v51  ;;  %v6602_v55 = vld [vmem:[#allocation6 + $0x198] sm:$0xff] }
 0x5f4   : > { %5857 = vst.msk [vmem:[#allocation6 + $0x159] sm:$0xff] %vm5773_vm15, %v5768_v15  ;;  %v6398_v27 = vpop.permute.xlu1 %6397  ;;  %v6913_v38 = vld [vmem:[#allocation7 + $0x90] sm:$0xff]  ;;  %v7423_v63 = vadd.f32 %v7422_v26, %v7421_v11  ;;  %v7424_v18 = vpop.f32.mrb[58].mxu1 }
 0x5f5   : > { %6436 = vst.msk [vmem:[#allocation7 + $0xa0] sm:$0xff] %vm6425_vm13, %v6398_v27  ;;  %v6527_v60 = vpop.permute.xlu0 %6526  ;;  %7031 = vmatpush1.bf16.xpose.msra.mxu1 %v6913_v38  ;;  %v7425_v58 = vpop.f32.mrb[59].mxu1  ;;  %v6603_v15 = vld [vmem:[#allocation6 + $0x1a0] sm:$0xff] }
 0x5f6   : > { %6565 = vst.msk [vmem:[#allocation7 + $0xa0] sm:$0xff] %vm6554_vm9, %v6527_v60  ;;  %7209 = vmatprep.subr.msk.bf16.mxu1 %vm5773_vm15, %v6916_v37  ;;  %v7426_v22 = vadd.f32 %v7425_v58, %v7424_v18  ;;  %v5495_v29 = vadd.f32 %v10259_v19, %v7423_v63  ;;  %v6619_v11 = vpack.c.bf16 %v6603_v15, %v6602_v55  ;;  %v6731_v26 = vld [vmem:[#allocation6 + $0x199] sm:$0xff]  ;;  %v6732_v27 = vld [vmem:[#allocation6 + $0x1a1] sm:$0xff]  ;;  %v6933_v63 = vlaneseq }
 0x5f7   : > { %6893 = vst.msk [vmem:[#allocation7 + $0xf8] sm:$0xff] %vm5773_vm15, %v6877_v30  ;;  %v10483_v38 = vld.sshfl [vmem:[%s10560_s7] sm:$0x11 pattern:$0x75316420]  ;;  %v6748_v18 = vpack.c.bf16 %v6732_v27, %v6731_v26 }
 0x5f8   : > { %v5656_v48 = vadd.f32 %v10331_v39, %v5495_v29  ;;  %v5498_v34 = vadd.f32 %v10259_v19, %v7426_v22  ;;  %v6596_v10 = vld [vmem:[#allocation6 + $0x150] sm:$0xff]  ;;  %v7636_v60 = vmov 1966171168   ;;  %v10488_v58 = vshrl.u32 %v6933_v63, 7 }
 0x5f9   : > { %v6725_v21 = vld [vmem:[#allocation6 + $0x151] sm:$0xff]  ;;  %v6947_v37 = vunpack.c.l.s4 %v7636_v60  ;;  %v6945_v22 = vcombine.high %v10483_v38, %v10483_v38 }
 0x5fa   : > { %vm5698_vm14 = vcmp.ge.f32.partialorder %v5656_v48, 0.0  ;;  %v5737_v32 = vmul.f32 %v10270_v28, %v5656_v48  ;;  %v5659_v16 = vadd.f32 %v10340_v41, %v5498_v34 }
 0x5fb   : > { %v6597_v1 = vld [vmem:[#allocation6 + $0x158] sm:$0xff]  ;;  %v6948_v29 = vunpack.c.0.s8 %v6947_v37 }
 0x5fc   : > { %v6726_v47 = vld [vmem:[#allocation6 + $0x159] sm:$0xff]  ;;  %v6616_v40 = vpack.c.bf16 %v6597_v1, %v6596_v10  ;;  %v5769_v14 = vsel %vm5698_vm14, %v5656_v48, %v5737_v32  ;;  %vm5699_vm12 = vcmp.ge.f32.partialorder %v5659_v16, 0.0  ;;  %v5738_v39 = vmul.f32 %v10270_v28, %v5659_v16  ;;  %v6927_v10 = vld [vmem:[#allocation8] sm:$0x1] }
 0x5fd   : > { %v6468_v7 = vld [vmem:[#allocation6 + $0x152] sm:$0xff]  ;;  %v6469_v12 = vld [vmem:[#allocation6 + $0x15a] sm:$0xff]  ;;  %v6745_v17 = vpack.c.bf16 %v6726_v47, %v6725_v21  ;;  %5858 = vst.msk [vmem:[#allocation6 + $0x169] sm:$0xff] %vm5773_vm15, %v5769_v14  ;;  %v10494_v48 = vsub.s32 %v6948_v29, %v10488_v58  ;;  %v7637_v1 = vmov 0  }
 0x5fe   : > { %v6487_v45 = vpack.c.bf16 %v6469_v12, %v6468_v7  ;;  %6660 = vrot.lane.b32.xlu1 %v6616_v40, %s7634_s29  ;;  %5924 = vst.msk [vmem:[#allocation7 + $0xe0] sm:$0xff] %vm5773_vm15, %v6616_v40  ;;  %v5770_v41 = vsel %vm5699_vm12, %v5659_v16, %v5738_v39  ;;  %v7427_v61 = vpop.f32.mrb[60].mxu1  ;;  %7570 = vset.pattern.permute.xlu0 %v7637_v1 }
 0x5ff   : > { %6789 = vrot.lane.b32.xlu0 %v6745_v17, %s7635_s14  ;;  %5859 = vst.msk [vmem:[#allocation6 + $0x171] sm:$0xff] %vm5773_vm15, %v5770_v41  ;;  %v7428_v54 = vpop.f32.mrb[61].mxu1  ;;  %v6959_v34 = vrot.slane %v6945_v22, %v10494_v48  ;;  %v6952_v15 = vrot.slane %v10483_v38, %v10494_v48 }
 0x600   : > { %6890 = vst.msk [vmem:[#allocation7 + $0xc8] sm:$0xff] %vm5773_vm15, %v6487_v45  ;;  %v7429_v33 = vadd.f32 %v7428_v54, %v7427_v61  ;;  %v7430_v42 = vpop.f32.mrb[62].mxu1 }
 0x601   : > { %v7431_v56 = vpop.f32.mrb[63].mxu1  ;;  %7215 = vmatprep.mubr.msk.bf16.mxu1 %vm5773_vm15, %v6959_v34 }
 0x602   : > { %6016 = vrot.lane.b32.xlu1 %v10401_v3, %s10826_s18  ;;  %v5503_v52 = vadd.f32 %v10259_v19, %v7429_v33  ;;  %v7432_v46 = vadd.f32 %v7431_v56, %v7430_v42 }
 0x603   : > { %6145 = vrot.lane.b32.xlu0 %v10394_v0, %s7618_s24 }
 0x604   : > { %v5664_v62 = vadd.f32 %v10329_v44, %v5503_v52  ;;  %v5506_v4 = vadd.f32 %v10259_v19, %v7432_v46  ;;  %v6598_v53 = vld [vmem:[#allocation6 + $0x168] sm:$0xff] }
 0x605   : > { %v6727_v57 = vld [vmem:[#allocation6 + $0x169] sm:$0xff] }
 0x606   : > { %6274 = vrot.lane.b32.xlu1 %v6616_v40, %s10600_s19  ;;  %vm5700_vm11 = vcmp.ge.f32.partialorder %v5664_v62, 0.0  ;;  %v5739_v6 = vmul.f32 %v10270_v28, %v5664_v62  ;;  %v5667_v3 = vadd.f32 %v10338_v5, %v5506_v4  ;;  %v6599_v49 = vld [vmem:[#allocation6 + $0x170] sm:$0xff] }
 0x607   : > { %6403 = vrot.lane.b32.xlu0 %v6745_v17, %s10662_s8  ;;  %v6470_v25 = vld [vmem:[#allocation6 + $0x16a] sm:$0xff]  ;;  %v6617_v0 = vpack.c.bf16 %v6599_v49, %v6598_v53  ;;  %v6471_v50 = vld [vmem:[#allocation6 + $0x172] sm:$0xff] }
 0x608   : > { %v6728_v20 = vld [vmem:[#allocation6 + $0x171] sm:$0xff]  ;;  %v5771_v8 = vsel %vm5700_vm11, %v5664_v62, %v5739_v6  ;;  %vm5701_vm1 = vcmp.ge.f32.partialorder %v5667_v3, 0.0  ;;  %v5740_v44 = vmul.f32 %v10270_v28, %v5667_v3  ;;  %v6488_v19 = vpack.c.bf16 %v6471_v50, %v6470_v25 }
 0x609   : > { %5860 = vst.msk [vmem:[#allocation6 + $0x181] sm:$0xff] %vm5773_vm15, %v5771_v8  ;;  %5925 = vst.msk [vmem:[#allocation7 + $0xf0] sm:$0xff] %vm5773_vm15, %v6617_v0  ;;  %v6746_v59 = vpack.c.bf16 %v6728_v20, %v6727_v57  ;;  %v6920_v52 = vld [vmem:[#allocation7 + $0xc8] sm:$0xff] }
 0x60a   : > { %6532 = vrot.lane.b32.xlu1 %v6487_v45, %s10680_s17  ;;  %v5772_v5 = vsel %vm5701_vm1, %v5667_v3, %v5740_v44  ;;  %6891 = vst.msk [vmem:[#allocation7 + $0xd8] sm:$0xff] %vm5773_vm15, %v6488_v19 }
 0x60b   : > { %6662 = vrot.lane.b32.xlu0 %v6617_v0, %s7634_s29  ;;  %5861 = vst.msk [vmem:[#allocation6 + $0x189] sm:$0xff] %vm5773_vm15, %v5772_v5 }
 0x60e   : > { %6791 = vrot.lane.b32.xlu1 %v6746_v59, %s7635_s14 }
 0x60f   : > { %6018 = vrot.lane.b32.xlu0 %v6745_v17, %s10826_s18  ;;  %v6918_v17 = vld [vmem:[#allocation7 + $0xb8] sm:$0xff] }
 0x610   : > { %v6600_v2 = vld [vmem:[#allocation6 + $0x180] sm:$0xff] }
 0x611   : > { %v6729_v43 = vld [vmem:[#allocation6 + $0x181] sm:$0xff] }
 0x612   : > { %6147 = vrot.lane.b32.xlu1 %v6487_v45, %s7618_s24  ;;  %v6472_v28 = vld [vmem:[#allocation6 + $0x182] sm:$0xff]  ;;  %v6473_v35 = vld [vmem:[#allocation6 + $0x18a] sm:$0xff] }
 0x613   : > { %6276 = vrot.lane.b32.xlu0 %v6617_v0, %s10600_s19  ;;  %v6601_v9 = vld [vmem:[#allocation6 + $0x188] sm:$0xff]  ;;  %v6489_v23 = vpack.c.bf16 %v6473_v35, %v6472_v28 }
 0x614   : > { %v6730_v13 = vld [vmem:[#allocation6 + $0x189] sm:$0xff]  ;;  %v6618_v36 = vpack.c.bf16 %v6601_v9, %v6600_v2 }
 0x615   : > { %6892 = vst.msk [vmem:[#allocation7 + $0xe8] sm:$0xff] %vm5773_vm15, %v6489_v23  ;;  %v6747_v31 = vpack.c.bf16 %v6730_v13, %v6729_v43  ;;  %v6922_v25 = vld [vmem:[#allocation7 + $0xd8] sm:$0xff] }
 0x616   : > { %6405 = vrot.lane.b32.xlu1 %v6746_v59, %s10662_s8 }
 0x617   : > { %6534 = vrot.lane.b32.xlu0 %v6488_v19, %s10680_s17 }
 0x61a   : > { %6664 = vrot.lane.b32.xlu1 %v6618_v36, %s7634_s29 }
 0x61b   : > { %6793 = vrot.lane.b32.xlu0 %v6747_v31, %s7635_s14 }
 0x61c   : > { %v6924_v28 = vld [vmem:[#allocation7 + $0xe8] sm:$0xff] }
 0x61e   : > { %6020 = vrot.lane.b32.xlu1 %v6746_v59, %s10826_s18 }
 0x61f   : > { %6149 = vrot.lane.b32.xlu0 %v6488_v19, %s7618_s24  ;;  %s7136_s24 = sshll.u32 %s10828_s12, 1 }
 0x622   : > { %6278 = vrot.lane.b32.xlu1 %v6618_v36, %s10600_s19  ;;  %v6926_v36 = vld [vmem:[#allocation7 + $0xf8] sm:$0xff] }
 0x623   : > { %6407 = vrot.lane.b32.xlu0 %v6747_v31, %s10662_s8  ;;  %s332_s8 = scalar_lea.vmem %s10562_s9, %s7136_s24 }
 0x626   : > { %6536 = vrot.lane.b32.xlu1 %v6489_v23, %s10680_s17 }
 0x627   : > { %6666 = vrot.lane.b32.xlu0 %v6619_v11, %s7634_s29  ;;  %v6935_v11 = vsub.s32 0, %v10488_v58 }
 0x62a   : > { %6795 = vrot.lane.b32.xlu1 %v6748_v18, %s7635_s14  ;;  %v6657_v47 = vpop.permute.xlu1 %6656 }
 0x62b   : > { %6930 = vperm.xlu0 %7570, %v6927_v10   ;;  %6695 = vst.msk [vmem:[#allocation7 + $0xa0] sm:$0xff] %vm6684_vm3, %v6657_v47  ;;  %v6786_v7 = vpop.permute.xlu0 %6785 }
 0x62c   : > { %6824 = vst.msk [vmem:[#allocation7 + $0xa0] sm:$0xff] %vm6813_vm4, %v6786_v7 }
 0x62e   : > { %v6013_v32 = vpop.permute.xlu1 %6012 }
 0x62f   : > { %6050 = vst.msk [vmem:[#allocation7 + $0xb0] sm:$0xff] %vm6038_vm6, %v6013_v32  ;;  %v6142_v16 = vpop.permute.xlu0 %6141 }
 0x630   : > { %6179 = vst.msk [vmem:[#allocation7 + $0xb0] sm:$0xff] %vm6167_vm7, %v6142_v16 }
 0x632   : > { %v6271_v40 = vpop.permute.xlu1 %6270 }
 0x633   : > { %6308 = vst.msk [vmem:[#allocation7 + $0xb0] sm:$0xff] %vm6296_vm8, %v6271_v40  ;;  %v6400_v21 = vpop.permute.xlu0 %6399  ;;  %v6915_v12 = vld [vmem:[#allocation7 + $0xa0] sm:$0xff] }
 0x634   : > { %6437 = vst.msk [vmem:[#allocation7 + $0xb0] sm:$0xff] %vm6425_vm13, %v6400_v21  ;;  %7033 = vmatpush1.bf16.xpose.msra.mxu1 %v6915_v12 }
 0x635   : > { %7210 = vmatprep.subr.msk.bf16.mxu1 %vm5773_vm15, %v6918_v17 }
 0x636   : > { %v6529_v45 = vpop.permute.xlu1 %6528 }
 0x637   : > { %6566 = vst.msk [vmem:[#allocation7 + $0xb0] sm:$0xff] %vm6554_vm9, %v6529_v45  ;;  %v6659_v14 = vpop.permute.xlu0 %6658 }
 0x638   : > { %6696 = vst.msk [vmem:[#allocation7 + $0xb0] sm:$0xff] %vm6684_vm3, %v6659_v14 }
 0x63a   : > { %v6788_v39 = vpop.permute.xlu1 %6787 }
 0x63b   : > { %6825 = vst.msk [vmem:[#allocation7 + $0xb0] sm:$0xff] %vm6813_vm4, %v6788_v39  ;;  %v6015_v41 = vpop.permute.xlu0 %6014 }
 0x63c   : > { %6051 = vst.msk [vmem:[#allocation7 + $0xc0] sm:$0xff] %vm6038_vm6, %v6015_v41 }
 0x63e   : > { %v6144_v61 = vpop.permute.xlu1 %6143 }
 0x63f   : > { %6180 = vst.msk [vmem:[#allocation7 + $0xc0] sm:$0xff] %vm6167_vm7, %v6144_v61  ;;  %v6273_v54 = vpop.permute.xlu0 %6272 }
 0x640   : > { %6309 = vst.msk [vmem:[#allocation7 + $0xc0] sm:$0xff] %vm6296_vm8, %v6273_v54 }
 0x642   : > { %v6402_v33 = vpop.permute.xlu1 %6401  ;;  %v6917_v42 = vld [vmem:[#allocation7 + $0xb0] sm:$0xff] }
 0x643   : > { %6438 = vst.msk [vmem:[#allocation7 + $0xc0] sm:$0xff] %vm6425_vm13, %v6402_v33  ;;  %v6531_v56 = vpop.permute.xlu0 %6530  ;;  %7035 = vmatpush1.bf16.xpose.msra.mxu1 %v6917_v42 }
 0x644   : > { %6567 = vst.msk [vmem:[#allocation7 + $0xc0] sm:$0xff] %vm6554_vm9, %v6531_v56  ;;  %7211 = vmatprep.subr.msk.bf16.mxu1 %vm5773_vm15, %v6920_v52 }
 0x670   : > { %v6661_v46 = vpop.permute.xlu1 %6660 }
 0x671   : > { %6697 = vst.msk [vmem:[#allocation7 + $0xc0] sm:$0xff] %vm6684_vm3, %v6661_v46  ;;  %v6790_v62 = vpop.permute.xlu0 %6789 }
 0x672   : > { %6826 = vst.msk [vmem:[#allocation7 + $0xc0] sm:$0xff] %vm6813_vm4, %v6790_v62 }
 0x674   : > { %v6017_v4 = vpop.permute.xlu1 %6016 }
 0x675   : > { %6052 = vst.msk [vmem:[#allocation7 + $0xd0] sm:$0xff] %vm6038_vm6, %v6017_v4  ;;  %v6146_v6 = vpop.permute.xlu0 %6145 }
 0x676   : > { %6181 = vst.msk [vmem:[#allocation7 + $0xd0] sm:$0xff] %vm6167_vm7, %v6146_v6 }
 0x678   : > { %v6275_v3 = vpop.permute.xlu1 %6274 }
 0x679   : > { %6310 = vst.msk [vmem:[#allocation7 + $0xd0] sm:$0xff] %vm6296_vm8, %v6275_v3  ;;  %v6404_v53 = vpop.permute.xlu0 %6403  ;;  %v6919_v49 = vld [vmem:[#allocation7 + $0xc0] sm:$0xff] }
 0x67a   : > { %6439 = vst.msk [vmem:[#allocation7 + $0xd0] sm:$0xff] %vm6425_vm13, %v6404_v53  ;;  %7037 = vmatpush1.bf16.xpose.msra.mxu1 %v6919_v49 }
 0x67b   : > { %7212 = vmatprep.subr.msk.bf16.mxu1 %vm5773_vm15, %v6922_v25 }
 0x67c   : > { %v6533_v0 = vpop.permute.xlu1 %6532 }
 0x67d   : > { %6568 = vst.msk [vmem:[#allocation7 + $0xd0] sm:$0xff] %vm6554_vm9, %v6533_v0  ;;  %v6663_v20 = vpop.permute.xlu0 %6662 }
 0x67e   : > { %6698 = vst.msk [vmem:[#allocation7 + $0xd0] sm:$0xff] %vm6684_vm3, %v6663_v20 }
 0x680   : > { %v6792_v50 = vpop.permute.xlu1 %6791 }
 0x681   : > { %6827 = vst.msk [vmem:[#allocation7 + $0xd0] sm:$0xff] %vm6813_vm4, %v6792_v50  ;;  %v6019_v8 = vpop.permute.xlu0 %6018 }
 0x682   : > { %6053 = vst.msk [vmem:[#allocation7 + $0xe0] sm:$0xff] %vm6038_vm6, %v6019_v8 }
 0x684   : > { %v6148_v44 = vpop.permute.xlu1 %6147 }
 0x685   : > { %6182 = vst.msk [vmem:[#allocation7 + $0xe0] sm:$0xff] %vm6167_vm7, %v6148_v44  ;;  %v6277_v19 = vpop.permute.xlu0 %6276 }
 0x686   : > { %6311 = vst.msk [vmem:[#allocation7 + $0xe0] sm:$0xff] %vm6296_vm8, %v6277_v19 }
 0x688   : > { %v6406_v57 = vpop.permute.xlu1 %6405  ;;  %v6921_v5 = vld [vmem:[#allocation7 + $0xd0] sm:$0xff] }
 0x689   : > { %6440 = vst.msk [vmem:[#allocation7 + $0xe0] sm:$0xff] %vm6425_vm13, %v6406_v57  ;;  %v6535_v59 = vpop.permute.xlu0 %6534  ;;  %7039 = vmatpush1.bf16.xpose.msra.mxu1 %v6921_v5 }
 0x68a   : > { %6569 = vst.msk [vmem:[#allocation7 + $0xe0] sm:$0xff] %vm6554_vm9, %v6535_v59  ;;  %7213 = vmatprep.subr.msk.bf16.mxu1 %vm5773_vm15, %v6924_v28 }
 0x68c   : > { %v6665_v9 = vpop.permute.xlu1 %6664 }
 0x68d   : > { %6699 = vst.msk [vmem:[#allocation7 + $0xe0] sm:$0xff] %vm6684_vm3, %v6665_v9  ;;  %v6794_v35 = vpop.permute.xlu0 %6793 }
 0x68e   : > { %6828 = vst.msk [vmem:[#allocation7 + $0xe0] sm:$0xff] %vm6813_vm4, %v6794_v35 }
 0x690   : > { %v6021_v13 = vpop.permute.xlu1 %6020 }
 0x691   : > { %6054 = vst.msk [vmem:[#allocation7 + $0xf0] sm:$0xff] %vm6038_vm6, %v6021_v13  ;;  %v6150_v23 = vpop.permute.xlu0 %6149 }
 0x692   : > { %6183 = vst.msk [vmem:[#allocation7 + $0xf0] sm:$0xff] %vm6167_vm7, %v6150_v23 }
 0x694   : > { %v6279_v2 = vpop.permute.xlu1 %6278 }
 0x695   : > { %6312 = vst.msk [vmem:[#allocation7 + $0xf0] sm:$0xff] %vm6296_vm8, %v6279_v2  ;;  %v6408_v43 = vpop.permute.xlu0 %6407  ;;  %v6923_v31 = vld [vmem:[#allocation7 + $0xe0] sm:$0xff] }
 0x696   : > { %6441 = vst.msk [vmem:[#allocation7 + $0xf0] sm:$0xff] %vm6425_vm13, %v6408_v43  ;;  %7041 = vmatpush1.bf16.xpose.msra.mxu1 %v6923_v31 }
 0x697   : > { %7214 = vmatprep.subr.msk.bf16.mxu1 %vm5773_vm15, %v6926_v36  ;;  %vm7073_vm15 = vcmp.lt.s32.totalorder %v6933_v63, 256 }
 0x698   : > { %v6537_v51 = vpop.permute.xlu1 %6536 }
 0x699   : > { %6570 = vst.msk [vmem:[#allocation7 + $0xf0] sm:$0xff] %vm6554_vm9, %v6537_v51  ;;  %v6667_v24 = vpop.permute.xlu0 %6666 }
 0x69a   : > { %6700 = vst.msk [vmem:[#allocation7 + $0xf0] sm:$0xff] %vm6684_vm3, %v6667_v24 }
 0x69c   : > { %v6796_v30 = vpop.permute.xlu1 %6795 }
 0x69d   : > { %6829 = vst.msk [vmem:[#allocation7 + $0xf0] sm:$0xff] %vm6813_vm4, %v6796_v30 }
 0x6a4   : > { %v6925_v55 = vld [vmem:[#allocation7 + $0xf0] sm:$0xff] }
 0x6a5   : > { %7043 = vmatpush1.bf16.xpose.msra.mxu1 %v6925_v55 }
 0x6aa   : > { %v6931_v26 = vpop.permute.xlu0 %6930 }
 0x6ab   : > { %v6936_v27 = vrot.slane %v6931_v26, %v6935_v11 }
 0x6ac   : > { %7045 = vmatmul.mubr.bf16.vlgmr.msra.gmra.mrb[64].mxu1 %v6952_v15 }
 0x77f   : > { %v7046_v18 = vpop.f32.mrb[64].mxu1 }
 0x780   : > { %v7047_v60 = vadd.f32 %v7046_v18, %v6936_v27  ;;  %v7048_v37 = vpop.f32.mrb[65].mxu1 }
 0x781   : > { %v7049_v22 = vadd.f32 %v7048_v37, %v6936_v27  ;;  %v7050_v29 = vpop.f32.mrb[66].mxu1 }
 0x782   : > { %v7051_v34 = vpop.f32.mrb[67].mxu1 }
 0x783   : > { %v7055_v10 = vcombine.low %v7047_v60, %v7049_v22 }
 0x785   : > { %v7062_v1 = vrot.slane %v7055_v10, %v10494_v48 }
 0x787   : > { %v7069_v38 = vrot.slane %v7062_v1, %v10494_v48 }
 0x789   : > { %7075 = vst.msk [vmem:[%s332_s8] sm:$0x3] %vm7073_vm15, %v7069_v38 }
 0x78a PF: > { %s21_s11 = sadd.s32 1, %s7608_s11  }
 0x78b   : > { %p18_p4 = scmp.ge.s32.totalorder %s21_s11, 4  }
 0x78d   :  { %20 = sbr.rel (!%p18_p4) target bundleno = 3 (0x3), region = 94 }

</bundles_post_ra>
